<compile_context>
chip_gen: v6e
topology: v6e:2x2x1
jax: 0.10.0
libtpu: 0.0.40
codegen_flags: <defaults>
</compile_context>

<pallas_src>
import math

import numpy as np
import jax
import jax.numpy as jnp
from jax.experimental import pallas as pl
from jax.experimental.pallas import tpu as pltpu


# ----------------------------------------------------------------------------
# Fused forward kernel (one grid step processes `ts` samples)
# ----------------------------------------------------------------------------
def _net_kernel(x_ref,
                band1_ref, c1b_ref, p1_ref,
                w2_ref, c2b_ref, p2_ref,
                w3_ref, c3b_ref, p3_ref,
                w4_ref, c4b_ref,
                f1w_ref, f1b_ref, f2w_ref, f2b_ref,
                f3w_ref, f3b_ref, f4w_ref, f4b_ref,
                o_ref):
    ts = x_ref.shape[0]

    def mm(a, b):
        return jnp.dot(a, b, preferred_element_type=jnp.float32)

    def elu(v):
        # nn.ELU(alpha=1.0): v if v > 0 else exp(v) - 1   (clamped exp arg)
        return jnp.where(v > 0.0, v, jnp.exp(jnp.minimum(v, 0.0)) - 1.0)

    # ---- conv1 (5x5): KH banded matmuls, batched over all ts samples -------
    oh1 = 24                                             # 28 - 5 + 1
    acc = mm(x_ref[:, 0:oh1, :].reshape(ts * oh1, 128), band1_ref[0])
    for i in range(1, 5):
        acc = acc + mm(x_ref[:, i:i + oh1, :].reshape(ts * oh1, 128),
                       band1_ref[i])
    y = elu(acc + c1b_ref[...])                          # (ts*24, 96)

    # ---- pool1: width max via batched 0/1 right-matmuls, height max on VPU -
    c = jnp.maximum(mm(y, p1_ref[0]), mm(y, p1_ref[1]))  # (ts*24, 48)
    c = c.reshape(ts, oh1, 48)
    # height-pool pairs of rows and flatten to (h, w, c) order -> (ts, 576)
    f = jnp.concatenate(
        [jnp.maximum(c[:, 2 * p, :], c[:, 2 * p + 1, :])
         for p in range(oh1 // 2)],
        axis=-1)                                         # (ts, 576)

    # ---- conv2..conv4 + pools as dense matmuls on flattened maps (M = ts) --
    f = elu(mm(f, w2_ref[...]) + c2b_ref[...])           # (ts, 800) = (10,10,8)
    f = jnp.maximum(jnp.maximum(mm(f, p2_ref[0]), mm(f, p2_ref[1])),
                    jnp.maximum(mm(f, p2_ref[2]), mm(f, p2_ref[3])))  # (ts, 200)
    f = elu(mm(f, w3_ref[...]) + c3b_ref[...])           # (ts, 256) = (4,4,16)
    f = jnp.maximum(jnp.maximum(mm(f, p3_ref[0]), mm(f, p3_ref[1])),
                    jnp.maximum(mm(f, p3_ref[2]), mm(f, p3_ref[3])))  # (ts, 64)
    f = elu(mm(f, w4_ref[...]) + c4b_ref[...])           # (ts, 32)

    # ---- FC stack (weights pre-transposed to (in, out)) --------------------
    f = elu(mm(f, f1w_ref[...]) + f1b_ref[...])          # (ts, 50)
    f = elu(mm(f, f2w_ref[...]) + f2b_ref[...])          # (ts, 50)
    f = elu(mm(f, f3w_ref[...]) + f3b_ref[...])          # (ts, 100)
    # fc4 zero-padded to 128 outputs -> lane-dense store
    o_ref[...] = mm(f, f4w_ref[...]) + f4b_ref[...]      # (ts, 128)


def _const_index_map(nd):
    return lambda i, _n=nd: (0,) * _n


# ----------------------------------------------------------------------------
# One-time parameter preparation
# ----------------------------------------------------------------------------
def prepare_params(p):
    prep = {}
    f32 = np.float32

    # ---- conv1: banded over kernel rows, K lane-padded 84 -> 128 -----------
    w1 = np.asarray(p["conv1_w"], f32)                    # (4, 3, 5, 5)
    b1 = np.asarray(p["conv1_b"], f32)
    cout1, cin1, kh1, kw1 = w1.shape
    W_IN = 28
    ow1 = W_IN - kw1 + 1                                  # 24
    band = np.zeros((kh1, W_IN * cin1, ow1 * cout1), f32)
    for i in range(kh1):
        for j in range(kw1):
            blk = w1[:, :, i, j].T                        # (cin, cout)
            for o in range(ow1):
                band[i, (o + j) * cin1:(o + j + 1) * cin1,
                        o * cout1:(o + 1) * cout1] = blk
    band_pad = np.zeros((kh1, 128, ow1 * cout1), f32)
    band_pad[:, :W_IN * cin1, :] = band
    prep["conv1_band"] = jnp.asarray(band_pad)            # (5, 128, 96)
    prep["conv1_bias"] = jnp.asarray(np.tile(b1, ow1).reshape(1, -1))

    # ---- pool1 width selectors: (24*4=96) -> (12*4=48), even/odd column ----
    sel1 = np.zeros((2, ow1 * cout1, (ow1 // 2) * cout1), f32)
    for par in range(2):
        for q in range(ow1 // 2):
            for ch in range(cout1):
                sel1[par, (2 * q + par) * cout1 + ch, q * cout1 + ch] = 1.0
    prep["pool1_sel"] = jnp.asarray(sel1)                  # (2, 96, 48)

    # ---- dense (implicit im2col) conv matrices on (h, w, c) flattened maps -
    def conv_matrix(w, H, W):
        co, ci, kh, kw = w.shape
        OH, OW = H - kh + 1, W - kw + 1
        m = np.zeros((H * W * ci, OH * OW * co), f32)
        for oh in range(OH):
            for owx in range(OW):
                c0 = (oh * OW + owx) * co
                for i in range(kh):
                    for j in range(kw):
                        r0 = ((oh + i) * W + (owx + j)) * ci
                        m[r0:r0 + ci, c0:c0 + co] = w[:, :, i, j].T
        return m, OH, OW, co

    def pool_matrices(H, W, C):
        OH, OW = H // 2, W // 2
        s = np.zeros((4, H * W * C, OH * OW * C), f32)
        k = 0
        for dy in range(2):
            for dx in range(2):
                for ph in range(OH):
                    for pw in range(OW):
                        for ch in range(C):
                            s[k, ((2 * ph + dy) * W + (2 * pw + dx)) * C + ch,
                                 (ph * OW + pw) * C + ch] = 1.0
                k += 1
        return s

    w2 = np.asarray(p["conv2_w"], f32); b2 = np.asarray(p["conv2_b"], f32)
    m2, OH2, OW2, co2 = conv_matrix(w2, 12, 12)           # (576, 800)
    prep["conv2_mat"] = jnp.asarray(m2)
    prep["conv2_bias"] = jnp.asarray(np.tile(b2, OH2 * OW2).reshape(1, -1))
    prep["pool2_sel"] = jnp.asarray(pool_matrices(OH2, OW2, co2))   # (4,800,200)

    w3 = np.asarray(p["conv3_w"], f32); b3 = np.asarray(p["conv3_b"], f32)
    m3, OH3, OW3, co3 = conv_matrix(w3, 5, 5)             # (200, 256)
    prep["conv3_mat"] = jnp.asarray(m3)
    prep["conv3_bias"] = jnp.asarray(np.tile(b3, OH3 * OW3).reshape(1, -1))
    prep["pool3_sel"] = jnp.asarray(pool_matrices(OH3, OW3, co3))   # (4,256,64)

    w4 = np.asarray(p["conv4_w"], f32); b4 = np.asarray(p["conv4_b"], f32)
    m4, OH4, OW4, co4 = conv_matrix(w4, 2, 2)             # (64, 32)
    prep["conv4_mat"] = jnp.asarray(m4)
    prep["conv4_bias"] = jnp.asarray(np.tile(b4, OH4 * OW4).reshape(1, -1))

    # ---- FC stack: store (in, out); fc4 lane-padded to 128 outputs ---------
    for i in range(1, 4):
        prep[f"fc{i}_w"] = jnp.asarray(np.asarray(p[f"fc{i}_w"], f32).T)
        prep[f"fc{i}_b"] = jnp.asarray(
            np.asarray(p[f"fc{i}_b"], f32).reshape(1, -1))
    fc4w = np.zeros((100, 128), f32)
    fc4w[:, :4] = np.asarray(p["fc4_w"], f32).T
    fc4b = np.zeros((1, 128), f32)
    fc4b[0, :4] = np.asarray(p["fc4_b"], f32)
    prep["fc4_w"] = jnp.asarray(fc4w)
    prep["fc4_b"] = jnp.asarray(fc4b)
    return prep


# ----------------------------------------------------------------------------
# Forward pass (single fused pallas_call)
# ----------------------------------------------------------------------------
def _choose_tile(B):
    # Big tiles (MXU M-fill), >=2 grid steps when the batch allows (megacore),
    # never below 8 sublanes; small batches are padded, not shrunk.
    if B >= 256:
        return 128
    return min(128, max(8, (((B + 1) // 2) + 7) // 8 * 8))


def net_forward(prep, x_nchw):
    B, C, H, W = x_nchw.shape                             # (B, 3, 28, 28)
    x = jnp.transpose(x_nchw.astype(jnp.float32), (0, 2, 3, 1)).reshape(B, H, W * C)
    x = jnp.pad(x, ((0, 0), (0, 0), (0, 128 - W * C)))    # lane-pad 84 -> 128

    ts = _choose_tile(B)
    g = -(-B // ts)
    Bp = g * ts
    if Bp != B:
        x = jnp.pad(x, ((0, Bp - B), (0, 0), (0, 0)))

    const_names = ["conv1_band", "conv1_bias", "pool1_sel",
                   "conv2_mat", "conv2_bias", "pool2_sel",
                   "conv3_mat", "conv3_bias", "pool3_sel",
                   "conv4_mat", "conv4_bias",
                   "fc1_w", "fc1_b", "fc2_w", "fc2_b",
                   "fc3_w", "fc3_b", "fc4_w", "fc4_b"]
    consts = [prep[n] for n in const_names]

    in_specs = [pl.BlockSpec((ts, H, 128), lambda i: (i, 0, 0))]
    for a in consts:
        in_specs.append(pl.BlockSpec(a.shape, _const_index_map(a.ndim)))

    out = pl.pallas_call(
        _net_kernel,
        out_shape=jax.ShapeDtypeStruct((Bp, 128), jnp.float32),
        grid=(g,),
        in_specs=in_specs,
        out_specs=pl.BlockSpec((ts, 128), lambda i: (i, 0)),
        compiler_params=pltpu.CompilerParams(
            dimension_semantics=("parallel",),
            vmem_limit_bytes=48 * 1024 * 1024),
    )(x, *consts)
    return out[:B, :4]


# ----------------------------------------------------------------------------
# Deterministic PyTorch-style parameter init
# ----------------------------------------------------------------------------
def init_params(key):
    def uniform(k, shape, fan_in):
        bound = 1.0 / math.sqrt(fan_in)
        return jax.random.uniform(k, shape, jnp.float32, -bound, bound)

    ks = jax.random.split(key, 16)
    p = {}
    p["conv1_w"] = uniform(ks[0], (4, 3, 5, 5), 3 * 5 * 5)
    p["conv1_b"] = uniform(ks[1], (4,), 3 * 5 * 5)
    p["conv2_w"] = uniform(ks[2], (8, 4, 3, 3), 4 * 3 * 3)
    p["conv2_b"] = uniform(ks[3], (8,), 4 * 3 * 3)
    p["conv3_w"] = uniform(ks[4], (16, 8, 2, 2), 8 * 2 * 2)
    p["conv3_b"] = uniform(ks[5], (16,), 8 * 2 * 2)
    p["conv4_w"] = uniform(ks[6], (32, 16, 2, 2), 16 * 2 * 2)
    p["conv4_b"] = uniform(ks[7], (32,), 16 * 2 * 2)
    p["fc1_w"] = uniform(ks[8], (50, 32), 32)
    p["fc1_b"] = uniform(ks[9], (50,), 32)
    p["fc2_w"] = uniform(ks[10], (50, 50), 50)
    p["fc2_b"] = uniform(ks[11], (50,), 50)
    p["fc3_w"] = uniform(ks[12], (100, 50), 50)
    p["fc3_b"] = uniform(ks[13], (100,), 50)
    p["fc4_w"] = uniform(ks[14], (4, 100), 100)
    p["fc4_b"] = uniform(ks[15], (4,), 100)
    return p


# ----------------------------------------------------------------------------
# Pure-JAX reference (correctness check for the fused kernel)
# ----------------------------------------------------------------------------
def reference_forward(params, x):
    hi = jax.lax.Precision.HIGHEST
    x = x.astype(jnp.float32)

    def elu(v):
        return jnp.where(v > 0.0, v, jnp.exp(jnp.minimum(v, 0.0)) - 1.0)

    def conv(v, w, b):
        y = jax.lax.conv_general_dilated(
            v, w, (1, 1), "VALID",
            dimension_numbers=("NCHW", "OIHW", "NCHW"), precision=hi)
        return y + b.reshape(1, -1, 1, 1)

    def pool(v):
        return jax.lax.reduce_window(v, -jnp.inf, jax.lax.max,
                                     (1, 1, 2, 2), (1, 1, 2, 2), "VALID")

    v = pool(elu(conv(x, params["conv1_w"], params["conv1_b"])))
    v = pool(elu(conv(v, params["conv2_w"], params["conv2_b"])))
    v = pool(elu(conv(v, params["conv3_w"], params["conv3_b"])))
    v = elu(conv(v, params["conv4_w"], params["conv4_b"]))
    v = v.reshape(v.shape[0], -1)
    for i in (1, 2, 3):
        v = elu(jnp.dot(v, params[f"fc{i}_w"].T, precision=hi) + params[f"fc{i}_b"])
    return jnp.dot(v, params["fc4_w"].T, precision=hi) + params["fc4_b"]


if __name__ == "__main__":
    key = jax.random.PRNGKey(0)
    k_param, k_in1, k_in2 = jax.random.split(key, 3)
    params = init_params(k_param)
    prep = prepare_params(params)
    fwd = jax.jit(net_forward)

    # Input must be 28x28 so conv4 output is 1x1 and fc1 sees 32 features.
    x_small = jax.random.normal(k_in1, (2, 3, 28, 28), dtype=jnp.float32)
    out_small = jax.block_until_ready(fwd(prep, x_small))
    assert out_small.shape == (2, 4), out_small.shape
    err_small = float(jnp.max(jnp.abs(out_small - reference_forward(params, x_small))))
    assert err_small < 2e-2, f"max abs error vs reference (B=2): {err_small}"

    # A larger batch exercises the multi-step (parallel) grid path.
    x_big = jax.random.normal(k_in2, (96, 3, 28, 28), dtype=jnp.float32)
    out_big = jax.block_until_ready(fwd(prep, x_big))
    assert out_big.shape == (96, 4), out_big.shape
    err_big = float(jnp.max(jnp.abs(out_big - reference_forward(params, x_big))))
    assert err_big < 2e-2, f"max abs error vs reference (B=96): {err_big}"

    print("KERNEL_OK")
</pallas_src>

<mosaic_0001>
module attributes {stable_mosaic.version = 11 : i64} {
  func.func @_net_kernel(%arg0: i32, %arg1: memref<8x28x128xf32, #tpu.memory_space<vmem>>, %arg2: memref<5x128x96xf32, #tpu.memory_space<vmem>>, %arg3: memref<1x96xf32, #tpu.memory_space<vmem>>, %arg4: memref<2x96x48xf32, #tpu.memory_space<vmem>>, %arg5: memref<576x800xf32, #tpu.memory_space<vmem>>, %arg6: memref<1x800xf32, #tpu.memory_space<vmem>>, %arg7: memref<4x800x200xf32, #tpu.memory_space<vmem>>, %arg8: memref<200x256xf32, #tpu.memory_space<vmem>>, %arg9: memref<1x256xf32, #tpu.memory_space<vmem>>, %arg10: memref<4x256x64xf32, #tpu.memory_space<vmem>>, %arg11: memref<64x32xf32, #tpu.memory_space<vmem>>, %arg12: memref<1x32xf32, #tpu.memory_space<vmem>>, %arg13: memref<32x50xf32, #tpu.memory_space<vmem>>, %arg14: memref<1x50xf32, #tpu.memory_space<vmem>>, %arg15: memref<50x50xf32, #tpu.memory_space<vmem>>, %arg16: memref<1x50xf32, #tpu.memory_space<vmem>>, %arg17: memref<50x100xf32, #tpu.memory_space<vmem>>, %arg18: memref<1x100xf32, #tpu.memory_space<vmem>>, %arg19: memref<100x128xf32, #tpu.memory_space<vmem>>, %arg20: memref<1x128xf32, #tpu.memory_space<vmem>>, %arg21: memref<8x128xf32, #tpu.memory_space<vmem>>) attributes {dimension_semantics = [#tpu.dimension_semantics<parallel>], iteration_bounds = array<i64: 1>, scalar_prefetch = 0 : i64, scratch_operands = 0 : i64, tpu.core_type = #tpu.core_type<tc>, window_params = [{transform_indices = @transform_0, window_bounds = array<i64: 8, 28, 128>}, {pipeline_mode = #tpu.pipeline_mode<synchronous>, transform_indices = @transform_1, window_bounds = array<i64: 5, 128, 96>}, {pipeline_mode = #tpu.pipeline_mode<synchronous>, transform_indices = @transform_2, window_bounds = array<i64: 1, 96>}, {pipeline_mode = #tpu.pipeline_mode<synchronous>, transform_indices = @transform_3, window_bounds = array<i64: 2, 96, 48>}, {pipeline_mode = #tpu.pipeline_mode<synchronous>, transform_indices = @transform_4, window_bounds = array<i64: 576, 800>}, {pipeline_mode = #tpu.pipeline_mode<synchronous>, transform_indices = @transform_5, window_bounds = array<i64: 1, 800>}, {pipeline_mode = #tpu.pipeline_mode<synchronous>, transform_indices = @transform_6, window_bounds = array<i64: 4, 800, 200>}, {pipeline_mode = #tpu.pipeline_mode<synchronous>, transform_indices = @transform_7, window_bounds = array<i64: 200, 256>}, {pipeline_mode = #tpu.pipeline_mode<synchronous>, transform_indices = @transform_8, window_bounds = array<i64: 1, 256>}, {pipeline_mode = #tpu.pipeline_mode<synchronous>, transform_indices = @transform_9, window_bounds = array<i64: 4, 256, 64>}, {pipeline_mode = #tpu.pipeline_mode<synchronous>, transform_indices = @transform_10, window_bounds = array<i64: 64, 32>}, {pipeline_mode = #tpu.pipeline_mode<synchronous>, transform_indices = @transform_11, window_bounds = array<i64: 1, 32>}, {pipeline_mode = #tpu.pipeline_mode<synchronous>, transform_indices = @transform_12, window_bounds = array<i64: 32, 50>}, {pipeline_mode = #tpu.pipeline_mode<synchronous>, transform_indices = @transform_13, window_bounds = array<i64: 1, 50>}, {pipeline_mode = #tpu.pipeline_mode<synchronous>, transform_indices = @transform_14, window_bounds = array<i64: 50, 50>}, {pipeline_mode = #tpu.pipeline_mode<synchronous>, transform_indices = @transform_15, window_bounds = array<i64: 1, 50>}, {pipeline_mode = #tpu.pipeline_mode<synchronous>, transform_indices = @transform_16, window_bounds = array<i64: 50, 100>}, {pipeline_mode = #tpu.pipeline_mode<synchronous>, transform_indices = @transform_17, window_bounds = array<i64: 1, 100>}, {pipeline_mode = #tpu.pipeline_mode<synchronous>, transform_indices = @transform_18, window_bounds = array<i64: 100, 128>}, {pipeline_mode = #tpu.pipeline_mode<synchronous>, transform_indices = @transform_19, window_bounds = array<i64: 1, 128>}, {transform_indices = @transform_20, window_bounds = array<i64: 8, 128>}]} {
    %c0 = arith.constant 0 : index
    %c0_0 = arith.constant 0 : index
    %c0_1 = arith.constant 0 : index
    %0 = vector.load %arg1[%c0, %c0_0, %c0_1] : memref<8x28x128xf32, #tpu.memory_space<vmem>>, vector<8x24x128xf32>
    %1 = vector.shape_cast %0 : vector<8x24x128xf32> to vector<192x128xf32>
    %c0_2 = arith.constant 0 : index
    %c0_3 = arith.constant 0 : index
    %c0_4 = arith.constant 0 : index
    %2 = vector.load %arg2[%c0_2, %c0_3, %c0_4] : memref<5x128x96xf32, #tpu.memory_space<vmem>>, vector<1x128x96xf32>
    %3 = vector.shape_cast %2 : vector<1x128x96xf32> to vector<128x96xf32>
    %cst = arith.constant dense<0.000000e+00> : vector<192x96xf32>
    %4 = tpu.matmul %1, %3, %cst {dimension_numbers = #tpu.dot_dimension_numbers<[1], [0], [0], [1], [0, 0, 1, 1], [], []>} : vector<192x128xf32>, vector<128x96xf32>, vector<192x96xf32> -> vector<192x96xf32>
    %c0_5 = arith.constant 0 : index
    %c1 = arith.constant 1 : index
    %c0_6 = arith.constant 0 : index
    %5 = vector.load %arg1[%c0_5, %c1, %c0_6] : memref<8x28x128xf32, #tpu.memory_space<vmem>>, vector<8x24x128xf32>
    %6 = vector.shape_cast %5 : vector<8x24x128xf32> to vector<192x128xf32>
    %c1_7 = arith.constant 1 : index
    %c0_8 = arith.constant 0 : index
    %c0_9 = arith.constant 0 : index
    %7 = vector.load %arg2[%c1_7, %c0_8, %c0_9] : memref<5x128x96xf32, #tpu.memory_space<vmem>>, vector<1x128x96xf32>
    %8 = vector.shape_cast %7 : vector<1x128x96xf32> to vector<128x96xf32>
    %cst_10 = arith.constant dense<0.000000e+00> : vector<192x96xf32>
    %9 = tpu.matmul %6, %8, %cst_10 {dimension_numbers = #tpu.dot_dimension_numbers<[1], [0], [0], [1], [0, 0, 1, 1], [], []>} : vector<192x128xf32>, vector<128x96xf32>, vector<192x96xf32> -> vector<192x96xf32>
    %10 = arith.addf %4, %9 : vector<192x96xf32>
    %c0_11 = arith.constant 0 : index
    %c2 = arith.constant 2 : index
    %c0_12 = arith.constant 0 : index
    %11 = vector.load %arg1[%c0_11, %c2, %c0_12] : memref<8x28x128xf32, #tpu.memory_space<vmem>>, vector<8x24x128xf32>
    %12 = vector.shape_cast %11 : vector<8x24x128xf32> to vector<192x128xf32>
    %c2_13 = arith.constant 2 : index
    %c0_14 = arith.constant 0 : index
    %c0_15 = arith.constant 0 : index
    %13 = vector.load %arg2[%c2_13, %c0_14, %c0_15] : memref<5x128x96xf32, #tpu.memory_space<vmem>>, vector<1x128x96xf32>
    %14 = vector.shape_cast %13 : vector<1x128x96xf32> to vector<128x96xf32>
    %cst_16 = arith.constant dense<0.000000e+00> : vector<192x96xf32>
    %15 = tpu.matmul %12, %14, %cst_16 {dimension_numbers = #tpu.dot_dimension_numbers<[1], [0], [0], [1], [0, 0, 1, 1], [], []>} : vector<192x128xf32>, vector<128x96xf32>, vector<192x96xf32> -> vector<192x96xf32>
    %16 = arith.addf %10, %15 : vector<192x96xf32>
    %c0_17 = arith.constant 0 : index
    %c3 = arith.constant 3 : index
    %c0_18 = arith.constant 0 : index
    %17 = vector.load %arg1[%c0_17, %c3, %c0_18] : memref<8x28x128xf32, #tpu.memory_space<vmem>>, vector<8x24x128xf32>
    %18 = vector.shape_cast %17 : vector<8x24x128xf32> to vector<192x128xf32>
    %c3_19 = arith.constant 3 : index
    %c0_20 = arith.constant 0 : index
    %c0_21 = arith.constant 0 : index
    %19 = vector.load %arg2[%c3_19, %c0_20, %c0_21] : memref<5x128x96xf32, #tpu.memory_space<vmem>>, vector<1x128x96xf32>
    %20 = vector.shape_cast %19 : vector<1x128x96xf32> to vector<128x96xf32>
    %cst_22 = arith.constant dense<0.000000e+00> : vector<192x96xf32>
    %21 = tpu.matmul %18, %20, %cst_22 {dimension_numbers = #tpu.dot_dimension_numbers<[1], [0], [0], [1], [0, 0, 1, 1], [], []>} : vector<192x128xf32>, vector<128x96xf32>, vector<192x96xf32> -> vector<192x96xf32>
    %22 = arith.addf %16, %21 : vector<192x96xf32>
    %c0_23 = arith.constant 0 : index
    %c4 = arith.constant 4 : index
    %c0_24 = arith.constant 0 : index
    %23 = vector.load %arg1[%c0_23, %c4, %c0_24] : memref<8x28x128xf32, #tpu.memory_space<vmem>>, vector<8x24x128xf32>
    %24 = vector.shape_cast %23 : vector<8x24x128xf32> to vector<192x128xf32>
    %c4_25 = arith.constant 4 : index
    %c0_26 = arith.constant 0 : index
    %c0_27 = arith.constant 0 : index
    %25 = vector.load %arg2[%c4_25, %c0_26, %c0_27] : memref<5x128x96xf32, #tpu.memory_space<vmem>>, vector<1x128x96xf32>
    %26 = vector.shape_cast %25 : vector<1x128x96xf32> to vector<128x96xf32>
    %cst_28 = arith.constant dense<0.000000e+00> : vector<192x96xf32>
    %27 = tpu.matmul %24, %26, %cst_28 {dimension_numbers = #tpu.dot_dimension_numbers<[1], [0], [0], [1], [0, 0, 1, 1], [], []>} : vector<192x128xf32>, vector<128x96xf32>, vector<192x96xf32> -> vector<192x96xf32>
    %28 = arith.addf %22, %27 : vector<192x96xf32>
    %c0_29 = arith.constant 0 : index
    %c0_30 = arith.constant 0 : index
    %29 = vector.load %arg3[%c0_29, %c0_30] : memref<1x96xf32, #tpu.memory_space<vmem>>, vector<1x96xf32>
    %30 = vector.broadcast %29 : vector<1x96xf32> to vector<192x96xf32>
    %31 = arith.addf %28, %30 : vector<192x96xf32>
    %cst_31 = arith.constant 0.000000e+00 : f32
    %32 = vector.broadcast %cst_31 : f32 to vector<192x96xf32>
    %33 = arith.cmpf ogt, %31, %32 : vector<192x96xf32>
    %cst_32 = arith.constant 0.000000e+00 : f32
    %34 = vector.broadcast %cst_32 : f32 to vector<192x96xf32>
    %35 = arith.minimumf %31, %34 : vector<192x96xf32>
    %36 = math.exp %35 : vector<192x96xf32>
    %cst_33 = arith.constant 1.000000e+00 : f32
    %37 = vector.broadcast %cst_33 : f32 to vector<192x96xf32>
    %38 = arith.subf %36, %37 : vector<192x96xf32>
    %39 = arith.select %33, %31, %38 : vector<192x96xi1>, vector<192x96xf32>
    %c0_34 = arith.constant 0 : index
    %c0_35 = arith.constant 0 : index
    %c0_36 = arith.constant 0 : index
    %40 = vector.load %arg4[%c0_34, %c0_35, %c0_36] : memref<2x96x48xf32, #tpu.memory_space<vmem>>, vector<1x96x48xf32>
    %41 = vector.shape_cast %40 : vector<1x96x48xf32> to vector<96x48xf32>
    %cst_37 = arith.constant dense<0.000000e+00> : vector<192x48xf32>
    %42 = tpu.matmul %39, %41, %cst_37 {dimension_numbers = #tpu.dot_dimension_numbers<[1], [0], [0], [1], [0, 0, 1, 1], [], []>} : vector<192x96xf32>, vector<96x48xf32>, vector<192x48xf32> -> vector<192x48xf32>
    %c1_38 = arith.constant 1 : index
    %c0_39 = arith.constant 0 : index
    %c0_40 = arith.constant 0 : index
    %43 = vector.load %arg4[%c1_38, %c0_39, %c0_40] : memref<2x96x48xf32, #tpu.memory_space<vmem>>, vector<1x96x48xf32>
    %44 = vector.shape_cast %43 : vector<1x96x48xf32> to vector<96x48xf32>
    %cst_41 = arith.constant dense<0.000000e+00> : vector<192x48xf32>
    %45 = tpu.matmul %39, %44, %cst_41 {dimension_numbers = #tpu.dot_dimension_numbers<[1], [0], [0], [1], [0, 0, 1, 1], [], []>} : vector<192x96xf32>, vector<96x48xf32>, vector<192x48xf32> -> vector<192x48xf32>
    %46 = arith.maximumf %42, %45 : vector<192x48xf32>
    %47 = vector.shape_cast %46 : vector<192x48xf32> to vector<8x24x48xf32>
    %48 = vector.extract_strided_slice %47 {offsets = [0, 0, 0], sizes = [8, 1, 48], strides = [1, 1, 1]} : vector<8x24x48xf32> to vector<8x1x48xf32>
    %49 = vector.shape_cast %48 : vector<8x1x48xf32> to vector<8x48xf32>
    %50 = vector.extract_strided_slice %47 {offsets = [0, 1, 0], sizes = [8, 1, 48], strides = [1, 1, 1]} : vector<8x24x48xf32> to vector<8x1x48xf32>
    %51 = vector.shape_cast %50 : vector<8x1x48xf32> to vector<8x48xf32>
    %52 = arith.maximumf %49, %51 : vector<8x48xf32>
    %53 = vector.extract_strided_slice %47 {offsets = [0, 2, 0], sizes = [8, 1, 48], strides = [1, 1, 1]} : vector<8x24x48xf32> to vector<8x1x48xf32>
    %54 = vector.shape_cast %53 : vector<8x1x48xf32> to vector<8x48xf32>
    %55 = vector.extract_strided_slice %47 {offsets = [0, 3, 0], sizes = [8, 1, 48], strides = [1, 1, 1]} : vector<8x24x48xf32> to vector<8x1x48xf32>
    %56 = vector.shape_cast %55 : vector<8x1x48xf32> to vector<8x48xf32>
    %57 = arith.maximumf %54, %56 : vector<8x48xf32>
    %58 = vector.extract_strided_slice %47 {offsets = [0, 4, 0], sizes = [8, 1, 48], strides = [1, 1, 1]} : vector<8x24x48xf32> to vector<8x1x48xf32>
    %59 = vector.shape_cast %58 : vector<8x1x48xf32> to vector<8x48xf32>
    %60 = vector.extract_strided_slice %47 {offsets = [0, 5, 0], sizes = [8, 1, 48], strides = [1, 1, 1]} : vector<8x24x48xf32> to vector<8x1x48xf32>
    %61 = vector.shape_cast %60 : vector<8x1x48xf32> to vector<8x48xf32>
    %62 = arith.maximumf %59, %61 : vector<8x48xf32>
    %63 = vector.extract_strided_slice %47 {offsets = [0, 6, 0], sizes = [8, 1, 48], strides = [1, 1, 1]} : vector<8x24x48xf32> to vector<8x1x48xf32>
    %64 = vector.shape_cast %63 : vector<8x1x48xf32> to vector<8x48xf32>
    %65 = vector.extract_strided_slice %47 {offsets = [0, 7, 0], sizes = [8, 1, 48], strides = [1, 1, 1]} : vector<8x24x48xf32> to vector<8x1x48xf32>
    %66 = vector.shape_cast %65 : vector<8x1x48xf32> to vector<8x48xf32>
    %67 = arith.maximumf %64, %66 : vector<8x48xf32>
    %68 = vector.extract_strided_slice %47 {offsets = [0, 8, 0], sizes = [8, 1, 48], strides = [1, 1, 1]} : vector<8x24x48xf32> to vector<8x1x48xf32>
    %69 = vector.shape_cast %68 : vector<8x1x48xf32> to vector<8x48xf32>
    %70 = vector.extract_strided_slice %47 {offsets = [0, 9, 0], sizes = [8, 1, 48], strides = [1, 1, 1]} : vector<8x24x48xf32> to vector<8x1x48xf32>
    %71 = vector.shape_cast %70 : vector<8x1x48xf32> to vector<8x48xf32>
    %72 = arith.maximumf %69, %71 : vector<8x48xf32>
    %73 = vector.extract_strided_slice %47 {offsets = [0, 10, 0], sizes = [8, 1, 48], strides = [1, 1, 1]} : vector<8x24x48xf32> to vector<8x1x48xf32>
    %74 = vector.shape_cast %73 : vector<8x1x48xf32> to vector<8x48xf32>
    %75 = vector.extract_strided_slice %47 {offsets = [0, 11, 0], sizes = [8, 1, 48], strides = [1, 1, 1]} : vector<8x24x48xf32> to vector<8x1x48xf32>
    %76 = vector.shape_cast %75 : vector<8x1x48xf32> to vector<8x48xf32>
    %77 = arith.maximumf %74, %76 : vector<8x48xf32>
    %78 = vector.extract_strided_slice %47 {offsets = [0, 12, 0], sizes = [8, 1, 48], strides = [1, 1, 1]} : vector<8x24x48xf32> to vector<8x1x48xf32>
    %79 = vector.shape_cast %78 : vector<8x1x48xf32> to vector<8x48xf32>
    %80 = vector.extract_strided_slice %47 {offsets = [0, 13, 0], sizes = [8, 1, 48], strides = [1, 1, 1]} : vector<8x24x48xf32> to vector<8x1x48xf32>
    %81 = vector.shape_cast %80 : vector<8x1x48xf32> to vector<8x48xf32>
    %82 = arith.maximumf %79, %81 : vector<8x48xf32>
    %83 = vector.extract_strided_slice %47 {offsets = [0, 14, 0], sizes = [8, 1, 48], strides = [1, 1, 1]} : vector<8x24x48xf32> to vector<8x1x48xf32>
    %84 = vector.shape_cast %83 : vector<8x1x48xf32> to vector<8x48xf32>
    %85 = vector.extract_strided_slice %47 {offsets = [0, 15, 0], sizes = [8, 1, 48], strides = [1, 1, 1]} : vector<8x24x48xf32> to vector<8x1x48xf32>
    %86 = vector.shape_cast %85 : vector<8x1x48xf32> to vector<8x48xf32>
    %87 = arith.maximumf %84, %86 : vector<8x48xf32>
    %88 = vector.extract_strided_slice %47 {offsets = [0, 16, 0], sizes = [8, 1, 48], strides = [1, 1, 1]} : vector<8x24x48xf32> to vector<8x1x48xf32>
    %89 = vector.shape_cast %88 : vector<8x1x48xf32> to vector<8x48xf32>
    %90 = vector.extract_strided_slice %47 {offsets = [0, 17, 0], sizes = [8, 1, 48], strides = [1, 1, 1]} : vector<8x24x48xf32> to vector<8x1x48xf32>
    %91 = vector.shape_cast %90 : vector<8x1x48xf32> to vector<8x48xf32>
    %92 = arith.maximumf %89, %91 : vector<8x48xf32>
    %93 = vector.extract_strided_slice %47 {offsets = [0, 18, 0], sizes = [8, 1, 48], strides = [1, 1, 1]} : vector<8x24x48xf32> to vector<8x1x48xf32>
    %94 = vector.shape_cast %93 : vector<8x1x48xf32> to vector<8x48xf32>
    %95 = vector.extract_strided_slice %47 {offsets = [0, 19, 0], sizes = [8, 1, 48], strides = [1, 1, 1]} : vector<8x24x48xf32> to vector<8x1x48xf32>
    %96 = vector.shape_cast %95 : vector<8x1x48xf32> to vector<8x48xf32>
    %97 = arith.maximumf %94, %96 : vector<8x48xf32>
    %98 = vector.extract_strided_slice %47 {offsets = [0, 20, 0], sizes = [8, 1, 48], strides = [1, 1, 1]} : vector<8x24x48xf32> to vector<8x1x48xf32>
    %99 = vector.shape_cast %98 : vector<8x1x48xf32> to vector<8x48xf32>
    %100 = vector.extract_strided_slice %47 {offsets = [0, 21, 0], sizes = [8, 1, 48], strides = [1, 1, 1]} : vector<8x24x48xf32> to vector<8x1x48xf32>
    %101 = vector.shape_cast %100 : vector<8x1x48xf32> to vector<8x48xf32>
    %102 = arith.maximumf %99, %101 : vector<8x48xf32>
    %103 = vector.extract_strided_slice %47 {offsets = [0, 22, 0], sizes = [8, 1, 48], strides = [1, 1, 1]} : vector<8x24x48xf32> to vector<8x1x48xf32>
    %104 = vector.shape_cast %103 : vector<8x1x48xf32> to vector<8x48xf32>
    %105 = vector.extract_strided_slice %47 {offsets = [0, 23, 0], sizes = [8, 1, 48], strides = [1, 1, 1]} : vector<8x24x48xf32> to vector<8x1x48xf32>
    %106 = vector.shape_cast %105 : vector<8x1x48xf32> to vector<8x48xf32>
    %107 = arith.maximumf %104, %106 : vector<8x48xf32>
    %108 = tpu.concatenate %52, %57, %62, %67, %72, %77, %82, %87, %92, %97, %102, %107 in 1 : vector<8x48xf32>, vector<8x48xf32>, vector<8x48xf32>, vector<8x48xf32>, vector<8x48xf32>, vector<8x48xf32>, vector<8x48xf32>, vector<8x48xf32>, vector<8x48xf32>, vector<8x48xf32>, vector<8x48xf32>, vector<8x48xf32> -> vector<8x576xf32>
    %c0_42 = arith.constant 0 : index
    %c0_43 = arith.constant 0 : index
    %109 = vector.load %arg5[%c0_42, %c0_43] : memref<576x800xf32, #tpu.memory_space<vmem>>, vector<576x800xf32>
    %cst_44 = arith.constant dense<0.000000e+00> : vector<8x800xf32>
    %110 = tpu.matmul %108, %109, %cst_44 {dimension_numbers = #tpu.dot_dimension_numbers<[1], [0], [0], [1], [0, 0, 1, 1], [], []>} : vector<8x576xf32>, vector<576x800xf32>, vector<8x800xf32> -> vector<8x800xf32>
    %c0_45 = arith.constant 0 : index
    %c0_46 = arith.constant 0 : index
    %111 = vector.load %arg6[%c0_45, %c0_46] : memref<1x800xf32, #tpu.memory_space<vmem>>, vector<1x800xf32>
    %112 = vector.broadcast %111 : vector<1x800xf32> to vector<8x800xf32>
    %113 = arith.addf %110, %112 : vector<8x800xf32>
    %cst_47 = arith.constant 0.000000e+00 : f32
    %114 = vector.broadcast %cst_47 : f32 to vector<8x800xf32>
    %115 = arith.cmpf ogt, %113, %114 : vector<8x800xf32>
    %cst_48 = arith.constant 0.000000e+00 : f32
    %116 = vector.broadcast %cst_48 : f32 to vector<8x800xf32>
    %117 = arith.minimumf %113, %116 : vector<8x800xf32>
    %118 = math.exp %117 : vector<8x800xf32>
    %cst_49 = arith.constant 1.000000e+00 : f32
    %119 = vector.broadcast %cst_49 : f32 to vector<8x800xf32>
    %120 = arith.subf %118, %119 : vector<8x800xf32>
    %121 = arith.select %115, %113, %120 : vector<8x800xi1>, vector<8x800xf32>
    %c0_50 = arith.constant 0 : index
    %c0_51 = arith.constant 0 : index
    %c0_52 = arith.constant 0 : index
    %122 = vector.load %arg7[%c0_50, %c0_51, %c0_52] : memref<4x800x200xf32, #tpu.memory_space<vmem>>, vector<1x800x200xf32>
    %123 = vector.shape_cast %122 : vector<1x800x200xf32> to vector<800x200xf32>
    %cst_53 = arith.constant dense<0.000000e+00> : vector<8x200xf32>
    %124 = tpu.matmul %121, %123, %cst_53 {dimension_numbers = #tpu.dot_dimension_numbers<[1], [0], [0], [1], [0, 0, 1, 1], [], []>} : vector<8x800xf32>, vector<800x200xf32>, vector<8x200xf32> -> vector<8x200xf32>
    %c1_54 = arith.constant 1 : index
    %c0_55 = arith.constant 0 : index
    %c0_56 = arith.constant 0 : index
    %125 = vector.load %arg7[%c1_54, %c0_55, %c0_56] : memref<4x800x200xf32, #tpu.memory_space<vmem>>, vector<1x800x200xf32>
    %126 = vector.shape_cast %125 : vector<1x800x200xf32> to vector<800x200xf32>
    %cst_57 = arith.constant dense<0.000000e+00> : vector<8x200xf32>
    %127 = tpu.matmul %121, %126, %cst_57 {dimension_numbers = #tpu.dot_dimension_numbers<[1], [0], [0], [1], [0, 0, 1, 1], [], []>} : vector<8x800xf32>, vector<800x200xf32>, vector<8x200xf32> -> vector<8x200xf32>
    %128 = arith.maximumf %124, %127 : vector<8x200xf32>
    %c2_58 = arith.constant 2 : index
    %c0_59 = arith.constant 0 : index
    %c0_60 = arith.constant 0 : index
    %129 = vector.load %arg7[%c2_58, %c0_59, %c0_60] : memref<4x800x200xf32, #tpu.memory_space<vmem>>, vector<1x800x200xf32>
    %130 = vector.shape_cast %129 : vector<1x800x200xf32> to vector<800x200xf32>
    %cst_61 = arith.constant dense<0.000000e+00> : vector<8x200xf32>
    %131 = tpu.matmul %121, %130, %cst_61 {dimension_numbers = #tpu.dot_dimension_numbers<[1], [0], [0], [1], [0, 0, 1, 1], [], []>} : vector<8x800xf32>, vector<800x200xf32>, vector<8x200xf32> -> vector<8x200xf32>
    %c3_62 = arith.constant 3 : index
    %c0_63 = arith.constant 0 : index
    %c0_64 = arith.constant 0 : index
    %132 = vector.load %arg7[%c3_62, %c0_63, %c0_64] : memref<4x800x200xf32, #tpu.memory_space<vmem>>, vector<1x800x200xf32>
    %133 = vector.shape_cast %132 : vector<1x800x200xf32> to vector<800x200xf32>
    %cst_65 = arith.constant dense<0.000000e+00> : vector<8x200xf32>
    %134 = tpu.matmul %121, %133, %cst_65 {dimension_numbers = #tpu.dot_dimension_numbers<[1], [0], [0], [1], [0, 0, 1, 1], [], []>} : vector<8x800xf32>, vector<800x200xf32>, vector<8x200xf32> -> vector<8x200xf32>
    %135 = arith.maximumf %131, %134 : vector<8x200xf32>
    %136 = arith.maximumf %128, %135 : vector<8x200xf32>
    %c0_66 = arith.constant 0 : index
    %c0_67 = arith.constant 0 : index
    %137 = vector.load %arg8[%c0_66, %c0_67] : memref<200x256xf32, #tpu.memory_space<vmem>>, vector<200x256xf32>
    %cst_68 = arith.constant dense<0.000000e+00> : vector<8x256xf32>
    %138 = tpu.matmul %136, %137, %cst_68 {dimension_numbers = #tpu.dot_dimension_numbers<[1], [0], [0], [1], [0, 0, 1, 1], [], []>} : vector<8x200xf32>, vector<200x256xf32>, vector<8x256xf32> -> vector<8x256xf32>
    %c0_69 = arith.constant 0 : index
    %c0_70 = arith.constant 0 : index
    %139 = vector.load %arg9[%c0_69, %c0_70] : memref<1x256xf32, #tpu.memory_space<vmem>>, vector<1x256xf32>
    %140 = vector.broadcast %139 : vector<1x256xf32> to vector<8x256xf32>
    %141 = arith.addf %138, %140 : vector<8x256xf32>
    %cst_71 = arith.constant 0.000000e+00 : f32
    %142 = vector.broadcast %cst_71 : f32 to vector<8x256xf32>
    %143 = arith.cmpf ogt, %141, %142 : vector<8x256xf32>
    %cst_72 = arith.constant 0.000000e+00 : f32
    %144 = vector.broadcast %cst_72 : f32 to vector<8x256xf32>
    %145 = arith.minimumf %141, %144 : vector<8x256xf32>
    %146 = math.exp %145 : vector<8x256xf32>
    %cst_73 = arith.constant 1.000000e+00 : f32
    %147 = vector.broadcast %cst_73 : f32 to vector<8x256xf32>
    %148 = arith.subf %146, %147 : vector<8x256xf32>
    %149 = arith.select %143, %141, %148 : vector<8x256xi1>, vector<8x256xf32>
    %c0_74 = arith.constant 0 : index
    %c0_75 = arith.constant 0 : index
    %c0_76 = arith.constant 0 : index
    %150 = vector.load %arg10[%c0_74, %c0_75, %c0_76] : memref<4x256x64xf32, #tpu.memory_space<vmem>>, vector<1x256x64xf32>
    %151 = vector.shape_cast %150 : vector<1x256x64xf32> to vector<256x64xf32>
    %cst_77 = arith.constant dense<0.000000e+00> : vector<8x64xf32>
    %152 = tpu.matmul %149, %151, %cst_77 {dimension_numbers = #tpu.dot_dimension_numbers<[1], [0], [0], [1], [0, 0, 1, 1], [], []>} : vector<8x256xf32>, vector<256x64xf32>, vector<8x64xf32> -> vector<8x64xf32>
    %c1_78 = arith.constant 1 : index
    %c0_79 = arith.constant 0 : index
    %c0_80 = arith.constant 0 : index
    %153 = vector.load %arg10[%c1_78, %c0_79, %c0_80] : memref<4x256x64xf32, #tpu.memory_space<vmem>>, vector<1x256x64xf32>
    %154 = vector.shape_cast %153 : vector<1x256x64xf32> to vector<256x64xf32>
    %cst_81 = arith.constant dense<0.000000e+00> : vector<8x64xf32>
    %155 = tpu.matmul %149, %154, %cst_81 {dimension_numbers = #tpu.dot_dimension_numbers<[1], [0], [0], [1], [0, 0, 1, 1], [], []>} : vector<8x256xf32>, vector<256x64xf32>, vector<8x64xf32> -> vector<8x64xf32>
    %156 = arith.maximumf %152, %155 : vector<8x64xf32>
    %c2_82 = arith.constant 2 : index
    %c0_83 = arith.constant 0 : index
    %c0_84 = arith.constant 0 : index
    %157 = vector.load %arg10[%c2_82, %c0_83, %c0_84] : memref<4x256x64xf32, #tpu.memory_space<vmem>>, vector<1x256x64xf32>
    %158 = vector.shape_cast %157 : vector<1x256x64xf32> to vector<256x64xf32>
    %cst_85 = arith.constant dense<0.000000e+00> : vector<8x64xf32>
    %159 = tpu.matmul %149, %158, %cst_85 {dimension_numbers = #tpu.dot_dimension_numbers<[1], [0], [0], [1], [0, 0, 1, 1], [], []>} : vector<8x256xf32>, vector<256x64xf32>, vector<8x64xf32> -> vector<8x64xf32>
    %c3_86 = arith.constant 3 : index
    %c0_87 = arith.constant 0 : index
    %c0_88 = arith.constant 0 : index
    %160 = vector.load %arg10[%c3_86, %c0_87, %c0_88] : memref<4x256x64xf32, #tpu.memory_space<vmem>>, vector<1x256x64xf32>
    %161 = vector.shape_cast %160 : vector<1x256x64xf32> to vector<256x64xf32>
    %cst_89 = arith.constant dense<0.000000e+00> : vector<8x64xf32>
    %162 = tpu.matmul %149, %161, %cst_89 {dimension_numbers = #tpu.dot_dimension_numbers<[1], [0], [0], [1], [0, 0, 1, 1], [], []>} : vector<8x256xf32>, vector<256x64xf32>, vector<8x64xf32> -> vector<8x64xf32>
    %163 = arith.maximumf %159, %162 : vector<8x64xf32>
    %164 = arith.maximumf %156, %163 : vector<8x64xf32>
    %c0_90 = arith.constant 0 : index
    %c0_91 = arith.constant 0 : index
    %165 = vector.load %arg11[%c0_90, %c0_91] : memref<64x32xf32, #tpu.memory_space<vmem>>, vector<64x32xf32>
    %cst_92 = arith.constant dense<0.000000e+00> : vector<8x32xf32>
    %166 = tpu.matmul %164, %165, %cst_92 {dimension_numbers = #tpu.dot_dimension_numbers<[1], [0], [0], [1], [0, 0, 1, 1], [], []>} : vector<8x64xf32>, vector<64x32xf32>, vector<8x32xf32> -> vector<8x32xf32>
    %c0_93 = arith.constant 0 : index
    %c0_94 = arith.constant 0 : index
    %167 = vector.load %arg12[%c0_93, %c0_94] : memref<1x32xf32, #tpu.memory_space<vmem>>, vector<1x32xf32>
    %168 = vector.broadcast %167 : vector<1x32xf32> to vector<8x32xf32>
    %169 = arith.addf %166, %168 : vector<8x32xf32>
    %cst_95 = arith.constant 0.000000e+00 : f32
    %170 = vector.broadcast %cst_95 : f32 to vector<8x32xf32>
    %171 = arith.cmpf ogt, %169, %170 : vector<8x32xf32>
    %cst_96 = arith.constant 0.000000e+00 : f32
    %172 = vector.broadcast %cst_96 : f32 to vector<8x32xf32>
    %173 = arith.minimumf %169, %172 : vector<8x32xf32>
    %174 = math.exp %173 : vector<8x32xf32>
    %cst_97 = arith.constant 1.000000e+00 : f32
    %175 = vector.broadcast %cst_97 : f32 to vector<8x32xf32>
    %176 = arith.subf %174, %175 : vector<8x32xf32>
    %177 = arith.select %171, %169, %176 : vector<8x32xi1>, vector<8x32xf32>
    %c0_98 = arith.constant 0 : index
    %c0_99 = arith.constant 0 : index
    %178 = vector.load %arg13[%c0_98, %c0_99] : memref<32x50xf32, #tpu.memory_space<vmem>>, vector<32x50xf32>
    %cst_100 = arith.constant dense<0.000000e+00> : vector<8x50xf32>
    %179 = tpu.matmul %177, %178, %cst_100 {dimension_numbers = #tpu.dot_dimension_numbers<[1], [0], [0], [1], [0, 0, 1, 1], [], []>} : vector<8x32xf32>, vector<32x50xf32>, vector<8x50xf32> -> vector<8x50xf32>
    %c0_101 = arith.constant 0 : index
    %c0_102 = arith.constant 0 : index
    %180 = vector.load %arg14[%c0_101, %c0_102] : memref<1x50xf32, #tpu.memory_space<vmem>>, vector<1x50xf32>
    %181 = vector.broadcast %180 : vector<1x50xf32> to vector<8x50xf32>
    %182 = arith.addf %179, %181 : vector<8x50xf32>
    %cst_103 = arith.constant 0.000000e+00 : f32
    %183 = vector.broadcast %cst_103 : f32 to vector<8x50xf32>
    %184 = arith.cmpf ogt, %182, %183 : vector<8x50xf32>
    %cst_104 = arith.constant 0.000000e+00 : f32
    %185 = vector.broadcast %cst_104 : f32 to vector<8x50xf32>
    %186 = arith.minimumf %182, %185 : vector<8x50xf32>
    %187 = math.exp %186 : vector<8x50xf32>
    %cst_105 = arith.constant 1.000000e+00 : f32
    %188 = vector.broadcast %cst_105 : f32 to vector<8x50xf32>
    %189 = arith.subf %187, %188 : vector<8x50xf32>
    %190 = arith.select %184, %182, %189 : vector<8x50xi1>, vector<8x50xf32>
    %c0_106 = arith.constant 0 : index
    %c0_107 = arith.constant 0 : index
    %191 = vector.load %arg15[%c0_106, %c0_107] : memref<50x50xf32, #tpu.memory_space<vmem>>, vector<50x50xf32>
    %cst_108 = arith.constant dense<0.000000e+00> : vector<8x50xf32>
    %192 = tpu.matmul %190, %191, %cst_108 {dimension_numbers = #tpu.dot_dimension_numbers<[1], [0], [0], [1], [0, 0, 1, 1], [], []>} : vector<8x50xf32>, vector<50x50xf32>, vector<8x50xf32> -> vector<8x50xf32>
    %c0_109 = arith.constant 0 : index
    %c0_110 = arith.constant 0 : index
    %193 = vector.load %arg16[%c0_109, %c0_110] : memref<1x50xf32, #tpu.memory_space<vmem>>, vector<1x50xf32>
    %194 = vector.broadcast %193 : vector<1x50xf32> to vector<8x50xf32>
    %195 = arith.addf %192, %194 : vector<8x50xf32>
    %cst_111 = arith.constant 0.000000e+00 : f32
    %196 = vector.broadcast %cst_111 : f32 to vector<8x50xf32>
    %197 = arith.cmpf ogt, %195, %196 : vector<8x50xf32>
    %cst_112 = arith.constant 0.000000e+00 : f32
    %198 = vector.broadcast %cst_112 : f32 to vector<8x50xf32>
    %199 = arith.minimumf %195, %198 : vector<8x50xf32>
    %200 = math.exp %199 : vector<8x50xf32>
    %cst_113 = arith.constant 1.000000e+00 : f32
    %201 = vector.broadcast %cst_113 : f32 to vector<8x50xf32>
    %202 = arith.subf %200, %201 : vector<8x50xf32>
    %203 = arith.select %197, %195, %202 : vector<8x50xi1>, vector<8x50xf32>
    %c0_114 = arith.constant 0 : index
    %c0_115 = arith.constant 0 : index
    %204 = vector.load %arg17[%c0_114, %c0_115] : memref<50x100xf32, #tpu.memory_space<vmem>>, vector<50x100xf32>
    %cst_116 = arith.constant dense<0.000000e+00> : vector<8x100xf32>
    %205 = tpu.matmul %203, %204, %cst_116 {dimension_numbers = #tpu.dot_dimension_numbers<[1], [0], [0], [1], [0, 0, 1, 1], [], []>} : vector<8x50xf32>, vector<50x100xf32>, vector<8x100xf32> -> vector<8x100xf32>
    %c0_117 = arith.constant 0 : index
    %c0_118 = arith.constant 0 : index
    %206 = vector.load %arg18[%c0_117, %c0_118] : memref<1x100xf32, #tpu.memory_space<vmem>>, vector<1x100xf32>
    %207 = vector.broadcast %206 : vector<1x100xf32> to vector<8x100xf32>
    %208 = arith.addf %205, %207 : vector<8x100xf32>
    %cst_119 = arith.constant 0.000000e+00 : f32
    %209 = vector.broadcast %cst_119 : f32 to vector<8x100xf32>
    %210 = arith.cmpf ogt, %208, %209 : vector<8x100xf32>
    %cst_120 = arith.constant 0.000000e+00 : f32
    %211 = vector.broadcast %cst_120 : f32 to vector<8x100xf32>
    %212 = arith.minimumf %208, %211 : vector<8x100xf32>
    %213 = math.exp %212 : vector<8x100xf32>
    %cst_121 = arith.constant 1.000000e+00 : f32
    %214 = vector.broadcast %cst_121 : f32 to vector<8x100xf32>
    %215 = arith.subf %213, %214 : vector<8x100xf32>
    %216 = arith.select %210, %208, %215 : vector<8x100xi1>, vector<8x100xf32>
    %c0_122 = arith.constant 0 : index
    %c0_123 = arith.constant 0 : index
    %217 = vector.load %arg19[%c0_122, %c0_123] : memref<100x128xf32, #tpu.memory_space<vmem>>, vector<100x128xf32>
    %cst_124 = arith.constant dense<0.000000e+00> : vector<8x128xf32>
    %218 = tpu.matmul %216, %217, %cst_124 {dimension_numbers = #tpu.dot_dimension_numbers<[1], [0], [0], [1], [0, 0, 1, 1], [], []>} : vector<8x100xf32>, vector<100x128xf32>, vector<8x128xf32> -> vector<8x128xf32>
    %c0_125 = arith.constant 0 : index
    %c0_126 = arith.constant 0 : index
    %219 = vector.load %arg20[%c0_125, %c0_126] : memref<1x128xf32, #tpu.memory_space<vmem>>, vector<1x128xf32>
    %220 = vector.broadcast %219 : vector<1x128xf32> to vector<8x128xf32>
    %221 = arith.addf %218, %220 : vector<8x128xf32>
    %c0_127 = arith.constant 0 : index
    %c0_128 = arith.constant 0 : index
    %222 = vector.load %arg21[%c0_127, %c0_128] : memref<8x128xf32, #tpu.memory_space<vmem>>, vector<8x128xf32>
    tpu.vector_store %arg21[%c0_127, %c0_128], %221 {strides = array<i32>} : memref<8x128xf32, #tpu.memory_space<vmem>>, vector<8x128xf32>,
    return
  }
  func.func @transform_0(%arg0: i32) -> (i32, i32, i32) {
    %c0_i32 = arith.constant 0 : i32
    %c0_i32_0 = arith.constant 0 : i32
    %c0_i32_1 = arith.constant 0 : i32
    return %arg0, %c0_i32, %c0_i32_0 : i32, i32, i32
  }
  func.func @transform_1(%arg0: i32) -> (i32, i32, i32) {
    %c0_i32 = arith.constant 0 : i32
    %c0_i32_0 = arith.constant 0 : i32
    %c0_i32_1 = arith.constant 0 : i32
    %c0_i32_2 = arith.constant 0 : i32
    return %c0_i32, %c0_i32_0, %c0_i32_1 : i32, i32, i32
  }
  func.func @transform_2(%arg0: i32) -> (i32, i32) {
    %c0_i32 = arith.constant 0 : i32
    %c0_i32_0 = arith.constant 0 : i32
    %c0_i32_1 = arith.constant 0 : i32
    return %c0_i32, %c0_i32_0 : i32, i32
  }
  func.func @transform_3(%arg0: i32) -> (i32, i32, i32) {
    %c0_i32 = arith.constant 0 : i32
    %c0_i32_0 = arith.constant 0 : i32
    %c0_i32_1 = arith.constant 0 : i32
    %c0_i32_2 = arith.constant 0 : i32
    return %c0_i32, %c0_i32_0, %c0_i32_1 : i32, i32, i32
  }
  func.func @transform_4(%arg0: i32) -> (i32, i32) {
    %c0_i32 = arith.constant 0 : i32
    %c0_i32_0 = arith.constant 0 : i32
    %c0_i32_1 = arith.constant 0 : i32
    return %c0_i32, %c0_i32_0 : i32, i32
  }
  func.func @transform_5(%arg0: i32) -> (i32, i32) {
    %c0_i32 = arith.constant 0 : i32
    %c0_i32_0 = arith.constant 0 : i32
    %c0_i32_1 = arith.constant 0 : i32
    return %c0_i32, %c0_i32_0 : i32, i32
  }
  func.func @transform_6(%arg0: i32) -> (i32, i32, i32) {
    %c0_i32 = arith.constant 0 : i32
    %c0_i32_0 = arith.constant 0 : i32
    %c0_i32_1 = arith.constant 0 : i32
    %c0_i32_2 = arith.constant 0 : i32
    return %c0_i32, %c0_i32_0, %c0_i32_1 : i32, i32, i32
  }
  func.func @transform_7(%arg0: i32) -> (i32, i32) {
    %c0_i32 = arith.constant 0 : i32
    %c0_i32_0 = arith.constant 0 : i32
    %c0_i32_1 = arith.constant 0 : i32
    return %c0_i32, %c0_i32_0 : i32, i32
  }
  func.func @transform_8(%arg0: i32) -> (i32, i32) {
    %c0_i32 = arith.constant 0 : i32
    %c0_i32_0 = arith.constant 0 : i32
    %c0_i32_1 = arith.constant 0 : i32
    return %c0_i32, %c0_i32_0 : i32, i32
  }
  func.func @transform_9(%arg0: i32) -> (i32, i32, i32) {
    %c0_i32 = arith.constant 0 : i32
    %c0_i32_0 = arith.constant 0 : i32
    %c0_i32_1 = arith.constant 0 : i32
    %c0_i32_2 = arith.constant 0 : i32
    return %c0_i32, %c0_i32_0, %c0_i32_1 : i32, i32, i32
  }
  func.func @transform_10(%arg0: i32) -> (i32, i32) {
    %c0_i32 = arith.constant 0 : i32
    %c0_i32_0 = arith.constant 0 : i32
    %c0_i32_1 = arith.constant 0 : i32
    return %c0_i32, %c0_i32_0 : i32, i32
  }
  func.func @transform_11(%arg0: i32) -> (i32, i32) {
    %c0_i32 = arith.constant 0 : i32
    %c0_i32_0 = arith.constant 0 : i32
    %c0_i32_1 = arith.constant 0 : i32
    return %c0_i32, %c0_i32_0 : i32, i32
  }
  func.func @transform_12(%arg0: i32) -> (i32, i32) {
    %c0_i32 = arith.constant 0 : i32
    %c0_i32_0 = arith.constant 0 : i32
    %c0_i32_1 = arith.constant 0 : i32
    return %c0_i32, %c0_i32_0 : i32, i32
  }
  func.func @transform_13(%arg0: i32) -> (i32, i32) {
    %c0_i32 = arith.constant 0 : i32
    %c0_i32_0 = arith.constant 0 : i32
    %c0_i32_1 = arith.constant 0 : i32
    return %c0_i32, %c0_i32_0 : i32, i32
  }
  func.func @transform_14(%arg0: i32) -> (i32, i32) {
    %c0_i32 = arith.constant 0 : i32
    %c0_i32_0 = arith.constant 0 : i32
    %c0_i32_1 = arith.constant 0 : i32
    return %c0_i32, %c0_i32_0 : i32, i32
  }
  func.func @transform_15(%arg0: i32) -> (i32, i32) {
    %c0_i32 = arith.constant 0 : i32
    %c0_i32_0 = arith.constant 0 : i32
    %c0_i32_1 = arith.constant 0 : i32
    return %c0_i32, %c0_i32_0 : i32, i32
  }
  func.func @transform_16(%arg0: i32) -> (i32, i32) {
    %c0_i32 = arith.constant 0 : i32
    %c0_i32_0 = arith.constant 0 : i32
    %c0_i32_1 = arith.constant 0 : i32
    return %c0_i32, %c0_i32_0 : i32, i32
  }
  func.func @transform_17(%arg0: i32) -> (i32, i32) {
    %c0_i32 = arith.constant 0 : i32
    %c0_i32_0 = arith.constant 0 : i32
    %c0_i32_1 = arith.constant 0 : i32
    return %c0_i32, %c0_i32_0 : i32, i32
  }
  func.func @transform_18(%arg0: i32) -> (i32, i32) {
    %c0_i32 = arith.constant 0 : i32
    %c0_i32_0 = arith.constant 0 : i32
    %c0_i32_1 = arith.constant 0 : i32
    return %c0_i32, %c0_i32_0 : i32, i32
  }
  func.func @transform_19(%arg0: i32) -> (i32, i32) {
    %c0_i32 = arith.constant 0 : i32
    %c0_i32_0 = arith.constant 0 : i32
    %c0_i32_1 = arith.constant 0 : i32
    return %c0_i32, %c0_i32_0 : i32, i32
  }
  func.func @transform_20(%arg0: i32) -> (i32, i32) {
    %c0_i32 = arith.constant 0 : i32
    %c0_i32_0 = arith.constant 0 : i32
    return %arg0, %c0_i32 : i32, i32
  }
}

</mosaic_0001>

<bundles_post_ra>
// kernel: net_forward.1
= control target key start
LH: loop header
LB: loop body
LE: loop exit
PB: predicated region body
PF: predicated region fallthrough
CT: control target
= control target key end

     0   :  { %vm1453_vm0 = vcmask 785408   ;;  %s8776_s27 = smov 64   ;;  %s8777_s24 = smov 112   ;;  %s15196_s1 = inlined_call_operand.vmem [shape: f32[5,128,96], index: 1, kind: input, shape index: {}]   ;;  %s15197_s0 = inlined_call_operand.vmem [shape: f32[8,28,128], index: 0, kind: input, shape index: {}]   ;;  %s15198_s3 = inlined_call_operand.vmem [shape: f32[2,96,48], index: 3, kind: input, shape index: {}]   ;;  %s15199_s2 = inlined_call_operand.vmem [shape: f32[1,96], index: 2, kind: input, shape index: {}]   ;;  %s15200_s4 = inlined_call_operand.vmem [shape: f32[576,800], index: 4, kind: input, shape index: {}]   ;;  %s15201_s6 = inlined_call_operand.vmem [shape: f32[4,800,200], index: 6, kind: input, shape index: {}]   ;;  %s15202_s5 = inlined_call_operand.vmem [shape: f32[1,800], index: 5, kind: input, shape index: {}]   ;;  %s15203_s7 = inlined_call_operand.vmem [shape: f32[200,256], index: 7, kind: input, shape index: {}]   ;;  %s15204_s9 = inlined_call_operand.vmem [shape: f32[4,256,64], index: 9, kind: input, shape index: {}]   ;;  %s15205_s8 = inlined_call_operand.vmem [shape: f32[1,256], index: 8, kind: input, shape index: {}]   ;;  %s15206_s10 = inlined_call_operand.vmem [shape: f32[64,32], index: 10, kind: input, shape index: {}]   ;;  %s15207_s12 = inlined_call_operand.vmem [shape: f32[32,50], index: 12, kind: input, shape index: {}]   ;;  %s15208_s11 = inlined_call_operand.vmem [shape: f32[1,32], index: 11, kind: input, shape index: {}]   ;;  %s15209_s14 = inlined_call_operand.vmem [shape: f32[50,50], index: 14, kind: input, shape index: {}]   ;;  %s15210_s13 = inlined_call_operand.vmem [shape: f32[1,50], index: 13, kind: input, shape index: {}]   ;;  %s15211_s16 = inlined_call_operand.vmem [shape: f32[50,100], index: 16, kind: input, shape index: {}]   ;;  %s15212_s18 = inlined_call_operand.vmem [shape: f32[100,128], index: 18, kind: input, shape index: {}]   ;;  %s15213_s15 = inlined_call_operand.vmem [shape: f32[1,50], index: 15, kind: input, shape index: {}]   ;;  %s15214_s17 = inlined_call_operand.vmem [shape: f32[1,100], index: 17, kind: input, shape index: {}]   ;;  %s15215_s19 = inlined_call_operand.vmem [shape: f32[1,128], index: 19, kind: input, shape index: {}]   ;;  %s15216_s20 = inlined_call_operand.vmem [shape: f32[8,128], index: 20, kind: output, shape index: {}]  }
   0x1   :  { %15221 = sst [smem:[#allocation31_spill]] %s15196_s1 }
   0x2   :  { %15222 = sst [smem:[#allocation32_spill]] %s15197_s0  ;;  %s8774_s0 = smov 96  }
   0x3   :  { %15223 = sst [smem:[#allocation33_spill]] %s15198_s3  ;;  %s8778_s3 = smov 48  }
   0x4   :  { %15224 = sst [smem:[#allocation34_spill]] %s15199_s2 }
   0x5   :  { %15225 = sst [smem:[#allocation35_spill]] %s15200_s4 }
   0x6   :  { %s15226_s23 = sld [smem:[#allocation31_spill]] }
   0x7   :  { %s15227_s29 = sld [smem:[#allocation32_spill]] }
   0x8   :  { %s15258_s28 = sld [smem:[#allocation34_spill]] }
   0x9   :  { %s15288_s30 = sld [smem:[#allocation35_spill]] }
   0xc   :  { %v6718_v0 = vld [vmem:[%s15226_s23 + $0xf8] sm:$0xff]  ;;  %v6717_v2 = vld [vmem:[%s15226_s23 + $0xf0] sm:$0xff]  ;;  %v6716_v4 = vld [vmem:[%s15226_s23 + $0xe8] sm:$0xff] }
   0xd   :  { %v104_v1 = vld [vmem:[%s15226_s23 + $0x78] sm:$0xff]  ;;  %8118 = vmatprep.subr.mxu0 %v6718_v0  ;;  %v103_v3 = vld [vmem:[%s15226_s23 + $0x70] sm:$0xff]  ;;  %v102_v5 = vld [vmem:[%s15226_s23 + $0x68] sm:$0xff] }
   0xe   :  { %8186 = vmatprep.subr.mxu1 %v104_v1  ;;  %8119 = vmatpush3.msra.mxu0 %v6718_v0  ;;  %v6715_v6 = vld [vmem:[%s15226_s23 + $0xe0] sm:$0xff]  ;;  %v6714_v8 = vld [vmem:[%s15226_s23 + $0xd8] sm:$0xff]  ;;  %v6713_v10 = vld [vmem:[%s15226_s23 + $0xd0] sm:$0xff] }
   0xf   :  { %8187 = vmatpush3.msra.mxu1 %v104_v1  ;;  %8120 = vmatprep.subr.mxu0 %v6717_v2  ;;  %v101_v7 = vld [vmem:[%s15226_s23 + $0x60] sm:$0xff]  ;;  %v100_v9 = vld [vmem:[%s15226_s23 + $0x58] sm:$0xff]  ;;  %v99_v11 = vld [vmem:[%s15226_s23 + $0x50] sm:$0xff] }
  0x10   :  { %8188 = vmatprep.subr.mxu1 %v103_v3  ;;  %8121 = vmatpush3.msra.mxu0 %v6717_v2  ;;  %v6712_v12 = vld [vmem:[%s15226_s23 + $0xc8] sm:$0xff]  ;;  %v6711_v14 = vld [vmem:[%s15226_s23 + $0xc0] sm:$0xff]  ;;  %v6710_v16 = vld [vmem:[%s15226_s23 + $0xb8] sm:$0xff] }
  0x11   :  { %8189 = vmatpush3.msra.mxu1 %v103_v3  ;;  %8122 = vmatprep.subr.mxu0 %v6716_v4  ;;  %v98_v13 = vld [vmem:[%s15226_s23 + $0x48] sm:$0xff]  ;;  %v97_v15 = vld [vmem:[%s15226_s23 + $0x40] sm:$0xff]  ;;  %v96_v17 = vld [vmem:[%s15226_s23 + $0x38] sm:$0xff] }
  0x12   :  { %8190 = vmatprep.subr.mxu1 %v102_v5  ;;  %8123 = vmatpush3.msra.mxu0 %v6716_v4  ;;  %v6709_v18 = vld [vmem:[%s15226_s23 + $0xb0] sm:$0xff]  ;;  %v6708_v20 = vld [vmem:[%s15226_s23 + $0xa8] sm:$0xff]  ;;  %v6707_v22 = vld [vmem:[%s15226_s23 + $0xa0] sm:$0xff] }
  0x13   :  { %8191 = vmatpush3.msra.mxu1 %v102_v5  ;;  %8124 = vmatprep.subr.mxu0 %v6715_v6  ;;  %v95_v19 = vld [vmem:[%s15226_s23 + $0x30] sm:$0xff]  ;;  %v94_v21 = vld [vmem:[%s15226_s23 + $0x28] sm:$0xff]  ;;  %v93_v23 = vld [vmem:[%s15226_s23 + $0x20] sm:$0xff] }
  0x14   :  { %8192 = vmatprep.subr.mxu1 %v101_v7  ;;  %8125 = vmatpush3.msra.mxu0 %v6715_v6  ;;  %v6706_v24 = vld [vmem:[%s15226_s23 + $0x98] sm:$0xff]  ;;  %v6705_v26 = vld [vmem:[%s15226_s23 + $0x90] sm:$0xff]  ;;  %v6704_v28 = vld [vmem:[%s15226_s23 + $0x88] sm:$0xff] }
  0x15   :  { %8193 = vmatpush3.msra.mxu1 %v101_v7  ;;  %8126 = vmatprep.subr.mxu0 %v6714_v8  ;;  %v92_v25 = vld [vmem:[%s15226_s23 + $0x18] sm:$0xff]  ;;  %v91_v27 = vld [vmem:[%s15226_s23 + $0x10] sm:$0xff]  ;;  %v90_v29 = vld [vmem:[%s15226_s23 + $0x8] sm:$0xff] }
  0x16   :  { %8194 = vmatprep.subr.mxu1 %v100_v9  ;;  %8127 = vmatpush3.msra.mxu0 %v6714_v8  ;;  %v6703_v30 = vld [vmem:[%s15226_s23 + $0x80] sm:$0xff]  ;;  %v106_v34 = vld [vmem:[%s15227_s29 + $0x9] sm:$0xff]  ;;  %v6734_v36 = vld [vmem:[%s15226_s23 + $0x178] sm:$0xff] }
  0x17   :  { %8195 = vmatpush3.msra.mxu1 %v100_v9  ;;  %8128 = vmatprep.subr.mxu0 %v6713_v10  ;;  %v89_v31 = vld [vmem:[%s15226_s23] sm:$0xff]  ;;  %v66_v35 = vld [vmem:[%s15227_s29 + $0x8] sm:$0xff]  ;;  %v107_v37 = vld [vmem:[%s15227_s29 + $0x11] sm:$0xff] }
  0x18   :  { %8196 = vmatprep.subr.mxu1 %v99_v11  ;;  %8129 = vmatpush3.msra.mxu0 %v6713_v10  ;;  %v105_v32 = vld [vmem:[%s15227_s29 + $0x1] sm:$0xff]  ;;  %v67_v38 = vld [vmem:[%s15227_s29 + $0x10] sm:$0xff]  ;;  %v6750_v40 = vld [vmem:[%s15226_s23 + $0x1f8] sm:$0xff] }
  0x19   :  { %8197 = vmatpush3.msra.mxu1 %v99_v11  ;;  %8130 = vmatprep.subr.mxu0 %v6712_v12  ;;  %v65_v33 = vld [vmem:[%s15227_s29] sm:$0xff]  ;;  %v6733_v39 = vld [vmem:[%s15226_s23 + $0x170] sm:$0xff]  ;;  %v6732_v44 = vld [vmem:[%s15226_s23 + $0x168] sm:$0xff] }
  0x1a   :  { %8198 = vmatprep.subr.mxu1 %v98_v13  ;;  %8131 = vmatpush3.msra.mxu0 %v6712_v12  ;;  %v108_v41 = vld [vmem:[%s15227_s29 + $0x21] sm:$0xff]  ;;  %v109_v43 = vld [vmem:[%s15227_s29 + $0x29] sm:$0xff]  ;;  %v110_v46 = vld [vmem:[%s15227_s29 + $0x31] sm:$0xff] }
  0x1b   :  { %8199 = vmatpush3.msra.mxu1 %v98_v13  ;;  %8132 = vmatprep.subr.mxu0 %v6711_v14  ;;  %v68_v42 = vld [vmem:[%s15227_s29 + $0x20] sm:$0xff]  ;;  %v69_v45 = vld [vmem:[%s15227_s29 + $0x28] sm:$0xff]  ;;  %v70_v47 = vld [vmem:[%s15227_s29 + $0x30] sm:$0xff] }
  0x1c   :  { %8200 = vmatprep.subr.mxu1 %v97_v15  ;;  %8133 = vmatpush3.msra.mxu0 %v6711_v14  ;;  %v6731_v48 = vld [vmem:[%s15226_s23 + $0x160] sm:$0xff]  ;;  %v6730_v51 = vld [vmem:[%s15226_s23 + $0x158] sm:$0xff]  ;;  %v6749_v52 = vld [vmem:[%s15226_s23 + $0x1f0] sm:$0xff] }
  0x1d   :  { %8201 = vmatpush3.msra.mxu1 %v97_v15  ;;  %8134 = vmatprep.subr.mxu0 %v6710_v16  ;;  %v111_v49 = vld [vmem:[%s15227_s29 + $0x41] sm:$0xff]  ;;  %v112_v53 = vld [vmem:[%s15227_s29 + $0x49] sm:$0xff]  ;;  %v113_v55 = vld [vmem:[%s15227_s29 + $0x51] sm:$0xff] }
  0x1e   :  { %8202 = vmatprep.subr.mxu1 %v96_v17  ;;  %8135 = vmatpush3.msra.mxu0 %v6710_v16  ;;  %v71_v50 = vld [vmem:[%s15227_s29 + $0x40] sm:$0xff]  ;;  %v72_v54 = vld [vmem:[%s15227_s29 + $0x48] sm:$0xff]  ;;  %v73_v56 = vld [vmem:[%s15227_s29 + $0x50] sm:$0xff] }
  0x1f   :  { %8203 = vmatpush3.msra.mxu1 %v96_v17  ;;  %8136 = vmatprep.subr.mxu0 %v6709_v18  ;;  %v6729_v57 = vld [vmem:[%s15226_s23 + $0x150] sm:$0xff]  ;;  %v114_v58 = vld [vmem:[%s15227_s29 + $0x61] sm:$0xff]  ;;  %v6726_v5 = vld [vmem:[%s15226_s23 + $0x138] sm:$0xff] }
  0x20   :  { %8204 = vmatprep.subr.mxu1 %v95_v19  ;;  %8137 = vmatpush3.msra.mxu0 %v6709_v18  ;;  %v74_v59 = vld [vmem:[%s15227_s29 + $0x60] sm:$0xff]  ;;  %v6728_v60 = vld [vmem:[%s15226_s23 + $0x148] sm:$0xff]  ;;  %v116_v1 = vld [vmem:[%s15227_s29 + $0x71] sm:$0xff] }
  0x21   :  { %8205 = vmatpush3.msra.mxu1 %v95_v19  ;;  %8138 = vmatprep.subr.mxu0 %v6708_v20  ;;  %v115_v61 = vld [vmem:[%s15227_s29 + $0x69] sm:$0xff]  ;;  %v6727_v63 = vld [vmem:[%s15226_s23 + $0x140] sm:$0xff]  ;;  %v6746_v9 = vld [vmem:[%s15226_s23 + $0x1d8] sm:$0xff] }
  0x22   :  { %8206 = vmatprep.subr.mxu1 %v94_v21  ;;  %8139 = vmatpush3.msra.mxu0 %v6708_v20  ;;  %v75_v62 = vld [vmem:[%s15227_s29 + $0x68] sm:$0xff]  ;;  %v76_v2 = vld [vmem:[%s15227_s29 + $0x70] sm:$0xff]  ;;  %v77_v4 = vld [vmem:[%s15227_s29 + $0x80] sm:$0xff] }
  0x23   :  { %8207 = vmatpush3.msra.mxu1 %v94_v21  ;;  %8140 = vmatprep.subr.mxu0 %v6707_v22  ;;  %v6748_v0 = vld [vmem:[%s15226_s23 + $0x1e8] sm:$0xff]  ;;  %v6747_v6 = vld [vmem:[%s15226_s23 + $0x1e0] sm:$0xff]  ;;  %v119_v10 = vld [vmem:[%s15227_s29 + $0x91] sm:$0xff] }
  0x24   :  { %8208 = vmatprep.subr.mxu1 %v93_v23  ;;  %8141 = vmatpush3.msra.mxu0 %v6707_v22  ;;  %v117_v3 = vld [vmem:[%s15227_s29 + $0x81] sm:$0xff]  ;;  %v118_v7 = vld [vmem:[%s15227_s29 + $0x89] sm:$0xff]  ;;  %v122_v20 = vld [vmem:[%s15227_s29 + $0xb1] sm:$0xff] }
  0x25   :  { %8209 = vmatpush3.msra.mxu1 %v93_v23  ;;  %8142 = vmatprep.subr.mxu0 %v6706_v24  ;;  %v78_v8 = vld [vmem:[%s15227_s29 + $0x88] sm:$0xff]  ;;  %v79_v11 = vld [vmem:[%s15227_s29 + $0x90] sm:$0xff]  ;;  %v80_v14 = vld [vmem:[%s15227_s29 + $0xa0] sm:$0xff] }
  0x26   :  { %8210 = vmatprep.subr.mxu1 %v92_v25  ;;  %8143 = vmatpush3.msra.mxu0 %v6706_v24  ;;  %v6725_v12 = vld [vmem:[%s15226_s23 + $0x130] sm:$0xff]  ;;  %v120_v13 = vld [vmem:[%s15227_s29 + $0xa1] sm:$0xff]  ;;  %v6742_v24 = vld [vmem:[%s15226_s23 + $0x1b8] sm:$0xff] }
  0x27   :  { %8211 = vmatpush3.msra.mxu1 %v92_v25  ;;  %8144 = vmatprep.subr.mxu0 %v6705_v26  ;;  %v6745_v15 = vld [vmem:[%s15226_s23 + $0x1d0] sm:$0xff]  ;;  %v6724_v16 = vld [vmem:[%s15226_s23 + $0x128] sm:$0xff]  ;;  %v6743_v22 = vld [vmem:[%s15226_s23 + $0x1c0] sm:$0xff] }
  0x28   :  { %8212 = vmatprep.subr.mxu1 %v91_v27  ;;  %8145 = vmatpush3.msra.mxu0 %v6705_v26  ;;  %v121_v17 = vld [vmem:[%s15227_s29 + $0xa9] sm:$0xff]  ;;  %v6723_v23 = vld [vmem:[%s15226_s23 + $0x120] sm:$0xff] }
  0x29   :  { %8213 = vmatpush3.msra.mxu1 %v91_v27  ;;  %8146 = vmatprep.subr.mxu0 %v6704_v28  ;;  %v6744_v18 = vld [vmem:[%s15226_s23 + $0x1c8] sm:$0xff]  ;;  %v82_v21 = vld [vmem:[%s15227_s29 + $0xb0] sm:$0xff]  ;;  %v83_v26 = vld [vmem:[%s15227_s29 + $0xc0] sm:$0xff] }
  0x2a   :  { %8214 = vmatprep.subr.mxu1 %v90_v29  ;;  %8147 = vmatpush3.msra.mxu0 %v6704_v28  ;;  %v81_v19 = vld [vmem:[%s15227_s29 + $0xa8] sm:$0xff] }
  0x2b   :  { %8215 = vmatpush3.msra.mxu1 %v90_v29  ;;  %8148 = vmatprep.subr.mxu0 %v6703_v30  ;;  %v123_v25 = vld [vmem:[%s15227_s29 + $0xc1] sm:$0xff]  ;;  %v124_v27 = vld [vmem:[%s15227_s29 + $0xc9] sm:$0xff]  ;;  %v6722_v29 = vld [vmem:[%s15226_s23 + $0x118] sm:$0xff] }
  0x2c   :  { %8216 = vmatprep.subr.mxu1 %v89_v31  ;;  %8149 = vmatpush3.msra.mxu0 %v6703_v30  ;;  %v84_v28 = vld [vmem:[%s15227_s29 + $0xc8] sm:$0xff]  ;;  %v6741_v30 = vld [vmem:[%s15226_s23 + $0x1b0] sm:$0xff] }
  0x2d   :  { %8150 = vmatprep.mubr.f32.mxu0 %v105_v32  ;;  %8217 = vmatpush3.msra.mxu1 %v89_v31  ;;  %v6740_v31 = vld [vmem:[%s15226_s23 + $0x1a8] sm:$0xff]  ;;  %v125_v32 = vld [vmem:[%s15227_s29 + $0xd1] sm:$0xff] }
  0x2e   :  { %8218 = vmatprep.mubr.f32.mxu1 %v65_v33  ;;  %8151 = vmatmul.mubr.f32.vlgmr.msra.gmra.mxu0 %v106_v34  ;;  %v85_v33 = vld [vmem:[%s15227_s29 + $0xd0] sm:$0xff] }
  0x2f   :  { %8219 = vmatmul.mubr.f32.vlgmr.msra.gmra.mxu1 %v66_v35  ;;  %8254 = vmatprep.subr.mxu0 %v6734_v36  ;;  %v6721_v34 = vld [vmem:[%s15226_s23 + $0x110] sm:$0xff]  ;;  %v126_v35 = vld [vmem:[%s15227_s29 + $0xe1] sm:$0xff] }
  0x30   :  { %8153 = vmatprep.mubr.f32.mxu0 %v107_v37  ;;  %8255 = vmatpush3.msra.mxu0 %v6734_v36  ;;  %v86_v36 = vld [vmem:[%s15227_s29 + $0xe0] sm:$0xff] }
  0x31   :  { %8221 = vmatprep.mubr.f32.mxu1 %v67_v38  ;;  %8256 = vmatprep.subr.mxu0 %v6733_v39  ;;  %v6739_v37 = vld [vmem:[%s15226_s23 + $0x1a0] sm:$0xff]  ;;  %v6720_v38 = vld [vmem:[%s15226_s23 + $0x108] sm:$0xff] }
  0x32   :  { %8322 = vmatprep.subr.mxu1 %v6750_v40  ;;  %8154 = vmatmul.mubr.f32.gmra.mxu0 %v108_v41  ;;  %v87_v41 = vld [vmem:[%s15227_s29 + $0xe8] sm:$0xff] }
  0x33   :  { %8222 = vmatmul.mubr.f32.gmra.mxu1 %v68_v42  ;;  %8257 = vmatpush3.msra.mxu0 %v6733_v39  ;;  %v127_v39 = vld [vmem:[%s15227_s29 + $0xe9] sm:$0xff]  ;;  %v128_v42 = vld [vmem:[%s15227_s29 + $0xf1] sm:$0xff] }
  0x34   :  { %8156 = vmatprep.mubr.f32.mxu0 %v109_v43  ;;  %8258 = vmatprep.subr.mxu0 %v6732_v44  ;;  %v88_v43 = vld [vmem:[%s15227_s29 + $0xf0] sm:$0xff] }
  0x35   :  { %8224 = vmatprep.mubr.f32.mxu1 %v69_v45  ;;  %8259 = vmatpush3.msra.mxu0 %v6732_v44  ;;  %v6737_v44 = vld [vmem:[%s15226_s23 + $0x190] sm:$0xff]  ;;  %v6719_v45 = vld [vmem:[%s15226_s23 + $0x100] sm:$0xff] }
  0x36   :  { %8323 = vmatpush3.msra.mxu1 %v6750_v40  ;;  %8157 = vmatmul.mubr.f32.gmra.mxu0 %v110_v46  ;;  %v6738_v40 = vld [vmem:[%s15226_s23 + $0x198] sm:$0xff]  ;;  %v6736_v46 = vld [vmem:[%s15226_s23 + $0x188] sm:$0xff] }
  0x37   :  { %8225 = vmatmul.mubr.f32.gmra.mxu1 %v70_v47  ;;  %8260 = vmatprep.subr.mxu0 %v6731_v48  ;;  %v516_v47 = vld [vmem:[%s15227_s29 + $0x2] sm:$0xff] }
  0x38   :  { %8159 = vmatprep.mubr.f32.mxu0 %v111_v49  ;;  %8261 = vmatpush3.msra.mxu0 %v6731_v48  ;;  %v517_v48 = vld [vmem:[%s15227_s29 + $0xa] sm:$0xff]  ;;  %v6735_v49 = vld [vmem:[%s15226_s23 + $0x180] sm:$0xff] }
  0x39   :  { %8227 = vmatprep.mubr.f32.mxu1 %v71_v50  ;;  %8262 = vmatprep.subr.mxu0 %v6730_v51  ;;  %v6766_v50 = vld [vmem:[%s15226_s23 + $0x278] sm:$0xff] }
  0x3a   :  { %8324 = vmatprep.subr.mxu1 %v6749_v52  ;;  %8160 = vmatmul.mubr.f32.gmra.mxu0 %v112_v53  ;;  %v518_v53 = vld [vmem:[%s15227_s29 + $0x12] sm:$0xff] }
  0x3b   :  { %8228 = vmatmul.mubr.f32.gmra.mxu1 %v72_v54  ;;  %8263 = vmatpush3.msra.mxu0 %v6730_v51  ;;  %v766_v51 = vld [vmem:[%s15227_s29 + $0x3] sm:$0xff]  ;;  %v6765_v54 = vld [vmem:[%s15226_s23 + $0x270] sm:$0xff] }
  0x3c   :  { %8162 = vmatprep.mubr.f32.mxu0 %v113_v55  ;;  %8230 = vmatprep.mubr.f32.mxu1 %v73_v56  ;;  %v519_v55 = vld [vmem:[%s15227_s29 + $0x22] sm:$0xff]  ;;  %v768_v56 = vld [vmem:[%s15227_s29 + $0x13] sm:$0xff] }
  0x3d   :  { %8264 = vmatprep.subr.mxu0 %v6729_v57  ;;  %8325 = vmatpush3.msra.mxu1 %v6749_v52  ;;  %v767_v52 = vld [vmem:[%s15227_s29 + $0xb] sm:$0xff] }
  0x3e   :  { %8265 = vmatpush3.msra.mxu0 %v6729_v57  ;;  %8326 = vmatprep.subr.mxu1 %v6748_v0  ;;  %v520_v57 = vld [vmem:[%s15227_s29 + $0x2a] sm:$0xff] }
  0x3f   :  { %8163 = vmatmul.mubr.f32.gmra.mxu0 %v114_v58  ;;  %8231 = vmatmul.mubr.f32.gmra.mxu1 %v74_v59  ;;  %v769_v58 = vld [vmem:[%s15227_s29 + $0x23] sm:$0xff] }
  0x40   :  { %8266 = vmatprep.subr.mxu0 %v6728_v60  ;;  %8165 = vmatprep.mubr.f32.mxu0 %v115_v61  ;;  %v6764_v59 = vld [vmem:[%s15226_s23 + $0x268] sm:$0xff]  ;;  %v521_v61 = vld [vmem:[%s15227_s29 + $0x32] sm:$0xff] }
  0x41   :  { %8233 = vmatprep.mubr.f32.mxu1 %v75_v62  ;;  %8267 = vmatpush3.msra.mxu0 %v6728_v60  ;;  %v770_v60 = vld [vmem:[%s15227_s29 + $0x2b] sm:$0xff]  ;;  %v6763_v62 = vld [vmem:[%s15226_s23 + $0x260] sm:$0xff] }
  0x42   :  { %8268 = vmatprep.subr.mxu0 %v6727_v63  ;;  %8327 = vmatpush3.msra.mxu1 %v6748_v0  ;;  %v771_v0 = vld [vmem:[%s15227_s29 + $0x33] sm:$0xff] }
  0x43   :  { %8166 = vmatmul.mubr.f32.gmra.mxu0 %v116_v1  ;;  %8234 = vmatmul.mubr.f32.gmra.mxu1 %v76_v2  ;;  %v6762_v1 = vld [vmem:[%s15226_s23 + $0x258] sm:$0xff]  ;;  %v772_v2 = vld [vmem:[%s15227_s29 + $0x43] sm:$0xff] }
  0x44   :  { %8269 = vmatpush3.msra.mxu0 %v6727_v63  ;;  %8168 = vmatprep.mubr.f32.mxu0 %v117_v3  ;;  %v522_v63 = vld [vmem:[%s15227_s29 + $0x42] sm:$0xff]  ;;  %v523_v3 = vld [vmem:[%s15227_s29 + $0x4a] sm:$0xff] }
  0x45   :  { %8236 = vmatprep.mubr.f32.mxu1 %v77_v4  ;;  %8270 = vmatprep.subr.mxu0 %v6726_v5  ;;  %v6761_v4 = vld [vmem:[%s15226_s23 + $0x250] sm:$0xff] }
  0x46   :  { %8328 = vmatprep.subr.mxu1 %v6747_v6  ;;  %8271 = vmatpush3.msra.mxu0 %v6726_v5  ;;  %v524_v5 = vld [vmem:[%s15227_s29 + $0x52] sm:$0xff] }
  0x47   :  { %8169 = vmatmul.mubr.f32.gmra.mxu0 %v118_v7  ;;  %8237 = vmatmul.mubr.f32.gmra.mxu1 %v78_v8  ;;  %v6760_v7 = vld [vmem:[%s15226_s23 + $0x248] sm:$0xff]  ;;  %v774_v8 = vld [vmem:[%s15227_s29 + $0x53] sm:$0xff] }
  0x48   :  { %8329 = vmatpush3.msra.mxu1 %v6747_v6  ;;  %8171 = vmatprep.mubr.f32.mxu0 %v119_v10  ;;  %v773_v6 = vld [vmem:[%s15227_s29 + $0x4b] sm:$0xff]  ;;  %v6759_v10 = vld [vmem:[%s15226_s23 + $0x240] sm:$0xff] }
  0x49   :  { %8330 = vmatprep.subr.mxu1 %v6746_v9  ;;  %8239 = vmatprep.mubr.f32.mxu1 %v79_v11  ;;  %v526_v11 = vld [vmem:[%s15227_s29 + $0x6a] sm:$0xff] }
  0x4a   :  { %8272 = vmatprep.subr.mxu0 %v6725_v12  ;;  %8331 = vmatpush3.msra.mxu1 %v6746_v9  ;;  %v525_v9 = vld [vmem:[%s15227_s29 + $0x62] sm:$0xff] }
  0x4b   :  { %8172 = vmatmul.mubr.f32.gmra.mxu0 %v120_v13  ;;  %8240 = vmatmul.mubr.f32.gmra.mxu1 %v80_v14  ;;  %v6758_v13 = vld [vmem:[%s15226_s23 + $0x238] sm:$0xff]  ;;  %v776_v14 = vld [vmem:[%s15227_s29 + $0x6b] sm:$0xff] }
  0x4c   :  { %8273 = vmatpush3.msra.mxu0 %v6725_v12  ;;  %8332 = vmatprep.subr.mxu1 %v6745_v15  ;;  %v775_v12 = vld [vmem:[%s15227_s29 + $0x63] sm:$0xff] }
  0x4d   :  { %8274 = vmatprep.subr.mxu0 %v6724_v16  ;;  %8333 = vmatpush3.msra.mxu1 %v6745_v15  ;;  %v527_v15 = vld [vmem:[%s15227_s29 + $0x72] sm:$0xff] }
  0x4e   :  { %8174 = vmatprep.mubr.f32.mxu0 %v121_v17  ;;  %8334 = vmatprep.subr.mxu1 %v6744_v18  ;;  %v528_v17 = vld [vmem:[%s15227_s29 + $0x82] sm:$0xff] }
  0x4f   :  { %8242 = vmatprep.mubr.f32.mxu1 %v81_v19  ;;  %8275 = vmatpush3.msra.mxu0 %v6724_v16  ;;  %v6757_v16 = vld [vmem:[%s15226_s23 + $0x230] sm:$0xff]  ;;  %v6756_v19 = vld [vmem:[%s15226_s23 + $0x228] sm:$0xff] }
  0x50   :  { %8335 = vmatpush3.msra.mxu1 %v6744_v18  ;;  %8175 = vmatmul.mubr.f32.gmra.mxu0 %v122_v20  ;;  %v777_v18 = vld [vmem:[%s15227_s29 + $0x73] sm:$0xff]  ;;  %v778_v20 = vld [vmem:[%s15227_s29 + $0x83] sm:$0xff] }
  0x51   :  { %8243 = vmatmul.mubr.f32.gmra.mxu1 %v82_v21  ;;  %8336 = vmatprep.subr.mxu1 %v6743_v22  ;;  %v529_v21 = vld [vmem:[%s15227_s29 + $0x8a] sm:$0xff] }
  0x52   :  { %8276 = vmatprep.subr.mxu0 %v6723_v23  ;;  %8337 = vmatpush3.msra.mxu1 %v6743_v22  ;;  %v6755_v22 = vld [vmem:[%s15226_s23 + $0x220] sm:$0xff] }
  0x53   :  { %8277 = vmatpush3.msra.mxu0 %v6723_v23  ;;  %8338 = vmatprep.subr.mxu1 %v6742_v24  ;;  %v530_v23 = vld [vmem:[%s15227_s29 + $0x92] sm:$0xff] }
  0x54   :  { %8177 = vmatprep.mubr.f32.mxu0 %v123_v25  ;;  %8245 = vmatprep.mubr.f32.mxu1 %v83_v26  ;;  %v6754_v25 = vld [vmem:[%s15226_s23 + $0x218] sm:$0xff] }
  0x55   :  { %8339 = vmatpush3.msra.mxu1 %v6742_v24  ;;  %8178 = vmatmul.mubr.f32.gmra.mxu0 %v124_v27  ;;  %v779_v24 = vld [vmem:[%s15227_s29 + $0x8b] sm:$0xff]  ;;  %v780_v26 = vld [vmem:[%s15227_s29 + $0x93] sm:$0xff]  ;;  %v531_v27 = vld [vmem:[%s15227_s29 + $0xa2] sm:$0xff] }
  0x56   :  { %8246 = vmatmul.mubr.f32.gmra.mxu1 %v84_v28  ;;  %8278 = vmatprep.subr.mxu0 %v6722_v29  ;;  %v6753_v28 = vld [vmem:[%s15226_s23 + $0x210] sm:$0xff] }
  0x57   :  { %8340 = vmatprep.subr.mxu1 %v6741_v30  ;;  %8279 = vmatpush3.msra.mxu0 %v6722_v29  ;;  %v532_v29 = vld [vmem:[%s15227_s29 + $0xaa] sm:$0xff] }
  0x58   :  { %8341 = vmatpush3.msra.mxu1 %v6741_v30  ;;  %8180 = vmatprep.mubr.f32.mxu0 %v125_v32  ;;  %v781_v30 = vld [vmem:[%s15227_s29 + $0xa3] sm:$0xff]  ;;  %v782_v32 = vld [vmem:[%s15227_s29 + $0xab] sm:$0xff] }
  0x59   :  { %8342 = vmatprep.subr.mxu1 %v6740_v31  ;;  %8248 = vmatprep.mubr.f32.mxu1 %v85_v33  ;;  %v533_v33 = vld [vmem:[%s15227_s29 + $0xb2] sm:$0xff] }
  0x5a   :  { %8280 = vmatprep.subr.mxu0 %v6721_v34  ;;  %8343 = vmatpush3.msra.mxu1 %v6740_v31  ;;  %v6752_v31 = vld [vmem:[%s15226_s23 + $0x208] sm:$0xff] }
  0x5b   :  { %8181 = vmatmul.mubr.f32.gmra.mxu0 %v126_v35  ;;  %8249 = vmatmul.mubr.f32.gmra.mxu1 %v86_v36  ;;  %v534_v35 = vld [vmem:[%s15227_s29 + $0xc2] sm:$0xff]  ;;  %v783_v36 = vld [vmem:[%s15227_s29 + $0xb3] sm:$0xff] }
  0x5c   :  { %8281 = vmatpush3.msra.mxu0 %v6721_v34  ;;  %8344 = vmatprep.subr.mxu1 %v6739_v37  ;;  %v6751_v34 = vld [vmem:[%s15226_s23 + $0x200] sm:$0xff]  ;;  %s15228_s23 = sld [smem:[#allocation33_spill]] }
  0x5d   :  { %8282 = vmatprep.subr.mxu0 %v6720_v38  ;;  %8345 = vmatpush3.msra.mxu1 %v6739_v37  ;;  %v784_v37 = vld [vmem:[%s15227_s29 + $0xc3] sm:$0xff] }
  0x5e   :  { %8183 = vmatprep.mubr.f32.mxu0 %v127_v39  ;;  %8346 = vmatprep.subr.mxu1 %v6738_v40  ;;  %v536_v39 = vld [vmem:[%s15227_s29 + $0xd2] sm:$0xff] }
  0x5f   :  { %8251 = vmatprep.mubr.f32.mxu1 %v87_v41  ;;  %8283 = vmatpush3.msra.mxu0 %v6720_v38  ;;  %v535_v38 = vld [vmem:[%s15227_s29 + $0xca] sm:$0xff]  ;;  %v786_v41 = vld [vmem:[%s15227_s29 + $0xd3] sm:$0xff] }
  0x60   :  { %8347 = vmatpush3.msra.mxu1 %v6738_v40  ;;  %8184 = vmatmul.mubr.f32.gmra.mxu0 %v128_v42  ;;  %v785_v40 = vld [vmem:[%s15227_s29 + $0xcb] sm:$0xff]  ;;  %v537_v42 = vld [vmem:[%s15227_s29 + $0xe2] sm:$0xff] }
  0x61   :  { %8252 = vmatmul.mubr.f32.gmra.mxu1 %v88_v43  ;;  %8348 = vmatprep.subr.mxu1 %v6737_v44  ;;  %v538_v43 = vld [vmem:[%s15227_s29 + $0xea] sm:$0xff] }
  0x62   :  { %8284 = vmatprep.subr.mxu0 %v6719_v45  ;;  %8349 = vmatpush3.msra.mxu1 %v6737_v44  ;;  %v787_v44 = vld [vmem:[%s15227_s29 + $0xe3] sm:$0xff] }
  0x63   :  { %8285 = vmatpush3.msra.mxu0 %v6719_v45  ;;  %8350 = vmatprep.subr.mxu1 %v6736_v46  ;;  %v788_v45 = vld [vmem:[%s15227_s29 + $0xeb] sm:$0xff] }
  0x64   :  { %8286 = vmatprep.mubr.f32.mxu0 %v516_v47  ;;  %8351 = vmatpush3.msra.mxu1 %v6736_v46  ;;  %v539_v46 = vld [vmem:[%s15227_s29 + $0xf2] sm:$0xff]  ;;  %v1016_v47 = vld [vmem:[%s15227_s29 + $0x4] sm:$0xff] }
  0x65   :  { %8287 = vmatmul.mubr.f32.vlgmr.msra.gmra.mxu0 %v517_v48  ;;  %8352 = vmatprep.subr.mxu1 %v6735_v49  ;;  %v789_v48 = vld [vmem:[%s15227_s29 + $0xf3] sm:$0xff] }
  0x66   :  { %8390 = vmatprep.subr.mxu0 %v6766_v50  ;;  %8353 = vmatpush3.msra.mxu1 %v6735_v49  ;;  %v1017_v49 = vld [vmem:[%s15227_s29 + $0xc] sm:$0xff] }
  0x67   :  { %8354 = vmatprep.mubr.f32.mxu1 %v766_v51  ;;  %8391 = vmatpush3.msra.mxu0 %v6766_v50  ;;  %v1018_v50 = vld [vmem:[%s15227_s29 + $0x14] sm:$0xff]  ;;  %v1019_v51 = vld [vmem:[%s15227_s29 + $0x24] sm:$0xff] }
  0x68   :  { %8355 = vmatmul.mubr.f32.vlgmr.msra.gmra.mxu1 %v767_v52  ;;  %8289 = vmatprep.mubr.f32.mxu0 %v518_v53  ;;  %v1020_v52 = vld [vmem:[%s15227_s29 + $0x2c] sm:$0xff]  ;;  %v1021_v53 = vld [vmem:[%s15227_s29 + $0x34] sm:$0xff] }
  0x69   :  { %8392 = vmatprep.subr.mxu0 %v6765_v54  ;;  %8290 = vmatmul.mubr.f32.gmra.mxu0 %v519_v55  ;;  %v1023_v55 = vld [vmem:[%s15227_s29 + $0x4c] sm:$0xff] }
  0x6a   :  { %8357 = vmatprep.mubr.f32.mxu1 %v768_v56  ;;  %8393 = vmatpush3.msra.mxu0 %v6765_v54  ;;  %v1022_v54 = vld [vmem:[%s15227_s29 + $0x44] sm:$0xff]  ;;  %v1024_v56 = vld [vmem:[%s15227_s29 + $0x54] sm:$0xff] }
  0x6b   :  { %8292 = vmatprep.mubr.f32.mxu0 %v520_v57  ;;  %8394 = vmatprep.subr.mxu0 %v6764_v59  ;;  %v1025_v57 = vld [vmem:[%s15227_s29 + $0x64] sm:$0xff] }
  0x6c   :  { %8358 = vmatmul.mubr.f32.gmra.mxu1 %v769_v58  ;;  %8395 = vmatpush3.msra.mxu0 %v6764_v59  ;;  %v1026_v58 = vld [vmem:[%s15227_s29 + $0x6c] sm:$0xff]  ;;  %v1027_v59 = vld [vmem:[%s15227_s29 + $0x74] sm:$0xff] }
  0x6d   :  { %8360 = vmatprep.mubr.f32.mxu1 %v770_v60  ;;  %8293 = vmatmul.mubr.f32.gmra.mxu0 %v521_v61  ;;  %v1028_v60 = vld [vmem:[%s15227_s29 + $0x84] sm:$0xff]  ;;  %v1029_v61 = vld [vmem:[%s15227_s29 + $0x8c] sm:$0xff] }
  0x6e   :  { %8396 = vmatprep.subr.mxu0 %v6763_v62  ;;  %8295 = vmatprep.mubr.f32.mxu0 %v522_v63  ;;  %v1031_v63 = vld [vmem:[%s15227_s29 + $0xa4] sm:$0xff] }
  0x6f   :  { %8397 = vmatpush3.msra.mxu0 %v6763_v62  ;;  %v1030_v62 = vld [vmem:[%s15227_s29 + $0x94] sm:$0xff] }
  0x70   :  { %8361 = vmatmul.mubr.f32.gmra.mxu1 %v771_v0  ;;  %8398 = vmatprep.subr.mxu0 %v6762_v1  ;;  %v1032_v0 = vld [vmem:[%s15227_s29 + $0xac] sm:$0xff] }
  0x71   :  { %8363 = vmatprep.mubr.f32.mxu1 %v772_v2  ;;  %8399 = vmatpush3.msra.mxu0 %v6762_v1  ;;  %v1033_v1 = vld [vmem:[%s15227_s29 + $0xb4] sm:$0xff]  ;;  %v1034_v2 = vld [vmem:[%s15227_s29 + $0xc4] sm:$0xff] }
  0x72   :  { %8296 = vmatmul.mubr.f32.gmra.mxu0 %v523_v3  ;;  %8400 = vmatprep.subr.mxu0 %v6761_v4  ;;  %v1035_v3 = vld [vmem:[%s15227_s29 + $0xcc] sm:$0xff] }
  0x73   :  { %8298 = vmatprep.mubr.f32.mxu0 %v524_v5  ;;  %8401 = vmatpush3.msra.mxu0 %v6761_v4  ;;  %v1036_v4 = vld [vmem:[%s15227_s29 + $0xd4] sm:$0xff]  ;;  %v1037_v5 = vld [vmem:[%s15227_s29 + $0xe4] sm:$0xff] }
  0x74   :  { %8364 = vmatmul.mubr.f32.gmra.mxu1 %v773_v6  ;;  %8402 = vmatprep.subr.mxu0 %v6760_v7  ;;  %v1038_v6 = vld [vmem:[%s15227_s29 + $0xec] sm:$0xff] }
  0x75   :  { %8366 = vmatprep.mubr.f32.mxu1 %v774_v8  ;;  %8403 = vmatpush3.msra.mxu0 %v6760_v7  ;;  %v1039_v7 = vld [vmem:[%s15227_s29 + $0xf4] sm:$0xff] }
  0x76   :  { %8299 = vmatmul.mubr.f32.gmra.mxu0 %v525_v9  ;;  %8404 = vmatprep.subr.mxu0 %v6759_v10  ;;  %v1452_v8 = vld [vmem:[%s15228_s23 + $0x58] sm:$0xff] }
  0x77   :  { %8301 = vmatprep.mubr.f32.mxu0 %v526_v11  ;;  %8405 = vmatpush3.msra.mxu0 %v6759_v10  ;;  %v6827_v9 = vld [vmem:[%s15228_s23 + $0xb8] sm:$0xff]  ;;  %v1451_v10 = vld [vmem:[%s15228_s23 + $0x50] sm:$0xff] }
  0x78   :  { %8367 = vmatmul.mubr.f32.gmra.mxu1 %v775_v12  ;;  %8406 = vmatprep.subr.mxu0 %v6758_v13  ;;  %v6826_v11 = vld [vmem:[%s15228_s23 + $0xb0] sm:$0xff]  ;;  %v1450_v12 = vld [vmem:[%s15228_s23 + $0x48] sm:$0xff] }
  0x79   :  { %8369 = vmatprep.mubr.f32.mxu1 %v776_v14  ;;  %8407 = vmatpush3.msra.mxu0 %v6758_v13  ;;  %v6825_v13 = vld [vmem:[%s15228_s23 + $0xa8] sm:$0xff]  ;;  %v1449_v14 = vld [vmem:[%s15228_s23 + $0x40] sm:$0xff] }
  0x7a   :  { %8302 = vmatmul.mubr.f32.gmra.mxu0 %v527_v15  ;;  %8408 = vmatprep.subr.mxu0 %v6757_v16  ;;  %v6824_v15 = vld [vmem:[%s15228_s23 + $0xa0] sm:$0xff] }
  0x7b   :  { %8304 = vmatprep.mubr.f32.mxu0 %v528_v17  ;;  %8409 = vmatpush3.msra.mxu0 %v6757_v16  ;;  %v1448_v16 = vld [vmem:[%s15228_s23 + $0x38] sm:$0xff] }
  0x7c   :  { %8370 = vmatmul.mubr.f32.gmra.mxu1 %v777_v18  ;;  %8410 = vmatprep.subr.mxu0 %v6756_v19  ;;  %v6823_v17 = vld [vmem:[%s15228_s23 + $0x98] sm:$0xff]  ;;  %v1447_v18 = vld [vmem:[%s15228_s23 + $0x30] sm:$0xff] }
  0x7d   :  { %8372 = vmatprep.mubr.f32.mxu1 %v778_v20  ;;  %8411 = vmatpush3.msra.mxu0 %v6756_v19  ;;  %v6822_v19 = vld [vmem:[%s15228_s23 + $0x90] sm:$0xff]  ;;  %v1446_v20 = vld [vmem:[%s15228_s23 + $0x28] sm:$0xff] }
  0x7e   :  { %8305 = vmatmul.mubr.f32.gmra.mxu0 %v529_v21  ;;  %8412 = vmatprep.subr.mxu0 %v6755_v22  ;;  %v6821_v21 = vld [vmem:[%s15228_s23 + $0x88] sm:$0xff] }
  0x7f   :  { %8307 = vmatprep.mubr.f32.mxu0 %v530_v23  ;;  %8413 = vmatpush3.msra.mxu0 %v6755_v22  ;;  %v1445_v22 = vld [vmem:[%s15228_s23 + $0x20] sm:$0xff] }
  0x80   :  { %8373 = vmatmul.mubr.f32.gmra.mxu1 %v779_v24  ;;  %8414 = vmatprep.subr.mxu0 %v6754_v25  ;;  %v6820_v23 = vld [vmem:[%s15228_s23 + $0x80] sm:$0xff]  ;;  %v1444_v24 = vld [vmem:[%s15228_s23 + $0x18] sm:$0xff] }
  0x81   :  { %8375 = vmatprep.mubr.f32.mxu1 %v780_v26  ;;  %8415 = vmatpush3.msra.mxu0 %v6754_v25  ;;  %v6819_v25 = vld [vmem:[%s15228_s23 + $0x78] sm:$0xff]  ;;  %v1443_v26 = vld [vmem:[%s15228_s23 + $0x10] sm:$0xff] }
  0x82   :  { %8308 = vmatmul.mubr.f32.gmra.mxu0 %v531_v27  ;;  %8416 = vmatprep.subr.mxu0 %v6753_v28  ;;  %v6818_v27 = vld [vmem:[%s15228_s23 + $0x70] sm:$0xff] }
  0x83   :  { %8310 = vmatprep.mubr.f32.mxu0 %v532_v29  ;;  %8417 = vmatpush3.msra.mxu0 %v6753_v28 }
  0x84   :  { %8376 = vmatmul.mubr.f32.gmra.mxu1 %v781_v30  ;;  %8418 = vmatprep.subr.mxu0 %v6752_v31  ;;  %v1442_v30 = vld [vmem:[%s15228_s23 + $0x8] sm:$0xff] }
  0x85   :  { %8378 = vmatprep.mubr.f32.mxu1 %v782_v32  ;;  %8419 = vmatpush3.msra.mxu0 %v6752_v31  ;;  %v6817_v31 = vld [vmem:[%s15228_s23 + $0x68] sm:$0xff] }
  0x86   :  { %8311 = vmatmul.mubr.f32.gmra.mxu0 %v533_v33  ;;  %8420 = vmatprep.subr.mxu0 %v6751_v34 }
  0x87   :  { %8313 = vmatprep.mubr.f32.mxu0 %v534_v35  ;;  %8421 = vmatpush3.msra.mxu0 %v6751_v34  ;;  %v1441_v34 = vld [vmem:[%s15228_s23] sm:$0xff] }
  0x88   :  { %8379 = vmatmul.mubr.f32.gmra.mxu1 %v783_v36  ;;  %8458 = vmatprep.subr.mxu1 %v1452_v8  ;;  %v6816_v35 = vld [vmem:[%s15228_s23 + $0x60] sm:$0xff]  ;;  %s8775_s23 = smov 16  }
  0x89   :  { %8381 = vmatprep.mubr.f32.mxu1 %v784_v37  ;;  %8518 = vmatprep.subr.mxu0 %v6827_v9 }
  0x8a   :  { %8314 = vmatmul.mubr.f32.gmra.mxu0 %v535_v38  ;;  %8459 = vmatpush3.msra.mxu1 %v1452_v8 }
  0x8b   :  { %8316 = vmatprep.mubr.f32.mxu0 %v536_v39  ;;  %8460 = vmatprep.subr.mxu1 %v1451_v10 }
  0x8c   :  { %8382 = vmatmul.mubr.f32.gmra.mxu1 %v785_v40 }
  0x8d   :  { %8384 = vmatprep.mubr.f32.mxu1 %v786_v41  ;;  %8461 = vmatpush3.msra.mxu1 %v1451_v10 }
  0x8e   :  { %8317 = vmatmul.mubr.f32.gmra.mxu0 %v537_v42  ;;  %8462 = vmatprep.subr.mxu1 %v1450_v12 }
  0x8f   :  { %8319 = vmatprep.mubr.f32.mxu0 %v538_v43  ;;  %8463 = vmatpush3.msra.mxu1 %v1450_v12 }
  0x90   :  { %8385 = vmatmul.mubr.f32.gmra.mxu1 %v787_v44  ;;  %8464 = vmatprep.subr.mxu1 %v1449_v14 }
  0x91   :  { %8387 = vmatprep.mubr.f32.mxu1 %v788_v45  ;;  %8465 = vmatpush3.msra.mxu1 %v1449_v14 }
  0x92   :  { %8320 = vmatmul.mubr.f32.gmra.mxu0 %v539_v46  ;;  %8466 = vmatprep.subr.mxu1 %v1448_v16 }
  0x93   :  { %8422 = vmatprep.mubr.f32.mxu0 %v1016_v47  ;;  %8467 = vmatpush3.msra.mxu1 %v1448_v16 }
  0x94   :  { %8388 = vmatmul.mubr.f32.gmra.mxu1 %v789_v48  ;;  %8468 = vmatprep.subr.mxu1 %v1447_v18 }
  0x95   :  { %8469 = vmatpush3.msra.mxu1 %v1447_v18 }
  0x96   :  { %8423 = vmatmul.mubr.f32.vlgmr.msra.gmra.mxu0 %v1017_v49  ;;  %8470 = vmatprep.subr.mxu1 %v1446_v20 }
  0x97   :  { %8425 = vmatprep.mubr.f32.mxu0 %v1018_v50  ;;  %8519 = vmatpush3.msra.mxu0 %v6827_v9 }
  0x98   :  { %8520 = vmatprep.subr.mxu0 %v6826_v11  ;;  %8471 = vmatpush3.msra.mxu1 %v1446_v20 }
  0x99   :  { %8521 = vmatpush3.msra.mxu0 %v6826_v11  ;;  %8472 = vmatprep.subr.mxu1 %v1445_v22 }
  0x9a   :  { %8426 = vmatmul.mubr.f32.gmra.mxu0 %v1019_v51  ;;  %8522 = vmatprep.subr.mxu0 %v6825_v13 }
  0x9b   :  { %8428 = vmatprep.mubr.f32.mxu0 %v1020_v52  ;;  %8523 = vmatpush3.msra.mxu0 %v6825_v13 }
  0x9c   :  { %8524 = vmatprep.subr.mxu0 %v6824_v15  ;;  %8473 = vmatpush3.msra.mxu1 %v1445_v22 }
  0x9d   :  { %8525 = vmatpush3.msra.mxu0 %v6824_v15  ;;  %8474 = vmatprep.subr.mxu1 %v1444_v24 }
  0x9e   :  { %8429 = vmatmul.mubr.f32.gmra.mxu0 %v1021_v53  ;;  %8526 = vmatprep.subr.mxu0 %v6823_v17 }
  0x9f   :  { %8431 = vmatprep.mubr.f32.mxu0 %v1022_v54  ;;  %8527 = vmatpush3.msra.mxu0 %v6823_v17 }
  0xa0   :  { %8528 = vmatprep.subr.mxu0 %v6822_v19  ;;  %8475 = vmatpush3.msra.mxu1 %v1444_v24 }
  0xa1   :  { %8529 = vmatpush3.msra.mxu0 %v6822_v19  ;;  %8476 = vmatprep.subr.mxu1 %v1443_v26 }
  0xa2   :  { %8432 = vmatmul.mubr.f32.gmra.mxu0 %v1023_v55  ;;  %8530 = vmatprep.subr.mxu0 %v6821_v21 }
  0xa3   :  { %8434 = vmatprep.mubr.f32.mxu0 %v1024_v56  ;;  %8531 = vmatpush3.msra.mxu0 %v6821_v21 }
  0xa4   :  { %8532 = vmatprep.subr.mxu0 %v6820_v23  ;;  %8477 = vmatpush3.msra.mxu1 %v1443_v26 }
  0xa5   :  { %8533 = vmatpush3.msra.mxu0 %v6820_v23  ;;  %8478 = vmatprep.subr.mxu1 %v1442_v30 }
  0xa6   :  { %8435 = vmatmul.mubr.f32.gmra.mxu0 %v1025_v57  ;;  %8534 = vmatprep.subr.mxu0 %v6819_v25 }
  0xa7   :  { %8437 = vmatprep.mubr.f32.mxu0 %v1026_v58  ;;  %8535 = vmatpush3.msra.mxu0 %v6819_v25 }
  0xa8   :  { %8536 = vmatprep.subr.mxu0 %v6818_v27  ;;  %8479 = vmatpush3.msra.mxu1 %v1442_v30 }
  0xa9   :  { %8537 = vmatpush3.msra.mxu0 %v6818_v27  ;;  %8480 = vmatprep.subr.mxu1 %v1441_v34 }
  0xaa   :  { %8438 = vmatmul.mubr.f32.gmra.mxu0 %v1027_v59  ;;  %8538 = vmatprep.subr.mxu0 %v6817_v31 }
  0xab   :  { %8440 = vmatprep.mubr.f32.mxu0 %v1028_v60  ;;  %8539 = vmatpush3.msra.mxu0 %v6817_v31 }
  0xac   :  { %8540 = vmatprep.subr.mxu0 %v6816_v35  ;;  %8481 = vmatpush3.msra.mxu1 %v1441_v34 }
  0xad   :  { %8541 = vmatpush3.msra.mxu0 %v6816_v35 }
  0xae   :  { %8441 = vmatmul.mubr.f32.gmra.mxu0 %v1029_v61 }
  0xaf   :  { %8443 = vmatprep.mubr.f32.mxu0 %v1030_v62 }
  0xb2   :  { %8444 = vmatmul.mubr.f32.gmra.mxu0 %v1031_v63 }
  0xb3   :  { %8446 = vmatprep.mubr.f32.mxu0 %v1032_v0 }
  0xb6   :  { %8447 = vmatmul.mubr.f32.gmra.mxu0 %v1033_v1 }
  0xb7   :  { %8449 = vmatprep.mubr.f32.mxu0 %v1034_v2 }
  0xba   :  { %8450 = vmatmul.mubr.f32.gmra.mxu0 %v1035_v3 }
  0xbb   :  { %8452 = vmatprep.mubr.f32.mxu0 %v1036_v4 }
  0xbe   :  { %8453 = vmatmul.mubr.f32.gmra.mxu0 %v1037_v5 }
  0xbf   :  { %8455 = vmatprep.mubr.f32.mxu0 %v1038_v6 }
  0xc2   :  { %8456 = vmatmul.mubr.f32.gmra.mxu0 %v1039_v7 }
  0xee   :  { %v9548_v28 = vpop.f32.mrf.mxu0 }
  0xef   :  { %v9550_v29 = vpop.f32.mrf.mxu1 }
  0xf0   :  { %v9558_v32 = vpop.f32.mrf.mxu0 }
  0xf1   :  { %v9560_v33 = vpop.f32.mrf.mxu1 }
  0xf2   :  { %v9568_v36 = vpop.f32.mrf.mxu0 }
  0xf3   :  { %v9570_v37 = vpop.f32.mrf.mxu1 }
  0xf4   :  { %v9572_v38 = vpop.f32.mrf.mxu0 }
  0xf5   :  { %v9574_v39 = vpop.f32.mrf.mxu1 }
  0xf6   :  { %v9576_v40 = vpop.f32.mrf.mxu0 }
  0xf7   :  { %v9578_v41 = vpop.f32.mrf.mxu1 }
  0xf8   :  { %v9580_v42 = vpop.f32.mrf.mxu0 }
  0xf9   :  { %v9582_v43 = vpop.f32.mrf.mxu1 }
  0xfa   :  { %v9584_v44 = vpop.f32.mrf.mxu0 }
  0xfb   :  { %v9586_v45 = vpop.f32.mrf.mxu1 }
  0xfc   :  { %v9588_v46 = vpop.f32.mrf.mxu0 }
  0xfd   :  { %v9590_v47 = vpop.f32.mrf.mxu1 }
  0xff   :  { %v9592_v48 = vpop.f32.mrf.mxu0  ;;  %v9594_v49 = vpop.f32.mrf.mxu1 }
 0x101   :  { %v9596_v50 = vpop.f32.mrf.mxu0  ;;  %v9598_v51 = vpop.f32.mrf.mxu1 }
 0x103   :  { %v9600_v52 = vpop.f32.mrf.mxu0  ;;  %v9602_v53 = vpop.f32.mrf.mxu1 }
 0x105   :  { %v9604_v54 = vpop.f32.mrf.mxu0  ;;  %v9606_v55 = vpop.f32.mrf.mxu1 }
 0x107   :  { %v9608_v56 = vpop.f32.mrf.mxu0  ;;  %v9610_v57 = vpop.f32.mrf.mxu1 }
 0x109   :  { %v9612_v58 = vpop.f32.mrf.mxu0  ;;  %v9614_v59 = vpop.f32.mrf.mxu1 }
 0x10b   :  { %v9616_v60 = vpop.f32.mrf.mxu0  ;;  %v9618_v61 = vpop.f32.mrf.mxu1 }
 0x10d   :  { %v9620_v62 = vpop.f32.mrf.mxu0  ;;  %v9622_v63 = vpop.f32.mrf.mxu1 }
 0x110   :  { %v9624_v0 = vpop.f32.mrf.mxu0 }
 0x111   :  { %v9626_v1 = vpop.f32.mrf.mxu1 }
 0x112   :  { %v9628_v2 = vpop.f32.mrf.mxu0 }
 0x113   :  { %v9630_v3 = vpop.f32.mrf.mxu1 }
 0x115   :  { %v9632_v4 = vpop.f32.mrf.mxu0 }
 0x116   :  { %v9634_v5 = vpop.f32.mrf.mxu1 }
 0x117   :  { %v9636_v6 = vpop.f32.mrf.mxu0 }
 0x118   :  { %v9638_v7 = vpop.f32.mrf.mxu1 }
 0x11b   :  { %v9640_v8 = vpop.f32.mrf.mxu0  ;;  %v9642_v9 = vpop.f32.mrf.mxu1 }
 0x11d   :  { %v9644_v10 = vpop.f32.mrf.mxu0  ;;  %v9646_v11 = vpop.f32.mrf.mxu1 }
 0x120   :  { %v9648_v12 = vpop.f32.mrf.mxu0 }
 0x121   :  { %v9650_v13 = vpop.f32.mrf.mxu1 }
 0x122   :  { %v9652_v14 = vpop.f32.mrf.mxu0 }
 0x123   :  { %15229 = vst [vmem:[#allocation2_spill] sm:$0xff] %v9652_v14  ;;  %v9654_v16 = vpop.f32.mrf.mxu1 }
 0x124   :  { %15230 = vst [vmem:[#allocation3_spill] sm:$0xff] %v9654_v16 }
 0x125   :  { %v8288_v15 = vpop.f32.mrf.mxu0 }
 0x127   :  { %v623_v17 = vpop.f32.mrf.mxu0 }
 0x128   :  { %v8356_v18 = vpop.f32.mrf.mxu1 }
 0x129   :  { %v8291_v19 = vpop.f32.mrf.mxu0 }
 0x12a   :  { %v9656_v20 = vpop.f32.mrf.mxu1 }
 0x12b   :  { %v9658_v21 = vpop.f32.mrf.mxu0 }
 0x12c   :  { %v9660_v22 = vpop.f32.mrf.mxu1 }
 0x12d   :  { %15231 = vst [vmem:[#allocation4_spill] sm:$0xff] %v9660_v22  ;;  %v9662_v23 = vpop.f32.mrf.mxu0 }
 0x12e   :  { %v9664_v24 = vpop.f32.mrf.mxu1 }
 0x12f   :  { %15232 = vst [vmem:[#allocation5_spill] sm:$0xff] %v9664_v24  ;;  %v9666_v25 = vpop.f32.mrf.mxu0 }
 0x130   :  { %15233 = vst [vmem:[#allocation6_spill] sm:$0xff] %v9666_v25  ;;  %v9668_v26 = vpop.f32.mrf.mxu1 }
 0x131   :  { %15234 = vst [vmem:[#allocation7_spill] sm:$0xff] %v9668_v26 }
 0x132   :  { %v9670_v27 = vpop.f32.mrf.mxu0  ;;  %v9672_v30 = vpop.f32.mrf.mxu1 }
 0x133   :  { %15235 = vst [vmem:[#allocation8_spill] sm:$0xff] %v9670_v27  ;;  %15236 = vst [vmem:[#allocation9_spill] sm:$0xff] %v9672_v30 }
 0x134   :  { %v9674_v31 = vpop.f32.mrf.mxu0  ;;  %v9676_v34 = vpop.f32.mrf.mxu1 }
 0x135   :  { %15237 = vst [vmem:[#allocation10_spill] sm:$0xff] %v9674_v31  ;;  %15238 = vst [vmem:[#allocation11_spill] sm:$0xff] %v9676_v34 }
 0x136   :  { %v9678_v35 = vpop.f32.mrf.mxu0  ;;  %v9680_v16 = vpop.f32.mrf.mxu1 }
 0x137   :  { %15239 = vst [vmem:[#allocation12_spill] sm:$0xff] %v9678_v35  ;;  %15240 = vst [vmem:[#allocation13_spill] sm:$0xff] %v9680_v16 }
 0x138   :  { %v9682_v22 = vpop.f32.mrf.mxu0  ;;  %v9684_v14 = vpop.f32.mrf.mxu1 }
 0x139   :  { %15241 = vst [vmem:[#allocation14_spill] sm:$0xff] %v9682_v22  ;;  %15242 = vst [vmem:[#allocation15_spill] sm:$0xff] %v9684_v14 }
 0x13a   :  { %v9686_v24 = vpop.f32.mrf.mxu0  ;;  %v9688_v25 = vpop.f32.mrf.mxu1 }
 0x13b   :  { %15243 = vst [vmem:[#allocation16_spill] sm:$0xff] %v9686_v24  ;;  %15244 = vst [vmem:[#allocation17_spill] sm:$0xff] %v9688_v25 }
 0x13c   :  { %v9690_v26 = vpop.f32.mrf.mxu0  ;;  %v9692_v27 = vpop.f32.mrf.mxu1 }
 0x13d   :  { %15245 = vst [vmem:[#allocation18_spill] sm:$0xff] %v9690_v26  ;;  %15246 = vst [vmem:[#allocation19_spill] sm:$0xff] %v9692_v27 }
 0x13e   :  { %v9694_v30 = vpop.f32.mrf.mxu0  ;;  %v9696_v31 = vpop.f32.mrf.mxu1 }
 0x13f   :  { %15247 = vst [vmem:[#allocation20_spill] sm:$0xff] %v9694_v30  ;;  %15248 = vst [vmem:[#allocation21_spill] sm:$0xff] %v9696_v31 }
 0x140   :  { %v9698_v34 = vpop.f32.mrf.mxu0  ;;  %v9700_v35 = vpop.f32.mrf.mxu1 }
 0x141   :  { %15249 = vst [vmem:[#allocation22_spill] sm:$0xff] %v9698_v34  ;;  %15250 = vst [vmem:[#allocation23_spill] sm:$0xff] %v9700_v35  ;;  %v403_v35 = vadd.f32 %v9550_v29, %v9548_v28  ;;  %v433_v29 = vadd.f32 %v9586_v45, %v9584_v44  ;;  %v473_v44 = vadd.f32 %v9618_v61, %v9616_v60 }
 0x142   :  { %v9702_v16 = vpop.f32.mrf.mxu0  ;;  %v9704_v22 = vpop.f32.mrf.mxu1  ;;  %v468_v45 = vadd.f32 %v9622_v63, %v9620_v62  ;;  %v15259_v63 = vld [vmem:[#allocation6_spill] sm:$0xff] }
 0x143   :  { %15251 = vst [vmem:[#allocation24_spill] sm:$0xff] %v9704_v22  ;;  %v743_v28 = vadd.f32 %v8288_v15, %v403_v35 }
 0x144   :  { %v9706_v14 = vpop.f32.mrf.mxu0  ;;  %v9710_v25 = vpop.f32.mrf.mxu1 }
 0x145   :  { %15253 = vst [vmem:[#allocation26_spill] sm:$0xff] %v9710_v25  ;;  %v413_v25 = vadd.f32 %v9570_v37, %v9568_v36  ;;  %v438_v36 = vadd.f32 %v9598_v51, %v9596_v50  ;;  %v993_v50 = vadd.f32 %v8356_v18, %v743_v28 }
 0x146   :  { %v9708_v24 = vpop.f32.mrf.mxu0  ;;  %v9716_v30 = vpop.f32.mrf.mxu1 }
 0x147   :  { %15252 = vst [vmem:[#allocation25_spill] sm:$0xff] %v9708_v24  ;;  %v398_v24 = vadd.f32 %v9560_v33, %v9558_v32  ;;  %v428_v32 = vadd.f32 %v9590_v47, %v9588_v46  ;;  %v443_v33 = vadd.f32 %v9594_v49, %v9592_v48  ;;  %v9764_v46 = vadd.f32 %v9626_v1, %v9624_v0  ;;  %v15260_v1 = vld [vmem:[#allocation8_spill] sm:$0xff] }
 0x148   :  { %v9712_v26 = vpop.f32.mrf.mxu0  ;;  %v9724_v22 = vpop.f32.mrf.mxu1  ;;  %v9770_v48 = vadd.f32 %v9630_v3, %v9628_v2  ;;  %v9774_v49 = vadd.f32 %v9634_v5, %v9632_v4  ;;  %v745_v51 = vadd.f32 %v8291_v19, %v413_v25  ;;  %v749_v2 = vadd.f32 %v15260_v1, %v433_v29  ;;  %v15261_v3 = vld [vmem:[#allocation10_spill] sm:$0xff]  ;;  %v15262_v5 = vld [vmem:[#allocation12_spill] sm:$0xff]  ;;  %v15275_v1 = vld [vmem:[#allocation17_spill] sm:$0xff] }
 0x149   :  { %15254 = vst [vmem:[#allocation27_spill] sm:$0xff] %v9712_v26  ;;  %v748_v4 = vadd.f32 %v15261_v3, %v428_v32  ;;  %v15267_v19 = vld [vmem:[#allocation14_spill] sm:$0xff] }
 0x14a   :  { %v9714_v27 = vpop.f32.mrf.mxu0 }
 0x14b   :  { %15255 = vst [vmem:[#allocation28_spill] sm:$0xff] %v9714_v27  ;;  %v408_v27 = vadd.f32 %v9574_v39, %v9572_v38  ;;  %v453_v38 = vadd.f32 %v9602_v53, %v9600_v52  ;;  %v448_v39 = vadd.f32 %v9606_v55, %v9604_v54  ;;  %v9778_v52 = vadd.f32 %v9638_v7, %v9636_v6 }
 0x14c   :  { %v9718_v31 = vpop.f32.mrf.mxu0  ;;  %v9782_v53 = vadd.f32 %v9642_v9, %v9640_v8  ;;  %v9786_v54 = vadd.f32 %v9646_v11, %v9644_v10  ;;  %v751_v6 = vadd.f32 %v15262_v5, %v443_v33  ;;  %v15263_v8 = vld [vmem:[#allocation2_spill] sm:$0xff]  ;;  %v15264_v9 = vld [vmem:[#allocation3_spill] sm:$0xff]  ;;  %v15265_v11 = vld [vmem:[#allocation4_spill] sm:$0xff] }
 0x14d   :  { %15256 = vst [vmem:[#allocation29_spill] sm:$0xff] %v9718_v31  ;;  %v423_v31 = vadd.f32 %v9578_v41, %v9576_v40  ;;  %v463_v40 = vadd.f32 %v9610_v57, %v9608_v56  ;;  %v742_v41 = vadd.f32 %v623_v17, %v398_v24  ;;  %v744_v55 = vadd.f32 %v9658_v21, %v408_v27  ;;  %v9792_v57 = vld [vmem:[%s15258_s28] ss:$0 sm:$0xff]  ;;  %v15266_v17 = vld [vmem:[#allocation5_spill] sm:$0xff]  ;;  %v15268_v21 = vld [vmem:[#allocation16_spill] sm:$0xff] }
 0x14e   :  { %v9720_v34 = vpop.f32.mrf.mxu0  ;;  %v9808_v10 = vadd.f32 %v15264_v9, %v15263_v8  ;;  %v15269_v24 = vld [vmem:[#allocation18_spill] sm:$0xff]  ;;  %v15271_v33 = vld [vmem:[#allocation9_spill] sm:$0xff]  ;;  %v15276_v5 = vld [vmem:[#allocation19_spill] sm:$0xff] }
 0x14f   :  { %15257 = vst [vmem:[#allocation30_spill] sm:$0xff] %v9720_v34  ;;  %v418_v34 = vadd.f32 %v9582_v43, %v9580_v42  ;;  %v9754_v42 = vpop.f32.mrf.mxu1  ;;  %v458_v43 = vadd.f32 %v9614_v59, %v9612_v58  ;;  %v9796_v58 = vadd.f32 %v9650_v13, %v9648_v12  ;;  %v992_v59 = vadd.f32 %v9656_v20, %v742_v41 }
 0x150   :  { %v9730_v26 = vpop.f32.mrf.mxu0  ;;  %v747_v60 = vadd.f32 %v9662_v23, %v423_v31  ;;  %v995_v12 = vadd.f32 %v15265_v11, %v745_v51  ;;  %v994_v18 = vadd.f32 %v15266_v17, %v744_v55  ;;  %v750_v20 = vadd.f32 %v15267_v19, %v438_v36  ;;  %v15270_v31 = vld [vmem:[#allocation7_spill] sm:$0xff]  ;;  %v15273_v36 = vld [vmem:[#allocation13_spill] sm:$0xff]  ;;  %v15279_v17 = vld [vmem:[#allocation22_spill] sm:$0xff] }
 0x151   :  { %v9800_v61 = vpop.f32.mrf.mxu1  ;;  %v746_v0 = vadd.f32 %v15259_v63, %v418_v34  ;;  %v753_v23 = vadd.f32 %v15268_v21, %v453_v38  ;;  %v752_v25 = vadd.f32 %v15269_v24, %v448_v39  ;;  %v998_v55 = vadd.f32 %v15273_v36, %v748_v4  ;;  %v15274_v38 = vld [vmem:[#allocation15_spill] sm:$0xff] }
 0x152   :  { %v9746_v37 = vpop.f32.mrf.mxu0  ;;  %v997_v34 = vadd.f32 %v15270_v31, %v747_v60  ;;  %v1000_v3 = vadd.f32 %v15275_v1, %v750_v20  ;;  %v757_v19 = vadd.f32 %v9702_v16, %v473_v44  ;;  %v756_v20 = vadd.f32 %v9706_v14, %v468_v45 }
 0x153   :  { %v9819_v35 = vpop.f32.mrf.mxu1  ;;  %v996_v41 = vadd.f32 %v15271_v33, %v746_v0  ;;  %v15277_v0 = vld [vmem:[#allocation20_spill] sm:$0xff]  ;;  %v15282_v33 = vld [vmem:[#allocation27_spill] sm:$0xff] }
 0x154   :  { %v9766_v47 = vpop.f32.mrf.mxu0  ;;  %v755_v8 = vadd.f32 %v15277_v0, %v463_v40 }
 0x156   :  { %v8424_v56 = vpop.f32.mrf.mxu0 }
 0x157   :  { %v1243_v62 = vadd.f32 %v8424_v56, %v993_v50  ;;  %v15272_v50 = vld [vmem:[#allocation11_spill] sm:$0xff]  ;;  %v1001_v56 = vadd.f32 %v15274_v38, %v751_v6  ;;  %v9841_v6 = vpop.f32.mrf.mxu1  ;;  %v15284_v38 = vld [vmem:[#allocation26_spill] sm:$0xff] }
 0x158   :  { %v1123_v7 = vpop.f32.mrf.mxu0  ;;  %v999_v51 = vadd.f32 %v15272_v50, %v749_v2  ;;  %v15278_v2 = vld [vmem:[#allocation21_spill] sm:$0xff]  ;;  %v15283_v50 = vld [vmem:[#allocation24_spill] sm:$0xff] }
 0x159   :  { %v9812_v13 = vadd.f32 %v9792_v57, %v1243_v62  ;;  %v1242_v15 = vadd.f32 %v1123_v7, %v992_v59  ;;  %v9835_v7 = vadd.f32 %v15276_v5, %v753_v23  ;;  %v9839_v9 = vadd.f32 %v15278_v2, %v752_v25  ;;  %v973_v44 = vpop.f32.mrf.mxu1  ;;  %v15285_v5 = vld [vmem:[#allocation28_spill] sm:$0xff] }
 0x15a   :  { %v8427_v27 = vpop.f32.mrf.mxu0  ;;  %v761_v0 = vadd.f32 %v15285_v5, %v9774_v49 }
 0x15b   :  { %v1322_v28 = vmin.f32 %v9812_v13, 0.0  ;;  %v9823_v29 = vadd.f32 %v9792_v57, %v1242_v15  ;;  %v1245_v32 = vadd.f32 %v8427_v27, %v995_v12  ;;  %v15280_v27 = vld [vmem:[#allocation23_spill] sm:$0xff]  ;;  %vm1298_vm1 = vcmp.gt.f32.partialorder %v9812_v13, 0.0 }
 0x15c   :  { %v1133_v39 = vpop.f32.mrf.mxu0  ;;  %v9852_v31 = vadd.f32 %v15280_v27, %v755_v8 }
 0x15d   :  { %v1347_v59 = vmul.f32 1.442695, %v1322_v28  ;;  %v1321_v60 = vmin.f32 %v9823_v29, 0.0  ;;  %v9831_v62 = vadd.f32 %v9792_v57, %v1245_v32  ;;  %v1244_v63 = vadd.f32 %v1133_v39, %v994_v18  ;;  %v15281_v28 = vld [vmem:[#allocation25_spill] sm:$0xff] }
 0x15e   :  { %v8430_v4 = vpop.f32.mrf.mxu0  ;;  %v754_v18 = vadd.f32 %v15279_v17, %v458_v43  ;;  %v759_v32 = vadd.f32 %v15281_v28, %v9764_v46  ;;  %v758_v43 = vadd.f32 %v15282_v33, %v9770_v48  ;;  %v9868_v39 = vadd.f32 %v15284_v38, %v757_v19  ;;  %v15287_v19 = vld [vmem:[#allocation30_spill] sm:$0xff] }
 0x15f   :  { %8699 = vpow2.f32 %v1347_v59  ;;  %v1345_v11 = vmul.f32 1.442695, %v1321_v60  ;;  %v1324_v12 = vmin.f32 %v9831_v62, 0.0  ;;  %v9845_v15 = vadd.f32 %v9792_v57, %v1244_v63 }
 0x160   :  { %v1247_v40 = vadd.f32 %v8430_v4, %v997_v34  ;;  %v1143_v21 = vpop.f32.mrf.mxu0  ;;  %v9865_v36 = vadd.f32 %v15283_v50, %v754_v18  ;;  %v9871_v46 = vadd.f32 %v9716_v30, %v756_v20  ;;  %v9884_v8 = vadd.f32 %v9754_v42, %v758_v43  ;;  %v8389_v4 = vpop.f32.mrf.mxu1 }
 0x161   :  { %8701 = vpow2.f32 %v1345_v11  ;;  %v1351_v23 = vmul.f32 1.442695, %v1324_v12  ;;  %v1323_v24 = vmin.f32 %v9845_v15, 0.0  ;;  %v1246_v25 = vadd.f32 %v1143_v21, %v996_v41 }
 0x162   :  { %v9859_v16 = vadd.f32 %v9792_v57, %v1247_v40  ;;  %v8433_v14 = vpop.f32.mrf.mxu0  ;;  %v763_v20 = vadd.f32 %v15287_v19, %v9782_v53  ;;  %v762_v42 = vadd.f32 %v9730_v26, %v9786_v54  ;;  %v764_v53 = vadd.f32 %v9766_v47, %v9808_v10 }
 0x163   :  { %8703 = vpow2.f32 %v1351_v23  ;;  %v1349_v45 = vmul.f32 1.442695, %v1323_v24  ;;  %v9862_v34 = vadd.f32 %v9792_v57, %v1246_v25  ;;  %v1249_v41 = vadd.f32 %v8433_v14, %v999_v51  ;;  %v983_v24 = vpop.f32.mrf.mxu1 }
 0x164   :  { %v1326_v48 = vmin.f32 %v9859_v16, 0.0  ;;  %v1153_v59 = vpop.f32.mrf.mxu0  ;;  %v9879_v51 = vadd.f32 %v9724_v22, %v759_v32  ;;  %vm1297_vm2 = vcmp.gt.f32.partialorder %v9823_v29, 0.0  ;;  %vm1299_vm3 = vcmp.gt.f32.partialorder %v9845_v15, 0.0 }
 0x165   :  { %8705 = vpow2.f32 %v1349_v45  ;;  %v1325_v60 = vmin.f32 %v9862_v34, 0.0  ;;  %v9876_v63 = vadd.f32 %v9792_v57, %v1249_v41  ;;  %v1248_v1 = vadd.f32 %v1153_v59, %v998_v55  ;;  %v15286_v55 = vld [vmem:[#allocation29_spill] sm:$0xff] }
 0x166   :  { %v1355_v30 = vmul.f32 1.442695, %v1326_v48  ;;  %v8436_v2 = vpop.f32.mrf.mxu0  ;;  %v760_v22 = vadd.f32 %v15286_v55, %v9778_v52  ;;  %v765_v52 = vadd.f32 %v9746_v37, %v9796_v58  ;;  %v9915_v37 = vadd.f32 %v973_v44, %v762_v42 }
 0x167   :  { %v1353_v11 = vmul.f32 1.442695, %v1325_v60  ;;  %v1328_v12 = vmin.f32 %v9876_v63, 0.0  ;;  %v9888_v17 = vadd.f32 %v9792_v57, %v1248_v1  ;;  %v1251_v18 = vadd.f32 %v8436_v2, %v1001_v56 }
 0x168   :  { %8707 = vpow2.f32 %v1355_v30  ;;  %v1163_v49 = vpop.f32.mrf.mxu0  ;;  %v9901_v56 = vadd.f32 %v9800_v61, %v761_v0  ;;  %v9910_v33 = vadd.f32 %v9819_v35, %v760_v22  ;;  %v9913_v61 = vadd.f32 %v9841_v6, %v763_v20 }
 0x169   :  { %8709 = vpow2.f32 %v1353_v11  ;;  %v1359_v40 = vmul.f32 1.442695, %v1328_v12  ;;  %v1327_v21 = vmin.f32 %v9888_v17, 0.0  ;;  %v9898_v23 = vadd.f32 %v9792_v57, %v1251_v18 }
 0x16a   :  { %v1250_v26 = vadd.f32 %v1163_v49, %v1000_v3  ;;  %v8439_v54 = vpop.f32.mrf.mxu0  ;;  %v9923_v14 = vadd.f32 %v8389_v4, %v765_v52  ;;  %v9925_v35 = vadd.f32 %v983_v24, %v764_v53  ;;  %vm1300_vm4 = vcmp.gt.f32.partialorder %v9831_v62, 0.0 }
 0x16b   :  { %8711 = vpow2.f32 %v1359_v40  ;;  %v1357_v25 = vmul.f32 1.442695, %v1327_v21  ;;  %v1330_v27 = vmin.f32 %v9898_v23, 0.0  ;;  %v1253_v28 = vadd.f32 %v8439_v54, %v9835_v7 }
 0x16c   :  { %v8700_v32 = vpop.eup %8699  ;;  %v9918_v47 = vadd.f32 %v9792_v57, %v1250_v26  ;;  %v1173_v58 = vpop.f32.mrf.mxu0  ;;  %vm1301_vm5 = vcmp.gt.f32.partialorder %v9862_v34, 0.0  ;;  %vm1302_vm6 = vcmp.gt.f32.partialorder %v9859_v16, 0.0  ;;  %vm1303_vm7 = vcmp.gt.f32.partialorder %v9888_v17, 0.0 }
 0x16d   :  { %v6769_v10 = vadd.f32 -1.0, %v8700_v32  ;;  %8713 = vpow2.f32 %v1357_v25  ;;  %v1363_v3 = vmul.f32 1.442695, %v1330_v27  ;;  %v9921_v43 = vadd.f32 %v9792_v57, %v1253_v28 }
 0x16e   :  { %v8702_v7 = vpop.eup %8701  ;;  %v1329_v6 = vmin.f32 %v9918_v47, 0.0  ;;  %v1252_v44 = vadd.f32 %v1173_v58, %v9839_v9  ;;  %v8442_v45 = vpop.f32.mrf.mxu0  ;;  %vm1304_vm8 = vcmp.gt.f32.partialorder %v9876_v63, 0.0  ;;  %vm1305_vm9 = vcmp.gt.f32.partialorder %v9918_v47, 0.0 }
 0x16f   :  { %8715 = vpow2.f32 %v1363_v3  ;;  %v1332_v41 = vmin.f32 %v9921_v43, 0.0  ;;  %v1255_v50 = vadd.f32 %v8442_v45, %v9852_v31  ;;  %v6768_v1 = vadd.f32 -1.0, %v8702_v7 }
 0x170   :  { %v8704_v38 = vpop.eup %8703  ;;  %v1361_v48 = vmul.f32 1.442695, %v1329_v6  ;;  %v9933_v59 = vadd.f32 %v9792_v57, %v1252_v44  ;;  %v1183_v60 = vpop.f32.mrf.mxu0  ;;  %v1418_v5 = vsel %vm1298_vm1, %v9812_v13, %v6769_v10  ;;  %vm1306_vm10 = vcmp.gt.f32.partialorder %v9898_v23, 0.0 }
 0x171   :  { %v1367_v9 = vmul.f32 1.442695, %v1332_v41  ;;  %v9938_v0 = vadd.f32 %v9792_v57, %v1255_v50  ;;  %v1254_v30 = vadd.f32 %v1183_v60, %v9865_v36  ;;  %v1417_v11 = vsel %vm1297_vm2, %v9823_v29, %v6768_v1 }
 0x172   :  { %v8706_v2 = vpop.eup %8705  ;;  %8717 = vpow2.f32 %v1361_v48  ;;  %v1331_v31 = vmin.f32 %v9933_v59, 0.0  ;;  %v8445_v4 = vpop.f32.mrf.mxu0  ;;  %v6771_v12 = vadd.f32 -1.0, %v8704_v38  ;;  %8482 = vmatprep.mubr.msk.f32.mxu1 %vm1453_vm0, %v1417_v11  ;;  %8542 = vmatprep.mubr.msk.f32.mxu0 %vm1453_vm0, %v1417_v11  ;;  %vm1307_vm11 = vcmp.gt.f32.partialorder %v9933_v59, 0.0 }
 0x173   :  { %8719 = vpow2.f32 %v1367_v9  ;;  %v1334_v18 = vmin.f32 %v9938_v0, 0.0  ;;  %v9945_v55 = vadd.f32 %v9792_v57, %v1254_v30  ;;  %v1257_v13 = vadd.f32 %v8445_v4, %v9868_v39  ;;  %8483 = vmatmul.mubr.msk.f32.vlgmr.msra.gmra.mxu1 %vm1453_vm0, %v1418_v5  ;;  %8543 = vmatmul.mubr.msk.f32.vlgmr.msra.gmra.mxu0 %vm1453_vm0, %v1418_v5 }
 0x174   :  { %v1365_v36 = vmul.f32 1.442695, %v1331_v31  ;;  %v1193_v22 = vpop.f32.mrf.mxu0  ;;  %v6770_v29 = vadd.f32 -1.0, %v8706_v2  ;;  %v1420_v53 = vsel %vm1300_vm4, %v9831_v62, %v6771_v12  ;;  %vm1308_vm12 = vcmp.gt.f32.partialorder %v9921_v43, 0.0 }
 0x175   :  { %v8708_v19 = vpop.eup %8707  ;;  %v1371_v20 = vmul.f32 1.442695, %v1334_v18  ;;  %v1333_v42 = vmin.f32 %v9945_v55, 0.0  ;;  %v9956_v39 = vadd.f32 %v9792_v57, %v1257_v13  ;;  %v1256_v49 = vadd.f32 %v1193_v22, %v9871_v46 }
 0x176   :  { %v8710_v40 = vpop.eup %8709  ;;  %8721 = vpow2.f32 %v1365_v36  ;;  %v8448_v21 = vpop.f32.mrf.mxu0  ;;  %v1419_v52 = vsel %vm1299_vm3, %v9845_v15, %v6770_v29  ;;  %v6773_v26 = vadd.f32 -1.0, %v8708_v19  ;;  %vm1309_vm13 = vcmp.gt.f32.partialorder %v9945_v55, 0.0 }
 0x177   :  { %8723 = vpow2.f32 %v1371_v20  ;;  %v1369_v54 = vmul.f32 1.442695, %v1333_v42  ;;  %v1336_v24 = vmin.f32 %v9956_v39, 0.0  ;;  %v9963_v25 = vadd.f32 %v9792_v57, %v1256_v49  ;;  %8485 = vmatprep.mubr.msk.f32.mxu1 %vm1453_vm0, %v1419_v52  ;;  %8545 = vmatprep.mubr.msk.f32.mxu0 %vm1453_vm0, %v1419_v52 }
 0x178   :  { %v8712_v46 = vpop.eup %8711  ;;  %v1259_v27 = vadd.f32 %v8448_v21, %v9879_v51  ;;  %8486 = vmatmul.mubr.msk.f32.gmra.mxu1 %vm1453_vm0, %v1420_v53  ;;  %8546 = vmatmul.mubr.msk.f32.gmra.mxu0 %vm1453_vm0, %v1420_v53  ;;  %v1203_v62 = vpop.f32.mrf.mxu0  ;;  %v6772_v15 = vadd.f32 -1.0, %v8710_v40  ;;  %v1422_v6 = vsel %vm1302_vm6, %v9859_v16, %v6773_v26  ;;  %vm1310_vm14 = vcmp.gt.f32.partialorder %v9938_v0, 0.0 }
 0x179   :  { %8725 = vpow2.f32 %v1369_v54  ;;  %v1375_v28 = vmul.f32 1.442695, %v1336_v24  ;;  %v1335_v32 = vmin.f32 %v9963_v25, 0.0  ;;  %v1258_v58 = vadd.f32 %v1203_v62, %v9884_v8 }
 0x17a   :  { %v8714_v10 = vpop.eup %8713  ;;  %v9975_v3 = vadd.f32 %v9792_v57, %v1259_v27  ;;  %v8451_v51 = vpop.f32.mrf.mxu0  ;;  %v1421_v7 = vsel %vm1301_vm5, %v9862_v34, %v6772_v15  ;;  %v6775_v44 = vadd.f32 -1.0, %v8712_v46  ;;  %vm1311_vm15 = vcmp.gt.f32.partialorder %v9963_v25, 0.0 }
 0x17b   :  { %8727 = vpow2.f32 %v1375_v28  ;;  %v1373_v45 = vmul.f32 1.442695, %v1335_v32  ;;  %v9980_v41 = vadd.f32 %v9792_v57, %v1258_v58  ;;  %v1261_v50 = vadd.f32 %v8451_v51, %v9901_v56  ;;  %8488 = vmatprep.mubr.msk.f32.mxu1 %vm1453_vm0, %v1421_v7  ;;  %8548 = vmatprep.mubr.msk.f32.mxu0 %vm1453_vm0, %v1421_v7 }
 0x17c   :  { %v8716_v8 = vpop.eup %8715  ;;  %v1338_v38 = vmin.f32 %v9975_v3, 0.0  ;;  %8489 = vmatmul.mubr.msk.f32.gmra.mxu1 %vm1453_vm0, %v1422_v6  ;;  %8549 = vmatmul.mubr.msk.f32.gmra.mxu0 %vm1453_vm0, %v1422_v6  ;;  %v1213_v16 = vpop.f32.mrf.mxu0  ;;  %v6774_v34 = vadd.f32 -1.0, %v8714_v10  ;;  %v1424_v30 = vsel %vm1304_vm8, %v9876_v63, %v6775_v44  ;;  %vm1312_vm1 = vcmp.gt.f32.partialorder %v9956_v39, 0.0 }
 0x17d   :  { %8729 = vpow2.f32 %v1373_v45  ;;  %v1337_v56 = vmin.f32 %v9980_v41, 0.0  ;;  %v9992_v48 = vadd.f32 %v9792_v57, %v1261_v50  ;;  %v1260_v60 = vadd.f32 %v1213_v16, %v9910_v33 }
 0x17e   :  { %v1379_v1 = vmul.f32 1.442695, %v1338_v38  ;;  %v8454_v5 = vpop.f32.mrf.mxu0  ;;  %v1423_v9 = vsel %vm1303_vm7, %v9888_v17, %v6774_v34  ;;  %v6777_v2 = vadd.f32 -1.0, %v8716_v8  ;;  %vm1313_vm2 = vcmp.gt.f32.partialorder %v9980_v41, 0.0 }
 0x17f   :  { %v8718_v31 = vpop.eup %8717  ;;  %v1377_v4 = vmul.f32 1.442695, %v1337_v56  ;;  %v1340_v11 = vmin.f32 %v9992_v48, 0.0  ;;  %v9999_v12 = vadd.f32 %v9792_v57, %v1260_v60  ;;  %v1263_v18 = vadd.f32 %v8454_v5, %v9913_v61  ;;  %8491 = vmatprep.mubr.msk.f32.mxu1 %vm1453_vm0, %v1423_v9  ;;  %8551 = vmatprep.mubr.msk.f32.mxu0 %vm1453_vm0, %v1423_v9 }
 0x180   :  { %v8720_v33 = vpop.eup %8719  ;;  %8731 = vpow2.f32 %v1379_v1  ;;  %8492 = vmatmul.mubr.msk.f32.gmra.mxu1 %vm1453_vm0, %v1424_v30  ;;  %8552 = vmatmul.mubr.msk.f32.gmra.mxu0 %vm1453_vm0, %v1424_v30  ;;  %v1223_v63 = vpop.f32.mrf.mxu0  ;;  %v6776_v17 = vadd.f32 -1.0, %v8718_v31  ;;  %v1426_v20 = vsel %vm1306_vm10, %v9898_v23, %v6777_v2  ;;  %vm1314_vm3 = vcmp.gt.f32.partialorder %v9975_v3, 0.0 }
 0x181   :  { %8733 = vpow2.f32 %v1377_v4  ;;  %v1383_v13 = vmul.f32 1.442695, %v1340_v11  ;;  %v1339_v61 = vmin.f32 %v9999_v12, 0.0  ;;  %v10010_v36 = vadd.f32 %v9792_v57, %v1263_v18 }
 0x182   :  { %v1262_v22 = vadd.f32 %v1223_v63, %v9915_v37  ;;  %v8457_v29 = vpop.f32.mrf.mxu0  ;;  %v1425_v19 = vsel %vm1305_vm9, %v9918_v47, %v6776_v17  ;;  %v6779_v42 = vadd.f32 -1.0, %v8720_v33  ;;  %vm1315_vm4 = vcmp.gt.f32.partialorder %v9999_v12, 0.0  ;;  %v2382_v17 = vld [vmem:[%s15288_s30 + $0x350] sm:$0xff] }
 0x183   :  { %v8722_v49 = vpop.eup %8721  ;;  %8735 = vpow2.f32 %v1383_v13  ;;  %v1381_v40 = vmul.f32 1.442695, %v1339_v61  ;;  %v1342_v21 = vmin.f32 %v10010_v36, 0.0  ;;  %v1265_v52 = vadd.f32 %v8457_v29, %v9923_v14  ;;  %8494 = vmatprep.mubr.msk.f32.mxu1 %vm1453_vm0, %v1425_v19  ;;  %8554 = vmatprep.mubr.msk.f32.mxu0 %vm1453_vm0, %v1425_v19  ;;  %v2381_v13 = vld [vmem:[%s15288_s30 + $0x348] sm:$0xff]  ;;  %v2375_v61 = vld [vmem:[%s15288_s30 + $0x318] sm:$0xff] }
 0x184   :  { %v8724_v53 = vpop.eup %8723  ;;  %v10020_v37 = vadd.f32 %v9792_v57, %v1262_v22  ;;  %8495 = vmatmul.mubr.msk.f32.gmra.mxu1 %vm1453_vm0, %v1426_v20  ;;  %8555 = vmatmul.mubr.msk.f32.gmra.mxu0 %vm1453_vm0, %v1426_v20  ;;  %v1233_v23 = vpop.f32.mrf.mxu0  ;;  %v6778_v47 = vadd.f32 -1.0, %v8722_v49  ;;  %v1428_v62 = vsel %vm1308_vm12, %v9921_v43, %v6779_v42  ;;  %vm1316_vm5 = vcmp.gt.f32.partialorder %v9992_v48, 0.0  ;;  %v2368_v22 = vld [vmem:[%s15288_s30 + $0x2e0] sm:$0xff]  ;;  %v2367_v29 = vld [vmem:[%s15288_s30 + $0x2d8] sm:$0xff]  ;;  %v2361_v19 = vld [vmem:[%s15288_s30 + $0x2a8] sm:$0xff] }
 0x185   :  { %8737 = vpow2.f32 %v1381_v40  ;;  %v1387_v14 = vmul.f32 1.442695, %v1342_v21  ;;  %v10027_v26 = vadd.f32 %v9792_v57, %v1265_v52  ;;  %v1264_v54 = vadd.f32 %v1233_v23, %v9925_v35  ;;  %2820 = vmatprep.subr.mxu1 %v2382_v17  ;;  %v2606_v20 = vld [vmem:[%s15288_s30 + $0xa50] sm:$0xff]  ;;  %v2605_v42 = vld [vmem:[%s15288_s30 + $0xa48] sm:$0xff]  ;;  %v2360_v49 = vld [vmem:[%s15288_s30 + $0x2a0] sm:$0xff] }
 0x186   :  { %v8726_v24 = vpop.eup %8725  ;;  %v1341_v46 = vmin.f32 %v10020_v37, 0.0  ;;  %v1427_v27 = vsel %vm1307_vm11, %v9933_v59, %v6778_v47  ;;  %v6781_v15 = vadd.f32 -1.0, %v8724_v53  ;;  %vm1317_vm6 = vcmp.gt.f32.partialorder %v10020_v37, 0.0  ;;  %2821 = vmatpush1.msra.mxu1 %v2381_v13  ;;  %2891 = vmatprep.subr.mxu0 %v2606_v20  ;;  %v2599_v40 = vld [vmem:[%s15288_s30 + $0xa18] sm:$0xff]  ;;  %v2354_v21 = vld [vmem:[%s15288_s30 + $0x270] sm:$0xff]  ;;  %v2592_v53 = vld [vmem:[%s15288_s30 + $0x9e0] sm:$0xff] }
 0x187   :  { %8739 = vpow2.f32 %v1387_v14  ;;  %v1344_v28 = vmin.f32 %v10027_v26, 0.0  ;;  %v10035_v32 = vadd.f32 %v9792_v57, %v1264_v54  ;;  %8497 = vmatprep.mubr.msk.f32.mxu1 %vm1453_vm0, %v1427_v27  ;;  %8557 = vmatprep.mubr.msk.f32.mxu0 %vm1453_vm0, %v1427_v27  ;;  %v6780_v58 = vadd.f32 -1.0, %v8726_v24  ;;  %v2598_v52 = vld [vmem:[%s15288_s30 + $0xa10] sm:$0xff]  ;;  %v2591_v23 = vld [vmem:[%s15288_s30 + $0x9d8] sm:$0xff]  ;;  %v2585_v14 = vld [vmem:[%s15288_s30 + $0x9a8] sm:$0xff] }
 0x188   :  { %v8728_v35 = vpop.eup %8727  ;;  %v1385_v10 = vmul.f32 1.442695, %v1341_v46  ;;  %8498 = vmatmul.mubr.msk.f32.gmra.mxu1 %vm1453_vm0, %v1428_v62  ;;  %8558 = vmatmul.mubr.msk.f32.gmra.mxu0 %vm1453_vm0, %v1428_v62  ;;  %v1430_v7 = vsel %vm1310_vm14, %v9938_v0, %v6781_v15  ;;  %vm1318_vm7 = vcmp.gt.f32.partialorder %v10010_v36, 0.0  ;;  %vm1320_vm9 = vcmp.gt.f32.partialorder %v10027_v26, 0.0  ;;  %v2347_v47 = vld [vmem:[%s15288_s30 + $0x238] sm:$0xff]  ;;  %v2584_v54 = vld [vmem:[%s15288_s30 + $0x9a0] sm:$0xff] }
 0x189   :  { %v1391_v43 = vmul.f32 1.442695, %v1344_v28  ;;  %v1343_v59 = vmin.f32 %v10035_v32, 0.0  ;;  %v1429_v51 = vsel %vm1309_vm13, %v9945_v55, %v6780_v58  ;;  %v6783_v45 = vadd.f32 -1.0, %v8728_v35  ;;  %2822 = vmatprep.subr.mxu1 %v2375_v61  ;;  %2892 = vmatpush1.msra.mxu0 %v2605_v42  ;;  %v2340_v24 = vld [vmem:[%s15288_s30 + $0x200] sm:$0xff]  ;;  %v2578_v46 = vld [vmem:[%s15288_s30 + $0x970] sm:$0xff] }
 0x18a   :  { %v8730_v57 = vpop.eup %8729  ;;  %8741 = vpow2.f32 %v1385_v10  ;;  %8500 = vmatprep.mubr.msk.f32.mxu1 %vm1453_vm0, %v1429_v51  ;;  %8560 = vmatprep.mubr.msk.f32.mxu0 %vm1453_vm0, %v1429_v51  ;;  %vm1319_vm8 = vcmp.gt.f32.partialorder %v10035_v32, 0.0  ;;  %v2339_v27 = vld [vmem:[%s15288_s30 + $0x1f8] sm:$0xff]  ;;  %v2577_v62 = vld [vmem:[%s15288_s30 + $0x968] sm:$0xff]  ;;  %v2570_v58 = vld [vmem:[%s15288_s30 + $0x930] sm:$0xff]  ;;  %vm2038_vm10 = vcmask 1041409   ;;  %vm2041_vm11 = vcmask 1042434  }
 0x18b   :  { %8743 = vpow2.f32 %v1391_v43  ;;  %v1389_v6 = vmul.f32 1.442695, %v1343_v59  ;;  %v6782_v44 = vadd.f32 -1.0, %v8730_v57  ;;  %v1432_v0 = vsel %vm1312_vm1, %v9956_v39, %v6783_v45  ;;  %2893 = vmatprep.subr.mxu0 %v2599_v40  ;;  %v2333_v15 = vld [vmem:[%s15288_s30 + $0x1c8] sm:$0xff]  ;;  %v2571_v28 = vld [vmem:[%s15288_s30 + $0x938] sm:$0xff]  ;;  %v2326_v35 = vld [vmem:[%s15288_s30 + $0x190] sm:$0xff] }
 0x18c   :  { %8501 = vmatmul.mubr.msk.f32.gmra.mxu1 %vm1453_vm0, %v1430_v7  ;;  %8561 = vmatmul.mubr.msk.f32.gmra.mxu0 %vm1453_vm0, %v1430_v7  ;;  %v2564_v10 = vld [vmem:[%s15288_s30 + $0x900] sm:$0xff]  ;;  %v2325_v43 = vld [vmem:[%s15288_s30 + $0x188] sm:$0xff]  ;;  %v2563_v59 = vld [vmem:[%s15288_s30 + $0x8f8] sm:$0xff]  ;;  %vm2044_vm12 = vcmask 1043459   ;;  %vm2047_vm13 = vcmask 1044484   ;;  %vm2050_vm14 = vcmask 1045509  }
 0x18d   :  { %v8732_v55 = vpop.eup %8731  ;;  %8745 = vpow2.f32 %v1389_v6  ;;  %v1431_v50 = vsel %vm1311_vm15, %v9963_v25, %v6782_v44  ;;  %2894 = vmatpush1.msra.mxu0 %v2598_v52  ;;  %v2319_v51 = vld [vmem:[%s15288_s30 + $0x158] sm:$0xff]  ;;  %v2557_v57 = vld [vmem:[%s15288_s30 + $0x8c8] sm:$0xff]  ;;  %v2318_v7 = vld [vmem:[%s15288_s30 + $0x150] sm:$0xff]  ;;  %vm2053_vm15 = vcmask 1046534   ;;  %vm2056_vm1 = vcmask 1047559  }
 0x18e   :  { %v8734_v8 = vpop.eup %8733  ;;  %8503 = vmatprep.mubr.msk.f32.mxu1 %vm1453_vm0, %v1431_v50  ;;  %8563 = vmatprep.mubr.msk.f32.mxu0 %vm1453_vm0, %v1431_v50  ;;  %v6785_v16 = vadd.f32 -1.0, %v8732_v55  ;;  %v2556_v6 = vld [vmem:[%s15288_s30 + $0x8c0] sm:$0xff]  ;;  %v2550_v45 = vld [vmem:[%s15288_s30 + $0x890] sm:$0xff]  ;;  %v2311_v55 = vld [vmem:[%s15288_s30 + $0x118] sm:$0xff] }
 0x18f   :  { %v6784_v38 = vadd.f32 -1.0, %v8734_v8  ;;  %2895 = vmatprep.subr.mxu0 %v2592_v53  ;;  %v2312_v44 = vld [vmem:[%s15288_s30 + $0x120] sm:$0xff]  ;;  %v2549_v50 = vld [vmem:[%s15288_s30 + $0x888] sm:$0xff]  ;;  %v2487_v17 = vld [vmem:[%s15288_s30 + $0x698] sm:$0xff] }
 0x190   :  { %v8736_v34 = vpop.eup %8735  ;;  %8504 = vmatmul.mubr.msk.f32.gmra.mxu1 %vm1453_vm0, %v1432_v0  ;;  %8564 = vmatmul.mubr.msk.f32.gmra.mxu0 %vm1453_vm0, %v1432_v0  ;;  %v1434_v39 = vsel %vm1314_vm3, %v9975_v3, %v6785_v16  ;;  %v2305_v8 = vld [vmem:[%s15288_s30 + $0xe8] sm:$0xff]  ;;  %v2543_v0 = vld [vmem:[%s15288_s30 + $0x858] sm:$0xff]  ;;  %v2542_v16 = vld [vmem:[%s15288_s30 + $0x850] sm:$0xff]  ;;  %vm2265_vm3 = vcmask 523264  }
 0x191   :  { %v1433_v25 = vsel %vm1313_vm2, %v9980_v41, %v6784_v38  ;;  %v6787_v1 = vadd.f32 -1.0, %v8736_v34  ;;  %2896 = vmatpush1.msra.mxu0 %v2591_v23  ;;  %v2304_v38 = vld [vmem:[%s15288_s30 + $0xe0] sm:$0xff]  ;;  %v2298_v34 = vld [vmem:[%s15288_s30 + $0xb0] sm:$0xff]  ;;  %v2501_v13 = vld [vmem:[%s15288_s30 + $0x708] sm:$0xff]  ;;  %vm2263_vm2 = vcmask 130048  }
 0x192   :  { %v8738_v56 = vpop.eup %8737  ;;  %8506 = vmatprep.mubr.msk.f32.mxu1 %vm1453_vm0, %v1433_v25  ;;  %8566 = vmatprep.mubr.msk.f32.mxu0 %vm1453_vm0, %v1433_v25  ;;  %v2536_v25 = vld [vmem:[%s15288_s30 + $0x820] sm:$0xff]  ;;  %v2486_v61 = vld [vmem:[%s15288_s30 + $0x690] sm:$0xff]  ;;  %v2717_v20 = vld [vmem:[%s15288_s30 + $0xdc8] sm:$0xff] }
 0x193   :  { %v6786_v60 = vadd.f32 -1.0, %v8738_v56  ;;  %v1436_v3 = vsel %vm1316_vm5, %v9992_v48, %v6787_v1  ;;  %2897 = vmatprep.subr.mxu0 %v2585_v14  ;;  %v2297_v56 = vld [vmem:[%s15288_s30 + $0xa8] sm:$0xff]  ;;  %v2472_v40 = vld [vmem:[%s15288_s30 + $0x620] sm:$0xff]  ;;  %v2466_v52 = vld [vmem:[%s15288_s30 + $0x5f0] sm:$0xff]  ;;  %vm2260_vm5 = vcmask 392192  }
 0x194   :  { %v8740_v5 = vpop.eup %8739  ;;  %8507 = vmatmul.mubr.msk.f32.gmra.mxu1 %vm1453_vm0, %v1434_v39  ;;  %8567 = vmatmul.mubr.msk.f32.gmra.mxu0 %vm1453_vm0, %v1434_v39  ;;  %v2535_v39 = vld [vmem:[%s15288_s30 + $0x818] sm:$0xff]  ;;  %v2529_v1 = vld [vmem:[%s15288_s30 + $0x7e8] sm:$0xff]  ;;  %v2704_v53 = vld [vmem:[%s15288_s30 + $0xd60] sm:$0xff] }
 0x195   :  { %v1435_v41 = vsel %vm1315_vm4, %v9999_v12, %v6786_v60  ;;  %v6789_v30 = vadd.f32 -1.0, %v8740_v5  ;;  %2898 = vmatpush1.msra.mxu0 %v2584_v54  ;;  %v2291_v60 = vld [vmem:[%s15288_s30 + $0x78] sm:$0xff]  ;;  %v2290_v5 = vld [vmem:[%s15288_s30 + $0x70] sm:$0xff]  ;;  %v2473_v42 = vld [vmem:[%s15288_s30 + $0x628] sm:$0xff]  ;;  %vm2267_vm4 = vcmask 916480  }
 0x196   :  { %8509 = vmatprep.mubr.msk.f32.mxu1 %vm1453_vm0, %v1435_v41  ;;  %8569 = vmatprep.mubr.msk.f32.mxu0 %vm1453_vm0, %v1435_v41  ;;  %v2528_v41 = vld [vmem:[%s15288_s30 + $0x7e0] sm:$0xff]  ;;  %v2703_v23 = vld [vmem:[%s15288_s30 + $0xd58] sm:$0xff]  ;;  %v2697_v14 = vld [vmem:[%s15288_s30 + $0xd28] sm:$0xff] }
 0x197   :  { %v8742_v9 = vpop.eup %8741  ;;  %v1438_v48 = vsel %vm1318_vm7, %v10010_v36, %v6789_v30  ;;  %v2374_v36 = vld [vmem:[%s15288_s30 + $0x310] sm:$0xff]  ;;  %2899 = vmatprep.subr.mxu0 %v2578_v46  ;;  %v2283_v30 = vld [vmem:[%s15288_s30 + $0x38] sm:$0xff]  ;;  %v2696_v54 = vld [vmem:[%s15288_s30 + $0xd20] sm:$0xff]  ;;  %vm2271_vm7 = vcmask 654336  }
 0x198   :  { %v8744_v2 = vpop.eup %8743  ;;  %8510 = vmatmul.mubr.msk.f32.gmra.mxu1 %vm1453_vm0, %v1436_v3  ;;  %8570 = vmatmul.mubr.msk.f32.gmra.mxu0 %vm1453_vm0, %v1436_v3  ;;  %v6788_v31 = vadd.f32 -1.0, %v8742_v9  ;;  %v2284_v9 = vld [vmem:[%s15288_s30 + $0x40] sm:$0xff]  ;;  %v2522_v3 = vld [vmem:[%s15288_s30 + $0x7b0] sm:$0xff] }
 0x199   :  { %v6791_v18 = vadd.f32 -1.0, %v8744_v2  ;;  %2823 = vmatpush1.msra.mxu1 %v2374_v36  ;;  %2900 = vmatpush1.msra.mxu0 %v2577_v62  ;;  %v2521_v2 = vld [vmem:[%s15288_s30 + $0x7a8] sm:$0xff]  ;;  %v2500_v36 = vld [vmem:[%s15288_s30 + $0x700] sm:$0xff]  ;;  %v2690_v46 = vld [vmem:[%s15288_s30 + $0xcf0] sm:$0xff] }
 0x19a   :  { %v8746_v4 = vpop.eup %8745  ;;  %v1437_v11 = vsel %vm1317_vm6, %v10020_v37, %v6788_v31  ;;  %2824 = vmatprep.subr.mxu1 %v2368_v22  ;;  %v2353_v37 = vld [vmem:[%s15288_s30 + $0x268] sm:$0xff]  ;;  %2901 = vmatprep.subr.mxu0 %v2571_v28  ;;  %v2480_v22 = vld [vmem:[%s15288_s30 + $0x660] sm:$0xff]  ;;  %vm2269_vm6 = vcmask 261120  }
 0x19b   :  { %8512 = vmatprep.mubr.msk.f32.mxu1 %vm1453_vm0, %v1437_v11  ;;  %8572 = vmatprep.mubr.msk.f32.mxu0 %vm1453_vm0, %v1437_v11  ;;  %v6790_v12 = vadd.f32 -1.0, %v8746_v4  ;;  %v1440_v63 = vsel %vm1320_vm9, %v10027_v26, %v6791_v18  ;;  %v2346_v26 = vld [vmem:[%s15288_s30 + $0x230] sm:$0xff]  ;;  %v2277_v31 = vld [vmem:[%s15288_s30 + $0x8] sm:$0xff]  ;;  %v2515_v4 = vld [vmem:[%s15288_s30 + $0x778] sm:$0xff] }
 0x19c   :  { %8513 = vmatmul.mubr.msk.f32.gmra.mxu1 %vm1453_vm0, %v1438_v48  ;;  %8573 = vmatmul.mubr.msk.f32.gmra.mxu0 %vm1453_vm0, %v1438_v48  ;;  %v2276_v11 = vld [vmem:[%s15288_s30] sm:$0xff]  ;;  %v2514_v48 = vld [vmem:[%s15288_s30 + $0x770] sm:$0xff]  ;;  %v2689_v62 = vld [vmem:[%s15288_s30 + $0xce8] sm:$0xff] }
 0x19d   :  { %v1439_v33 = vsel %vm1319_vm8, %v10035_v32, %v6790_v12  ;;  %2825 = vmatpush1.msra.mxu1 %v2367_v29  ;;  %v2332_v32 = vld [vmem:[%s15288_s30 + $0x1c0] sm:$0xff]  ;;  %2902 = vmatpush1.msra.mxu0 %v2570_v58  ;;  %v2494_v12 = vld [vmem:[%s15288_s30 + $0x6d0] sm:$0xff]  ;;  %v2437_v58 = vld [vmem:[%s15288_s30 + $0x508] sm:$0xff] }
 0x19e   :  { %8515 = vmatprep.mubr.msk.f32.mxu1 %vm1453_vm0, %v1439_v33  ;;  %8575 = vmatprep.mubr.msk.f32.mxu0 %vm1453_vm0, %v1439_v33  ;;  %v2508_v18 = vld [vmem:[%s15288_s30 + $0x740] sm:$0xff]  ;;  %v2493_v33 = vld [vmem:[%s15288_s30 + $0x6c8] sm:$0xff]  ;;  %v2718_v29 = vld [vmem:[%s15288_s30 + $0xdd0] sm:$0xff] }
 0x19f   :  { %2826 = vmatprep.subr.mxu1 %v2361_v19  ;;  %2903 = vmatprep.subr.mxu0 %v2564_v10  ;;  %v2479_v19 = vld [vmem:[%s15288_s30 + $0x658] sm:$0xff]  ;;  %v2444_v28 = vld [vmem:[%s15288_s30 + $0x540] sm:$0xff]  ;;  %v2430_v10 = vld [vmem:[%s15288_s30 + $0x4d0] sm:$0xff] }
 0x1a0   :  { %8516 = vmatmul.mubr.msk.f32.gmra.mxu1 %vm1453_vm0, %v1440_v63  ;;  %8576 = vmatmul.mubr.msk.f32.gmra.mxu0 %vm1453_vm0, %v1440_v63  ;;  %v2507_v63 = vld [vmem:[%s15288_s30 + $0x738] sm:$0xff] }
 0x1a1   :  { %2827 = vmatpush1.msra.mxu1 %v2360_v49  ;;  %2904 = vmatpush1.msra.mxu0 %v2563_v59  ;;  %v2711_v49 = vld [vmem:[%s15288_s30 + $0xd98] sm:$0xff] }
 0x1a2   :  { %2828 = vmatprep.subr.mxu1 %v2354_v21  ;;  %2905 = vmatprep.subr.mxu0 %v2557_v57  ;;  %v2710_v21 = vld [vmem:[%s15288_s30 + $0xd90] sm:$0xff] }
 0x1a3   :  { %2829 = vmatpush1.msra.mxu1 %v2353_v37  ;;  %2906 = vmatpush1.msra.mxu0 %v2556_v6  ;;  %v2465_v37 = vld [vmem:[%s15288_s30 + $0x5e8] sm:$0xff] }
 0x1a4   :  { %2830 = vmatprep.subr.mxu1 %v2347_v47  ;;  %2907 = vmatprep.subr.mxu0 %v2550_v45  ;;  %v2459_v47 = vld [vmem:[%s15288_s30 + $0x5b8] sm:$0xff] }
 0x1a5   :  { %2831 = vmatpush1.msra.mxu1 %v2346_v26  ;;  %2908 = vmatpush1.msra.mxu0 %v2549_v50  ;;  %v2458_v26 = vld [vmem:[%s15288_s30 + $0x5b0] sm:$0xff] }
 0x1a6   :  { %2832 = vmatprep.subr.mxu1 %v2340_v24  ;;  %2909 = vmatprep.subr.mxu0 %v2543_v0  ;;  %v2452_v24 = vld [vmem:[%s15288_s30 + $0x580] sm:$0xff] }
 0x1a7   :  { %2833 = vmatpush1.msra.mxu1 %v2339_v27  ;;  %2910 = vmatpush1.msra.mxu0 %v2542_v16  ;;  %v2451_v27 = vld [vmem:[%s15288_s30 + $0x578] sm:$0xff] }
 0x1a8   :  { %2834 = vmatprep.subr.mxu1 %v2333_v15  ;;  %2911 = vmatprep.subr.mxu0 %v2536_v25  ;;  %v2445_v15 = vld [vmem:[%s15288_s30 + $0x548] sm:$0xff] }
 0x1a9   :  { %2835 = vmatpush1.msra.mxu1 %v2332_v32  ;;  %2912 = vmatpush1.msra.mxu0 %v2535_v39  ;;  %v2438_v32 = vld [vmem:[%s15288_s30 + $0x510] sm:$0xff] }
 0x1aa   :  { %2836 = vmatprep.subr.mxu1 %v2326_v35  ;;  %2913 = vmatprep.subr.mxu0 %v2529_v1  ;;  %v2431_v35 = vld [vmem:[%s15288_s30 + $0x4d8] sm:$0xff] }
 0x1ab   :  { %2837 = vmatpush1.msra.mxu1 %v2325_v43  ;;  %2914 = vmatpush1.msra.mxu0 %v2528_v41  ;;  %v2424_v43 = vld [vmem:[%s15288_s30 + $0x4a0] sm:$0xff] }
 0x1ac   :  { %2838 = vmatprep.subr.mxu1 %v2319_v51  ;;  %2915 = vmatprep.subr.mxu0 %v2522_v3 }
 0x1ad   :  { %2839 = vmatpush1.msra.mxu1 %v2318_v7  ;;  %2916 = vmatpush1.msra.mxu0 %v2521_v2 }
 0x1ae   :  { %2840 = vmatprep.subr.mxu1 %v2312_v44  ;;  %2917 = vmatprep.subr.mxu0 %v2515_v4 }
 0x1af   :  { %2841 = vmatpush1.msra.mxu1 %v2311_v55  ;;  %2918 = vmatpush1.msra.mxu0 %v2514_v48 }
 0x1b0   :  { %2842 = vmatprep.subr.mxu1 %v2305_v8  ;;  %2919 = vmatprep.subr.mxu0 %v2508_v18 }
 0x1b1   :  { %2843 = vmatpush1.msra.mxu1 %v2304_v38  ;;  %2920 = vmatpush1.msra.mxu0 %v2507_v63 }
 0x1b2   :  { %2844 = vmatprep.subr.mxu1 %v2298_v34  ;;  %2921 = vmatprep.subr.mxu0 %v2501_v13 }
 0x1b3   :  { %2845 = vmatpush1.msra.mxu1 %v2297_v56  ;;  %2922 = vmatpush1.msra.mxu0 %v2500_v36 }
 0x1b4   :  { %2846 = vmatprep.subr.mxu1 %v2291_v60  ;;  %2923 = vmatprep.subr.mxu0 %v2718_v29 }
 0x1b5   :  { %2847 = vmatpush1.msra.mxu1 %v2290_v5  ;;  %2924 = vmatpush2.msra.mxu0 %v2717_v20 }
 0x1b6   :  { %2848 = vmatprep.subr.mxu1 %v2284_v9  ;;  %2925 = vmatprep.subr.mxu0 %v2711_v49 }
 0x1b7   :  { %2849 = vmatpush1.msra.mxu1 %v2283_v30  ;;  %2926 = vmatpush2.msra.mxu0 %v2710_v21 }
 0x1b8   :  { %2850 = vmatprep.subr.mxu1 %v2277_v31  ;;  %2927 = vmatprep.subr.mxu0 %v2704_v53 }
 0x1b9   :  { %2851 = vmatpush1.msra.mxu1 %v2276_v11  ;;  %2928 = vmatpush2.msra.mxu0 %v2703_v23 }
 0x1ba   :  { %2852 = vmatprep.subr.mxu1 %v2494_v12  ;;  %2929 = vmatprep.subr.mxu0 %v2697_v14 }
 0x1bb   :  { %2853 = vmatpush2.msra.mxu1 %v2493_v33  ;;  %2930 = vmatpush2.msra.mxu0 %v2696_v54 }
 0x1bc   :  { %2854 = vmatprep.subr.mxu1 %v2487_v17  ;;  %2931 = vmatprep.subr.mxu0 %v2690_v46 }
 0x1bd   :  { %2855 = vmatpush2.msra.mxu1 %v2486_v61  ;;  %2932 = vmatpush2.msra.mxu0 %v2689_v62 }
 0x1be   :  { %2856 = vmatprep.subr.mxu1 %v2480_v22 }
 0x1bf   :  { %2857 = vmatpush2.msra.mxu1 %v2479_v19 }
 0x1c0   :  { %2858 = vmatprep.subr.mxu1 %v2473_v42 }
 0x1c1   :  { %2859 = vmatpush2.msra.mxu1 %v2472_v40 }
 0x1c2   :  { %2860 = vmatprep.subr.mxu1 %v2466_v52 }
 0x1c3   :  { %2861 = vmatpush2.msra.mxu1 %v2465_v37 }
 0x1c4   :  { %2862 = vmatprep.subr.mxu1 %v2459_v47 }
 0x1c5   :  { %2863 = vmatpush2.msra.mxu1 %v2458_v26 }
 0x1c6   :  { %2864 = vmatprep.subr.mxu1 %v2452_v24 }
 0x1c7   :  { %2865 = vmatpush2.msra.mxu1 %v2451_v27 }
 0x1c8   :  { %2866 = vmatprep.subr.mxu1 %v2445_v15 }
 0x1c9   :  { %2867 = vmatpush2.msra.mxu1 %v2444_v28 }
 0x1ca   :  { %2868 = vmatprep.subr.mxu1 %v2438_v32 }
 0x1cb   :  { %2869 = vmatpush2.msra.mxu1 %v2437_v58 }
 0x1cc   :  { %2870 = vmatprep.subr.mxu1 %v2431_v35 }
 0x1cd   :  { %2871 = vmatpush2.msra.mxu1 %v2430_v10 }
 0x1ce   :  { %2872 = vmatprep.subr.mxu1 %v2424_v43 }
 0x233   :  { %v8484_v59 = vpop.f32.mrf.mxu1  ;;  %v8544_v51 = vpop.f32.mrf.mxu0 }
 0x234   :  { %v1910_v57 = vmax.f32 %v8484_v59, %v8544_v51 }
 0x235   :  { %v1592_v7 = vpop.f32.mrf.mxu1  ;;  %v1790_v6 = vpop.f32.mrf.mxu0 }
 0x236   :  { %v1909_v44 = vmax.f32 %v1592_v7, %v1790_v6  ;;  %v1973_v50 = vrot.slane %v1910_v57, 1 }
 0x238   :  { %v8487_v45 = vpop.f32.mrf.mxu1  ;;  %v8547_v55 = vpop.f32.mrf.mxu0  ;;  %v1941_v16 = vrot.slane %v1909_v44, 1  ;;  %v10375_v60 = vmax.f32 %v1910_v57, %v1973_v50 }
 0x239   :  { %v1912_v8 = vmax.f32 %v8487_v45, %v8547_v55 }
 0x23a   :  { %v1602_v0 = vpop.f32.mrf.mxu1  ;;  %v1800_v38 = vpop.f32.mrf.mxu0  ;;  %v1957_v3 = vmax.f32 %v1909_v44, %v1941_v16  ;;  %v2135_v12 = vrot.slane %v10375_v60, 2  ;;  %v2152_v17 = vrot.slane %v10375_v60, 4  ;;  %v2169_v19 = vrot.slane %v10375_v60, 6 }
 0x23b   :  { %v1942_v34 = vrot.slane %v1912_v8, 1  ;;  %v1911_v25 = vmax.f32 %v1602_v0, %v1800_v38 }
 0x23c   :  { %v8490_v56 = vpop.f32.mrf.mxu1  ;;  %v8550_v39 = vpop.f32.mrf.mxu0  ;;  %v2059_v20 = vrot.slane %v1957_v3, 2  ;;  %v2076_v40 = vrot.slane %v1957_v3, 4  ;;  %v2093_v21 = vrot.slane %v1957_v3, 6 }
 0x23d   :  { %v1914_v1 = vmax.f32 %v8490_v56, %v8550_v39  ;;  %v1958_v5 = vmax.f32 %v1912_v8, %v1942_v34  ;;  %v2005_v30 = vrot.slane %v1911_v25, 1 }
 0x23e   :  { %v1612_v41 = vpop.f32.mrf.mxu1  ;;  %v1810_v9 = vpop.f32.mrf.mxu0 }
 0x23f   :  { %v2006_v2 = vrot.slane %v1914_v1, 1  ;;  %v1913_v31 = vmax.f32 %v1612_v41, %v1810_v9  ;;  %v2037_v4 = vrot.slane %v1958_v5, 7  ;;  %v2060_v61 = vrot.slane %v1958_v5, 1 }
 0x240   :  { %v8493_v11 = vpop.f32.mrf.mxu1  ;;  %v8553_v48 = vpop.f32.mrf.mxu0  ;;  %v2094_v36 = vrot.slane %v1958_v5, 5  ;;  %v2021_v42 = vmax.f32 %v1911_v25, %v2005_v30  ;;  %v2077_v52 = vrot.slane %v1958_v5, 3 }
 0x241   :  { %v2022_v18 = vmax.f32 %v1914_v1, %v2006_v2  ;;  %v1974_v33 = vrot.slane %v1913_v31, 1  ;;  %v1916_v63 = vmax.f32 %v8493_v11, %v8553_v48  ;;  %v2039_v13 = vsel %vm2038_vm10, %v2037_v4, %v1957_v3 }
 0x242   :  { %v1622_v22 = vpop.f32.mrf.mxu1  ;;  %v1820_v29 = vpop.f32.mrf.mxu0  ;;  %v2095_v24 = vsel %vm2038_vm10, %v2094_v36, %v2093_v21  ;;  %v10388_v62 = vsel %vm2038_vm10, %v2060_v61, %v2059_v20  ;;  %v2226_v32 = vrot.slane %v2021_v42, 4  ;;  %v2243_v58 = vrot.slane %v2021_v42, 6 }
 0x243   :  { %v2194_v49 = vrot.slane %v2022_v18, 7  ;;  %v10381_v53 = vmax.f32 %v1913_v31, %v1974_v33  ;;  %v1975_v14 = vrot.slane %v1916_v63, 1  ;;  %v1915_v26 = vmax.f32 %v1622_v22, %v1820_v29 }
 0x244   :  { %v8496_v37 = vpop.f32.mrf.mxu1  ;;  %v8556_v23 = vpop.f32.mrf.mxu0  ;;  %v2227_v46 = vrot.slane %v2022_v18, 3  ;;  %v2244_v27 = vrot.slane %v2022_v18, 5  ;;  %v2210_v43 = vrot.slane %v2022_v18, 1  ;;  %v2209_v44 = vrot.slane %v2021_v42, 2 }
 0x245   :  { %v10384_v47 = vsel %vm2038_vm10, %v2194_v49, %v2021_v42  ;;  %v1918_v54 = vmax.f32 %v8496_v37, %v8556_v23  ;;  %v2136_v35 = vrot.slane %v10381_v53, 1  ;;  %v1943_v10 = vrot.slane %v1915_v26, 1 }
 0x246   :  { %v1632_v15 = vpop.f32.mrf.mxu1  ;;  %v1830_v28 = vpop.f32.mrf.mxu0  ;;  %v2153_v59 = vrot.slane %v10381_v53, 3  ;;  %v2170_v45 = vrot.slane %v10381_v53, 5  ;;  %v10393_v55 = vmax.f32 %v1916_v63, %v1975_v14  ;;  %v2078_v50 = vsel %vm2038_vm10, %v2077_v52, %v2076_v40 }
 0x247   :  { %v1944_v51 = vrot.slane %v1918_v54, 1  ;;  %v1917_v57 = vmax.f32 %v1632_v15, %v1830_v28  ;;  %v10397_v8 = vsel %vm2038_vm10, %v2227_v46, %v2226_v32  ;;  %v10400_v0 = vsel %vm2038_vm10, %v2244_v27, %v2243_v58 }
 0x248   :  { %v8499_v7 = vpop.f32.mrf.mxu1  ;;  %v8559_v6 = vpop.f32.mrf.mxu0  ;;  %v2118_v38 = vrot.slane %v10381_v53, 7  ;;  %v1959_v16 = vmax.f32 %v1915_v26, %v1943_v10  ;;  %v2137_v56 = vsel %vm2038_vm10, %v2136_v35, %v2135_v12  ;;  %v10405_v41 = vsel %vm2038_vm10, %v2153_v59, %v2152_v17 }
 0x249   :  { %v2007_v39 = vrot.slane %v1917_v57, 1  ;;  %v1920_v1 = vmax.f32 %v8499_v7, %v8559_v6  ;;  %v10407_v3 = vmax.f32 %v1918_v54, %v1944_v51  ;;  %v2211_v30 = vsel %vm2038_vm10, %v2210_v43, %v2209_v44 }
 0x24a   :  { %v1642_v34 = vpop.f32.mrf.mxu1  ;;  %v1840_v25 = vpop.f32.mrf.mxu0  ;;  %v2040_v9 = vrot.slane %v1959_v16, 6  ;;  %v10411_v4 = vsel %vm2038_vm10, %v2170_v45, %v2169_v19  ;;  %v2120_v11 = vrot.slane %v10393_v55, 6  ;;  %v2079_v48 = vrot.slane %v1959_v16, 2 }
 0x24b   :  { %v1919_v5 = vmax.f32 %v1642_v34, %v1840_v25  ;;  %v2096_v12 = vrot.slane %v1959_v16, 4  ;;  %v10417_v33 = vmax.f32 %v1917_v57, %v2007_v39  ;;  %v2008_v63 = vrot.slane %v1920_v1, 1 }
 0x24c   :  { %v8502_v2 = vpop.f32.mrf.mxu1  ;;  %v8562_v31 = vpop.f32.mrf.mxu0  ;;  %v10415_v18 = vsel %vm2041_vm11, %v2040_v9, %v2039_v13  ;;  %v2138_v22 = vsel %vm2041_vm11, %v10393_v55, %v2137_v56  ;;  %v2155_v29 = vrot.slane %v10393_v55, 2  ;;  %v2172_v19 = vrot.slane %v10393_v55, 4  ;;  %v2608_v55 = vld [vmem:[%s15288_s30 + $0xa60] sm:$0xff] }
 0x24d   :  { %v1976_v17 = vrot.slane %v1919_v5, 1  ;;  %v1922_v20 = vmax.f32 %v8502_v2, %v8562_v31  ;;  %v2081_v42 = vrot.slane %v10407_v3, 1  ;;  %v2196_v49 = vrot.slane %v10417_v33, 6 }
 0x24e   :  { %v1652_v61 = vpop.f32.mrf.mxu1  ;;  %v1850_v36 = vpop.f32.mrf.mxu0  ;;  %v2119_v52 = vsel %vm2038_vm10, %v2118_v38, %v10375_v60  ;;  %v2098_v53 = vrot.slane %v10407_v3, 3  ;;  %v10428_v37 = vmax.f32 %v1920_v1, %v2008_v63  ;;  %v2080_v23 = vsel %vm2041_vm11, %v2079_v48, %v2078_v50 }
 0x24f   :  { %v1921_v13 = vmax.f32 %v1652_v61, %v1850_v36  ;;  %v2097_v14 = vsel %vm2041_vm11, %v2096_v12, %v2095_v24  ;;  %v10434_v26 = vsel %vm2041_vm11, %v2196_v49, %v10384_v47  ;;  %v10436_v54 = vmax.f32 %v1919_v5, %v1976_v17 }
 0x250   :  { %v8505_v40 = vpop.f32.mrf.mxu1  ;;  %v8565_v21 = vpop.f32.mrf.mxu0  ;;  %v1977_v46 = vrot.slane %v1922_v20, 1  ;;  %v2062_v60 = vsel %vm2041_vm11, %v1959_v16, %v10388_v62  ;;  %v2043_v32 = vrot.slane %v10407_v3, 5  ;;  %v2063_v58 = vrot.slane %v10407_v3, 7 }
 0x251   :  { %v1924_v27 = vmax.f32 %v8505_v40, %v8565_v21  ;;  %v10444_v24 = vsel %vm2041_vm11, %v10417_v33, %v2211_v30  ;;  %v2229_v47 = vrot.slane %v10417_v33, 2  ;;  %v2246_v35 = vrot.slane %v10417_v33, 4  ;;  %v2683_v21 = vld [vmem:[%s15288_s30 + $0xcb8] sm:$0xff] }
 0x252   :  { %v1662_v15 = vpop.f32.mrf.mxu1  ;;  %v1860_v28 = vpop.f32.mrf.mxu0  ;;  %v1945_v10 = vrot.slane %v1921_v13, 1  ;;  %v2082_v51 = vsel %vm2044_vm12, %v2081_v42, %v2080_v23  ;;  %v10451_v6 = vsel %vm2044_vm12, %v2098_v53, %v2097_v14  ;;  %v2213_v44 = vrot.slane %v10428_v37, 7  ;;  %2933 = vmatprep.subr.mxu0 %v2683_v21 }
 0x253   :  { %v1946_v62 = vrot.slane %v1924_v27, 1  ;;  %v1923_v7 = vmax.f32 %v1662_v15, %v1860_v28  ;;  %v2139_v45 = vrot.slane %v10436_v54, 7  ;;  %v10455_v50 = vmax.f32 %v1922_v20, %v1977_v46  ;;  %v2682_v46 = vld [vmem:[%s15288_s30 + $0xcb0] sm:$0xff]  ;;  %v2676_v15 = vld [vmem:[%s15288_s30 + $0xc80] sm:$0xff] }
 0x254   :  { %v8508_v43 = vpop.f32.mrf.mxu1  ;;  %v8568_v59 = vpop.f32.mrf.mxu0  ;;  %v2231_v25 = vrot.slane %v10428_v37, 1  ;;  %v2248_v56 = vrot.slane %v10428_v37, 3  ;;  %v2122_v39 = vrot.slane %v10436_v54, 5  ;;  %v2157_v1 = vrot.slane %v10436_v54, 1  ;;  %2934 = vmatpush2.msra.mxu0 %v2682_v46 }
 0x255   :  { %v1926_v38 = vmax.f32 %v8508_v43, %v8568_v59  ;;  %v2174_v5 = vrot.slane %v10436_v54, 3  ;;  %v10462_v9 = vmax.f32 %v1921_v13, %v1945_v10  ;;  %v2009_v30 = vrot.slane %v1923_v7, 1  ;;  %2935 = vmatprep.subr.mxu0 %v2676_v15  ;;  %v2403_v15 = vld [vmem:[%s15288_s30 + $0x3f8] sm:$0xff] }
 0x256   :  { %v1672_v16 = vpop.f32.mrf.mxu1  ;;  %v1870_v34 = vpop.f32.mrf.mxu0  ;;  %v10465_v48 = vsel %vm2041_vm11, %v2120_v11, %v2119_v52  ;;  %v10467_v12 = vmax.f32 %v1924_v27, %v1946_v62  ;;  %v2124_v36 = vrot.slane %v10455_v50, 4  ;;  %v2141_v20 = vrot.slane %v10455_v50, 6  ;;  %v2423_v11 = vld [vmem:[%s15288_s30 + $0x498] sm:$0xff]  ;;  %v2417_v52 = vld [vmem:[%s15288_s30 + $0x468] sm:$0xff]  ;;  %v2416_v27 = vld [vmem:[%s15288_s30 + $0x460] sm:$0xff] }
 0x257   :  { %v2010_v63 = vrot.slane %v1926_v38, 1  ;;  %v1925_v17 = vmax.f32 %v1672_v16, %v1870_v34  ;;  %v10474_v13 = vsel %vm2044_vm12, %v2139_v45, %v2138_v22  ;;  %v10477_v40 = vsel %vm2044_vm12, %v2063_v58, %v2062_v60  ;;  %2873 = vmatpush2.msra.mxu1 %v2423_v11  ;;  %v2410_v62 = vld [vmem:[%s15288_s30 + $0x430] sm:$0xff] }
 0x258   :  { %v8511_v2 = vpop.f32.mrf.mxu1  ;;  %v8571_v31 = vpop.f32.mrf.mxu0  ;;  %v10489_v23 = vmax.f32 %v1923_v7, %v2009_v30  ;;  %v2046_v28 = vrot.slane %v10462_v9, 4  ;;  %v2065_v60 = vrot.slane %v10462_v9, 6  ;;  %v2100_v58 = vrot.slane %v10462_v9, 2  ;;  %2874 = vmatprep.subr.mxu1 %v2417_v52  ;;  %v2675_v7 = vld [vmem:[%s15288_s30 + $0xc78] sm:$0xff] }
 0x259   :  { %v10469_v61 = vmax.f32 %v8511_v2, %v8571_v31  ;;  %v1978_v22 = vrot.slane %v1925_v17, 1  ;;  %v10503_v10 = vmax.f32 %v1926_v38, %v2010_v63  ;;  %v2067_v16 = vrot.slane %v10467_v12, 5  ;;  %2875 = vmatpush2.msra.mxu1 %v2416_v27  ;;  %2936 = vmatpush2.msra.mxu0 %v2675_v7  ;;  %v2669_v27 = vld [vmem:[%s15288_s30 + $0xc48] sm:$0xff] }
 0x25a   :  { %v1682_v42 = vpop.f32.mrf.mxu1  ;;  %v1880_v49 = vpop.f32.mrf.mxu0  ;;  %v2083_v34 = vsel %vm2047_vm13, %v10462_v9, %v2082_v51  ;;  %v2102_v30 = vrot.slane %v10467_v12, 1  ;;  %2876 = vmatprep.subr.mxu1 %v2410_v62  ;;  %v2215_v21 = vrot.slane %v10489_v23, 6  ;;  %v2409_v51 = vld [vmem:[%s15288_s30 + $0x428] sm:$0xff]  ;;  %v2101_v7 = vsel %vm2047_vm13, %v2100_v58, %v10451_v6  ;;  %2937 = vmatprep.subr.mxu0 %v2669_v27 }
 0x25b   :  { %v1927_v14 = vmax.f32 %v1682_v42, %v1880_v49  ;;  %v1979_v38 = vrot.slane %v10469_v61, 1  ;;  %v2084_v49 = vrot.slane %v10467_v12, 7  ;;  %v10520_v52 = vmax.f32 %v1925_v17, %v1978_v22  ;;  %2877 = vmatpush2.msra.mxu1 %v2409_v51  ;;  %v2396_v51 = vld [vmem:[%s15288_s30 + $0x3c0] sm:$0xff]  ;;  %v2661_v27 = vld [vmem:[%s15288_s30 + $0xc08] sm:$0xff] }
 0x25c   :  { %v8514_v43 = vpop.f32.mrf.mxu1  ;;  %v8574_v59 = vpop.f32.mrf.mxu0  ;;  %2878 = vmatprep.subr.mxu1 %v2403_v15  ;;  %v2217_v33 = vrot.slane %v10503_v10, 5  ;;  %v2045_v54 = vsel %vm2044_vm12, %v2043_v32, %v10415_v18  ;;  %v15290_v3 = vrot.slane %v10455_v50, 2  ;;  %v15291_v32 = vrot.slane %v10467_v12, 3 }
 0x25d   :  { %v1947_v2 = vrot.slane %v1927_v14, 1  ;;  %v1930_v31 = vmax.f32 %v8514_v43, %v8574_v59  ;;  %v2250_v43 = vrot.slane %v10489_v23, 2  ;;  %v10548_v59 = vmax.f32 %v10469_v61, %v1979_v38 }
 0x25e   :  { %v1692_v63 = vpop.f32.mrf.mxu1  ;;  %v1890_v42 = vpop.f32.mrf.mxu0  ;;  %v2085_v57 = vsel %vm2050_vm14, %v2084_v49, %v2083_v34  ;;  %v2123_v38 = vsel %vm2044_vm12, %v2122_v39, %v10465_v48  ;;  %v2143_v15 = vrot.slane %v10520_v52, 5  ;;  %v2395_v34 = vld [vmem:[%s15288_s30 + $0x3b8] sm:$0xff]  ;;  %v2389_v39 = vld [vmem:[%s15288_s30 + $0x388] sm:$0xff] }
 0x25f   :  { %v1929_v46 = vmax.f32 %v1692_v63, %v1890_v42  ;;  %v10533_v62 = vmax.f32 %v1927_v14, %v1947_v2  ;;  %v2668_v63 = vld [vmem:[%s15288_s30 + $0xc40] sm:$0xff]  ;;  %v2402_v42 = vld [vmem:[%s15288_s30 + $0x3f0] sm:$0xff]  ;;  %v2234_v2 = vrot.slane %v10503_v10, 7  ;;  %v1948_v6 = vrot.slane %v1930_v31, 1  ;;  %v2655_v49 = vld [vmem:[%s15288_s30 + $0xbd8] sm:$0xff] }
 0x260   :  { %v8517_v17 = vpop.f32.mrf.mxu1  ;;  %v8577_v22 = vpop.f32.mrf.mxu0  ;;  %v2662_v14 = vld [vmem:[%s15288_s30 + $0xc10] sm:$0xff]  ;;  %2938 = vmatpush2.msra.mxu0 %v2668_v63  ;;  %2879 = vmatpush2.msra.mxu1 %v2402_v42  ;;  %v2103_v63 = vsel %vm2050_vm14, %v2102_v30, %v2101_v7  ;;  %v2388_v7 = vld [vmem:[%s15288_s30 + $0x380] sm:$0xff] }
 0x261   :  { %v1932_v58 = vmax.f32 %v8517_v17, %v8577_v22  ;;  %v2011_v11 = vrot.slane %v1929_v46, 1  ;;  %v2086_v61 = vrot.slane %v10533_v62, 6  ;;  %2939 = vmatprep.subr.mxu0 %v2662_v14  ;;  %v10563_v17 = vmax.f32 %v1930_v31, %v1948_v6  ;;  %2880 = vmatprep.subr.mxu1 %v2396_v51  ;;  %v2654_v30 = vld [vmem:[%s15288_s30 + $0xbd0] sm:$0xff]  ;;  %v2648_v42 = vld [vmem:[%s15288_s30 + $0xba0] sm:$0xff] }
 0x262   :  { %v1702_v45 = vpop.f32.mrf.mxu1  ;;  %v1900_v53 = vpop.f32.mrf.mxu0  ;;  %2940 = vmatpush2.msra.mxu0 %v2661_v27  ;;  %2881 = vmatpush2.msra.mxu1 %v2395_v34  ;;  %v2125_v6 = vsel %vm2047_vm13, %v2124_v36, %v2123_v38  ;;  %v2128_v51 = vrot.slane %v10548_v59, 2  ;;  %v2647_v27 = vld [vmem:[%s15288_s30 + $0xb98] sm:$0xff]  ;;  %v2142_v36 = vsel %vm2047_vm13, %v2141_v20, %v10474_v13  ;;  %v2641_v38 = vld [vmem:[%s15288_s30 + $0xb68] sm:$0xff]  ;;  %v2640_v20 = vld [vmem:[%s15288_s30 + $0xb60] sm:$0xff] }
 0x263   :  { %v1931_v22 = vmax.f32 %v1702_v45, %v1900_v53  ;;  %v2012_v48 = vrot.slane %v1932_v58, 1  ;;  %v2087_v31 = vsel %vm2053_vm15, %v2086_v61, %v2085_v57  ;;  %v2104_v53 = vsel %vm2053_vm15, %v10533_v62, %v2103_v63  ;;  %2941 = vmatprep.subr.mxu0 %v2655_v49  ;;  %2882 = vmatprep.subr.mxu1 %v2389_v39  ;;  %v2774_v61 = vld [vmem:[%s15288_s30 + $0xf90] sm:$0xff] }
 0x264   :  { %v2126_v45 = vrot.slane %v10520_v52, 3  ;;  %v2088_v14 = vrot.slane %v10563_v17, 5  ;;  %2942 = vmatpush2.msra.mxu0 %v2654_v30  ;;  %v2252_v63 = vrot.slane %v10503_v10, 1  ;;  %v10600_v34 = vmax.f32 %v1929_v46, %v2011_v11  ;;  %2883 = vmatpush2.msra.mxu1 %v2388_v7 }
 0x265   :  { %v1980_v57 = vrot.slane %v1931_v22, 1  ;;  %2943 = vmatprep.subr.mxu0 %v2648_v42  ;;  %v2105_v11 = vrot.slane %v10563_v17, 7  ;;  %v2066_v46 = vsel %vm2047_vm13, %v2065_v60, %v10477_v40  ;;  %v10621_v13 = vmax.f32 %v1932_v58, %v2012_v48  ;;  %2978 = vmatprep.subr.mxu1 %v2774_v61  ;;  %v2634_v40 = vld [vmem:[%s15288_s30 + $0xb30] sm:$0xff] }
 0x266   :  { %v2127_v49 = vsel %vm2050_vm14, %v2126_v45, %v2125_v6  ;;  %v2089_v30 = vsel %vm2056_vm1, %v2088_v14, %v2087_v31  ;;  %2944 = vmatpush2.msra.mxu0 %v2647_v27  ;;  %v2145_v31 = vrot.slane %v10548_v59, 4  ;;  %v2069_v45 = vrot.slane %v10533_v62, 4 }
 0x267   :  { %v10610_v39 = vmax.f32 %v1931_v22, %v1980_v57  ;;  %2090 = vrot.lane.b32.xlu0 %v2089_v30, %s8774_s0  ;;  %v2144_v22 = vsel %vm2050_vm14, %v2143_v15, %v2142_v36  ;;  %v2129_v60 = vsel %vm2053_vm15, %v2128_v51, %v2127_v49  ;;  %v2247_v15 = vsel %vm2041_vm11, %v2246_v35, %v10400_v0  ;;  %v2633_v0 = vld [vmem:[%s15288_s30 + $0xb28] sm:$0xff] }
 0x268   :  { %2945 = vmatprep.subr.mxu0 %v2641_v38  ;;  %v2068_v48 = vsel %vm2050_vm14, %v2067_v16, %v2066_v46  ;;  %v2071_v42 = vrot.slane %v10563_v17, 3  ;;  %v2249_v57 = vsel %vm2044_vm12, %v2248_v56, %v2247_v15  ;;  %v2230_v14 = vsel %vm2041_vm11, %v2229_v47, %v10397_v8  ;;  %v2627_v8 = vld [vmem:[%s15288_s30 + $0xaf8] sm:$0xff] }
 0x269   :  { %v2130_v7 = vrot.slane %v10610_v39, 1  ;;  %v2147_v58 = vrot.slane %v10610_v39, 3  ;;  %2946 = vmatpush2.msra.mxu0 %v2640_v20  ;;  %v2106_v35 = vsel %vm2056_vm1, %v2105_v11, %v2104_v53  ;;  %v2070_v6 = vsel %vm2053_vm15, %v2069_v45, %v2068_v48 }
 0x26a   :  { %v2251_v56 = vsel %vm2047_vm13, %v2250_v43, %v2249_v57  ;;  %2947 = vmatprep.subr.mxu0 %v2634_v40  ;;  %v2160_v47 = vrot.slane %v10520_v52, 7  ;;  %v2146_v53 = vsel %vm2053_vm15, %v2145_v31, %v2144_v22  ;;  %v2236_v51 = vrot.slane %v10600_v34, 6  ;;  %v2626_v43 = vld [vmem:[%s15288_s30 + $0xaf0] sm:$0xff] }
 0x26b   :  { %v2131_v16 = vsel %vm2056_vm1, %v2130_v7, %v2129_v60  ;;  %2107 = vrot.lane.b32.xlu0 %v2106_v35, %s8775_s23  ;;  %v2148_v27 = vsel %vm2056_vm1, %v2147_v58, %v2146_v53  ;;  %v2255_v61 = vrot.slane %v10621_v13, 7  ;;  %v2232_v49 = vsel %vm2044_vm12, %v2231_v25, %v2230_v14  ;;  %2948 = vmatpush2.msra.mxu0 %v2633_v0  ;;  %v2620_v25 = vld [vmem:[%s15288_s30 + $0xac0] sm:$0xff] }
 0x26c   :  { %2132 = vrot.lane.b32.xlu1 %v2131_v16, %s8776_s27  ;;  %v2156_v36 = vsel %vm2041_vm11, %v2155_v29, %v10405_v41  ;;  %v2072_v38 = vsel %vm2056_vm1, %v2071_v42, %v2070_v6  ;;  %v2253_v30 = vsel %vm2050_vm14, %v2252_v63, %v2251_v56  ;;  %v2233_v11 = vsel %vm2047_vm13, %v10489_v23, %v2232_v49 }
 0x26d   :  { %v2158_v46 = vsel %vm2044_vm12, %v2157_v1, %v2156_v36  ;;  %2949 = vmatprep.subr.mxu0 %v2627_v8  ;;  %v2235_v41 = vsel %vm2050_vm14, %v2234_v2, %v2233_v11  ;;  %v2238_v29 = vrot.slane %v10621_v13, 5  ;;  %v2162_v63 = vrot.slane %v10548_v59, 6  ;;  %v2619_v1 = vld [vmem:[%s15288_s30 + $0xab8] sm:$0xff] }
 0x26e   :  { %v2214_v20 = vsel %vm2044_vm12, %v2213_v44, %v10444_v24  ;;  %2950 = vmatpush2.msra.mxu0 %v2626_v43  ;;  %v2237_v2 = vsel %vm2053_vm15, %v2236_v51, %v2235_v41  ;;  %v2159_v22 = vsel %vm2047_vm13, %v10455_v50, %v2158_v46  ;;  %v2219_v24 = vrot.slane %v10600_v34, 4  ;;  %v2613_v44 = vld [vmem:[%s15288_s30 + $0xa88] sm:$0xff]  ;;  %v2767_v11 = vld [vmem:[%s15288_s30 + $0xf58] sm:$0xff]  ;;  %v2766_v46 = vld [vmem:[%s15288_s30 + $0xf50] sm:$0xff] }
 0x26f   :  { %2149 = vrot.lane.b32.xlu0 %v2148_v27, %s8777_s24  ;;  %v2216_v31 = vsel %vm2047_vm13, %v2215_v21, %v2214_v20  ;;  %v2178_v45 = vrot.slane %v10520_v52, 1  ;;  %v2254_v40 = vsel %vm2053_vm15, %v10600_v34, %v2253_v30  ;;  %v2161_v60 = vsel %vm2050_vm14, %v2160_v47, %v2159_v22  ;;  %2951 = vmatprep.subr.mxu0 %v2620_v25  ;;  %v2612_v52 = vld [vmem:[%s15288_s30 + $0xa80] sm:$0xff]  ;;  %v2759_v20 = vld [vmem:[%s15288_s30 + $0xf18] sm:$0xff] }
 0x270   :  { %2073 = vrot.lane.b32.xlu1 %v2072_v38, %s8778_s3  ;;  %v2164_v7 = vrot.slane %v10610_v39, 5  ;;  %v2052_v58 = vrot.slane %v10533_v62, 2  ;;  %v2204_v21 = vrot.slane %v10600_v34, 2  ;;  %v2256_v15 = vsel %vm2056_vm1, %v2255_v61, %v2254_v40  ;;  %2952 = vmatpush2.msra.mxu0 %v2619_v1  ;;  %v2773_v38 = vld [vmem:[%s15288_s30 + $0xf88] sm:$0xff] }
 0x271   :  { %v2173_v48 = vsel %vm2041_vm11, %v2172_v19, %v10411_v4  ;;  %v2239_v42 = vsel %vm2056_vm1, %v2238_v29, %v2237_v2  ;;  %v2218_v57 = vsel %vm2050_vm14, %v2217_v33, %v2216_v31  ;;  %v2221_v62 = vrot.slane %v10621_v13, 3  ;;  %2953 = vmatprep.subr.mxu0 %v2613_v44  ;;  %v2760_v29 = vld [vmem:[%s15288_s30 + $0xf20] sm:$0xff]  ;;  %v2753_v1 = vld [vmem:[%s15288_s30 + $0xee8] sm:$0xff]  ;;  %v2746_v31 = vld [vmem:[%s15288_s30 + $0xeb0] sm:$0xff] }
 0x272   :  { %v2175_v34 = vsel %vm2044_vm12, %v2174_v5, %v2173_v48  ;;  %v2163_v4 = vsel %vm2053_vm15, %v2162_v63, %v2161_v60  ;;  %v2220_v19 = vsel %vm2053_vm15, %v2219_v24, %v2218_v57  ;;  %v2055_v5 = vrot.slane %v10563_v17, 1  ;;  %2954 = vmatpush2.msra.mxu0 %v2612_v52  ;;  %v2752_v2 = vld [vmem:[%s15288_s30 + $0xee0] sm:$0xff]  ;;  %v2739_v60 = vld [vmem:[%s15288_s30 + $0xe78] sm:$0xff]  ;;  %v2601_v57 = vld [vmem:[%s15288_s30 + $0xa28] sm:$0xff] }
 0x273   :  { %2257 = vrot.lane.b32.xlu0 %v2256_v15, %s8775_s23  ;;  %v2165_v14 = vsel %vm2056_vm1, %v2164_v7, %v2163_v4  ;;  %v2181_v0 = vrot.slane %v10610_v39, 7  ;;  %v2048_v35 = vsel %vm2047_vm13, %v2046_v28, %v2045_v54  ;;  %v15289_v16 = vrot.slane %v10428_v37, 5  ;;  %3104 = vmatprep.subr.mxu0 %v2608_v55  ;;  %s8780_s23 = smov 80   ;;  %v2738_v7 = vld [vmem:[%s15288_s30 + $0xe70] sm:$0xff]  ;;  %v2732_v15 = vld [vmem:[%s15288_s30 + $0xe40] sm:$0xff]  ;;  %v2607_v48 = vld [vmem:[%s15288_s30 + $0xa58] sm:$0xff] }
 0x274   :  { %2240 = vrot.lane.b32.xlu1 %v2239_v42, %s8774_s0  ;;  %v2177_v18 = vsel %vm2047_vm13, %v15290_v3, %v2175_v34  ;;  %v2051_v17 = vsel %vm2050_vm14, %v15291_v32, %v2048_v35  ;;  %v15292_v39 = vrot.slane %v10489_v23, 4  ;;  %v2206_v28 = vrot.slane %v10621_v13, 1  ;;  %s8779_s0 = smov 32   ;;  %v2731_v42 = vld [vmem:[%s15288_s30 + $0xe38] sm:$0xff]  ;;  %v2600_v34 = vld [vmem:[%s15288_s30 + $0xa20] sm:$0xff]  ;;  %v2594_v4 = vld [vmem:[%s15288_s30 + $0x9f0] sm:$0xff] }
 0x275   :  { %v2199_v6 = vsel %vm2044_vm12, %v15289_v16, %v10434_v26  ;;  %v2222_v37 = vsel %vm2056_vm1, %v2221_v62, %v2220_v19  ;;  %v2179_v26 = vsel %vm2050_vm14, %v2178_v45, %v2177_v18  ;;  %v2054_v56 = vsel %vm2053_vm15, %v2052_v58, %v2051_v17  ;;  %v2745_v45 = vld [vmem:[%s15288_s30 + $0xea8] sm:$0xff]  ;;  %v2724_v55 = vld [vmem:[%s15288_s30 + $0xe00] sm:$0xff]  ;;  %v2586_v16 = vld [vmem:[%s15288_s30 + $0x9b0] sm:$0xff] }
 0x276   :  { %v2201_v9 = vsel %vm2047_vm13, %v15292_v39, %v2199_v6  ;;  %v15293_v50 = vrot.slane %v10503_v10, 3  ;;  %v2057_v12 = vsel %vm2056_vm1, %v2055_v5, %v2054_v56  ;;  %v2180_v33 = vsel %vm2053_vm15, %v10548_v59, %v2179_v26  ;;  %v2725_v62 = vld [vmem:[%s15288_s30 + $0xe08] sm:$0xff]  ;;  %v2384_v19 = vld [vmem:[%s15288_s30 + $0x360] sm:$0xff]  ;;  %v2370_v18 = vld [vmem:[%s15288_s30 + $0x2f0] sm:$0xff] }
 0x277   :  { %2166 = vrot.lane.b32.xlu0 %v2165_v14, %s8779_s0  ;;  %v2182_v47 = vsel %vm2056_vm1, %v2181_v0, %v2180_v33  ;;  %v8781_v63 = vmov 0.0   ;;  %v2593_v54 = vld [vmem:[%s15288_s30 + $0x9e8] sm:$0xff]  ;;  %v2383_v14 = vld [vmem:[%s15288_s30 + $0x358] sm:$0xff]  ;;  %v2376_v6 = vld [vmem:[%s15288_s30 + $0x320] sm:$0xff] }
 0x278   :  { %v2203_v8 = vsel %vm2050_vm14, %v15293_v50, %v2201_v9  ;;  %2223 = vrot.lane.b32.xlu1 %v2222_v37, %s8778_s3  ;;  %v2587_v0 = vld [vmem:[%s15288_s30 + $0x9b8] sm:$0xff]  ;;  %v2377_v35 = vld [vmem:[%s15288_s30 + $0x328] sm:$0xff]  ;;  %v2580_v3 = vld [vmem:[%s15288_s30 + $0x980] sm:$0xff] }
 0x279   :  { %v2205_v23 = vsel %vm2053_vm15, %v2204_v21, %v2203_v8  ;;  %v2579_v32 = vld [vmem:[%s15288_s30 + $0x978] sm:$0xff]  ;;  %v2369_v17 = vld [vmem:[%s15288_s30 + $0x2e8] sm:$0xff]  ;;  %v2362_v37 = vld [vmem:[%s15288_s30 + $0x2b0] sm:$0xff]  ;;  %vm5721_vm15 = vcmask 588800  }
 0x27a   :  { %v2207_v13 = vsel %vm2056_vm1, %v2206_v28, %v2205_v23  ;;  %v2573_v39 = vld [vmem:[%s15288_s30 + $0x948] sm:$0xff]  ;;  %v2363_v9 = vld [vmem:[%s15288_s30 + $0x2b8] sm:$0xff]  ;;  %v2572_v28 = vld [vmem:[%s15288_s30 + $0x940] sm:$0xff] }
 0x27b   :  { %v2566_v26 = vld [vmem:[%s15288_s30 + $0x910] sm:$0xff]  ;;  %v2356_v56 = vld [vmem:[%s15288_s30 + $0x280] sm:$0xff]  ;;  %v2565_v50 = vld [vmem:[%s15288_s30 + $0x908] sm:$0xff] }
 0x27c   :  { %2183 = vrot.lane.b32.xlu1 %v2182_v47, %s8780_s23  ;;  %v2355_v8 = vld [vmem:[%s15288_s30 + $0x278] sm:$0xff]  ;;  %v2349_v23 = vld [vmem:[%s15288_s30 + $0x248] sm:$0xff]  ;;  %v2348_v33 = vld [vmem:[%s15288_s30 + $0x240] sm:$0xff] }
 0x27d   :  { %v2552_v47 = vld [vmem:[%s15288_s30 + $0x8a0] sm:$0xff] }
 0x2d9   :  { %v2091_v10 = vpop.permute.xlu0 %2090 }
 0x2dd   :  { %v2108_v53 = vpop.permute.xlu0 %2107 }
 0x2de   :  { %v2133_v51 = vpop.permute.xlu1 %2132  ;;  %v2264_v43 = vsel %vm2263_vm2, %v2091_v10, %v2108_v53  ;;  %v2551_v53 = vld [vmem:[%s15288_s30 + $0x898] sm:$0xff] }
 0x2df   :  { %v2266_v27 = vsel %vm2265_vm3, %v2264_v43, %v2133_v51  ;;  %v2341_v51 = vld [vmem:[%s15288_s30 + $0x208] sm:$0xff] }
 0x2e0   :  { %v2545_v43 = vld [vmem:[%s15288_s30 + $0x868] sm:$0xff] }
 0x2e1   :  { %v2150_v61 = vpop.permute.xlu0 %2149 }
 0x2e2   :  { %v2074_v49 = vpop.permute.xlu1 %2073  ;;  %v10777_v36 = vsel %vm2267_vm4, %v2266_v27, %v2150_v61  ;;  %v2335_v27 = vld [vmem:[%s15288_s30 + $0x1d8] sm:$0xff]  ;;  %vm6424_vm4 = vcmask 1041408  }
 0x2e3   :  { %v2261_v59 = vsel %vm2260_vm5, %v2057_v12, %v2074_v49  ;;  %2884 = vmatprep.mubr.f32.mxu1 %v10777_v36  ;;  %v2559_v12 = vld [vmem:[%s15288_s30 + $0x8d8] sm:$0xff]  ;;  %v2334_v49 = vld [vmem:[%s15288_s30 + $0x1d0] sm:$0xff] }
 0x2e4   :  { %v10785_v30 = vsel %vm1453_vm0, %v2261_v59, %v2091_v10  ;;  %v2342_v10 = vld [vmem:[%s15288_s30 + $0x210] sm:$0xff] }
 0x2e5   :  { %2885 = vmatmul.mubr.f32.vlgmr.msra.gmra.mxu1 %v10785_v30  ;;  %v2258_v25 = vpop.permute.xlu0 %2257  ;;  %v2538_v59 = vld [vmem:[%s15288_s30 + $0x830] sm:$0xff] }
 0x2e6   :  { %2979 = vmatpush1.msra.mxu1 %v2773_v38  ;;  %v2241_v41 = vpop.permute.xlu1 %2240  ;;  %3026 = vmatprep.mubr.f32.mxu1 %v8781_v63  ;;  %v2328_v38 = vld [vmem:[%s15288_s30 + $0x1a0] sm:$0xff] }
 0x2e7   :  { %2980 = vmatprep.subr.mxu1 %v2767_v11  ;;  %v10860_v5 = vsel %vm2263_vm2, %v2241_v41, %v2258_v25  ;;  %v2537_v11 = vld [vmem:[%s15288_s30 + $0x828] sm:$0xff]  ;;  %v2531_v25 = vld [vmem:[%s15288_s30 + $0x7f8] sm:$0xff] }
 0x2e8   :  { %2981 = vmatpush1.msra.mxu1 %v2766_v46  ;;  %v2327_v46 = vld [vmem:[%s15288_s30 + $0x198] sm:$0xff] }
 0x2e9   :  { %2982 = vmatprep.subr.mxu1 %v2760_v29  ;;  %v2167_v24 = vpop.permute.xlu0 %2166  ;;  %v2530_v29 = vld [vmem:[%s15288_s30 + $0x7f0] sm:$0xff] }
 0x2ea   :  { %2983 = vmatpush1.msra.mxu1 %v2759_v20  ;;  %v2224_v22 = vpop.permute.xlu1 %2223  ;;  %v2270_v58 = vsel %vm2269_vm6, %v2150_v61, %v2167_v24  ;;  %v2544_v61 = vld [vmem:[%s15288_s30 + $0x860] sm:$0xff]  ;;  %v2517_v24 = vld [vmem:[%s15288_s30 + $0x788] sm:$0xff] }
 0x2eb   :  { %2984 = vmatprep.subr.mxu1 %v2753_v1  ;;  %v2273_v44 = vsel %vm2260_vm5, %v2207_v13, %v2224_v22  ;;  %v2558_v13 = vld [vmem:[%s15288_s30 + $0x8d0] sm:$0xff]  ;;  %v2320_v20 = vld [vmem:[%s15288_s30 + $0x160] sm:$0xff]  ;;  %v2523_v22 = vld [vmem:[%s15288_s30 + $0x7b8] sm:$0xff]  ;;  %vm6420_vm5 = vcmask 408576  }
 0x2ec   :  { %2985 = vmatpush1.msra.mxu1 %v2752_v2  ;;  %v10815_v40 = vsel %vm1453_vm0, %v2273_v44, %v2241_v41  ;;  %v2321_v41 = vld [vmem:[%s15288_s30 + $0x168] sm:$0xff]  ;;  %v2524_v1 = vld [vmem:[%s15288_s30 + $0x7c0] sm:$0xff]  ;;  %v2314_v2 = vld [vmem:[%s15288_s30 + $0x130] sm:$0xff]  ;;  %vm8782_vm0 = vmmov 0  }
 0x2ed   :  { %2986 = vmatprep.subr.mxu1 %v2746_v31  ;;  %2955 = vmatprep.mubr.f32.mxu0 %v10815_v40  ;;  %v2313_v31 = vld [vmem:[%s15288_s30 + $0x128] sm:$0xff]  ;;  %v2307_v44 = vld [vmem:[%s15288_s30 + $0xf8] sm:$0xff] }
 0x2ee   :  { %2987 = vmatpush1.msra.mxu1 %v2745_v45  ;;  %v2184_v21 = vpop.permute.xlu1 %2183  ;;  %v2516_v45 = vld [vmem:[%s15288_s30 + $0x780] sm:$0xff] }
 0x2ef   :  { %2988 = vmatprep.subr.mxu1 %v2739_v60  ;;  %v10831_v52 = vsel %vm2271_vm7, %v2270_v58, %v2184_v21  ;;  %v2306_v60 = vld [vmem:[%s15288_s30 + $0xf0] sm:$0xff]  ;;  %v2300_v58 = vld [vmem:[%s15288_s30 + $0xc0] sm:$0xff]  ;;  %v2509_v21 = vld [vmem:[%s15288_s30 + $0x748] sm:$0xff]  ;;  %vm6624_vm7 = vcmask 1043456  }
 0x2f0   :  { %2989 = vmatpush1.msra.mxu1 %v2738_v7  ;;  %2956 = vmatmul.mubr.f32.vlgmr.msra.gmra.mxu0 %v10831_v52  ;;  %v2510_v7 = vld [vmem:[%s15288_s30 + $0x750] sm:$0xff] }
 0x2f1   :  { %2990 = vmatprep.subr.mxu1 %v2732_v15  ;;  %3105 = vmatpush1.msra.mxu0 %v2607_v48  ;;  %v2299_v15 = vld [vmem:[%s15288_s30 + $0xb8] sm:$0xff] }
 0x2f2   :  { %2991 = vmatpush1.msra.mxu1 %v2731_v42  ;;  %3106 = vmatprep.subr.mxu0 %v2601_v57  ;;  %v2503_v48 = vld [vmem:[%s15288_s30 + $0x718] sm:$0xff]  ;;  %v2293_v42 = vld [vmem:[%s15288_s30 + $0x88] sm:$0xff]  ;;  %v2502_v57 = vld [vmem:[%s15288_s30 + $0x710] sm:$0xff] }
 0x2f3   :  { %3168 = vmatprep.mubr.f32.mxu0 %v10815_v40  ;;  %2992 = vmatprep.subr.mxu1 %v2725_v62  ;;  %v2292_v62 = vld [vmem:[%s15288_s30 + $0x80] sm:$0xff] }
 0x2f4   :  { %3107 = vmatpush1.msra.mxu0 %v2600_v34  ;;  %2993 = vmatpush1.msra.mxu1 %v2724_v55  ;;  %v2720_v34 = vld [vmem:[%s15288_s30 + $0xde0] sm:$0xff]  ;;  %v2286_v55 = vld [vmem:[%s15288_s30 + $0x50] sm:$0xff] }
 0x2f5   :  { %3108 = vmatprep.subr.mxu0 %v2594_v4  ;;  %6852 = vmatmul.mubr.msk.f32.vlgmr.msra.gmra.mxu1 %vm2265_vm3, %v10860_v5  ;;  %v2719_v4 = vld [vmem:[%s15288_s30 + $0xdd8] sm:$0xff] }
 0x2f6   :  { %3033 = vmatprep.subr.mxu1 %v2384_v19  ;;  %3109 = vmatpush1.msra.mxu0 %v2593_v54  ;;  %v2285_v19 = vld [vmem:[%s15288_s30 + $0x48] sm:$0xff] }
 0x2f7   :  { %3034 = vmatpush1.msra.mxu1 %v2383_v14  ;;  %3097 = vmatprep.mubr.f32.mxu1 %v10777_v36  ;;  %v2713_v54 = vld [vmem:[%s15288_s30 + $0xda8] sm:$0xff]  ;;  %v2279_v14 = vld [vmem:[%s15288_s30 + $0x18] sm:$0xff] }
 0x2f8   :  { %3110 = vmatprep.subr.mxu0 %v2587_v0  ;;  %3035 = vmatprep.subr.mxu1 %v2377_v35  ;;  %v2712_v0 = vld [vmem:[%s15288_s30 + $0xda0] sm:$0xff]  ;;  %v2278_v35 = vld [vmem:[%s15288_s30 + $0x10] sm:$0xff] }
 0x2f9   :  { %3111 = vmatpush1.msra.mxu0 %v2586_v16  ;;  %3036 = vmatpush1.msra.mxu1 %v2376_v6  ;;  %v2706_v16 = vld [vmem:[%s15288_s30 + $0xd70] sm:$0xff]  ;;  %v2496_v6 = vld [vmem:[%s15288_s30 + $0x6e0] sm:$0xff] }
 0x2fa   :  { %3112 = vmatprep.subr.mxu0 %v2580_v3  ;;  %3037 = vmatprep.subr.mxu1 %v2370_v18  ;;  %v2705_v3 = vld [vmem:[%s15288_s30 + $0xd68] sm:$0xff]  ;;  %v2495_v18 = vld [vmem:[%s15288_s30 + $0x6d8] sm:$0xff] }
 0x2fb   :  { %3113 = vmatpush1.msra.mxu0 %v2579_v32  ;;  %3038 = vmatpush1.msra.mxu1 %v2369_v17  ;;  %v2699_v32 = vld [vmem:[%s15288_s30 + $0xd38] sm:$0xff]  ;;  %v2489_v17 = vld [vmem:[%s15288_s30 + $0x6a8] sm:$0xff] }
 0x2fc   :  { %3114 = vmatprep.subr.mxu0 %v2573_v39  ;;  %3039 = vmatprep.subr.mxu1 %v2363_v9  ;;  %v2698_v39 = vld [vmem:[%s15288_s30 + $0xd30] sm:$0xff]  ;;  %v2488_v9 = vld [vmem:[%s15288_s30 + $0x6a0] sm:$0xff] }
 0x2fd   :  { %3115 = vmatpush1.msra.mxu0 %v2572_v28  ;;  %3040 = vmatpush1.msra.mxu1 %v2362_v37  ;;  %v2692_v28 = vld [vmem:[%s15288_s30 + $0xd00] sm:$0xff]  ;;  %v2482_v37 = vld [vmem:[%s15288_s30 + $0x670] sm:$0xff] }
 0x2fe   :  { %3116 = vmatprep.subr.mxu0 %v2566_v26  ;;  %3041 = vmatprep.subr.mxu1 %v2356_v56  ;;  %v2691_v26 = vld [vmem:[%s15288_s30 + $0xcf8] sm:$0xff]  ;;  %v2481_v56 = vld [vmem:[%s15288_s30 + $0x668] sm:$0xff] }
 0x2ff   :  { %3117 = vmatpush1.msra.mxu0 %v2565_v50  ;;  %3042 = vmatpush1.msra.mxu1 %v2355_v8  ;;  %v2685_v50 = vld [vmem:[%s15288_s30 + $0xcc8] sm:$0xff]  ;;  %v2475_v8 = vld [vmem:[%s15288_s30 + $0x638] sm:$0xff] }
 0x300   :  { %3118 = vmatprep.subr.mxu0 %v2559_v12  ;;  %3043 = vmatprep.subr.mxu1 %v2349_v23  ;;  %v2684_v12 = vld [vmem:[%s15288_s30 + $0xcc0] sm:$0xff]  ;;  %v2474_v23 = vld [vmem:[%s15288_s30 + $0x630] sm:$0xff] }
 0x301   :  { %3119 = vmatpush1.msra.mxu0 %v2558_v13  ;;  %3044 = vmatpush1.msra.mxu1 %v2348_v33  ;;  %v2678_v13 = vld [vmem:[%s15288_s30 + $0xc90] sm:$0xff]  ;;  %v2468_v33 = vld [vmem:[%s15288_s30 + $0x600] sm:$0xff] }
 0x302   :  { %3120 = vmatprep.subr.mxu0 %v2552_v47  ;;  %3045 = vmatprep.subr.mxu1 %v2342_v10  ;;  %v2677_v47 = vld [vmem:[%s15288_s30 + $0xc88] sm:$0xff]  ;;  %v2467_v10 = vld [vmem:[%s15288_s30 + $0x5f8] sm:$0xff] }
 0x303   :  { %3121 = vmatpush1.msra.mxu0 %v2551_v53  ;;  %3046 = vmatpush1.msra.mxu1 %v2341_v51  ;;  %v2671_v53 = vld [vmem:[%s15288_s30 + $0xc58] sm:$0xff]  ;;  %v2461_v51 = vld [vmem:[%s15288_s30 + $0x5c8] sm:$0xff] }
 0x304   :  { %3122 = vmatprep.subr.mxu0 %v2545_v43  ;;  %3047 = vmatprep.subr.mxu1 %v2335_v27  ;;  %v2670_v43 = vld [vmem:[%s15288_s30 + $0xc50] sm:$0xff]  ;;  %v2460_v27 = vld [vmem:[%s15288_s30 + $0x5c0] sm:$0xff] }
 0x305   :  { %3123 = vmatpush1.msra.mxu0 %v2544_v61  ;;  %3048 = vmatpush1.msra.mxu1 %v2334_v49  ;;  %v2664_v61 = vld [vmem:[%s15288_s30 + $0xc20] sm:$0xff]  ;;  %v2454_v49 = vld [vmem:[%s15288_s30 + $0x590] sm:$0xff] }
 0x306   :  { %3124 = vmatprep.subr.mxu0 %v2538_v59  ;;  %3049 = vmatprep.subr.mxu1 %v2328_v38  ;;  %v2663_v59 = vld [vmem:[%s15288_s30 + $0xc18] sm:$0xff]  ;;  %v2453_v38 = vld [vmem:[%s15288_s30 + $0x588] sm:$0xff] }
 0x307   :  { %3125 = vmatpush1.msra.mxu0 %v2537_v11  ;;  %3050 = vmatpush1.msra.mxu1 %v2327_v46  ;;  %v2657_v11 = vld [vmem:[%s15288_s30 + $0xbe8] sm:$0xff]  ;;  %v2447_v46 = vld [vmem:[%s15288_s30 + $0x558] sm:$0xff] }
 0x308   :  { %3126 = vmatprep.subr.mxu0 %v2531_v25  ;;  %3051 = vmatprep.subr.mxu1 %v2321_v41  ;;  %v2656_v25 = vld [vmem:[%s15288_s30 + $0xbe0] sm:$0xff]  ;;  %v2446_v41 = vld [vmem:[%s15288_s30 + $0x550] sm:$0xff] }
 0x309   :  { %3127 = vmatpush1.msra.mxu0 %v2530_v29  ;;  %3052 = vmatpush1.msra.mxu1 %v2320_v20  ;;  %v2650_v29 = vld [vmem:[%s15288_s30 + $0xbb0] sm:$0xff]  ;;  %v2440_v20 = vld [vmem:[%s15288_s30 + $0x520] sm:$0xff] }
 0x30a   :  { %3128 = vmatprep.subr.mxu0 %v2524_v1  ;;  %3053 = vmatprep.subr.mxu1 %v2314_v2  ;;  %v2649_v1 = vld [vmem:[%s15288_s30 + $0xba8] sm:$0xff]  ;;  %v2439_v2 = vld [vmem:[%s15288_s30 + $0x518] sm:$0xff] }
 0x30b   :  { %3129 = vmatpush1.msra.mxu0 %v2523_v22  ;;  %3054 = vmatpush1.msra.mxu1 %v2313_v31  ;;  %v2643_v22 = vld [vmem:[%s15288_s30 + $0xb78] sm:$0xff]  ;;  %v2433_v31 = vld [vmem:[%s15288_s30 + $0x4e8] sm:$0xff] }
 0x30c   :  { %3130 = vmatprep.subr.mxu0 %v2517_v24  ;;  %3055 = vmatprep.subr.mxu1 %v2307_v44  ;;  %v2642_v24 = vld [vmem:[%s15288_s30 + $0xb70] sm:$0xff]  ;;  %v2432_v44 = vld [vmem:[%s15288_s30 + $0x4e0] sm:$0xff] }
 0x30d   :  { %3131 = vmatpush1.msra.mxu0 %v2516_v45  ;;  %3056 = vmatpush1.msra.mxu1 %v2306_v60  ;;  %v2636_v45 = vld [vmem:[%s15288_s30 + $0xb40] sm:$0xff]  ;;  %v2426_v60 = vld [vmem:[%s15288_s30 + $0x4b0] sm:$0xff] }
 0x30e   :  { %3132 = vmatprep.subr.mxu0 %v2510_v7  ;;  %3057 = vmatprep.subr.mxu1 %v2300_v58  ;;  %v2635_v7 = vld [vmem:[%s15288_s30 + $0xb38] sm:$0xff]  ;;  %v2425_v58 = vld [vmem:[%s15288_s30 + $0x4a8] sm:$0xff] }
 0x30f   :  { %3133 = vmatpush1.msra.mxu0 %v2509_v21  ;;  %3058 = vmatpush1.msra.mxu1 %v2299_v15  ;;  %v2629_v21 = vld [vmem:[%s15288_s30 + $0xb08] sm:$0xff]  ;;  %v2419_v15 = vld [vmem:[%s15288_s30 + $0x478] sm:$0xff] }
 0x310   :  { %3134 = vmatprep.subr.mxu0 %v2503_v48  ;;  %3059 = vmatprep.subr.mxu1 %v2293_v42  ;;  %v2628_v48 = vld [vmem:[%s15288_s30 + $0xb00] sm:$0xff]  ;;  %v2418_v42 = vld [vmem:[%s15288_s30 + $0x470] sm:$0xff] }
 0x311   :  { %3135 = vmatpush1.msra.mxu0 %v2502_v57  ;;  %3060 = vmatpush1.msra.mxu1 %v2292_v62  ;;  %v2622_v57 = vld [vmem:[%s15288_s30 + $0xad0] sm:$0xff]  ;;  %v2412_v62 = vld [vmem:[%s15288_s30 + $0x440] sm:$0xff] }
 0x312   :  { %3136 = vmatprep.subr.mxu0 %v2720_v34  ;;  %3061 = vmatprep.subr.mxu1 %v2286_v55  ;;  %v2621_v34 = vld [vmem:[%s15288_s30 + $0xac8] sm:$0xff]  ;;  %v2411_v55 = vld [vmem:[%s15288_s30 + $0x438] sm:$0xff] }
 0x313   :  { %3137 = vmatpush2.msra.mxu0 %v2719_v4  ;;  %3062 = vmatpush1.msra.mxu1 %v2285_v19  ;;  %v2615_v4 = vld [vmem:[%s15288_s30 + $0xa98] sm:$0xff]  ;;  %v2405_v19 = vld [vmem:[%s15288_s30 + $0x408] sm:$0xff] }
 0x314   :  { %3138 = vmatprep.subr.mxu0 %v2713_v54  ;;  %3063 = vmatprep.subr.mxu1 %v2279_v14  ;;  %v2614_v54 = vld [vmem:[%s15288_s30 + $0xa90] sm:$0xff]  ;;  %v2404_v14 = vld [vmem:[%s15288_s30 + $0x400] sm:$0xff] }
 0x315   :  { %3139 = vmatpush2.msra.mxu0 %v2712_v0  ;;  %3064 = vmatpush1.msra.mxu1 %v2278_v35  ;;  %v2610_v0 = vld [vmem:[%s15288_s30 + $0xa70] sm:$0xff] }
 0x316   :  { %3140 = vmatprep.subr.mxu0 %v2706_v16  ;;  %3065 = vmatprep.subr.mxu1 %v2496_v6  ;;  %v2398_v35 = vld [vmem:[%s15288_s30 + $0x3d0] sm:$0xff]  ;;  %v2609_v16 = vld [vmem:[%s15288_s30 + $0xa68] sm:$0xff] }
 0x317   :  { %3141 = vmatpush2.msra.mxu0 %v2705_v3  ;;  %3066 = vmatpush2.msra.mxu1 %v2495_v18  ;;  %v2397_v6 = vld [vmem:[%s15288_s30 + $0x3c8] sm:$0xff]  ;;  %v2603_v3 = vld [vmem:[%s15288_s30 + $0xa38] sm:$0xff] }
 0x318   :  { %3142 = vmatprep.subr.mxu0 %v2699_v32  ;;  %3067 = vmatprep.subr.mxu1 %v2489_v17  ;;  %v2391_v18 = vld [vmem:[%s15288_s30 + $0x398] sm:$0xff]  ;;  %v2602_v32 = vld [vmem:[%s15288_s30 + $0xa30] sm:$0xff] }
 0x319   :  { %3143 = vmatpush2.msra.mxu0 %v2698_v39  ;;  %3068 = vmatpush2.msra.mxu1 %v2488_v9  ;;  %v2390_v17 = vld [vmem:[%s15288_s30 + $0x390] sm:$0xff]  ;;  %v2596_v39 = vld [vmem:[%s15288_s30 + $0xa00] sm:$0xff] }
 0x31a   :  { %3144 = vmatprep.subr.mxu0 %v2692_v28  ;;  %3069 = vmatprep.subr.mxu1 %v2482_v37  ;;  %v2776_v9 = vld [vmem:[%s15288_s30 + $0xfa0] sm:$0xff]  ;;  %v2595_v28 = vld [vmem:[%s15288_s30 + $0x9f8] sm:$0xff] }
 0x31b   :  { %3145 = vmatpush2.msra.mxu0 %v2691_v26  ;;  %3070 = vmatpush2.msra.mxu1 %v2481_v56  ;;  %v2775_v37 = vld [vmem:[%s15288_s30 + $0xf98] sm:$0xff]  ;;  %v2589_v26 = vld [vmem:[%s15288_s30 + $0x9c8] sm:$0xff] }
 0x31c   :  { %3146 = vmatprep.subr.mxu0 %v2685_v50  ;;  %3071 = vmatprep.subr.mxu1 %v2475_v8  ;;  %v2769_v56 = vld [vmem:[%s15288_s30 + $0xf68] sm:$0xff]  ;;  %v2588_v50 = vld [vmem:[%s15288_s30 + $0x9c0] sm:$0xff] }
 0x31d   :  { %3147 = vmatpush2.msra.mxu0 %v2684_v12  ;;  %3072 = vmatpush2.msra.mxu1 %v2474_v23  ;;  %v2768_v8 = vld [vmem:[%s15288_s30 + $0xf60] sm:$0xff]  ;;  %v2582_v12 = vld [vmem:[%s15288_s30 + $0x990] sm:$0xff] }
 0x31e   :  { %3148 = vmatprep.subr.mxu0 %v2678_v13  ;;  %3073 = vmatprep.subr.mxu1 %v2468_v33  ;;  %v2762_v23 = vld [vmem:[%s15288_s30 + $0xf30] sm:$0xff]  ;;  %v2581_v13 = vld [vmem:[%s15288_s30 + $0x988] sm:$0xff] }
 0x31f   :  { %3149 = vmatpush2.msra.mxu0 %v2677_v47  ;;  %3074 = vmatpush2.msra.mxu1 %v2467_v10  ;;  %v2761_v33 = vld [vmem:[%s15288_s30 + $0xf28] sm:$0xff]  ;;  %v2575_v47 = vld [vmem:[%s15288_s30 + $0x958] sm:$0xff] }
 0x320   :  { %3150 = vmatprep.subr.mxu0 %v2671_v53  ;;  %3075 = vmatprep.subr.mxu1 %v2461_v51  ;;  %v2755_v10 = vld [vmem:[%s15288_s30 + $0xef8] sm:$0xff]  ;;  %v2574_v53 = vld [vmem:[%s15288_s30 + $0x950] sm:$0xff] }
 0x321   :  { %3151 = vmatpush2.msra.mxu0 %v2670_v43  ;;  %3076 = vmatpush2.msra.mxu1 %v2460_v27  ;;  %v2754_v51 = vld [vmem:[%s15288_s30 + $0xef0] sm:$0xff]  ;;  %v2568_v43 = vld [vmem:[%s15288_s30 + $0x920] sm:$0xff] }
 0x322   :  { %3152 = vmatprep.subr.mxu0 %v2664_v61  ;;  %3077 = vmatprep.subr.mxu1 %v2454_v49  ;;  %v2748_v27 = vld [vmem:[%s15288_s30 + $0xec0] sm:$0xff]  ;;  %v2567_v61 = vld [vmem:[%s15288_s30 + $0x918] sm:$0xff] }
 0x323   :  { %3153 = vmatpush2.msra.mxu0 %v2663_v59  ;;  %3078 = vmatpush2.msra.mxu1 %v2453_v38  ;;  %v2747_v49 = vld [vmem:[%s15288_s30 + $0xeb8] sm:$0xff]  ;;  %v2561_v59 = vld [vmem:[%s15288_s30 + $0x8e8] sm:$0xff] }
 0x324   :  { %3154 = vmatprep.subr.mxu0 %v2657_v11  ;;  %3079 = vmatprep.subr.mxu1 %v2447_v46  ;;  %v2741_v38 = vld [vmem:[%s15288_s30 + $0xe88] sm:$0xff]  ;;  %v2560_v11 = vld [vmem:[%s15288_s30 + $0x8e0] sm:$0xff] }
 0x325   :  { %3155 = vmatpush2.msra.mxu0 %v2656_v25  ;;  %3080 = vmatpush2.msra.mxu1 %v2446_v41  ;;  %v2740_v46 = vld [vmem:[%s15288_s30 + $0xe80] sm:$0xff]  ;;  %v2554_v25 = vld [vmem:[%s15288_s30 + $0x8b0] sm:$0xff] }
 0x326   :  { %3156 = vmatprep.subr.mxu0 %v2650_v29  ;;  %3081 = vmatprep.subr.mxu1 %v2440_v20  ;;  %v2734_v41 = vld [vmem:[%s15288_s30 + $0xe50] sm:$0xff]  ;;  %v2553_v29 = vld [vmem:[%s15288_s30 + $0x8a8] sm:$0xff] }
 0x327   :  { %3157 = vmatpush2.msra.mxu0 %v2649_v1  ;;  %3082 = vmatpush2.msra.mxu1 %v2439_v2  ;;  %v2733_v20 = vld [vmem:[%s15288_s30 + $0xe48] sm:$0xff]  ;;  %v2547_v1 = vld [vmem:[%s15288_s30 + $0x878] sm:$0xff] }
 0x328   :  { %3158 = vmatprep.subr.mxu0 %v2643_v22  ;;  %3083 = vmatprep.subr.mxu1 %v2433_v31  ;;  %v2727_v2 = vld [vmem:[%s15288_s30 + $0xe18] sm:$0xff]  ;;  %v2546_v22 = vld [vmem:[%s15288_s30 + $0x870] sm:$0xff] }
 0x329   :  { %3159 = vmatpush2.msra.mxu0 %v2642_v24  ;;  %3084 = vmatpush2.msra.mxu1 %v2432_v44  ;;  %v2726_v31 = vld [vmem:[%s15288_s30 + $0xe10] sm:$0xff]  ;;  %v2540_v24 = vld [vmem:[%s15288_s30 + $0x840] sm:$0xff] }
 0x32a   :  { %3160 = vmatprep.subr.mxu0 %v2636_v45  ;;  %3085 = vmatprep.subr.mxu1 %v2426_v60  ;;  %v2386_v44 = vld [vmem:[%s15288_s30 + $0x370] sm:$0xff]  ;;  %v2539_v45 = vld [vmem:[%s15288_s30 + $0x838] sm:$0xff]  ;;  %v2385_v60 = vld [vmem:[%s15288_s30 + $0x368] sm:$0xff] }
 0x32b   :  { %3161 = vmatpush2.msra.mxu0 %v2635_v7  ;;  %3086 = vmatpush2.msra.mxu1 %v2425_v58  ;;  %v2533_v7 = vld [vmem:[%s15288_s30 + $0x808] sm:$0xff]  ;;  %v2379_v58 = vld [vmem:[%s15288_s30 + $0x338] sm:$0xff] }
 0x32c   :  { %3162 = vmatprep.subr.mxu0 %v2629_v21  ;;  %3087 = vmatprep.subr.mxu1 %v2419_v15  ;;  %v2532_v21 = vld [vmem:[%s15288_s30 + $0x800] sm:$0xff]  ;;  %v2378_v15 = vld [vmem:[%s15288_s30 + $0x330] sm:$0xff] }
 0x32d   :  { %3163 = vmatpush2.msra.mxu0 %v2628_v48  ;;  %3088 = vmatpush2.msra.mxu1 %v2418_v42  ;;  %v2526_v48 = vld [vmem:[%s15288_s30 + $0x7d0] sm:$0xff]  ;;  %v2372_v42 = vld [vmem:[%s15288_s30 + $0x300] sm:$0xff] }
 0x32e   :  { %3164 = vmatprep.subr.mxu0 %v2622_v57  ;;  %3089 = vmatprep.subr.mxu1 %v2412_v62  ;;  %v2525_v57 = vld [vmem:[%s15288_s30 + $0x7c8] sm:$0xff]  ;;  %v2371_v62 = vld [vmem:[%s15288_s30 + $0x2f8] sm:$0xff] }
 0x32f   :  { %3165 = vmatpush2.msra.mxu0 %v2621_v34  ;;  %3090 = vmatpush2.msra.mxu1 %v2411_v55  ;;  %v2519_v34 = vld [vmem:[%s15288_s30 + $0x798] sm:$0xff]  ;;  %v2365_v55 = vld [vmem:[%s15288_s30 + $0x2c8] sm:$0xff] }
 0x330   :  { %3166 = vmatprep.subr.mxu0 %v2615_v4  ;;  %3091 = vmatprep.subr.mxu1 %v2405_v19  ;;  %v2518_v4 = vld [vmem:[%s15288_s30 + $0x790] sm:$0xff]  ;;  %v2364_v19 = vld [vmem:[%s15288_s30 + $0x2c0] sm:$0xff] }
 0x331   :  { %3167 = vmatpush2.msra.mxu0 %v2614_v54  ;;  %3092 = vmatpush2.msra.mxu1 %v2404_v14  ;;  %v2512_v54 = vld [vmem:[%s15288_s30 + $0x760] sm:$0xff]  ;;  %v2358_v14 = vld [vmem:[%s15288_s30 + $0x290] sm:$0xff] }
 0x332   :  { %3169 = vmatmul.mubr.f32.vlgmr.msra.gmra.mxu0 %v10831_v52  ;;  %3317 = vmatprep.subr.mxu0 %v2610_v0  ;;  %v2511_v0 = vld [vmem:[%s15288_s30 + $0x758] sm:$0xff] }
 0x333   :  { %3093 = vmatprep.subr.mxu1 %v2398_v35  ;;  %3318 = vmatpush1.msra.mxu0 %v2609_v16  ;;  %v2357_v35 = vld [vmem:[%s15288_s30 + $0x288] sm:$0xff] }
 0x334   :  { %3381 = vmatprep.mubr.f32.mxu0 %v10815_v40  ;;  %3094 = vmatpush2.msra.mxu1 %v2397_v6  ;;  %v2505_v16 = vld [vmem:[%s15288_s30 + $0x728] sm:$0xff]  ;;  %v2351_v6 = vld [vmem:[%s15288_s30 + $0x258] sm:$0xff] }
 0x335   :  { %3319 = vmatprep.subr.mxu0 %v2603_v3  ;;  %3095 = vmatprep.subr.mxu1 %v2391_v18  ;;  %v2504_v3 = vld [vmem:[%s15288_s30 + $0x720] sm:$0xff]  ;;  %v2350_v18 = vld [vmem:[%s15288_s30 + $0x250] sm:$0xff] }
 0x336   :  { %3320 = vmatpush1.msra.mxu0 %v2602_v32  ;;  %3096 = vmatpush2.msra.mxu1 %v2390_v17  ;;  %v2722_v32 = vld [vmem:[%s15288_s30 + $0xdf0] sm:$0xff]  ;;  %v2344_v17 = vld [vmem:[%s15288_s30 + $0x220] sm:$0xff] }
 0x337   :  { %3321 = vmatprep.subr.mxu0 %v2596_v39  ;;  %3098 = vmatmul.mubr.f32.vlgmr.msra.gmra.mxu1 %v10785_v30  ;;  %v2721_v39 = vld [vmem:[%s15288_s30 + $0xde8] sm:$0xff] }
 0x338   :  { %3191 = vmatprep.subr.mxu1 %v2776_v9  ;;  %3322 = vmatpush1.msra.mxu0 %v2595_v28  ;;  %v2343_v9 = vld [vmem:[%s15288_s30 + $0x218] sm:$0xff] }
 0x339   :  { %3192 = vmatpush1.msra.mxu1 %v2775_v37  ;;  %3323 = vmatprep.subr.mxu0 %v2589_v26  ;;  %v2715_v28 = vld [vmem:[%s15288_s30 + $0xdb8] sm:$0xff]  ;;  %v2337_v37 = vld [vmem:[%s15288_s30 + $0x1e8] sm:$0xff]  ;;  %v2714_v26 = vld [vmem:[%s15288_s30 + $0xdb0] sm:$0xff] }
 0x33a   :  { %3193 = vmatprep.subr.mxu1 %v2769_v56  ;;  %3324 = vmatpush1.msra.mxu0 %v2588_v50  ;;  %v2336_v56 = vld [vmem:[%s15288_s30 + $0x1e0] sm:$0xff] }
 0x33b   :  { %3194 = vmatpush1.msra.mxu1 %v2768_v8  ;;  %3325 = vmatprep.subr.mxu0 %v2582_v12  ;;  %v2708_v50 = vld [vmem:[%s15288_s30 + $0xd80] sm:$0xff]  ;;  %v2330_v8 = vld [vmem:[%s15288_s30 + $0x1b0] sm:$0xff]  ;;  %v2707_v12 = vld [vmem:[%s15288_s30 + $0xd78] sm:$0xff] }
 0x33c   :  { %3195 = vmatprep.subr.mxu1 %v2762_v23  ;;  %3326 = vmatpush1.msra.mxu0 %v2581_v13  ;;  %v2329_v23 = vld [vmem:[%s15288_s30 + $0x1a8] sm:$0xff] }
 0x33d   :  { %3196 = vmatpush1.msra.mxu1 %v2761_v33  ;;  %3327 = vmatprep.subr.mxu0 %v2575_v47  ;;  %v2701_v13 = vld [vmem:[%s15288_s30 + $0xd48] sm:$0xff]  ;;  %v2323_v33 = vld [vmem:[%s15288_s30 + $0x178] sm:$0xff]  ;;  %v2700_v47 = vld [vmem:[%s15288_s30 + $0xd40] sm:$0xff] }
 0x33e   :  { %3197 = vmatprep.subr.mxu1 %v2755_v10  ;;  %3328 = vmatpush1.msra.mxu0 %v2574_v53  ;;  %v2322_v10 = vld [vmem:[%s15288_s30 + $0x170] sm:$0xff] }
 0x33f   :  { %3198 = vmatpush1.msra.mxu1 %v2754_v51  ;;  %3329 = vmatprep.subr.mxu0 %v2568_v43  ;;  %v2694_v53 = vld [vmem:[%s15288_s30 + $0xd10] sm:$0xff]  ;;  %v2316_v51 = vld [vmem:[%s15288_s30 + $0x140] sm:$0xff]  ;;  %v2693_v43 = vld [vmem:[%s15288_s30 + $0xd08] sm:$0xff] }
 0x340   :  { %3199 = vmatprep.subr.mxu1 %v2748_v27  ;;  %3330 = vmatpush1.msra.mxu0 %v2567_v61  ;;  %v2315_v27 = vld [vmem:[%s15288_s30 + $0x138] sm:$0xff] }
 0x341   :  { %3200 = vmatpush1.msra.mxu1 %v2747_v49  ;;  %3331 = vmatprep.subr.mxu0 %v2561_v59  ;;  %v2687_v61 = vld [vmem:[%s15288_s30 + $0xcd8] sm:$0xff]  ;;  %v2309_v49 = vld [vmem:[%s15288_s30 + $0x108] sm:$0xff]  ;;  %v2686_v59 = vld [vmem:[%s15288_s30 + $0xcd0] sm:$0xff] }
 0x342   :  { %3201 = vmatprep.subr.mxu1 %v2741_v38  ;;  %3332 = vmatpush1.msra.mxu0 %v2560_v11  ;;  %v2308_v38 = vld [vmem:[%s15288_s30 + $0x100] sm:$0xff] }
 0x343   :  { %3202 = vmatpush1.msra.mxu1 %v2740_v46  ;;  %3333 = vmatprep.subr.mxu0 %v2554_v25  ;;  %v2680_v11 = vld [vmem:[%s15288_s30 + $0xca0] sm:$0xff]  ;;  %v2302_v46 = vld [vmem:[%s15288_s30 + $0xd0] sm:$0xff]  ;;  %v2679_v25 = vld [vmem:[%s15288_s30 + $0xc98] sm:$0xff] }
 0x344   :  { %3203 = vmatprep.subr.mxu1 %v2734_v41  ;;  %3334 = vmatpush1.msra.mxu0 %v2553_v29  ;;  %v2301_v41 = vld [vmem:[%s15288_s30 + $0xc8] sm:$0xff] }
 0x345   :  { %3204 = vmatpush1.msra.mxu1 %v2733_v20  ;;  %3335 = vmatprep.subr.mxu0 %v2547_v1  ;;  %v2673_v29 = vld [vmem:[%s15288_s30 + $0xc68] sm:$0xff]  ;;  %v2295_v20 = vld [vmem:[%s15288_s30 + $0x98] sm:$0xff]  ;;  %v2672_v1 = vld [vmem:[%s15288_s30 + $0xc60] sm:$0xff] }
 0x346   :  { %3205 = vmatprep.subr.mxu1 %v2727_v2  ;;  %3336 = vmatpush1.msra.mxu0 %v2546_v22  ;;  %v2294_v2 = vld [vmem:[%s15288_s30 + $0x90] sm:$0xff] }
 0x347   :  { %3206 = vmatpush1.msra.mxu1 %v2726_v31  ;;  %3239 = vmatprep.mubr.f32.mxu1 %v8781_v63  ;;  %v2666_v22 = vld [vmem:[%s15288_s30 + $0xc30] sm:$0xff]  ;;  %v2288_v31 = vld [vmem:[%s15288_s30 + $0x60] sm:$0xff] }
 0x348   :  { %3337 = vmatprep.subr.mxu0 %v2540_v24  ;;  %6853 = vmatmul.mubr.msk.f32.vlgmr.msra.gmra.mxu1 %vm2265_vm3, %v10860_v5  ;;  %v2665_v24 = vld [vmem:[%s15288_s30 + $0xc28] sm:$0xff] }
 0x349   :  { %3246 = vmatprep.subr.mxu1 %v2386_v44  ;;  %3338 = vmatpush1.msra.mxu0 %v2539_v45  ;;  %v2287_v44 = vld [vmem:[%s15288_s30 + $0x58] sm:$0xff] }
 0x34a   :  { %3247 = vmatpush1.msra.mxu1 %v2385_v60  ;;  %3310 = vmatprep.mubr.f32.mxu1 %v10777_v36  ;;  %v2659_v45 = vld [vmem:[%s15288_s30 + $0xbf8] sm:$0xff]  ;;  %v2281_v60 = vld [vmem:[%s15288_s30 + $0x28] sm:$0xff] }
 0x34b   :  { %3339 = vmatprep.subr.mxu0 %v2533_v7  ;;  %3248 = vmatprep.subr.mxu1 %v2379_v58  ;;  %v2658_v7 = vld [vmem:[%s15288_s30 + $0xbf0] sm:$0xff]  ;;  %v2280_v58 = vld [vmem:[%s15288_s30 + $0x20] sm:$0xff] }
 0x34c   :  { %3340 = vmatpush1.msra.mxu0 %v2532_v21  ;;  %3249 = vmatpush1.msra.mxu1 %v2378_v15  ;;  %v2652_v21 = vld [vmem:[%s15288_s30 + $0xbc0] sm:$0xff]  ;;  %v2498_v15 = vld [vmem:[%s15288_s30 + $0x6f0] sm:$0xff] }
 0x34d   :  { %3341 = vmatprep.subr.mxu0 %v2526_v48  ;;  %3250 = vmatprep.subr.mxu1 %v2372_v42  ;;  %v2651_v48 = vld [vmem:[%s15288_s30 + $0xbb8] sm:$0xff]  ;;  %v2497_v42 = vld [vmem:[%s15288_s30 + $0x6e8] sm:$0xff] }
 0x34e   :  { %3342 = vmatpush1.msra.mxu0 %v2525_v57  ;;  %3251 = vmatpush1.msra.mxu1 %v2371_v62  ;;  %v2645_v57 = vld [vmem:[%s15288_s30 + $0xb88] sm:$0xff]  ;;  %v2491_v62 = vld [vmem:[%s15288_s30 + $0x6b8] sm:$0xff] }
 0x34f   :  { %3343 = vmatprep.subr.mxu0 %v2519_v34  ;;  %3252 = vmatprep.subr.mxu1 %v2365_v55  ;;  %v2644_v34 = vld [vmem:[%s15288_s30 + $0xb80] sm:$0xff]  ;;  %v2490_v55 = vld [vmem:[%s15288_s30 + $0x6b0] sm:$0xff] }
 0x350   :  { %3344 = vmatpush1.msra.mxu0 %v2518_v4  ;;  %3253 = vmatpush1.msra.mxu1 %v2364_v19  ;;  %v2638_v4 = vld [vmem:[%s15288_s30 + $0xb50] sm:$0xff]  ;;  %v2484_v19 = vld [vmem:[%s15288_s30 + $0x680] sm:$0xff] }
 0x351   :  { %3345 = vmatprep.subr.mxu0 %v2512_v54  ;;  %3254 = vmatprep.subr.mxu1 %v2358_v14  ;;  %v2637_v54 = vld [vmem:[%s15288_s30 + $0xb48] sm:$0xff]  ;;  %v2483_v14 = vld [vmem:[%s15288_s30 + $0x678] sm:$0xff] }
 0x352   :  { %3346 = vmatpush1.msra.mxu0 %v2511_v0  ;;  %3255 = vmatpush1.msra.mxu1 %v2357_v35  ;;  %v2631_v0 = vld [vmem:[%s15288_s30 + $0xb18] sm:$0xff]  ;;  %v2477_v35 = vld [vmem:[%s15288_s30 + $0x648] sm:$0xff] }
 0x353   :  { %3347 = vmatprep.subr.mxu0 %v2505_v16  ;;  %3256 = vmatprep.subr.mxu1 %v2351_v6  ;;  %v2630_v16 = vld [vmem:[%s15288_s30 + $0xb10] sm:$0xff]  ;;  %v2476_v6 = vld [vmem:[%s15288_s30 + $0x640] sm:$0xff] }
 0x354   :  { %3348 = vmatpush1.msra.mxu0 %v2504_v3  ;;  %3257 = vmatpush1.msra.mxu1 %v2350_v18  ;;  %v2624_v3 = vld [vmem:[%s15288_s30 + $0xae0] sm:$0xff]  ;;  %v2470_v18 = vld [vmem:[%s15288_s30 + $0x610] sm:$0xff] }
 0x355   :  { %3349 = vmatprep.subr.mxu0 %v2722_v32  ;;  %3258 = vmatprep.subr.mxu1 %v2344_v17  ;;  %v2623_v32 = vld [vmem:[%s15288_s30 + $0xad8] sm:$0xff]  ;;  %v2469_v17 = vld [vmem:[%s15288_s30 + $0x608] sm:$0xff] }
 0x356   :  { %3350 = vmatpush2.msra.mxu0 %v2721_v39  ;;  %3259 = vmatpush1.msra.mxu1 %v2343_v9  ;;  %v2617_v39 = vld [vmem:[%s15288_s30 + $0xaa8] sm:$0xff]  ;;  %v2463_v9 = vld [vmem:[%s15288_s30 + $0x5d8] sm:$0xff] }
 0x357   :  { %3351 = vmatprep.subr.mxu0 %v2715_v28  ;;  %3260 = vmatprep.subr.mxu1 %v2337_v37  ;;  %v2616_v28 = vld [vmem:[%s15288_s30 + $0xaa0] sm:$0xff]  ;;  %v2462_v37 = vld [vmem:[%s15288_s30 + $0x5d0] sm:$0xff] }
 0x358   :  { %3352 = vmatpush2.msra.mxu0 %v2714_v26  ;;  %3261 = vmatpush1.msra.mxu1 %v2336_v56  ;;  %v2499_v26 = vld [vmem:[%s15288_s30 + $0x6f8] sm:$0xff]  ;;  %v2456_v56 = vld [vmem:[%s15288_s30 + $0x5a0] sm:$0xff] }
 0x359   :  { %3353 = vmatprep.subr.mxu0 %v2708_v50  ;;  %3262 = vmatprep.subr.mxu1 %v2330_v8  ;;  %v2387_v50 = vld [vmem:[%s15288_s30 + $0x378] sm:$0xff] }
 0x35a   :  { %3354 = vmatpush2.msra.mxu0 %v2707_v12  ;;  %3263 = vmatpush1.msra.mxu1 %v2329_v23  ;;  %v2455_v8 = vld [vmem:[%s15288_s30 + $0x598] sm:$0xff]  ;;  %v2492_v12 = vld [vmem:[%s15288_s30 + $0x6c0] sm:$0xff]  ;;  %v2449_v23 = vld [vmem:[%s15288_s30 + $0x568] sm:$0xff] }
 0x35b   :  { %3355 = vmatprep.subr.mxu0 %v2701_v13  ;;  %3264 = vmatprep.subr.mxu1 %v2323_v33  ;;  %v2380_v13 = vld [vmem:[%s15288_s30 + $0x340] sm:$0xff] }
 0x35c   :  { %3356 = vmatpush2.msra.mxu0 %v2700_v47  ;;  %3265 = vmatpush1.msra.mxu1 %v2322_v10  ;;  %v2448_v33 = vld [vmem:[%s15288_s30 + $0x560] sm:$0xff]  ;;  %v2485_v47 = vld [vmem:[%s15288_s30 + $0x688] sm:$0xff]  ;;  %v2442_v10 = vld [vmem:[%s15288_s30 + $0x530] sm:$0xff] }
 0x35d   :  { %3357 = vmatprep.subr.mxu0 %v2694_v53  ;;  %3266 = vmatprep.subr.mxu1 %v2316_v51  ;;  %v2373_v53 = vld [vmem:[%s15288_s30 + $0x308] sm:$0xff] }
 0x35e   :  { %3358 = vmatpush2.msra.mxu0 %v2693_v43  ;;  %3267 = vmatpush1.msra.mxu1 %v2315_v27  ;;  %v2441_v51 = vld [vmem:[%s15288_s30 + $0x528] sm:$0xff]  ;;  %v2435_v43 = vld [vmem:[%s15288_s30 + $0x4f8] sm:$0xff]  ;;  %v2366_v27 = vld [vmem:[%s15288_s30 + $0x2d0] sm:$0xff] }
 0x35f   :  { %3359 = vmatprep.subr.mxu0 %v2687_v61  ;;  %3268 = vmatprep.subr.mxu1 %v2309_v49  ;;  %v2434_v61 = vld [vmem:[%s15288_s30 + $0x4f0] sm:$0xff]  ;;  %v2471_v49 = vld [vmem:[%s15288_s30 + $0x618] sm:$0xff] }
 0x360   :  { %3360 = vmatpush2.msra.mxu0 %v2686_v59  ;;  %3269 = vmatpush1.msra.mxu1 %v2308_v38  ;;  %v2428_v59 = vld [vmem:[%s15288_s30 + $0x4c0] sm:$0xff]  ;;  %v2359_v38 = vld [vmem:[%s15288_s30 + $0x298] sm:$0xff] }
 0x361   :  { %3361 = vmatprep.subr.mxu0 %v2680_v11  ;;  %3270 = vmatprep.subr.mxu1 %v2302_v46  ;;  %v2427_v11 = vld [vmem:[%s15288_s30 + $0x4b8] sm:$0xff]  ;;  %v2464_v46 = vld [vmem:[%s15288_s30 + $0x5e0] sm:$0xff] }
 0x362   :  { %3362 = vmatpush2.msra.mxu0 %v2679_v25  ;;  %3271 = vmatpush1.msra.mxu1 %v2301_v41  ;;  %v2421_v25 = vld [vmem:[%s15288_s30 + $0x488] sm:$0xff]  ;;  %v2352_v41 = vld [vmem:[%s15288_s30 + $0x260] sm:$0xff] }
 0x363   :  { %3363 = vmatprep.subr.mxu0 %v2673_v29  ;;  %3272 = vmatprep.subr.mxu1 %v2295_v20  ;;  %v2420_v29 = vld [vmem:[%s15288_s30 + $0x480] sm:$0xff]  ;;  %v2457_v20 = vld [vmem:[%s15288_s30 + $0x5a8] sm:$0xff] }
 0x364   :  { %3364 = vmatpush2.msra.mxu0 %v2672_v1  ;;  %3273 = vmatpush1.msra.mxu1 %v2294_v2  ;;  %v2414_v1 = vld [vmem:[%s15288_s30 + $0x450] sm:$0xff]  ;;  %v2345_v2 = vld [vmem:[%s15288_s30 + $0x228] sm:$0xff] }
 0x365   :  { %3365 = vmatprep.subr.mxu0 %v2666_v22  ;;  %3274 = vmatprep.subr.mxu1 %v2288_v31  ;;  %v2413_v22 = vld [vmem:[%s15288_s30 + $0x448] sm:$0xff]  ;;  %v2450_v31 = vld [vmem:[%s15288_s30 + $0x570] sm:$0xff] }
 0x366   :  { %3366 = vmatpush2.msra.mxu0 %v2665_v24  ;;  %3275 = vmatpush1.msra.mxu1 %v2287_v44  ;;  %v2407_v24 = vld [vmem:[%s15288_s30 + $0x418] sm:$0xff]  ;;  %v2338_v44 = vld [vmem:[%s15288_s30 + $0x1f0] sm:$0xff] }
 0x367   :  { %3367 = vmatprep.subr.mxu0 %v2659_v45  ;;  %3276 = vmatprep.subr.mxu1 %v2281_v60  ;;  %v2406_v45 = vld [vmem:[%s15288_s30 + $0x410] sm:$0xff]  ;;  %v2443_v60 = vld [vmem:[%s15288_s30 + $0x538] sm:$0xff] }
 0x368   :  { %3368 = vmatpush2.msra.mxu0 %v2658_v7  ;;  %3277 = vmatpush1.msra.mxu1 %v2280_v58  ;;  %v2400_v7 = vld [vmem:[%s15288_s30 + $0x3e0] sm:$0xff]  ;;  %v2331_v58 = vld [vmem:[%s15288_s30 + $0x1b8] sm:$0xff] }
 0x369   :  { %3369 = vmatprep.subr.mxu0 %v2652_v21  ;;  %3278 = vmatprep.subr.mxu1 %v2498_v15  ;;  %v2399_v21 = vld [vmem:[%s15288_s30 + $0x3d8] sm:$0xff]  ;;  %v2436_v15 = vld [vmem:[%s15288_s30 + $0x500] sm:$0xff] }
 0x36a   :  { %3370 = vmatpush2.msra.mxu0 %v2651_v48  ;;  %3279 = vmatpush2.msra.mxu1 %v2497_v42  ;;  %v2393_v48 = vld [vmem:[%s15288_s30 + $0x3a8] sm:$0xff]  ;;  %v2324_v42 = vld [vmem:[%s15288_s30 + $0x180] sm:$0xff] }
 0x36b   :  { %3371 = vmatprep.subr.mxu0 %v2645_v57  ;;  %3280 = vmatprep.subr.mxu1 %v2491_v62  ;;  %v2392_v57 = vld [vmem:[%s15288_s30 + $0x3a0] sm:$0xff]  ;;  %v2429_v62 = vld [vmem:[%s15288_s30 + $0x4c8] sm:$0xff] }
 0x36c   :  { %3372 = vmatpush2.msra.mxu0 %v2644_v34  ;;  %3281 = vmatpush2.msra.mxu1 %v2490_v55  ;;  %v2778_v34 = vld [vmem:[%s15288_s30 + $0xfb0] sm:$0xff]  ;;  %v2317_v55 = vld [vmem:[%s15288_s30 + $0x148] sm:$0xff] }
 0x36d   :  { %3373 = vmatprep.subr.mxu0 %v2638_v4  ;;  %3282 = vmatprep.subr.mxu1 %v2484_v19  ;;  %v2777_v4 = vld [vmem:[%s15288_s30 + $0xfa8] sm:$0xff]  ;;  %v2422_v19 = vld [vmem:[%s15288_s30 + $0x490] sm:$0xff] }
 0x36e   :  { %3374 = vmatpush2.msra.mxu0 %v2637_v54  ;;  %3283 = vmatpush2.msra.mxu1 %v2483_v14  ;;  %v2771_v54 = vld [vmem:[%s15288_s30 + $0xf78] sm:$0xff]  ;;  %v2310_v14 = vld [vmem:[%s15288_s30 + $0x110] sm:$0xff] }
 0x36f   :  { %3375 = vmatprep.subr.mxu0 %v2631_v0  ;;  %3284 = vmatprep.subr.mxu1 %v2477_v35  ;;  %v2770_v0 = vld [vmem:[%s15288_s30 + $0xf70] sm:$0xff]  ;;  %v2415_v35 = vld [vmem:[%s15288_s30 + $0x458] sm:$0xff] }
 0x370   :  { %3376 = vmatpush2.msra.mxu0 %v2630_v16  ;;  %3285 = vmatpush2.msra.mxu1 %v2476_v6  ;;  %v2764_v16 = vld [vmem:[%s15288_s30 + $0xf40] sm:$0xff]  ;;  %v2303_v6 = vld [vmem:[%s15288_s30 + $0xd8] sm:$0xff] }
 0x371   :  { %3377 = vmatprep.subr.mxu0 %v2624_v3  ;;  %3286 = vmatprep.subr.mxu1 %v2470_v18  ;;  %v2763_v3 = vld [vmem:[%s15288_s30 + $0xf38] sm:$0xff]  ;;  %v2408_v18 = vld [vmem:[%s15288_s30 + $0x420] sm:$0xff] }
 0x372   :  { %3378 = vmatpush2.msra.mxu0 %v2623_v32  ;;  %3287 = vmatpush2.msra.mxu1 %v2469_v17  ;;  %v2757_v32 = vld [vmem:[%s15288_s30 + $0xf08] sm:$0xff]  ;;  %v2296_v17 = vld [vmem:[%s15288_s30 + $0xa0] sm:$0xff] }
 0x373   :  { %3379 = vmatprep.subr.mxu0 %v2617_v39  ;;  %3288 = vmatprep.subr.mxu1 %v2463_v9  ;;  %v2756_v39 = vld [vmem:[%s15288_s30 + $0xf00] sm:$0xff]  ;;  %v2401_v9 = vld [vmem:[%s15288_s30 + $0x3e8] sm:$0xff] }
 0x374   :  { %3380 = vmatpush2.msra.mxu0 %v2616_v28  ;;  %3289 = vmatpush2.msra.mxu1 %v2462_v37  ;;  %v2750_v28 = vld [vmem:[%s15288_s30 + $0xed0] sm:$0xff]  ;;  %v2289_v37 = vld [vmem:[%s15288_s30 + $0x68] sm:$0xff] }
 0x375   :  { %3382 = vmatmul.mubr.f32.vlgmr.msra.gmra.mxu0 %v10831_v52  ;;  %7855 = vmatprep.subr.mxu0 %v2499_v26  ;;  %v2749_v26 = vld [vmem:[%s15288_s30 + $0xec8] sm:$0xff] }
 0x376   :  { %3290 = vmatprep.subr.mxu1 %v2456_v56  ;;  %7856 = vmatpush3.msra.mxu0 %v2387_v50  ;;  %v2394_v56 = vld [vmem:[%s15288_s30 + $0x3b0] sm:$0xff]  ;;  %v2743_v50 = vld [vmem:[%s15288_s30 + $0xe98] sm:$0xff] }
 0x377   :  { %3523 = vmatprep.mubr.f32.mxu0 %v10777_v36  ;;  %3291 = vmatpush2.msra.mxu1 %v2455_v8  ;;  %v2478_v36 = vld [vmem:[%s15288_s30 + $0x650] sm:$0xff] }
 0x378   :  { %7857 = vmatprep.subr.mxu0 %v2492_v12  ;;  %3292 = vmatprep.subr.mxu1 %v2449_v23  ;;  %v2282_v8 = vld [vmem:[%s15288_s30 + $0x30] sm:$0xff]  ;;  %v2736_v23 = vld [vmem:[%s15288_s30 + $0xe60] sm:$0xff] }
 0x379   :  { %7858 = vmatpush3.msra.mxu0 %v2380_v13  ;;  %3293 = vmatpush2.msra.mxu1 %v2448_v33  ;;  %v2742_v12 = vld [vmem:[%s15288_s30 + $0xe90] sm:$0xff]  ;;  %v2779_v13 = vld [vmem:[%s15288_s30 + $0xfb8] sm:$0xff] }
 0x37a   :  { %7859 = vmatprep.subr.mxu0 %v2485_v47  ;;  %3294 = vmatprep.subr.mxu1 %v2442_v10  ;;  %v2735_v33 = vld [vmem:[%s15288_s30 + $0xe58] sm:$0xff]  ;;  %v2729_v47 = vld [vmem:[%s15288_s30 + $0xe28] sm:$0xff]  ;;  %v2772_v10 = vld [vmem:[%s15288_s30 + $0xf80] sm:$0xff] }
 0x37b   :  { %7860 = vmatpush3.msra.mxu0 %v2373_v53  ;;  %3295 = vmatpush2.msra.mxu1 %v2441_v51  ;;  %v2728_v53 = vld [vmem:[%s15288_s30 + $0xe20] sm:$0xff]  ;;  %v2765_v51 = vld [vmem:[%s15288_s30 + $0xf48] sm:$0xff] }
 0x37c   :  { %7861 = vmatprep.subr.mxu0 %v2478_v36  ;;  %3296 = vmatprep.subr.mxu1 %v2435_v43  ;;  %v2611_v36 = vld [vmem:[%s15288_s30 + $0xa78] sm:$0xff]  ;;  %v2716_v43 = vld [vmem:[%s15288_s30 + $0xdc0] sm:$0xff] }
 0x37d   :  { %7862 = vmatpush3.msra.mxu0 %v2366_v27  ;;  %3297 = vmatpush2.msra.mxu1 %v2434_v61  ;;  %v2758_v27 = vld [vmem:[%s15288_s30 + $0xf10] sm:$0xff]  ;;  %v2604_v61 = vld [vmem:[%s15288_s30 + $0xa40] sm:$0xff] }
 0x37e   :  { %7863 = vmatprep.subr.mxu0 %v2471_v49  ;;  %3298 = vmatprep.subr.mxu1 %v2428_v59  ;;  %v2709_v49 = vld [vmem:[%s15288_s30 + $0xd88] sm:$0xff]  ;;  %v2751_v59 = vld [vmem:[%s15288_s30 + $0xed8] sm:$0xff] }
 0x37f   :  { %7864 = vmatpush3.msra.mxu0 %v2359_v38  ;;  %3299 = vmatpush2.msra.mxu1 %v2427_v11  ;;  %v2597_v38 = vld [vmem:[%s15288_s30 + $0xa08] sm:$0xff]  ;;  %v2744_v11 = vld [vmem:[%s15288_s30 + $0xea0] sm:$0xff] }
 0x380   :  { %7865 = vmatprep.subr.mxu0 %v2464_v46  ;;  %3300 = vmatprep.subr.mxu1 %v2421_v25  ;;  %v2590_v46 = vld [vmem:[%s15288_s30 + $0x9d0] sm:$0xff]  ;;  %v2695_v25 = vld [vmem:[%s15288_s30 + $0xd18] sm:$0xff] }
 0x381   :  { %7866 = vmatpush3.msra.mxu0 %v2352_v41  ;;  %3301 = vmatpush2.msra.mxu1 %v2420_v29  ;;  %v2737_v41 = vld [vmem:[%s15288_s30 + $0xe68] sm:$0xff]  ;;  %v2583_v29 = vld [vmem:[%s15288_s30 + $0x998] sm:$0xff] }
 0x382   :  { %7867 = vmatprep.subr.mxu0 %v2457_v20  ;;  %3302 = vmatprep.subr.mxu1 %v2414_v1  ;;  %v2688_v20 = vld [vmem:[%s15288_s30 + $0xce0] sm:$0xff]  ;;  %v2730_v1 = vld [vmem:[%s15288_s30 + $0xe30] sm:$0xff] }
 0x383   :  { %7868 = vmatpush3.msra.mxu0 %v2345_v2  ;;  %3303 = vmatpush2.msra.mxu1 %v2413_v22  ;;  %v2576_v2 = vld [vmem:[%s15288_s30 + $0x960] sm:$0xff]  ;;  %v2681_v22 = vld [vmem:[%s15288_s30 + $0xca8] sm:$0xff] }
 0x384   :  { %7869 = vmatprep.subr.mxu0 %v2450_v31  ;;  %3304 = vmatprep.subr.mxu1 %v2407_v24  ;;  %v2782_v31 = vlaneseq  ;;  %v2569_v24 = vld [vmem:[%s15288_s30 + $0x928] sm:$0xff] }
 0x385   :  { %7870 = vmatpush3.msra.mxu0 %v2338_v44  ;;  %3305 = vmatpush2.msra.mxu1 %v2406_v45  ;;  %v3806_v44 = vld [vmem:[%s15201_s6 + $0x2f8] sm:$0xff]  ;;  %v2674_v45 = vld [vmem:[%s15288_s30 + $0xc70] sm:$0xff] }
 0x386   :  { %7871 = vmatprep.subr.mxu0 %v2443_v60  ;;  %3306 = vmatprep.subr.mxu1 %v2400_v7  ;;  %v3805_v60 = vld [vmem:[%s15201_s6 + $0x2f0] sm:$0xff] }
 0x387   :  { %7872 = vmatpush3.msra.mxu0 %v2331_v58  ;;  %3307 = vmatpush2.msra.mxu1 %v2399_v21  ;;  %v2562_v7 = vld [vmem:[%s15288_s30 + $0x8f0] sm:$0xff]  ;;  %v3804_v58 = vld [vmem:[%s15201_s6 + $0x2e8] sm:$0xff]  ;;  %v2667_v21 = vld [vmem:[%s15288_s30 + $0xc38] sm:$0xff] }
 0x388   :  { %7873 = vmatprep.subr.mxu0 %v2436_v15  ;;  %3308 = vmatprep.subr.mxu1 %v2393_v48  ;;  %v11915_v15 = vshrl.u32 %v2782_v31, 7  ;;  %v2555_v48 = vld [vmem:[%s15288_s30 + $0x8b8] sm:$0xff]  ;;  %v3737_v31 = vld [vmem:[%s15201_s6 + $0xd0] sm:$0xff] }
 0x389   :  { %7874 = vmatpush3.msra.mxu0 %v2324_v42  ;;  %3309 = vmatpush2.msra.mxu1 %v2392_v57  ;;  %v3802_v42 = vld [vmem:[%s15201_s6 + $0x2d8] sm:$0xff]  ;;  %v2660_v57 = vld [vmem:[%s15288_s30 + $0xc00] sm:$0xff] }
 0x38a   :  { %7875 = vmatprep.subr.mxu0 %v2429_v62  ;;  %3311 = vmatmul.mubr.f32.vlgmr.msra.gmra.mxu1 %v10785_v30  ;;  %v2788_v62 = vsub.s32 1, %v11915_v15 }
 0x38b   :  { %3404 = vmatprep.subr.mxu1 %v2778_v34  ;;  %7876 = vmatpush3.msra.mxu0 %v2317_v55  ;;  %v3801_v34 = vld [vmem:[%s15201_s6 + $0x2d0] sm:$0xff] }
 0x38c   :  { %3405 = vmatpush1.msra.mxu1 %v2777_v4  ;;  %7877 = vmatprep.subr.mxu0 %v2422_v19  ;;  %v2548_v4 = vld [vmem:[%s15288_s30 + $0x880] sm:$0xff]  ;;  %v3800_v19 = vld [vmem:[%s15201_s6 + $0x2c8] sm:$0xff] }
 0x38d   :  { %3406 = vmatprep.subr.mxu1 %v2771_v54  ;;  %7878 = vmatpush3.msra.mxu0 %v2310_v14  ;;  %v2653_v54 = vld [vmem:[%s15288_s30 + $0xbc8] sm:$0xff]  ;;  %v3799_v14 = vld [vmem:[%s15201_s6 + $0x2c0] sm:$0xff] }
 0x38e   :  { %3407 = vmatpush1.msra.mxu1 %v2770_v0  ;;  %7879 = vmatprep.subr.mxu0 %v2415_v35  ;;  %v11950_v0 = vld [vmem:[%s15202_s5] sm:$0x7f]  ;;  %v2541_v35 = vld [vmem:[%s15288_s30 + $0x848] sm:$0xff] }
 0x38f   :  { %3408 = vmatprep.subr.mxu1 %v2764_v16  ;;  %7880 = vmatpush3.msra.mxu0 %v2303_v6  ;;  %v3798_v16 = vld [vmem:[%s15201_s6 + $0x2b8] sm:$0xff]  ;;  %v2789_v6 = vrot.slane %v11950_v0, %v2788_v62 }
 0x390   :  { %3409 = vmatpush1.msra.mxu1 %v2763_v3  ;;  %7881 = vmatprep.subr.mxu0 %v2408_v18  ;;  %v2646_v3 = vld [vmem:[%s15288_s30 + $0xb90] sm:$0xff] }
 0x391   :  { %3410 = vmatprep.subr.mxu1 %v2757_v32  ;;  %7882 = vmatpush3.msra.mxu0 %v2296_v17  ;;  %v3797_v32 = vld [vmem:[%s15201_s6 + $0x2b0] sm:$0xff] }
 0x392   :  { %3411 = vmatpush1.msra.mxu1 %v2756_v39  ;;  %7883 = vmatprep.subr.mxu0 %v2401_v9  ;;  %v2534_v39 = vld [vmem:[%s15288_s30 + $0x810] sm:$0xff]  ;;  %v3796_v9 = vld [vmem:[%s15201_s6 + $0x2a8] sm:$0xff] }
 0x393   :  { %3412 = vmatprep.subr.mxu1 %v2750_v28  ;;  %7884 = vmatpush3.msra.mxu0 %v2289_v37  ;;  %v2639_v28 = vld [vmem:[%s15288_s30 + $0xb58] sm:$0xff]  ;;  %v3795_v37 = vld [vmem:[%s15201_s6 + $0x2a0] sm:$0xff] }
 0x394   :  { %3413 = vmatpush1.msra.mxu1 %v2749_v26  ;;  %7885 = vmatprep.subr.mxu0 %v2394_v56  ;;  %v2527_v26 = vld [vmem:[%s15288_s30 + $0x7d8] sm:$0xff] }
 0x395   :  { %3414 = vmatprep.subr.mxu1 %v2743_v50  ;;  %7886 = vmatpush3.msra.mxu0 %v2282_v8  ;;  %v3794_v50 = vld [vmem:[%s15201_s6 + $0x298] sm:$0xff] }
 0x396   :  { %3415 = vmatpush1.msra.mxu1 %v2742_v12  ;;  %3524 = vmatmul.mubr.f32.vlgmr.msra.gmra.mxu0 %v10785_v30  ;;  %v2723_v30 = vld [vmem:[%s15288_s30 + $0xdf8] sm:$0xff]  ;;  %v2632_v12 = vld [vmem:[%s15288_s30 + $0xb20] sm:$0xff] }
 0x397   :  { %8578 = vmatprep.subr.mxu0 %v8781_v63  ;;  %3416 = vmatprep.subr.mxu1 %v2736_v23  ;;  %v3793_v23 = vld [vmem:[%s15201_s6 + $0x290] sm:$0xff] }
 0x398   :  { %8579 = vmatpush3.msra.mxu0 %v2779_v13  ;;  %3417 = vmatpush1.msra.mxu1 %v2735_v33  ;;  %v2520_v13 = vld [vmem:[%s15288_s30 + $0x7a0] sm:$0xff] }
 0x399   :  { %8580 = vmatprep.subr.mxu0 %v8781_v63  ;;  %3418 = vmatprep.subr.mxu1 %v2729_v47  ;;  %v3792_v47 = vld [vmem:[%s15201_s6 + $0x288] sm:$0xff] }
 0x39a   :  { %8581 = vmatpush3.msra.mxu0 %v2772_v10  ;;  %3419 = vmatpush1.msra.mxu1 %v2728_v53  ;;  %v2625_v10 = vld [vmem:[%s15288_s30 + $0xae8] sm:$0xff] }
 0x39b   :  { %3452 = vmatprep.mubr.f32.mxu1 %v8781_v63  ;;  %8582 = vmatprep.subr.mxu0 %v8781_v63 }
 0x39c   :  { %6854 = vmatmul.mubr.msk.f32.vlgmr.msra.gmra.mxu1 %vm2265_vm3, %v10860_v5  ;;  %7890 = vmatprep.subr.mxu1 %v2723_v30  ;;  %v3791_v30 = vld [vmem:[%s15201_s6 + $0x280] sm:$0xff] }
 0x39d   :  { %8583 = vmatpush3.msra.mxu0 %v2765_v51  ;;  %7891 = vmatpush3.msra.mxu1 %v2611_v36  ;;  %v2513_v51 = vld [vmem:[%s15288_s30 + $0x768] sm:$0xff] }
 0x39e   :  { %3593 = vmatprep.mubr.f32.mxu1 %v10815_v40  ;;  %8584 = vmatprep.subr.mxu0 %v8781_v63  ;;  %v2702_v40 = vld [vmem:[%s15288_s30 + $0xd50] sm:$0xff] }
 0x39f   :  { %7892 = vmatprep.subr.mxu1 %v2716_v43  ;;  %8585 = vmatpush3.msra.mxu0 %v2758_v27  ;;  %v3790_v43 = vld [vmem:[%s15201_s6 + $0x278] sm:$0xff]  ;;  %v2618_v27 = vld [vmem:[%s15288_s30 + $0xab0] sm:$0xff] }
 0x3a0   :  { %7893 = vmatpush3.msra.mxu1 %v2604_v61  ;;  %8586 = vmatprep.subr.mxu0 %v8781_v63 }
 0x3a1   :  { %7894 = vmatprep.subr.mxu1 %v2709_v49  ;;  %8587 = vmatpush3.msra.mxu0 %v2751_v59  ;;  %v3789_v49 = vld [vmem:[%s15201_s6 + $0x270] sm:$0xff] }
 0x3a2   :  { %7895 = vmatpush3.msra.mxu1 %v2597_v38  ;;  %8588 = vmatprep.subr.mxu0 %v8781_v63  ;;  %v2506_v59 = vld [vmem:[%s15288_s30 + $0x730] sm:$0xff]  ;;  %v3788_v38 = vld [vmem:[%s15201_s6 + $0x268] sm:$0xff] }
 0x3a3   :  { %7896 = vmatprep.subr.mxu1 %v2702_v40  ;;  %8589 = vmatpush3.msra.mxu0 %v2744_v11  ;;  %v3742_v40 = vld [vmem:[%s15201_s6 + $0xf8] sm:$0xff] }
 0x3a4   :  { %7897 = vmatpush3.msra.mxu1 %v2590_v46  ;;  %8590 = vmatprep.subr.mxu0 %v8781_v63  ;;  %v3741_v46 = vld [vmem:[%s15201_s6 + $0xf0] sm:$0xff] }
 0x3a5   :  { %7898 = vmatprep.subr.mxu1 %v2695_v25  ;;  %8591 = vmatpush3.msra.mxu0 %v2737_v41  ;;  %v11933_v55 = vpop.f32.mrf.mxu1  ;;  %v3787_v25 = vld [vmem:[%s15201_s6 + $0x260] sm:$0xff] }
 0x3a6   :  { %7899 = vmatpush3.msra.mxu1 %v2583_v29  ;;  %8592 = vmatprep.subr.mxu0 %v8781_v63  ;;  %v3740_v29 = vld [vmem:[%s15201_s6 + $0xe8] sm:$0xff] }
 0x3a7   :  { %7900 = vmatprep.subr.mxu1 %v2688_v20  ;;  %8593 = vmatpush3.msra.mxu0 %v2730_v1  ;;  %v2888_v17 = vpop.f32.mrf.mxu1  ;;  %v3786_v20 = vld [vmem:[%s15201_s6 + $0x258] sm:$0xff]  ;;  %v3739_v1 = vld [vmem:[%s15201_s6 + $0xe0] sm:$0xff] }
 0x3a8   :  { %8594 = vmatprep.mubr.msk.f32.mxu0 %vm8782_vm0, %v8781_v63  ;;  %7901 = vmatpush3.msra.mxu1 %v2576_v2  ;;  %v2889_v8 = vadd.f32 %v2888_v17, %v2789_v6  ;;  %v3785_v2 = vld [vmem:[%s15201_s6 + $0x250] sm:$0xff]  ;;  %v3838_v6 = vld [vmem:[%s15201_s6 + $0x3f8] sm:$0xff] }
 0x3a9   :  { %8595 = vmatmul.mubr.msk.f32.vlgmr.msra.gmra.mxu0 %vm2265_vm3, %v10860_v5  ;;  %7902 = vmatprep.subr.mxu1 %v2681_v22  ;;  %v3803_v5 = vld [vmem:[%s15201_s6 + $0x2e0] sm:$0xff]  ;;  %v3738_v22 = vld [vmem:[%s15201_s6 + $0xd8] sm:$0xff] }
 0x3aa   :  { %7903 = vmatpush3.msra.mxu1 %v2569_v24  ;;  %3985 = vmatprep.subr.mxu0 %v3806_v44  ;;  %v3783_v24 = vld [vmem:[%s15201_s6 + $0x240] sm:$0xff]  ;;  %v3736_v44 = vld [vmem:[%s15201_s6 + $0xc8] sm:$0xff]  ;;  %v3726_v17 = vld [vmem:[%s15201_s6 + $0x78] sm:$0xff] }
 0x3ab   :  { %7904 = vmatprep.subr.mxu1 %v2674_v45  ;;  %3986 = vmatpush1.msra.mxu0 %v3805_v60  ;;  %v3782_v45 = vld [vmem:[%s15201_s6 + $0x238] sm:$0xff]  ;;  %v3735_v60 = vld [vmem:[%s15201_s6 + $0xc0] sm:$0xff] }
 0x3ac   :  { %7905 = vmatpush3.msra.mxu1 %v2562_v7  ;;  %3987 = vmatprep.subr.mxu0 %v3804_v58  ;;  %v3781_v7 = vld [vmem:[%s15201_s6 + $0x230] sm:$0xff]  ;;  %v3734_v58 = vld [vmem:[%s15201_s6 + $0xb8] sm:$0xff] }
 0x3ad   :  { %7906 = vmatprep.subr.mxu1 %v2667_v21  ;;  %3988 = vmatpush1.msra.mxu0 %v3803_v5  ;;  %v3780_v21 = vld [vmem:[%s15201_s6 + $0x228] sm:$0xff]  ;;  %v3733_v5 = vld [vmem:[%s15201_s6 + $0xb0] sm:$0xff] }
 0x3ae   :  { %7907 = vmatpush3.msra.mxu1 %v2555_v48  ;;  %3989 = vmatprep.subr.mxu0 %v3802_v42  ;;  %v3779_v48 = vld [vmem:[%s15201_s6 + $0x220] sm:$0xff]  ;;  %v3732_v42 = vld [vmem:[%s15201_s6 + $0xa8] sm:$0xff] }
 0x3af   :  { %7908 = vmatprep.subr.mxu1 %v2660_v57  ;;  %3990 = vmatpush1.msra.mxu0 %v3801_v34  ;;  %v3778_v57 = vld [vmem:[%s15201_s6 + $0x218] sm:$0xff]  ;;  %v3731_v34 = vld [vmem:[%s15201_s6 + $0xa0] sm:$0xff] }
 0x3b0   :  { %7909 = vmatpush3.msra.mxu1 %v2548_v4  ;;  %v11964_v18 = vpop.f32.mrf.mxu0  ;;  %3991 = vmatprep.subr.mxu0 %v3800_v19  ;;  %v3777_v4 = vld [vmem:[%s15201_s6 + $0x210] sm:$0xff]  ;;  %v3730_v19 = vld [vmem:[%s15201_s6 + $0x98] sm:$0xff] }
 0x3b1   :  { %7910 = vmatprep.subr.mxu1 %v2653_v54  ;;  %3992 = vmatpush1.msra.mxu0 %v3799_v14  ;;  %v3776_v54 = vld [vmem:[%s15201_s6 + $0x208] sm:$0xff]  ;;  %v3729_v14 = vld [vmem:[%s15201_s6 + $0x90] sm:$0xff] }
 0x3b2   :  { %7911 = vmatpush3.msra.mxu1 %v2541_v35  ;;  %3993 = vmatprep.subr.mxu0 %v3798_v16  ;;  %v2959_v56 = vpop.f32.mrf.mxu0  ;;  %v3775_v35 = vld [vmem:[%s15201_s6 + $0x200] sm:$0xff]  ;;  %v3728_v16 = vld [vmem:[%s15201_s6 + $0x88] sm:$0xff] }
 0x3b3   :  { %7912 = vmatprep.subr.mxu1 %v2646_v3  ;;  %3994 = vmatpush1.msra.mxu0 %v3797_v32  ;;  %v2960_v53 = vadd.f32 %v2959_v56, %v2889_v8  ;;  %v3727_v3 = vld [vmem:[%s15201_s6 + $0x80] sm:$0xff]  ;;  %v3837_v32 = vld [vmem:[%s15201_s6 + $0x3f0] sm:$0xff]  ;;  %v3834_v8 = vld [vmem:[%s15201_s6 + $0x3d8] sm:$0xff] }
 0x3b4   :  { %7913 = vmatpush3.msra.mxu1 %v2534_v39  ;;  %3995 = vmatprep.subr.mxu0 %v3796_v9  ;;  %v3836_v39 = vld [vmem:[%s15201_s6 + $0x3e8] sm:$0xff] }
 0x3b5   :  { %7914 = vmatprep.subr.mxu1 %v2639_v28  ;;  %v11996_v33 = vpop.f32.mrf.mxu1  ;;  %3996 = vmatpush1.msra.mxu0 %v3795_v37  ;;  %v3725_v28 = vld [vmem:[%s15201_s6 + $0x70] sm:$0xff]  ;;  %v3835_v37 = vld [vmem:[%s15201_s6 + $0x3e0] sm:$0xff] }
 0x3b6   :  { %7915 = vmatpush3.msra.mxu1 %v2527_v26  ;;  %3997 = vmatprep.subr.mxu0 %v3794_v50  ;;  %v3724_v26 = vld [vmem:[%s15201_s6 + $0x68] sm:$0xff]  ;;  %v3723_v50 = vld [vmem:[%s15201_s6 + $0x60] sm:$0xff] }
 0x3b7   :  { %7916 = vmatprep.subr.mxu1 %v2632_v12  ;;  %v3030_v36 = vpop.f32.mrf.mxu1  ;;  %3998 = vmatpush1.msra.mxu0 %v3793_v23  ;;  %v3722_v12 = vld [vmem:[%s15201_s6 + $0x58] sm:$0xff] }
 0x3b8   :  { %7917 = vmatpush3.msra.mxu1 %v2520_v13  ;;  %v12016_v61 = vadd.f32 %v3030_v36, %v2960_v53  ;;  %3999 = vmatprep.subr.mxu0 %v3792_v47  ;;  %v3833_v13 = vld [vmem:[%s15201_s6 + $0x3d0] sm:$0xff]  ;;  %v2784_v53 = vsub.s32 0, %v11915_v15  ;;  %v3719_v36 = vld [vmem:[%s15201_s6 + $0x40] sm:$0xff] }
 0x3b9   :  { %7918 = vmatprep.subr.mxu1 %v2625_v10  ;;  %4000 = vmatpush1.msra.mxu0 %v3791_v30  ;;  %v3721_v47 = vld [vmem:[%s15201_s6 + $0x50] sm:$0xff]  ;;  %v3832_v10 = vld [vmem:[%s15201_s6 + $0x3c8] sm:$0xff] }
 0x3ba   :  { %7919 = vmatpush3.msra.mxu1 %v2513_v51  ;;  %v3677_v11 = vmin.f32 %v12016_v61, 0.0  ;;  %4001 = vmatprep.subr.mxu0 %v3790_v43  ;;  %vm3670_vm8 = vcmp.gt.f32.partialorder %v12016_v61, 0.0  ;;  %v3720_v30 = vld [vmem:[%s15201_s6 + $0x48] sm:$0xff]  ;;  %v3831_v51 = vld [vmem:[%s15201_s6 + $0x3c0] sm:$0xff]  ;;  %v3830_v43 = vld [vmem:[%s15201_s6 + $0x3b8] sm:$0xff] }
 0x3bb   :  { %7920 = vmatprep.subr.mxu1 %v2618_v27  ;;  %4002 = vmatpush1.msra.mxu0 %v3789_v49  ;;  %v3718_v27 = vld [vmem:[%s15201_s6 + $0x38] sm:$0xff]  ;;  %v3717_v49 = vld [vmem:[%s15201_s6 + $0x30] sm:$0xff] }
 0x3bc   :  { %7921 = vmatpush3.msra.mxu1 %v2506_v59  ;;  %v3685_v41 = vmul.f32 1.442695, %v3677_v11  ;;  %4003 = vmatprep.subr.mxu0 %v3788_v38  ;;  %v3828_v59 = vld [vmem:[%s15201_s6 + $0x3a8] sm:$0xff]  ;;  %v2785_v38 = vrot.slane %v11950_v0, %v2784_v53  ;;  %v3827_v11 = vld [vmem:[%s15201_s6 + $0x3a0] sm:$0xff] }
 0x3bd   :  { %3594 = vmatmul.mubr.f32.vlgmr.msra.gmra.mxu1 %v10831_v52  ;;  %3914 = vmatprep.subr.mxu1 %v3742_v40  ;;  %v3784_v52 = vld [vmem:[%s15201_s6 + $0x248] sm:$0xff] }
 0x3be   :  { %3915 = vmatpush1.msra.mxu1 %v3741_v46  ;;  %8747 = vpow2.f32 %v3685_v41  ;;  %4004 = vmatpush1.msra.mxu0 %v3787_v25  ;;  %v3716_v40 = vld [vmem:[%s15201_s6 + $0x28] sm:$0xff]  ;;  %v3715_v46 = vld [vmem:[%s15201_s6 + $0x20] sm:$0xff]  ;;  %v3826_v25 = vld [vmem:[%s15201_s6 + $0x398] sm:$0xff] }
 0x3bf   :  { %3916 = vmatprep.subr.mxu1 %v3740_v29  ;;  %4005 = vmatprep.subr.mxu0 %v3786_v20  ;;  %v3714_v41 = vld [vmem:[%s15201_s6 + $0x18] sm:$0xff]  ;;  %v3825_v29 = vld [vmem:[%s15201_s6 + $0x390] sm:$0xff] }
 0x3c0   :  { %3917 = vmatpush1.msra.mxu1 %v3739_v1  ;;  %4006 = vmatpush1.msra.mxu0 %v3785_v2  ;;  %v3713_v20 = vld [vmem:[%s15201_s6 + $0x10] sm:$0xff]  ;;  %v3824_v1 = vld [vmem:[%s15201_s6 + $0x388] sm:$0xff]  ;;  %v2887_v2 = vadd.f32 %v11933_v55, %v2785_v38  ;;  %v3822_v55 = vld [vmem:[%s15201_s6 + $0x378] sm:$0xff] }
 0x3c1   :  { %3918 = vmatprep.subr.mxu1 %v3738_v22  ;;  %4007 = vmatprep.subr.mxu0 %v3784_v52  ;;  %v3712_v22 = vld [vmem:[%s15201_s6 + $0x8] sm:$0xff]  ;;  %v3823_v52 = vld [vmem:[%s15201_s6 + $0x380] sm:$0xff]  ;;  %v3749_v38 = vld [vmem:[%s15201_s6 + $0x130] sm:$0xff] }
 0x3c2   :  { %3919 = vmatpush1.msra.mxu1 %v3737_v31  ;;  %4008 = vmatpush1.msra.mxu0 %v3783_v24  ;;  %v3711_v31 = vld [vmem:[%s15201_s6] sm:$0xff]  ;;  %v2958_v24 = vadd.f32 %v11964_v18, %v2887_v2  ;;  %v3820_v18 = vld [vmem:[%s15201_s6 + $0x368] sm:$0xff]  ;;  %v3870_v2 = vld [vmem:[%s15201_s6 + $0x4f8] sm:$0xff] }
 0x3c3   :  { %3920 = vmatprep.subr.mxu1 %v3736_v44  ;;  %4009 = vmatprep.subr.mxu0 %v3782_v45  ;;  %v3774_v44 = vld [vmem:[%s15201_s6 + $0x1f8] sm:$0xff]  ;;  %v3821_v45 = vld [vmem:[%s15201_s6 + $0x370] sm:$0xff] }
 0x3c4   :  { %3921 = vmatpush1.msra.mxu1 %v3735_v60  ;;  %4010 = vmatpush1.msra.mxu0 %v3781_v7  ;;  %v3773_v60 = vld [vmem:[%s15201_s6 + $0x1f0] sm:$0xff]  ;;  %v12239_v7 = vadd.f32 %v11996_v33, %v2958_v24  ;;  %v3818_v33 = vld [vmem:[%s15201_s6 + $0x358] sm:$0xff]  ;;  %v2796_v24 = vsub.s32 3, %v11915_v15 }
 0x3c5   :  { %3922 = vmatprep.subr.mxu1 %v3734_v58  ;;  %4011 = vmatprep.subr.mxu0 %v3780_v21  ;;  %v3772_v58 = vld [vmem:[%s15201_s6 + $0x1e8] sm:$0xff]  ;;  %v3819_v21 = vld [vmem:[%s15201_s6 + $0x360] sm:$0xff] }
 0x3c6   :  { %3923 = vmatpush1.msra.mxu1 %v3733_v5  ;;  %4012 = vmatpush1.msra.mxu0 %v3779_v48  ;;  %v3771_v5 = vld [vmem:[%s15201_s6 + $0x1e0] sm:$0xff]  ;;  %v3770_v48 = vld [vmem:[%s15201_s6 + $0x1d8] sm:$0xff]  ;;  %vm3669_vm9 = vcmp.gt.f32.partialorder %v12239_v7, 0.0 }
 0x3c7   :  { %3924 = vmatprep.subr.mxu1 %v3732_v42  ;;  %4013 = vmatprep.subr.mxu0 %v3778_v57  ;;  %v3817_v42 = vld [vmem:[%s15201_s6 + $0x350] sm:$0xff] }
 0x3c8   :  { %3925 = vmatpush1.msra.mxu1 %v3731_v34  ;;  %4014 = vmatpush1.msra.mxu0 %v3777_v4  ;;  %v3769_v57 = vld [vmem:[%s15201_s6 + $0x1d0] sm:$0xff]  ;;  %v3816_v34 = vld [vmem:[%s15201_s6 + $0x348] sm:$0xff]  ;;  %v3676_v4 = vmin.f32 %v12239_v7, 0.0 }
 0x3c9   :  { %3926 = vmatprep.subr.mxu1 %v3730_v19  ;;  %4015 = vmatprep.subr.mxu0 %v3776_v54  ;;  %v3768_v19 = vld [vmem:[%s15201_s6 + $0x1c8] sm:$0xff]  ;;  %v3815_v54 = vld [vmem:[%s15201_s6 + $0x340] sm:$0xff] }
 0x3ca   :  { %3927 = vmatpush1.msra.mxu1 %v3729_v14  ;;  %4016 = vmatpush1.msra.mxu0 %v3775_v35  ;;  %v3767_v14 = vld [vmem:[%s15201_s6 + $0x1c0] sm:$0xff]  ;;  %v3814_v35 = vld [vmem:[%s15201_s6 + $0x338] sm:$0xff] }
 0x3cb   :  { %v8748_v9 = vpop.eup %8747  ;;  %3928 = vmatprep.subr.mxu1 %v3728_v16  ;;  %4017 = vmatprep.subr.mxu0 %v3838_v6  ;;  %v3766_v16 = vld [vmem:[%s15201_s6 + $0x1b8] sm:$0xff]  ;;  %v3813_v6 = vld [vmem:[%s15201_s6 + $0x330] sm:$0xff] }
 0x3cc   :  { %3929 = vmatpush1.msra.mxu1 %v3727_v3  ;;  %v6857_v56 = vadd.f32 -1.0, %v8748_v9  ;;  %4018 = vmatpush2.msra.mxu0 %v3837_v32  ;;  %v3765_v3 = vld [vmem:[%s15201_s6 + $0x1b0] sm:$0xff]  ;;  %v3812_v32 = vld [vmem:[%s15201_s6 + $0x328] sm:$0xff]  ;;  %v3811_v9 = vld [vmem:[%s15201_s6 + $0x320] sm:$0xff] }
 0x3cd   :  { %3930 = vmatprep.subr.mxu1 %v3726_v17  ;;  %4019 = vmatprep.subr.mxu0 %v3836_v39  ;;  %v3683_v17 = vmul.f32 1.442695, %v3676_v4  ;;  %v3764_v39 = vld [vmem:[%s15201_s6 + $0x1a8] sm:$0xff] }
 0x3ce   :  { %3931 = vmatpush1.msra.mxu1 %v3725_v28  ;;  %v12148_v23 = vsel %vm3670_vm8, %v12016_v61, %v6857_v56  ;;  %4020 = vmatpush2.msra.mxu0 %v3835_v37  ;;  %v3829_v61 = vld [vmem:[%s15201_s6 + $0x3b0] sm:$0xff]  ;;  %v3763_v28 = vld [vmem:[%s15201_s6 + $0x1a0] sm:$0xff]  ;;  %v3810_v37 = vld [vmem:[%s15201_s6 + $0x318] sm:$0xff]  ;;  %vm6620_vm8 = vcmask 818176  }
 0x3cf   :  { %3932 = vmatprep.subr.mxu1 %v3724_v26  ;;  %3978 = vmatprep.mubr.f32.mxu1 %v12148_v23  ;;  %v3762_v26 = vld [vmem:[%s15201_s6 + $0x198] sm:$0xff]  ;;  %v3809_v56 = vld [vmem:[%s15201_s6 + $0x310] sm:$0xff]  ;;  %8749 = vpow2.f32 %v3683_v17  ;;  %v3860_v4 = vld [vmem:[%s15201_s6 + $0x4a8] sm:$0xff] }
 0x3d0   :  { %3933 = vmatpush1.msra.mxu1 %v3723_v50  ;;  %4021 = vmatprep.subr.mxu0 %v3834_v8  ;;  %v3761_v50 = vld [vmem:[%s15201_s6 + $0x190] sm:$0xff]  ;;  %v3808_v8 = vld [vmem:[%s15201_s6 + $0x308] sm:$0xff] }
 0x3d1   :  { %3934 = vmatprep.subr.mxu1 %v3722_v12  ;;  %4022 = vmatpush2.msra.mxu0 %v3833_v13  ;;  %v3760_v12 = vld [vmem:[%s15201_s6 + $0x188] sm:$0xff]  ;;  %v3807_v13 = vld [vmem:[%s15201_s6 + $0x300] sm:$0xff] }
 0x3d2   :  { %3935 = vmatpush1.msra.mxu1 %v3721_v47  ;;  %4023 = vmatprep.subr.mxu0 %v3832_v10  ;;  %v3759_v47 = vld [vmem:[%s15201_s6 + $0x180] sm:$0xff]  ;;  %v3758_v10 = vld [vmem:[%s15201_s6 + $0x178] sm:$0xff] }
 0x3d3   :  { %3936 = vmatprep.subr.mxu1 %v3720_v30  ;;  %4024 = vmatpush2.msra.mxu0 %v3831_v51  ;;  %v3757_v30 = vld [vmem:[%s15201_s6 + $0x170] sm:$0xff]  ;;  %v3756_v51 = vld [vmem:[%s15201_s6 + $0x168] sm:$0xff] }
 0x3d4   :  { %3937 = vmatpush1.msra.mxu1 %v3719_v36  ;;  %4025 = vmatprep.subr.mxu0 %v3830_v43  ;;  %v3755_v36 = vld [vmem:[%s15201_s6 + $0x160] sm:$0xff]  ;;  %v3754_v43 = vld [vmem:[%s15201_s6 + $0x158] sm:$0xff] }
 0x3d5   :  { %3938 = vmatprep.subr.mxu1 %v3718_v27  ;;  %4026 = vmatpush2.msra.mxu0 %v3829_v61  ;;  %v3753_v27 = vld [vmem:[%s15201_s6 + $0x150] sm:$0xff]  ;;  %v3752_v61 = vld [vmem:[%s15201_s6 + $0x148] sm:$0xff] }
 0x3d6   :  { %3939 = vmatpush1.msra.mxu1 %v3717_v49  ;;  %4027 = vmatprep.subr.mxu0 %v3828_v59  ;;  %v3751_v49 = vld [vmem:[%s15201_s6 + $0x140] sm:$0xff]  ;;  %v3750_v59 = vld [vmem:[%s15201_s6 + $0x138] sm:$0xff] }
 0x3d7   :  { %3940 = vmatprep.subr.mxu1 %v3716_v40  ;;  %4028 = vmatpush2.msra.mxu0 %v3827_v11  ;;  %v3748_v40 = vld [vmem:[%s15201_s6 + $0x128] sm:$0xff] }
 0x3d8   :  { %3941 = vmatpush1.msra.mxu1 %v3715_v46  ;;  %4029 = vmatprep.subr.mxu0 %v3826_v25  ;;  %v3747_v46 = vld [vmem:[%s15201_s6 + $0x120] sm:$0xff]  ;;  %v3746_v25 = vld [vmem:[%s15201_s6 + $0x118] sm:$0xff] }
 0x3d9   :  { %3942 = vmatprep.subr.mxu1 %v3714_v41  ;;  %4030 = vmatpush2.msra.mxu0 %v3825_v29  ;;  %v3745_v41 = vld [vmem:[%s15201_s6 + $0x110] sm:$0xff]  ;;  %v3744_v29 = vld [vmem:[%s15201_s6 + $0x108] sm:$0xff] }
 0x3da   :  { %3943 = vmatpush1.msra.mxu1 %v3713_v20  ;;  %4031 = vmatprep.subr.mxu0 %v3824_v1  ;;  %v3743_v1 = vld [vmem:[%s15201_s6 + $0x100] sm:$0xff] }
 0x3db   :  { %3944 = vmatprep.subr.mxu1 %v3712_v22  ;;  %4032 = vmatpush2.msra.mxu0 %v3823_v52  ;;  %v2792_v22 = vsub.s32 2, %v11915_v15  ;;  %v3869_v52 = vld [vmem:[%s15201_s6 + $0x4f0] sm:$0xff] }
 0x3dc   :  { %3945 = vmatpush1.msra.mxu1 %v3711_v31  ;;  %4033 = vmatprep.subr.mxu0 %v3822_v55  ;;  %v8750_v11 = vpop.eup %8749  ;;  %v3868_v55 = vld [vmem:[%s15201_s6 + $0x4e8] sm:$0xff] }
 0x3dd   :  { %3946 = vmatprep.subr.mxu1 %v3774_v44  ;;  %4034 = vmatpush2.msra.mxu0 %v3821_v45  ;;  %v6856_v20 = vadd.f32 -1.0, %v8750_v11  ;;  %v3867_v44 = vld [vmem:[%s15201_s6 + $0x4e0] sm:$0xff]  ;;  %v3841_v11 = vld [vmem:[%s15201_s6 + $0x410] sm:$0xff] }
 0x3de   :  { %3947 = vmatpush2.msra.mxu1 %v3773_v60  ;;  %4035 = vmatprep.subr.mxu0 %v3820_v18  ;;  %v3866_v60 = vld [vmem:[%s15201_s6 + $0x4d8] sm:$0xff]  ;;  %v2793_v18 = vrot.slane %v11950_v0, %v2792_v22 }
 0x3df   :  { %3948 = vmatprep.subr.mxu1 %v3772_v58  ;;  %4036 = vmatpush2.msra.mxu0 %v3819_v21  ;;  %v12380_v31 = vsel %vm3669_vm9, %v12239_v7, %v6856_v20  ;;  %v3865_v7 = vld [vmem:[%s15201_s6 + $0x4d0] sm:$0xff]  ;;  %v3864_v58 = vld [vmem:[%s15201_s6 + $0x4c8] sm:$0xff]  ;;  %v2797_v21 = vrot.slane %v11950_v0, %v2796_v24 }
 0x3e0   :  { %3949 = vmatpush2.msra.mxu1 %v3771_v5  ;;  %4037 = vmatprep.subr.mxu0 %v3818_v33  ;;  %v3863_v5 = vld [vmem:[%s15201_s6 + $0x4c0] sm:$0xff] }
 0x3e1   :  { %3950 = vmatprep.subr.mxu1 %v3770_v48  ;;  %4038 = vmatpush2.msra.mxu0 %v3817_v42  ;;  %v3862_v48 = vld [vmem:[%s15201_s6 + $0x4b8] sm:$0xff] }
 0x3e2   :  { %3951 = vmatpush2.msra.mxu1 %v3769_v57  ;;  %4039 = vmatprep.subr.mxu0 %v3816_v34  ;;  %v3861_v57 = vld [vmem:[%s15201_s6 + $0x4b0] sm:$0xff] }
 0x3e3   :  { %3952 = vmatprep.subr.mxu1 %v3768_v19  ;;  %4040 = vmatpush2.msra.mxu0 %v3815_v54  ;;  %v3859_v54 = vld [vmem:[%s15201_s6 + $0x4a0] sm:$0xff] }
 0x3e4   :  { %3953 = vmatpush2.msra.mxu1 %v3767_v14  ;;  %4041 = vmatprep.subr.mxu0 %v3814_v35  ;;  %v3858_v14 = vld [vmem:[%s15201_s6 + $0x498] sm:$0xff] }
 0x3e5   :  { %3954 = vmatprep.subr.mxu1 %v3766_v16  ;;  %4042 = vmatpush2.msra.mxu0 %v3813_v6  ;;  %v3857_v16 = vld [vmem:[%s15201_s6 + $0x490] sm:$0xff] }
 0x3e6   :  { %3955 = vmatpush2.msra.mxu1 %v3765_v3  ;;  %4043 = vmatprep.subr.mxu0 %v3812_v32  ;;  %v3856_v32 = vld [vmem:[%s15201_s6 + $0x488] sm:$0xff] }
 0x3e7   :  { %3956 = vmatprep.subr.mxu1 %v3764_v39  ;;  %4044 = vmatpush2.msra.mxu0 %v3811_v9  ;;  %v3855_v9 = vld [vmem:[%s15201_s6 + $0x480] sm:$0xff] }
 0x3e8   :  { %3957 = vmatpush2.msra.mxu1 %v3763_v28  ;;  %4045 = vmatprep.subr.mxu0 %v3810_v37  ;;  %v3854_v37 = vld [vmem:[%s15201_s6 + $0x478] sm:$0xff] }
 0x3e9   :  { %3958 = vmatprep.subr.mxu1 %v3762_v26  ;;  %4046 = vmatpush2.msra.mxu0 %v3809_v56 }
 0x3ea   :  { %3959 = vmatpush2.msra.mxu1 %v3761_v50  ;;  %4047 = vmatprep.subr.mxu0 %v3808_v8  ;;  %v3853_v50 = vld [vmem:[%s15201_s6 + $0x470] sm:$0xff]  ;;  %v3852_v8 = vld [vmem:[%s15201_s6 + $0x468] sm:$0xff] }
 0x3eb   :  { %3960 = vmatprep.subr.mxu1 %v3760_v12  ;;  %4048 = vmatpush2.msra.mxu0 %v3807_v13 }
 0x3ec   :  { %3961 = vmatpush2.msra.mxu1 %v3759_v47  ;;  %v3851_v47 = vld [vmem:[%s15201_s6 + $0x460] sm:$0xff] }
 0x3ed   :  { %3962 = vmatprep.subr.mxu1 %v3758_v10  ;;  %v3850_v10 = vld [vmem:[%s15201_s6 + $0x458] sm:$0xff] }
 0x3ee   :  { %3963 = vmatpush2.msra.mxu1 %v3757_v30 }
 0x3ef   :  { %3964 = vmatprep.subr.mxu1 %v3756_v51  ;;  %v3849_v51 = vld [vmem:[%s15201_s6 + $0x450] sm:$0xff] }
 0x3f0   :  { %3965 = vmatpush2.msra.mxu1 %v3755_v36  ;;  %v3848_v36 = vld [vmem:[%s15201_s6 + $0x448] sm:$0xff] }
 0x3f1   :  { %3966 = vmatprep.subr.mxu1 %v3754_v43  ;;  %v3847_v43 = vld [vmem:[%s15201_s6 + $0x440] sm:$0xff] }
 0x3f2   :  { %3967 = vmatpush2.msra.mxu1 %v3753_v27  ;;  %v3170_v34 = vpop.f32.mrf.mxu0  ;;  %v3910_v27 = vld [vmem:[%s15201_s6 + $0x638] sm:$0xff] }
 0x3f3   :  { %3968 = vmatprep.subr.mxu1 %v3752_v61  ;;  %v3846_v61 = vld [vmem:[%s15201_s6 + $0x438] sm:$0xff]  ;;  %4151 = vmatprep.subr.mxu0 %v3910_v27  ;;  %v2804_v27 = vsub.s32 5, %v11915_v15 }
 0x3f4   :  { %3969 = vmatpush2.msra.mxu1 %v3751_v49  ;;  %v3172_v6 = vpop.f32.mrf.mxu0  ;;  %v3845_v49 = vld [vmem:[%s15201_s6 + $0x430] sm:$0xff] }
 0x3f5   :  { %3970 = vmatprep.subr.mxu1 %v3750_v59  ;;  %v3844_v59 = vld [vmem:[%s15201_s6 + $0x428] sm:$0xff] }
 0x3f6   :  { %3971 = vmatpush2.msra.mxu1 %v3749_v38  ;;  %v3843_v38 = vld [vmem:[%s15201_s6 + $0x420] sm:$0xff] }
 0x3f7   :  { %3972 = vmatprep.subr.mxu1 %v3748_v40  ;;  %v3099_v45 = vpop.f32.mrf.mxu1  ;;  %v3842_v40 = vld [vmem:[%s15201_s6 + $0x418] sm:$0xff] }
 0x3f8   :  { %3973 = vmatpush2.msra.mxu1 %v3747_v46  ;;  %v3100_v42 = vadd.f32 %v3099_v45, %v2793_v18  ;;  %v3840_v46 = vld [vmem:[%s15201_s6 + $0x408] sm:$0xff]  ;;  %v3895_v18 = vld [vmem:[%s15201_s6 + $0x5c0] sm:$0xff] }
 0x3f9   :  { %3974 = vmatprep.subr.mxu1 %v3746_v25  ;;  %v3101_v33 = vpop.f32.mrf.mxu1  ;;  %v3839_v25 = vld [vmem:[%s15201_s6 + $0x400] sm:$0xff]  ;;  %v3896_v45 = vld [vmem:[%s15201_s6 + $0x5c8] sm:$0xff] }
 0x3fa   :  { %3975 = vmatpush2.msra.mxu1 %v3745_v41  ;;  %v3102_v19 = vadd.f32 %v3101_v33, %v2797_v21  ;;  %v3171_v35 = vadd.f32 %v3170_v34, %v3100_v42  ;;  %v3902_v41 = vld [vmem:[%s15201_s6 + $0x5f8] sm:$0xff]  ;;  %v3893_v33 = vld [vmem:[%s15201_s6 + $0x5b0] sm:$0xff]  ;;  %v3892_v42 = vld [vmem:[%s15201_s6 + $0x5a8] sm:$0xff] }
 0x3fb   :  { %3976 = vmatprep.subr.mxu1 %v3744_v29  ;;  %v3901_v29 = vld [vmem:[%s15201_s6 + $0x5f0] sm:$0xff]  ;;  %v3894_v21 = vld [vmem:[%s15201_s6 + $0x5b8] sm:$0xff]  ;;  %v3891_v34 = vld [vmem:[%s15201_s6 + $0x5a0] sm:$0xff] }
 0x3fc   :  { %3977 = vmatpush2.msra.mxu1 %v3743_v1  ;;  %v3173_v39 = vadd.f32 %v3172_v6, %v3102_v19  ;;  %v3900_v1 = vld [vmem:[%s15201_s6 + $0x5e8] sm:$0xff]  ;;  %v3890_v19 = vld [vmem:[%s15201_s6 + $0x598] sm:$0xff]  ;;  %v3887_v6 = vld [vmem:[%s15201_s6 + $0x580] sm:$0xff] }
 0x3fd   :  { %3979 = vmatmul.mubr.f32.vlgmr.msra.gmra.mxu1 %v12380_v31  ;;  %4056 = vmatprep.subr.mxu1 %v3870_v2  ;;  %v3899_v2 = vld [vmem:[%s15201_s6 + $0x5e0] sm:$0xff] }
 0x3fe   :  { %4057 = vmatpush1.msra.mxu1 %v3869_v52 }
 0x3ff   :  { %4058 = vmatprep.subr.mxu1 %v3868_v55  ;;  %v3898_v55 = vld [vmem:[%s15201_s6 + $0x5d8] sm:$0xff] }
 0x400   :  { %4059 = vmatpush1.msra.mxu1 %v3867_v44  ;;  %v3897_v44 = vld [vmem:[%s15201_s6 + $0x5d0] sm:$0xff] }
 0x401   :  { %4060 = vmatprep.subr.mxu1 %v3866_v60 }
 0x402   :  { %4061 = vmatpush1.msra.mxu1 %v3865_v7  ;;  %v3909_v7 = vld [vmem:[%s15201_s6 + $0x630] sm:$0xff] }
 0x403   :  { %4062 = vmatprep.subr.mxu1 %v3864_v58 }
 0x404   :  { %4063 = vmatpush1.msra.mxu1 %v3863_v5  ;;  %v3908_v5 = vld [vmem:[%s15201_s6 + $0x628] sm:$0xff] }
 0x405   :  { %4064 = vmatprep.subr.mxu1 %v3862_v48  ;;  %v3907_v48 = vld [vmem:[%s15201_s6 + $0x620] sm:$0xff] }
 0x406   :  { %4065 = vmatpush1.msra.mxu1 %v3861_v57  ;;  %v3906_v57 = vld [vmem:[%s15201_s6 + $0x618] sm:$0xff] }
 0x407   :  { %4066 = vmatprep.subr.mxu1 %v3860_v4  ;;  %v3905_v4 = vld [vmem:[%s15201_s6 + $0x610] sm:$0xff] }
 0x408   :  { %v3241_v3 = vpop.f32.mrf.mxu1  ;;  %4067 = vmatpush1.msra.mxu1 %v3859_v54  ;;  %v3904_v54 = vld [vmem:[%s15201_s6 + $0x608] sm:$0xff] }
 0x409   :  { %v12425_v17 = vadd.f32 %v3241_v3, %v3171_v35  ;;  %4068 = vmatprep.subr.mxu1 %v3858_v14  ;;  %v3889_v14 = vld [vmem:[%s15201_s6 + $0x590] sm:$0xff]  ;;  %v3903_v35 = vld [vmem:[%s15201_s6 + $0x600] sm:$0xff]  ;;  %v6895_v3 = vld [vmem:[%s15201_s6 + $0x738] sm:$0xff] }
 0x40a   :  { %v3243_v28 = vpop.f32.mrf.mxu1  ;;  %4069 = vmatpush1.msra.mxu1 %v3857_v16  ;;  %v3888_v16 = vld [vmem:[%s15201_s6 + $0x588] sm:$0xff] }
 0x40b   :  { %v3678_v26 = vmin.f32 %v12425_v17, 0.0  ;;  %v3244_v56 = vadd.f32 %v3243_v28, %v3173_v39  ;;  %4070 = vmatprep.subr.mxu1 %v3856_v32  ;;  %vm3671_vm11 = vcmp.gt.f32.partialorder %v12425_v17, 0.0  ;;  %v3886_v32 = vld [vmem:[%s15201_s6 + $0x578] sm:$0xff]  ;;  %v3884_v39 = vld [vmem:[%s15201_s6 + $0x568] sm:$0xff] }
 0x40c   :  { %4071 = vmatpush1.msra.mxu1 %v3855_v9  ;;  %v3883_v9 = vld [vmem:[%s15201_s6 + $0x560] sm:$0xff]  ;;  %v3882_v28 = vld [vmem:[%s15201_s6 + $0x558] sm:$0xff] }
 0x40d   :  { %v3687_v12 = vmul.f32 1.442695, %v3678_v26  ;;  %v3679_v13 = vmin.f32 %v3244_v56, 0.0  ;;  %4072 = vmatprep.subr.mxu1 %v3854_v37  ;;  %vm3672_vm10 = vcmp.gt.f32.partialorder %v3244_v56, 0.0  ;;  %v3881_v37 = vld [vmem:[%s15201_s6 + $0x550] sm:$0xff]  ;;  %v3880_v26 = vld [vmem:[%s15201_s6 + $0x548] sm:$0xff] }
 0x40e   :  { %4073 = vmatpush1.msra.mxu1 %v3853_v50  ;;  %v3878_v50 = vld [vmem:[%s15201_s6 + $0x538] sm:$0xff] }
 0x40f   :  { %8751 = vpow2.f32 %v3687_v12  ;;  %v3689_v30 = vmul.f32 1.442695, %v3679_v13  ;;  %4074 = vmatprep.subr.mxu1 %v3852_v8  ;;  %v3877_v8 = vld [vmem:[%s15201_s6 + $0x530] sm:$0xff]  ;;  %v3876_v12 = vld [vmem:[%s15201_s6 + $0x528] sm:$0xff]  ;;  %v3875_v13 = vld [vmem:[%s15201_s6 + $0x520] sm:$0xff] }
 0x410   :  { %4075 = vmatpush1.msra.mxu1 %v3851_v47  ;;  %v3874_v47 = vld [vmem:[%s15201_s6 + $0x518] sm:$0xff] }
 0x411   :  { %8753 = vpow2.f32 %v3689_v30  ;;  %4076 = vmatprep.subr.mxu1 %v3850_v10  ;;  %v3873_v10 = vld [vmem:[%s15201_s6 + $0x510] sm:$0xff]  ;;  %v3872_v30 = vld [vmem:[%s15201_s6 + $0x508] sm:$0xff] }
 0x412   :  { %4077 = vmatpush1.msra.mxu1 %v3849_v51  ;;  %v3871_v51 = vld [vmem:[%s15201_s6 + $0x500] sm:$0xff] }
 0x413   :  { %4078 = vmatprep.subr.mxu1 %v3848_v36  ;;  %v6959_v36 = vld [vmem:[%s15201_s6 + $0x938] sm:$0xff] }
 0x414   :  { %4079 = vmatpush1.msra.mxu1 %v3847_v43  ;;  %v2800_v43 = vsub.s32 4, %v11915_v15 }
 0x415   :  { %4080 = vmatprep.subr.mxu1 %v3846_v61 }
 0x416   :  { %4081 = vmatpush1.msra.mxu1 %v3845_v49  ;;  %v2801_v49 = vrot.slane %v11950_v0, %v2800_v43  ;;  %v6942_v43 = vld [vmem:[%s15201_s6 + $0x8b0] sm:$0xff] }
 0x417   :  { %4082 = vmatprep.subr.mxu1 %v3844_v59  ;;  %v2805_v59 = vrot.slane %v11950_v0, %v2804_v27 }
 0x418   :  { %4083 = vmatpush1.msra.mxu1 %v3843_v38 }
 0x419   :  { %4084 = vmatprep.subr.mxu1 %v3842_v40 }
 0x41a   :  { %4085 = vmatpush1.msra.mxu1 %v3841_v11 }
 0x41b   :  { %4086 = vmatprep.subr.mxu1 %v3840_v46 }
 0x41c   :  { %v8752_v20 = vpop.eup %8751  ;;  %4087 = vmatpush1.msra.mxu1 %v3839_v25 }
 0x41d   :  { %4088 = vmatprep.subr.mxu1 %v3902_v41  ;;  %v6858_v52 = vadd.f32 -1.0, %v8752_v20 }
 0x41e   :  { %v8754_v22 = vpop.eup %8753  ;;  %4089 = vmatpush2.msra.mxu1 %v3901_v29 }
 0x41f   :  { %v6859_v24 = vadd.f32 -1.0, %v8754_v22  ;;  %4090 = vmatprep.subr.mxu1 %v3900_v1  ;;  %v12514_v58 = vsel %vm3671_vm11, %v12425_v17, %v6858_v52  ;;  %v3885_v17 = vld [vmem:[%s15201_s6 + $0x570] sm:$0xff] }
 0x420   :  { %4091 = vmatpush2.msra.mxu1 %v3899_v2 }
 0x421   :  { %v12504_v60 = vsel %vm3672_vm10, %v3244_v56, %v6859_v24  ;;  %4092 = vmatprep.subr.mxu1 %v3898_v55  ;;  %v3879_v56 = vld [vmem:[%s15201_s6 + $0x540] sm:$0xff] }
 0x422   :  { %4049 = vmatprep.mubr.f32.mxu0 %v12504_v60  ;;  %4093 = vmatpush2.msra.mxu1 %v3897_v44 }
 0x423   :  { %4050 = vmatmul.mubr.f32.vlgmr.msra.gmra.mxu0 %v12514_v58  ;;  %4094 = vmatprep.subr.mxu1 %v3896_v45 }
 0x424   :  { %4095 = vmatpush2.msra.mxu1 %v3895_v18  ;;  %4152 = vmatpush1.msra.mxu0 %v3909_v7 }
 0x425   :  { %4096 = vmatprep.subr.mxu1 %v3894_v21  ;;  %4153 = vmatprep.subr.mxu0 %v3908_v5 }
 0x426   :  { %4097 = vmatpush2.msra.mxu1 %v3893_v33  ;;  %4154 = vmatpush1.msra.mxu0 %v3907_v48 }
 0x427   :  { %4098 = vmatprep.subr.mxu1 %v3892_v42  ;;  %4155 = vmatprep.subr.mxu0 %v3906_v57  ;;  %v6958_v57 = vld [vmem:[%s15201_s6 + $0x930] sm:$0xff] }
 0x428   :  { %4099 = vmatpush2.msra.mxu1 %v3891_v34  ;;  %4156 = vmatpush1.msra.mxu0 %v3905_v4  ;;  %v6957_v4 = vld [vmem:[%s15201_s6 + $0x928] sm:$0xff] }
 0x429   :  { %4100 = vmatprep.subr.mxu1 %v3890_v19  ;;  %4157 = vmatprep.subr.mxu0 %v3904_v54  ;;  %v6956_v19 = vld [vmem:[%s15201_s6 + $0x920] sm:$0xff]  ;;  %v2808_v54 = vsub.s32 6, %v11915_v15  ;;  %v7485_v15 = vld [vmem:[%s15204_s9 + $0x178] sm:$0xff] }
 0x42a   :  { %4101 = vmatpush2.msra.mxu1 %v3889_v14  ;;  %4158 = vmatpush1.msra.mxu0 %v3903_v35  ;;  %v6955_v14 = vld [vmem:[%s15201_s6 + $0x918] sm:$0xff]  ;;  %v6954_v35 = vld [vmem:[%s15201_s6 + $0x910] sm:$0xff] }
 0x42b   :  { %4102 = vmatprep.subr.mxu1 %v3888_v16  ;;  %4191 = vmatprep.mubr.f32.mxu0 %v8781_v63  ;;  %v6953_v16 = vld [vmem:[%s15201_s6 + $0x908] sm:$0xff] }
 0x42c   :  { %4103 = vmatpush2.msra.mxu1 %v3887_v6  ;;  %4399 = vmatprep.subr.mxu0 %v6895_v3  ;;  %v6952_v6 = vld [vmem:[%s15201_s6 + $0x900] sm:$0xff] }
 0x42d   :  { %4104 = vmatprep.subr.mxu1 %v3886_v32  ;;  %v8773_v3 = vld [vmem:[%s15202_s5] sm:$0x7f] }
 0x42e   :  { %4105 = vmatpush2.msra.mxu1 %v3885_v17  ;;  %v2809_v32 = vrot.slane %v8773_v3, %v2808_v54  ;;  %v6984_v54 = vld [vmem:[%s15201_s6 + $0xa00] sm:$0xff] }
 0x42f   :  { %4106 = vmatprep.subr.mxu1 %v3884_v39  ;;  %v6951_v39 = vld [vmem:[%s15201_s6 + $0x8f8] sm:$0xff]  ;;  %v6888_v3 = vld [vmem:[%s15201_s6 + $0x700] sm:$0xff] }
 0x430   :  { %4107 = vmatpush2.msra.mxu1 %v3883_v9 }
 0x431   :  { %4108 = vmatprep.subr.mxu1 %v3882_v28  ;;  %v6950_v28 = vld [vmem:[%s15201_s6 + $0x8f0] sm:$0xff] }
 0x432   :  { %4109 = vmatpush2.msra.mxu1 %v3881_v37  ;;  %v6949_v37 = vld [vmem:[%s15201_s6 + $0x8e8] sm:$0xff] }
 0x433   :  { %4110 = vmatprep.subr.mxu1 %v3880_v26 }
 0x434   :  { %4111 = vmatpush2.msra.mxu1 %v3879_v56  ;;  %v6948_v56 = vld [vmem:[%s15201_s6 + $0x8e0] sm:$0xff] }
 0x435   :  { %4112 = vmatprep.subr.mxu1 %v3878_v50  ;;  %v3383_v11 = vpop.f32.mrf.mxu0 }
 0x436   :  { %4113 = vmatpush2.msra.mxu1 %v3877_v8 }
 0x437   :  { %4114 = vmatprep.subr.mxu1 %v3876_v12  ;;  %v3385_v41 = vpop.f32.mrf.mxu0  ;;  %v6947_v12 = vld [vmem:[%s15201_s6 + $0x8d8] sm:$0xff] }
 0x438   :  { %4115 = vmatpush2.msra.mxu1 %v3875_v13  ;;  %v6946_v13 = vld [vmem:[%s15201_s6 + $0x8d0] sm:$0xff] }
 0x439   :  { %4116 = vmatprep.subr.mxu1 %v3874_v47 }
 0x43a   :  { %4117 = vmatpush2.msra.mxu1 %v3873_v10  ;;  %v6945_v10 = vld [vmem:[%s15201_s6 + $0x8c8] sm:$0xff] }
 0x43b   :  { %4118 = vmatprep.subr.mxu1 %v3872_v30  ;;  %v6944_v30 = vld [vmem:[%s15201_s6 + $0x8c0] sm:$0xff] }
 0x43c   :  { %4119 = vmatpush2.msra.mxu1 %v3871_v51 }
 0x43d   :  { %4470 = vmatprep.subr.mxu1 %v6959_v36  ;;  %v6943_v36 = vld [vmem:[%s15201_s6 + $0x8b8] sm:$0xff] }
 0x44a   :  { %v3312_v61 = vpop.f32.mrf.mxu1 }
 0x44b   :  { %v3313_v40 = vadd.f32 %v3312_v61, %v2801_v49  ;;  %v6941_v61 = vld [vmem:[%s15201_s6 + $0x8a8] sm:$0xff]  ;;  %v6940_v49 = vld [vmem:[%s15201_s6 + $0x8a0] sm:$0xff] }
 0x44c   :  { %v3314_v38 = vpop.f32.mrf.mxu1 }
 0x44d   :  { %v3315_v46 = vadd.f32 %v3314_v38, %v2805_v59  ;;  %v3384_v25 = vadd.f32 %v3383_v11, %v3313_v40  ;;  %v6939_v38 = vld [vmem:[%s15201_s6 + $0x898] sm:$0xff]  ;;  %v6938_v40 = vld [vmem:[%s15201_s6 + $0x890] sm:$0xff]  ;;  %v6937_v11 = vld [vmem:[%s15201_s6 + $0x888] sm:$0xff] }
 0x44f   :  { %v3386_v1 = vadd.f32 %v3385_v41, %v3315_v46  ;;  %v6936_v46 = vld [vmem:[%s15201_s6 + $0x880] sm:$0xff]  ;;  %v6934_v41 = vld [vmem:[%s15201_s6 + $0x870] sm:$0xff] }
 0x456   :  { %v7887_v44 = vpop.f32.mrf.mxu0 }
 0x458   :  { %v7888_v18 = vpop.f32.mrf.mxu0 }
 0x459   :  { %v7889_v17 = vadd.f32 %v7888_v18, %v7887_v44  ;;  %v6989_v44 = vld [vmem:[%s15201_s6 + $0xa28] sm:$0xff]  ;;  %v6988_v18 = vld [vmem:[%s15201_s6 + $0xa20] sm:$0xff] }
 0x45b   :  { %v3526_v50 = vadd.f32 %v7889_v17, %v2809_v32  ;;  %v6981_v32 = vld [vmem:[%s15201_s6 + $0x9e8] sm:$0xff]  ;;  %v6887_v17 = vld [vmem:[%s15201_s6 + $0x6f8] sm:$0xff] }
 0x45c   :  { %v3454_v29 = vpop.f32.mrf.mxu1 }
 0x45d   :  { %v3455_v20 = vadd.f32 %v3454_v29, %v3384_v25  ;;  %v6935_v25 = vld [vmem:[%s15201_s6 + $0x878] sm:$0xff]  ;;  %v6933_v29 = vld [vmem:[%s15201_s6 + $0x868] sm:$0xff] }
 0x45e   :  { %v3456_v2 = vpop.f32.mrf.mxu1 }
 0x45f   :  { %v3680_v22 = vmin.f32 %v3455_v20, 0.0  ;;  %v3457_v52 = vadd.f32 %v3456_v2, %v3386_v1  ;;  %vm3673_vm13 = vcmp.gt.f32.partialorder %v3455_v20, 0.0  ;;  %v6931_v1 = vld [vmem:[%s15201_s6 + $0x858] sm:$0xff]  ;;  %v6930_v2 = vld [vmem:[%s15201_s6 + $0x850] sm:$0xff] }
 0x461   :  { %v3691_v55 = vmul.f32 1.442695, %v3680_v22  ;;  %v3681_v24 = vmin.f32 %v3457_v52, 0.0  ;;  %vm3674_vm12 = vcmp.gt.f32.partialorder %v3457_v52, 0.0  ;;  %v6929_v22 = vld [vmem:[%s15201_s6 + $0x848] sm:$0xff] }
 0x463   :  { %8755 = vpow2.f32 %v3691_v55  ;;  %v3693_v45 = vmul.f32 1.442695, %v3681_v24  ;;  %v6991_v55 = vld [vmem:[%s15201_s6 + $0xa38] sm:$0xff]  ;;  %v6990_v24 = vld [vmem:[%s15201_s6 + $0xa30] sm:$0xff] }
 0x465   :  { %8757 = vpow2.f32 %v3693_v45 }
 0x469   :  { %v3665_v0 = vpop.f32.mrf.mxu0 }
 0x46b   :  { %v8596_v7 = vpop.f32.mrf.mxu0 }
 0x46c   :  { %v6987_v7 = vld [vmem:[%s15201_s6 + $0xa18] sm:$0xff] }
 0x470   :  { %v8756_v21 = vpop.eup %8755 }
 0x471   :  { %v6860_v33 = vadd.f32 -1.0, %v8756_v21  ;;  %v6894_v21 = vld [vmem:[%s15201_s6 + $0x730] sm:$0xff] }
 0x472   :  { %v8758_v5 = vpop.eup %8757 }
 0x473   :  { %v6861_v48 = vadd.f32 -1.0, %v8758_v5  ;;  %v12624_v34 = vsel %vm3673_vm13, %v3455_v20, %v6860_v33  ;;  %v6932_v20 = vld [vmem:[%s15201_s6 + $0x860] sm:$0xff]  ;;  %v6893_v33 = vld [vmem:[%s15201_s6 + $0x728] sm:$0xff] }
 0x475   :  { %v12618_v42 = vsel %vm3674_vm12, %v3457_v52, %v6861_v48  ;;  %v6928_v52 = vld [vmem:[%s15201_s6 + $0x840] sm:$0xff]  ;;  %v6986_v48 = vld [vmem:[%s15201_s6 + $0xa10] sm:$0xff] }
 0x476   :  { %4120 = vmatprep.mubr.f32.mxu1 %v12618_v42 }
 0x477   :  { %4121 = vmatmul.mubr.f32.vlgmr.msra.gmra.mxu1 %v12624_v34 }
 0x478   :  { %4471 = vmatpush1.msra.mxu1 %v6958_v57  ;;  %4534 = vmatprep.mubr.f32.mxu1 %v12504_v60  ;;  %v6892_v57 = vld [vmem:[%s15201_s6 + $0x720] sm:$0xff] }
 0x479   :  { %4472 = vmatprep.subr.mxu1 %v6957_v4  ;;  %v6985_v4 = vld [vmem:[%s15201_s6 + $0xa08] sm:$0xff] }
 0x47a   :  { %4473 = vmatpush1.msra.mxu1 %v6956_v19  ;;  %v6891_v19 = vld [vmem:[%s15201_s6 + $0x718] sm:$0xff] }
 0x47b   :  { %4474 = vmatprep.subr.mxu1 %v6955_v14  ;;  %v6890_v14 = vld [vmem:[%s15201_s6 + $0x710] sm:$0xff] }
 0x47c   :  { %4475 = vmatpush1.msra.mxu1 %v6954_v35  ;;  %v6983_v35 = vld [vmem:[%s15201_s6 + $0x9f8] sm:$0xff] }
 0x47d   :  { %v7922_v9 = vpop.f32.mrf.mxu1  ;;  %4476 = vmatprep.subr.mxu1 %v6953_v16  ;;  %v6889_v16 = vld [vmem:[%s15201_s6 + $0x708] sm:$0xff] }
 0x47e   :  { %4477 = vmatpush1.msra.mxu1 %v6952_v6  ;;  %v6982_v6 = vld [vmem:[%s15201_s6 + $0x9f0] sm:$0xff] }
 0x47f   :  { %v7923_v26 = vpop.f32.mrf.mxu1  ;;  %4478 = vmatprep.subr.mxu1 %v6951_v39  ;;  %v6980_v39 = vld [vmem:[%s15201_s6 + $0x9e0] sm:$0xff] }
 0x480   :  { %v7924_v8 = vadd.f32 %v7923_v26, %v7922_v9  ;;  %4479 = vmatpush1.msra.mxu1 %v6950_v28  ;;  %v6886_v9 = vld [vmem:[%s15201_s6 + $0x6f0] sm:$0xff]  ;;  %v6979_v28 = vld [vmem:[%s15201_s6 + $0x9d8] sm:$0xff] }
 0x481   :  { %4480 = vmatprep.subr.mxu1 %v6949_v37  ;;  %v6885_v37 = vld [vmem:[%s15201_s6 + $0x6e8] sm:$0xff]  ;;  %v6978_v26 = vld [vmem:[%s15201_s6 + $0x9d0] sm:$0xff] }
 0x482   :  { %v3596_v47 = vadd.f32 %v7924_v8, %v3526_v50  ;;  %4481 = vmatpush1.msra.mxu1 %v6948_v56  ;;  %v6884_v56 = vld [vmem:[%s15201_s6 + $0x6e0] sm:$0xff]  ;;  %v6977_v50 = vld [vmem:[%s15201_s6 + $0x9c8] sm:$0xff]  ;;  %v6883_v8 = vld [vmem:[%s15201_s6 + $0x6d8] sm:$0xff] }
 0x483   :  { %4482 = vmatprep.subr.mxu1 %v6947_v12  ;;  %v6976_v12 = vld [vmem:[%s15201_s6 + $0x9c0] sm:$0xff] }
 0x484   :  { %v3666_v51 = vadd.f32 %v3665_v0, %v3596_v47  ;;  %4483 = vmatpush1.msra.mxu1 %v6946_v13  ;;  %v6882_v13 = vld [vmem:[%s15201_s6 + $0x6d0] sm:$0xff]  ;;  %v6975_v47 = vld [vmem:[%s15201_s6 + $0x9b8] sm:$0xff] }
 0x485   :  { %4484 = vmatprep.subr.mxu1 %v6945_v10  ;;  %v6881_v10 = vld [vmem:[%s15201_s6 + $0x6c8] sm:$0xff] }
 0x486   :  { %v3682_v27 = vmin.f32 %v3666_v51, 0.0  ;;  %4485 = vmatpush1.msra.mxu1 %v6944_v30  ;;  %vm3675_vm14 = vcmp.gt.f32.partialorder %v3666_v51, 0.0  ;;  %v6974_v30 = vld [vmem:[%s15201_s6 + $0x9b0] sm:$0xff] }
 0x487   :  { %4486 = vmatprep.subr.mxu1 %v6943_v36  ;;  %v6973_v36 = vld [vmem:[%s15201_s6 + $0x9a8] sm:$0xff] }
 0x488   :  { %v3695_v59 = vmul.f32 1.442695, %v3682_v27  ;;  %4487 = vmatpush1.msra.mxu1 %v6942_v43  ;;  %v6879_v43 = vld [vmem:[%s15201_s6 + $0x6b8] sm:$0xff]  ;;  %v6972_v27 = vld [vmem:[%s15201_s6 + $0x9a0] sm:$0xff] }
 0x489   :  { %4488 = vmatprep.subr.mxu1 %v6941_v61  ;;  %v6878_v61 = vld [vmem:[%s15201_s6 + $0x6b0] sm:$0xff] }
 0x48a   :  { %8759 = vpow2.f32 %v3695_v59  ;;  %4489 = vmatpush1.msra.mxu1 %v6940_v49  ;;  %v6971_v49 = vld [vmem:[%s15201_s6 + $0x998] sm:$0xff]  ;;  %v6877_v59 = vld [vmem:[%s15201_s6 + $0x6a8] sm:$0xff] }
 0x48b   :  { %4490 = vmatprep.subr.mxu1 %v6939_v38  ;;  %v6970_v38 = vld [vmem:[%s15201_s6 + $0x990] sm:$0xff] }
 0x48c   :  { %4491 = vmatpush1.msra.mxu1 %v6938_v40  ;;  %v6876_v40 = vld [vmem:[%s15201_s6 + $0x6a0] sm:$0xff] }
 0x48d   :  { %4492 = vmatprep.subr.mxu1 %v6937_v11  ;;  %v6969_v11 = vld [vmem:[%s15201_s6 + $0x988] sm:$0xff] }
 0x48e   :  { %4493 = vmatpush1.msra.mxu1 %v6936_v46  ;;  %v6875_v46 = vld [vmem:[%s15201_s6 + $0x698] sm:$0xff] }
 0x48f   :  { %4494 = vmatprep.subr.mxu1 %v6935_v25  ;;  %v6968_v25 = vld [vmem:[%s15201_s6 + $0x980] sm:$0xff] }
 0x490   :  { %4495 = vmatpush1.msra.mxu1 %v6934_v41  ;;  %v6874_v41 = vld [vmem:[%s15201_s6 + $0x690] sm:$0xff] }
 0x491   :  { %4496 = vmatprep.subr.mxu1 %v6933_v29  ;;  %v6967_v29 = vld [vmem:[%s15201_s6 + $0x978] sm:$0xff] }
 0x492   :  { %4497 = vmatpush1.msra.mxu1 %v6932_v20  ;;  %v6873_v20 = vld [vmem:[%s15201_s6 + $0x688] sm:$0xff] }
 0x493   :  { %4498 = vmatprep.subr.mxu1 %v6931_v1  ;;  %v6966_v1 = vld [vmem:[%s15201_s6 + $0x970] sm:$0xff] }
 0x494   :  { %4499 = vmatpush1.msra.mxu1 %v6930_v2  ;;  %v6872_v2 = vld [vmem:[%s15201_s6 + $0x680] sm:$0xff] }
 0x495   :  { %4500 = vmatprep.subr.mxu1 %v6929_v22  ;;  %v6965_v22 = vld [vmem:[%s15201_s6 + $0x968] sm:$0xff] }
 0x496   :  { %4501 = vmatpush1.msra.mxu1 %v6928_v52  ;;  %v6871_v52 = vld [vmem:[%s15201_s6 + $0x678] sm:$0xff] }
 0x497   :  { %v8760_v45 = vpop.eup %8759  ;;  %4502 = vmatprep.subr.mxu1 %v6991_v55  ;;  %v6964_v55 = vld [vmem:[%s15201_s6 + $0x960] sm:$0xff] }
 0x498   :  { %4503 = vmatpush2.msra.mxu1 %v6990_v24  ;;  %v6862_v0 = vadd.f32 -1.0, %v8760_v45  ;;  %v6870_v24 = vld [vmem:[%s15201_s6 + $0x670] sm:$0xff]  ;;  %v6869_v45 = vld [vmem:[%s15201_s6 + $0x668] sm:$0xff] }
 0x499   :  { %4504 = vmatprep.subr.mxu1 %v6989_v44  ;;  %v6963_v44 = vld [vmem:[%s15201_s6 + $0x958] sm:$0xff] }
 0x49a   :  { %4505 = vmatpush2.msra.mxu1 %v6988_v18  ;;  %v12740_v5 = vsel %vm3675_vm14, %v3666_v51, %v6862_v0  ;;  %v6880_v51 = vld [vmem:[%s15201_s6 + $0x6c0] sm:$0xff]  ;;  %v6962_v18 = vld [vmem:[%s15201_s6 + $0x950] sm:$0xff] }
 0x49b   :  { %6863 = vmatmul.mubr.msk.f32.vlgmr.msra.gmra.mxu0 %vm2269_vm6, %v12740_v5  ;;  %4506 = vmatprep.subr.mxu1 %v6987_v7  ;;  %v6868_v0 = vld [vmem:[%s15201_s6 + $0x660] sm:$0xff]  ;;  %v6961_v7 = vld [vmem:[%s15201_s6 + $0x948] sm:$0xff] }
 0x49c   :  { %4400 = vmatpush1.msra.mxu0 %v6894_v21  ;;  %4463 = vmatprep.mubr.f32.mxu0 %v12148_v23  ;;  %v6867_v21 = vld [vmem:[%s15201_s6 + $0x658] sm:$0xff] }
 0x49d   :  { %4401 = vmatprep.subr.mxu0 %v6893_v33  ;;  %4507 = vmatpush2.msra.mxu1 %v6986_v48  ;;  %v6960_v33 = vld [vmem:[%s15201_s6 + $0x940] sm:$0xff]  ;;  %v6866_v48 = vld [vmem:[%s15201_s6 + $0x650] sm:$0xff] }
 0x49e   :  { %4402 = vmatpush1.msra.mxu0 %v6892_v57  ;;  %4508 = vmatprep.subr.mxu1 %v6985_v4  ;;  %v7096_v57 = vld [vmem:[%s15201_s6 + $0xd78] sm:$0xff]  ;;  %v6865_v4 = vld [vmem:[%s15201_s6 + $0x648] sm:$0xff] }
 0x49f   :  { %4403 = vmatprep.subr.mxu0 %v6891_v19  ;;  %4509 = vmatpush2.msra.mxu1 %v6984_v54  ;;  %v7095_v19 = vld [vmem:[%s15201_s6 + $0xd70] sm:$0xff]  ;;  %v6864_v54 = vld [vmem:[%s15201_s6 + $0x640] sm:$0xff] }
 0x4a0   :  { %4404 = vmatpush1.msra.mxu0 %v6890_v14  ;;  %4510 = vmatprep.subr.mxu1 %v6983_v35  ;;  %v7094_v14 = vld [vmem:[%s15201_s6 + $0xd68] sm:$0xff]  ;;  %v6927_v35 = vld [vmem:[%s15201_s6 + $0x838] sm:$0xff] }
 0x4a1   :  { %4405 = vmatprep.subr.mxu0 %v6889_v16  ;;  %4511 = vmatpush2.msra.mxu1 %v6982_v6  ;;  %v7093_v16 = vld [vmem:[%s15201_s6 + $0xd60] sm:$0xff]  ;;  %v6926_v6 = vld [vmem:[%s15201_s6 + $0x830] sm:$0xff] }
 0x4a2   :  { %4406 = vmatpush1.msra.mxu0 %v6888_v3  ;;  %4512 = vmatprep.subr.mxu1 %v6981_v32  ;;  %v7092_v3 = vld [vmem:[%s15201_s6 + $0xd58] sm:$0xff]  ;;  %v6925_v32 = vld [vmem:[%s15201_s6 + $0x828] sm:$0xff] }
 0x4a3   :  { %4407 = vmatprep.subr.mxu0 %v6887_v17  ;;  %4513 = vmatpush2.msra.mxu1 %v6980_v39  ;;  %v7091_v17 = vld [vmem:[%s15201_s6 + $0xd50] sm:$0xff]  ;;  %v6924_v39 = vld [vmem:[%s15201_s6 + $0x820] sm:$0xff] }
 0x4a4   :  { %4408 = vmatpush1.msra.mxu0 %v6886_v9  ;;  %4514 = vmatprep.subr.mxu1 %v6979_v28  ;;  %v7090_v9 = vld [vmem:[%s15201_s6 + $0xd48] sm:$0xff]  ;;  %v6923_v28 = vld [vmem:[%s15201_s6 + $0x818] sm:$0xff] }
 0x4a5   :  { %4409 = vmatprep.subr.mxu0 %v6885_v37  ;;  %4515 = vmatpush2.msra.mxu1 %v6978_v26  ;;  %v7089_v37 = vld [vmem:[%s15201_s6 + $0xd40] sm:$0xff]  ;;  %v6922_v26 = vld [vmem:[%s15201_s6 + $0x810] sm:$0xff] }
 0x4a6   :  { %4410 = vmatpush1.msra.mxu0 %v6884_v56  ;;  %4516 = vmatprep.subr.mxu1 %v6977_v50  ;;  %v7088_v56 = vld [vmem:[%s15201_s6 + $0xd38] sm:$0xff]  ;;  %v6921_v50 = vld [vmem:[%s15201_s6 + $0x808] sm:$0xff] }
 0x4a7   :  { %4411 = vmatprep.subr.mxu0 %v6883_v8  ;;  %4517 = vmatpush2.msra.mxu1 %v6976_v12  ;;  %v7087_v8 = vld [vmem:[%s15201_s6 + $0xd30] sm:$0xff]  ;;  %v6920_v12 = vld [vmem:[%s15201_s6 + $0x800] sm:$0xff] }
 0x4a8   :  { %4412 = vmatpush1.msra.mxu0 %v6882_v13  ;;  %4518 = vmatprep.subr.mxu1 %v6975_v47  ;;  %v7086_v13 = vld [vmem:[%s15201_s6 + $0xd28] sm:$0xff]  ;;  %v6919_v47 = vld [vmem:[%s15201_s6 + $0x7f8] sm:$0xff] }
 0x4a9   :  { %4413 = vmatprep.subr.mxu0 %v6881_v10  ;;  %4519 = vmatpush2.msra.mxu1 %v6974_v30  ;;  %v7085_v10 = vld [vmem:[%s15201_s6 + $0xd20] sm:$0xff]  ;;  %v6918_v30 = vld [vmem:[%s15201_s6 + $0x7f0] sm:$0xff] }
 0x4aa   :  { %4414 = vmatpush1.msra.mxu0 %v6880_v51  ;;  %4520 = vmatprep.subr.mxu1 %v6973_v36  ;;  %v7084_v51 = vld [vmem:[%s15201_s6 + $0xd18] sm:$0xff]  ;;  %v6917_v36 = vld [vmem:[%s15201_s6 + $0x7e8] sm:$0xff] }
 0x4ab   :  { %4415 = vmatprep.subr.mxu0 %v6879_v43  ;;  %4521 = vmatpush2.msra.mxu1 %v6972_v27  ;;  %v7083_v43 = vld [vmem:[%s15201_s6 + $0xd10] sm:$0xff]  ;;  %v6916_v27 = vld [vmem:[%s15201_s6 + $0x7e0] sm:$0xff] }
 0x4ac   :  { %4416 = vmatpush1.msra.mxu0 %v6878_v61  ;;  %4522 = vmatprep.subr.mxu1 %v6971_v49  ;;  %v7082_v61 = vld [vmem:[%s15201_s6 + $0xd08] sm:$0xff]  ;;  %v6915_v49 = vld [vmem:[%s15201_s6 + $0x7d8] sm:$0xff] }
 0x4ad   :  { %4417 = vmatprep.subr.mxu0 %v6877_v59  ;;  %4523 = vmatpush2.msra.mxu1 %v6970_v38  ;;  %v7081_v59 = vld [vmem:[%s15201_s6 + $0xd00] sm:$0xff]  ;;  %v6914_v38 = vld [vmem:[%s15201_s6 + $0x7d0] sm:$0xff] }
 0x4ae   :  { %4418 = vmatpush1.msra.mxu0 %v6876_v40  ;;  %4524 = vmatprep.subr.mxu1 %v6969_v11  ;;  %v7080_v40 = vld [vmem:[%s15201_s6 + $0xcf8] sm:$0xff]  ;;  %v6913_v11 = vld [vmem:[%s15201_s6 + $0x7c8] sm:$0xff] }
 0x4af   :  { %4419 = vmatprep.subr.mxu0 %v6875_v46  ;;  %4525 = vmatpush2.msra.mxu1 %v6968_v25  ;;  %v7079_v46 = vld [vmem:[%s15201_s6 + $0xcf0] sm:$0xff]  ;;  %v6912_v25 = vld [vmem:[%s15201_s6 + $0x7c0] sm:$0xff] }
 0x4b0   :  { %4420 = vmatpush1.msra.mxu0 %v6874_v41  ;;  %4526 = vmatprep.subr.mxu1 %v6967_v29  ;;  %v7078_v41 = vld [vmem:[%s15201_s6 + $0xce8] sm:$0xff]  ;;  %v6911_v29 = vld [vmem:[%s15201_s6 + $0x7b8] sm:$0xff] }
 0x4b1   :  { %4421 = vmatprep.subr.mxu0 %v6873_v20  ;;  %4527 = vmatpush2.msra.mxu1 %v6966_v1  ;;  %v7077_v20 = vld [vmem:[%s15201_s6 + $0xce0] sm:$0xff]  ;;  %v6910_v1 = vld [vmem:[%s15201_s6 + $0x7b0] sm:$0xff] }
 0x4b2   :  { %4422 = vmatpush1.msra.mxu0 %v6872_v2  ;;  %4528 = vmatprep.subr.mxu1 %v6965_v22  ;;  %v7076_v2 = vld [vmem:[%s15201_s6 + $0xcd8] sm:$0xff]  ;;  %v6909_v22 = vld [vmem:[%s15201_s6 + $0x7a8] sm:$0xff] }
 0x4b3   :  { %4423 = vmatprep.subr.mxu0 %v6871_v52  ;;  %4529 = vmatpush2.msra.mxu1 %v6964_v55  ;;  %v7075_v52 = vld [vmem:[%s15201_s6 + $0xcd0] sm:$0xff]  ;;  %v6908_v55 = vld [vmem:[%s15201_s6 + $0x7a0] sm:$0xff] }
 0x4b4   :  { %4424 = vmatpush1.msra.mxu0 %v6870_v24  ;;  %4530 = vmatprep.subr.mxu1 %v6963_v44  ;;  %v7074_v24 = vld [vmem:[%s15201_s6 + $0xcc8] sm:$0xff]  ;;  %v6907_v44 = vld [vmem:[%s15201_s6 + $0x798] sm:$0xff] }
 0x4b5   :  { %4425 = vmatprep.subr.mxu0 %v6869_v45  ;;  %4531 = vmatpush2.msra.mxu1 %v6962_v18  ;;  %v7073_v45 = vld [vmem:[%s15201_s6 + $0xcc0] sm:$0xff]  ;;  %v6906_v18 = vld [vmem:[%s15201_s6 + $0x790] sm:$0xff] }
 0x4b6   :  { %4426 = vmatpush1.msra.mxu0 %v6868_v0  ;;  %4532 = vmatprep.subr.mxu1 %v6961_v7  ;;  %v7072_v0 = vld [vmem:[%s15201_s6 + $0xcb8] sm:$0xff]  ;;  %v6905_v7 = vld [vmem:[%s15201_s6 + $0x788] sm:$0xff] }
 0x4b7   :  { %4427 = vmatprep.subr.mxu0 %v6867_v21  ;;  %4533 = vmatpush2.msra.mxu1 %v6960_v33  ;;  %v7071_v21 = vld [vmem:[%s15201_s6 + $0xcb0] sm:$0xff]  ;;  %v6904_v33 = vld [vmem:[%s15201_s6 + $0x780] sm:$0xff] }
 0x4b8   :  { %4428 = vmatpush1.msra.mxu0 %v6866_v48  ;;  %4535 = vmatmul.mubr.f32.vlgmr.msra.gmra.mxu1 %v12514_v58  ;;  %v7070_v48 = vld [vmem:[%s15201_s6 + $0xca8] sm:$0xff] }
 0x4b9   :  { %4886 = vmatprep.subr.mxu1 %v7096_v57  ;;  %4429 = vmatprep.subr.mxu0 %v6865_v4  ;;  %v6903_v57 = vld [vmem:[%s15201_s6 + $0x778] sm:$0xff]  ;;  %v7069_v4 = vld [vmem:[%s15201_s6 + $0xca0] sm:$0xff] }
 0x4ba   :  { %4887 = vmatpush1.msra.mxu1 %v7095_v19  ;;  %4950 = vmatprep.mubr.f32.mxu1 %v12148_v23  ;;  %v6902_v19 = vld [vmem:[%s15201_s6 + $0x770] sm:$0xff] }
 0x4bb   :  { %4430 = vmatpush1.msra.mxu0 %v6864_v54  ;;  %4888 = vmatprep.subr.mxu1 %v7094_v14  ;;  %v7068_v54 = vld [vmem:[%s15201_s6 + $0xc98] sm:$0xff]  ;;  %v6901_v14 = vld [vmem:[%s15201_s6 + $0x768] sm:$0xff] }
 0x4bc   :  { %4431 = vmatprep.subr.mxu0 %v6927_v35  ;;  %4889 = vmatpush1.msra.mxu1 %v7093_v16  ;;  %v7067_v35 = vld [vmem:[%s15201_s6 + $0xc90] sm:$0xff]  ;;  %v6900_v16 = vld [vmem:[%s15201_s6 + $0x760] sm:$0xff] }
 0x4bd   :  { %4432 = vmatpush2.msra.mxu0 %v6926_v6  ;;  %4890 = vmatprep.subr.mxu1 %v7092_v3  ;;  %v7066_v6 = vld [vmem:[%s15201_s6 + $0xc88] sm:$0xff]  ;;  %v6899_v3 = vld [vmem:[%s15201_s6 + $0x758] sm:$0xff] }
 0x4be   :  { %4433 = vmatprep.subr.mxu0 %v6925_v32  ;;  %4891 = vmatpush1.msra.mxu1 %v7091_v17  ;;  %v7065_v32 = vld [vmem:[%s15201_s6 + $0xc80] sm:$0xff]  ;;  %v6898_v17 = vld [vmem:[%s15201_s6 + $0x750] sm:$0xff] }
 0x4bf   :  { %4434 = vmatpush2.msra.mxu0 %v6924_v39  ;;  %4892 = vmatprep.subr.mxu1 %v7090_v9  ;;  %v7128_v39 = vld [vmem:[%s15201_s6 + $0xe78] sm:$0xff]  ;;  %v6897_v9 = vld [vmem:[%s15201_s6 + $0x748] sm:$0xff] }
 0x4c0   :  { %4435 = vmatprep.subr.mxu0 %v6923_v28  ;;  %4893 = vmatpush1.msra.mxu1 %v7089_v37  ;;  %v7127_v28 = vld [vmem:[%s15201_s6 + $0xe70] sm:$0xff]  ;;  %v6896_v37 = vld [vmem:[%s15201_s6 + $0x740] sm:$0xff] }
 0x4c1   :  { %4436 = vmatpush2.msra.mxu0 %v6922_v26  ;;  %4894 = vmatprep.subr.mxu1 %v7088_v56  ;;  %v7126_v26 = vld [vmem:[%s15201_s6 + $0xe68] sm:$0xff]  ;;  %v7023_v56 = vld [vmem:[%s15201_s6 + $0xb38] sm:$0xff] }
 0x4c2   :  { %4437 = vmatprep.subr.mxu0 %v6921_v50  ;;  %4895 = vmatpush1.msra.mxu1 %v7087_v8  ;;  %v7125_v50 = vld [vmem:[%s15201_s6 + $0xe60] sm:$0xff]  ;;  %v7022_v8 = vld [vmem:[%s15201_s6 + $0xb30] sm:$0xff] }
 0x4c3   :  { %4438 = vmatpush2.msra.mxu0 %v6920_v12  ;;  %4896 = vmatprep.subr.mxu1 %v7086_v13  ;;  %v7124_v12 = vld [vmem:[%s15201_s6 + $0xe58] sm:$0xff]  ;;  %v7021_v13 = vld [vmem:[%s15201_s6 + $0xb28] sm:$0xff] }
 0x4c4   :  { %4439 = vmatprep.subr.mxu0 %v6919_v47  ;;  %4897 = vmatpush1.msra.mxu1 %v7085_v10  ;;  %v7123_v47 = vld [vmem:[%s15201_s6 + $0xe50] sm:$0xff]  ;;  %v7020_v10 = vld [vmem:[%s15201_s6 + $0xb20] sm:$0xff] }
 0x4c5   :  { %4440 = vmatpush2.msra.mxu0 %v6918_v30  ;;  %4898 = vmatprep.subr.mxu1 %v7084_v51  ;;  %v7122_v30 = vld [vmem:[%s15201_s6 + $0xe48] sm:$0xff]  ;;  %v7019_v51 = vld [vmem:[%s15201_s6 + $0xb18] sm:$0xff] }
 0x4c6   :  { %4441 = vmatprep.subr.mxu0 %v6917_v36  ;;  %4899 = vmatpush1.msra.mxu1 %v7083_v43  ;;  %v7121_v36 = vld [vmem:[%s15201_s6 + $0xe40] sm:$0xff]  ;;  %v7018_v43 = vld [vmem:[%s15201_s6 + $0xb10] sm:$0xff] }
 0x4c7   :  { %4442 = vmatpush2.msra.mxu0 %v6916_v27  ;;  %4900 = vmatprep.subr.mxu1 %v7082_v61  ;;  %v7120_v27 = vld [vmem:[%s15201_s6 + $0xe38] sm:$0xff]  ;;  %v7017_v61 = vld [vmem:[%s15201_s6 + $0xb08] sm:$0xff] }
 0x4c8   :  { %4443 = vmatprep.subr.mxu0 %v6915_v49  ;;  %4901 = vmatpush1.msra.mxu1 %v7081_v59  ;;  %v7119_v49 = vld [vmem:[%s15201_s6 + $0xe30] sm:$0xff]  ;;  %v7016_v59 = vld [vmem:[%s15201_s6 + $0xb00] sm:$0xff] }
 0x4c9   :  { %4444 = vmatpush2.msra.mxu0 %v6914_v38  ;;  %4902 = vmatprep.subr.mxu1 %v7080_v40  ;;  %v7118_v38 = vld [vmem:[%s15201_s6 + $0xe28] sm:$0xff]  ;;  %v7015_v40 = vld [vmem:[%s15201_s6 + $0xaf8] sm:$0xff] }
 0x4ca   :  { %4445 = vmatprep.subr.mxu0 %v6913_v11  ;;  %4903 = vmatpush1.msra.mxu1 %v7079_v46  ;;  %v7117_v11 = vld [vmem:[%s15201_s6 + $0xe20] sm:$0xff]  ;;  %v7014_v46 = vld [vmem:[%s15201_s6 + $0xaf0] sm:$0xff] }
 0x4cb   :  { %4446 = vmatpush2.msra.mxu0 %v6912_v25  ;;  %4904 = vmatprep.subr.mxu1 %v7078_v41  ;;  %v7116_v25 = vld [vmem:[%s15201_s6 + $0xe18] sm:$0xff]  ;;  %v7013_v41 = vld [vmem:[%s15201_s6 + $0xae8] sm:$0xff] }
 0x4cc   :  { %4447 = vmatprep.subr.mxu0 %v6911_v29  ;;  %4905 = vmatpush1.msra.mxu1 %v7077_v20  ;;  %v7115_v29 = vld [vmem:[%s15201_s6 + $0xe10] sm:$0xff]  ;;  %v7012_v20 = vld [vmem:[%s15201_s6 + $0xae0] sm:$0xff] }
 0x4cd   :  { %4448 = vmatpush2.msra.mxu0 %v6910_v1  ;;  %4906 = vmatprep.subr.mxu1 %v7076_v2  ;;  %v7114_v1 = vld [vmem:[%s15201_s6 + $0xe08] sm:$0xff]  ;;  %v7011_v2 = vld [vmem:[%s15201_s6 + $0xad8] sm:$0xff] }
 0x4ce   :  { %4449 = vmatprep.subr.mxu0 %v6909_v22  ;;  %4907 = vmatpush1.msra.mxu1 %v7075_v52  ;;  %v7113_v22 = vld [vmem:[%s15201_s6 + $0xe00] sm:$0xff]  ;;  %v7010_v52 = vld [vmem:[%s15201_s6 + $0xad0] sm:$0xff] }
 0x4cf   :  { %4450 = vmatpush2.msra.mxu0 %v6908_v55  ;;  %4908 = vmatprep.subr.mxu1 %v7074_v24  ;;  %v7112_v55 = vld [vmem:[%s15201_s6 + $0xdf8] sm:$0xff]  ;;  %v7009_v24 = vld [vmem:[%s15201_s6 + $0xac8] sm:$0xff] }
 0x4d0   :  { %4451 = vmatprep.subr.mxu0 %v6907_v44  ;;  %4909 = vmatpush1.msra.mxu1 %v7073_v45  ;;  %v7111_v44 = vld [vmem:[%s15201_s6 + $0xdf0] sm:$0xff]  ;;  %v7008_v45 = vld [vmem:[%s15201_s6 + $0xac0] sm:$0xff] }
 0x4d1   :  { %4452 = vmatpush2.msra.mxu0 %v6906_v18  ;;  %4910 = vmatprep.subr.mxu1 %v7072_v0  ;;  %v7110_v18 = vld [vmem:[%s15201_s6 + $0xde8] sm:$0xff]  ;;  %v7007_v0 = vld [vmem:[%s15201_s6 + $0xab8] sm:$0xff] }
 0x4d2   :  { %4453 = vmatprep.subr.mxu0 %v6905_v7  ;;  %4911 = vmatpush1.msra.mxu1 %v7071_v21  ;;  %v7109_v7 = vld [vmem:[%s15201_s6 + $0xde0] sm:$0xff]  ;;  %v7006_v21 = vld [vmem:[%s15201_s6 + $0xab0] sm:$0xff] }
 0x4d3   :  { %4454 = vmatpush2.msra.mxu0 %v6904_v33  ;;  %4912 = vmatprep.subr.mxu1 %v7070_v48  ;;  %v7108_v33 = vld [vmem:[%s15201_s6 + $0xdd8] sm:$0xff]  ;;  %v7005_v48 = vld [vmem:[%s15201_s6 + $0xaa8] sm:$0xff] }
 0x4d4   :  { %4455 = vmatprep.subr.mxu0 %v6903_v57  ;;  %4913 = vmatpush1.msra.mxu1 %v7069_v4  ;;  %v7107_v57 = vld [vmem:[%s15201_s6 + $0xdd0] sm:$0xff]  ;;  %v7004_v4 = vld [vmem:[%s15201_s6 + $0xaa0] sm:$0xff] }
 0x4d5   :  { %4456 = vmatpush2.msra.mxu0 %v6902_v19  ;;  %4914 = vmatprep.subr.mxu1 %v7068_v54  ;;  %v7106_v19 = vld [vmem:[%s15201_s6 + $0xdc8] sm:$0xff]  ;;  %v7003_v54 = vld [vmem:[%s15201_s6 + $0xa98] sm:$0xff] }
 0x4d6   :  { %4457 = vmatprep.subr.mxu0 %v6901_v14  ;;  %4915 = vmatpush1.msra.mxu1 %v7067_v35  ;;  %v7105_v14 = vld [vmem:[%s15201_s6 + $0xdc0] sm:$0xff]  ;;  %v7002_v35 = vld [vmem:[%s15201_s6 + $0xa90] sm:$0xff] }
 0x4d7   :  { %4458 = vmatpush2.msra.mxu0 %v6900_v16  ;;  %4916 = vmatprep.subr.mxu1 %v7066_v6  ;;  %v7104_v16 = vld [vmem:[%s15201_s6 + $0xdb8] sm:$0xff]  ;;  %v7001_v6 = vld [vmem:[%s15201_s6 + $0xa88] sm:$0xff] }
 0x4d8   :  { %4459 = vmatprep.subr.mxu0 %v6899_v3  ;;  %4917 = vmatpush1.msra.mxu1 %v7065_v32  ;;  %v7103_v3 = vld [vmem:[%s15201_s6 + $0xdb0] sm:$0xff]  ;;  %v7000_v32 = vld [vmem:[%s15201_s6 + $0xa80] sm:$0xff] }
 0x4d9   :  { %4460 = vmatpush2.msra.mxu0 %v6898_v17  ;;  %4918 = vmatprep.subr.mxu1 %v7128_v39  ;;  %v7102_v17 = vld [vmem:[%s15201_s6 + $0xda8] sm:$0xff]  ;;  %v6999_v39 = vld [vmem:[%s15201_s6 + $0xa78] sm:$0xff] }
 0x4da   :  { %4461 = vmatprep.subr.mxu0 %v6897_v9  ;;  %4919 = vmatpush2.msra.mxu1 %v7127_v28  ;;  %v7101_v9 = vld [vmem:[%s15201_s6 + $0xda0] sm:$0xff]  ;;  %v6998_v28 = vld [vmem:[%s15201_s6 + $0xa70] sm:$0xff] }
 0x4db   :  { %4462 = vmatpush2.msra.mxu0 %v6896_v37  ;;  %4920 = vmatprep.subr.mxu1 %v7126_v26  ;;  %v7100_v37 = vld [vmem:[%s15201_s6 + $0xd98] sm:$0xff]  ;;  %v6997_v26 = vld [vmem:[%s15201_s6 + $0xa68] sm:$0xff] }
 0x4dc   :  { %4464 = vmatmul.mubr.f32.vlgmr.msra.gmra.mxu0 %v12380_v31  ;;  %4541 = vmatprep.subr.mxu0 %v7023_v56  ;;  %v7099_v56 = vld [vmem:[%s15201_s6 + $0xd90] sm:$0xff] }
 0x4dd   :  { %4921 = vmatpush2.msra.mxu1 %v7125_v50  ;;  %4542 = vmatpush1.msra.mxu0 %v7022_v8  ;;  %v6996_v50 = vld [vmem:[%s15201_s6 + $0xa60] sm:$0xff]  ;;  %v7098_v8 = vld [vmem:[%s15201_s6 + $0xd88] sm:$0xff] }
 0x4de   :  { %4605 = vmatprep.mubr.f32.mxu0 %v12618_v42  ;;  %4922 = vmatprep.subr.mxu1 %v7124_v12  ;;  %v6995_v12 = vld [vmem:[%s15201_s6 + $0xa58] sm:$0xff] }
 0x4df   :  { %4543 = vmatprep.subr.mxu0 %v7021_v13  ;;  %4923 = vmatpush2.msra.mxu1 %v7123_v47  ;;  %v7097_v13 = vld [vmem:[%s15201_s6 + $0xd80] sm:$0xff]  ;;  %v6994_v47 = vld [vmem:[%s15201_s6 + $0xa50] sm:$0xff] }
 0x4e0   :  { %4544 = vmatpush1.msra.mxu0 %v7020_v10  ;;  %4924 = vmatprep.subr.mxu1 %v7122_v30  ;;  %v7224_v10 = vld [vmem:[%s15201_s6 + $0x1178] sm:$0xff]  ;;  %v6993_v30 = vld [vmem:[%s15201_s6 + $0xa48] sm:$0xff] }
 0x4e1   :  { %4545 = vmatprep.subr.mxu0 %v7019_v51  ;;  %4925 = vmatpush2.msra.mxu1 %v7121_v36  ;;  %v7223_v51 = vld [vmem:[%s15201_s6 + $0x1170] sm:$0xff]  ;;  %v6992_v36 = vld [vmem:[%s15201_s6 + $0xa40] sm:$0xff] }
 0x4e2   :  { %4546 = vmatpush1.msra.mxu0 %v7018_v43  ;;  %4926 = vmatprep.subr.mxu1 %v7120_v27  ;;  %v7222_v43 = vld [vmem:[%s15201_s6 + $0x1168] sm:$0xff]  ;;  %v7055_v27 = vld [vmem:[%s15201_s6 + $0xc38] sm:$0xff] }
 0x4e3   :  { %4547 = vmatprep.subr.mxu0 %v7017_v61  ;;  %4927 = vmatpush2.msra.mxu1 %v7119_v49  ;;  %v7221_v61 = vld [vmem:[%s15201_s6 + $0x1160] sm:$0xff]  ;;  %v7054_v49 = vld [vmem:[%s15201_s6 + $0xc30] sm:$0xff] }
 0x4e4   :  { %4548 = vmatpush1.msra.mxu0 %v7016_v59  ;;  %4928 = vmatprep.subr.mxu1 %v7118_v38  ;;  %v7220_v59 = vld [vmem:[%s15201_s6 + $0x1158] sm:$0xff]  ;;  %v7053_v38 = vld [vmem:[%s15201_s6 + $0xc28] sm:$0xff] }
 0x4e5   :  { %4549 = vmatprep.subr.mxu0 %v7015_v40  ;;  %4929 = vmatpush2.msra.mxu1 %v7117_v11  ;;  %v7219_v40 = vld [vmem:[%s15201_s6 + $0x1150] sm:$0xff]  ;;  %v7052_v11 = vld [vmem:[%s15201_s6 + $0xc20] sm:$0xff] }
 0x4e6   :  { %4550 = vmatpush1.msra.mxu0 %v7014_v46  ;;  %4930 = vmatprep.subr.mxu1 %v7116_v25  ;;  %v7218_v46 = vld [vmem:[%s15201_s6 + $0x1148] sm:$0xff]  ;;  %v7051_v25 = vld [vmem:[%s15201_s6 + $0xc18] sm:$0xff] }
 0x4e7   :  { %4551 = vmatprep.subr.mxu0 %v7013_v41  ;;  %4931 = vmatpush2.msra.mxu1 %v7115_v29  ;;  %v7217_v41 = vld [vmem:[%s15201_s6 + $0x1140] sm:$0xff]  ;;  %v7050_v29 = vld [vmem:[%s15201_s6 + $0xc10] sm:$0xff] }
 0x4e8   :  { %4552 = vmatpush1.msra.mxu0 %v7012_v20  ;;  %4932 = vmatprep.subr.mxu1 %v7114_v1  ;;  %v7216_v20 = vld [vmem:[%s15201_s6 + $0x1138] sm:$0xff]  ;;  %v7049_v1 = vld [vmem:[%s15201_s6 + $0xc08] sm:$0xff] }
 0x4e9   :  { %4553 = vmatprep.subr.mxu0 %v7011_v2  ;;  %4933 = vmatpush2.msra.mxu1 %v7113_v22  ;;  %v7215_v2 = vld [vmem:[%s15201_s6 + $0x1130] sm:$0xff]  ;;  %v7048_v22 = vld [vmem:[%s15201_s6 + $0xc00] sm:$0xff] }
 0x4ea   :  { %4554 = vmatpush1.msra.mxu0 %v7010_v52  ;;  %4934 = vmatprep.subr.mxu1 %v7112_v55  ;;  %v7214_v52 = vld [vmem:[%s15201_s6 + $0x1128] sm:$0xff]  ;;  %v7047_v55 = vld [vmem:[%s15201_s6 + $0xbf8] sm:$0xff] }
 0x4eb   :  { %4555 = vmatprep.subr.mxu0 %v7009_v24  ;;  %4935 = vmatpush2.msra.mxu1 %v7111_v44  ;;  %v7213_v24 = vld [vmem:[%s15201_s6 + $0x1120] sm:$0xff]  ;;  %v7046_v44 = vld [vmem:[%s15201_s6 + $0xbf0] sm:$0xff] }
 0x4ec   :  { %4556 = vmatpush1.msra.mxu0 %v7008_v45  ;;  %4936 = vmatprep.subr.mxu1 %v7110_v18  ;;  %v7212_v45 = vld [vmem:[%s15201_s6 + $0x1118] sm:$0xff]  ;;  %v7045_v18 = vld [vmem:[%s15201_s6 + $0xbe8] sm:$0xff] }
 0x4ed   :  { %4557 = vmatprep.subr.mxu0 %v7007_v0  ;;  %4937 = vmatpush2.msra.mxu1 %v7109_v7  ;;  %v7211_v0 = vld [vmem:[%s15201_s6 + $0x1110] sm:$0xff]  ;;  %v7044_v7 = vld [vmem:[%s15201_s6 + $0xbe0] sm:$0xff] }
 0x4ee   :  { %4558 = vmatpush1.msra.mxu0 %v7006_v21  ;;  %4938 = vmatprep.subr.mxu1 %v7108_v33  ;;  %v7210_v21 = vld [vmem:[%s15201_s6 + $0x1108] sm:$0xff]  ;;  %v7043_v33 = vld [vmem:[%s15201_s6 + $0xbd8] sm:$0xff] }
 0x4ef   :  { %4559 = vmatprep.subr.mxu0 %v7005_v48  ;;  %4939 = vmatpush2.msra.mxu1 %v7107_v57  ;;  %v7209_v48 = vld [vmem:[%s15201_s6 + $0x1100] sm:$0xff]  ;;  %v7042_v57 = vld [vmem:[%s15201_s6 + $0xbd0] sm:$0xff] }
 0x4f0   :  { %4560 = vmatpush1.msra.mxu0 %v7004_v4  ;;  %4940 = vmatprep.subr.mxu1 %v7106_v19  ;;  %v7208_v4 = vld [vmem:[%s15201_s6 + $0x10f8] sm:$0xff]  ;;  %v7041_v19 = vld [vmem:[%s15201_s6 + $0xbc8] sm:$0xff] }
 0x4f1   :  { %4561 = vmatprep.subr.mxu0 %v7003_v54  ;;  %4941 = vmatpush2.msra.mxu1 %v7105_v14  ;;  %v7207_v54 = vld [vmem:[%s15201_s6 + $0x10f0] sm:$0xff]  ;;  %v7040_v14 = vld [vmem:[%s15201_s6 + $0xbc0] sm:$0xff] }
 0x4f2   :  { %4562 = vmatpush1.msra.mxu0 %v7002_v35  ;;  %4942 = vmatprep.subr.mxu1 %v7104_v16  ;;  %v7206_v35 = vld [vmem:[%s15201_s6 + $0x10e8] sm:$0xff]  ;;  %v7039_v16 = vld [vmem:[%s15201_s6 + $0xbb8] sm:$0xff] }
 0x4f3   :  { %4563 = vmatprep.subr.mxu0 %v7001_v6  ;;  %4943 = vmatpush2.msra.mxu1 %v7103_v3  ;;  %v7205_v6 = vld [vmem:[%s15201_s6 + $0x10e0] sm:$0xff]  ;;  %v7038_v3 = vld [vmem:[%s15201_s6 + $0xbb0] sm:$0xff] }
 0x4f4   :  { %4564 = vmatpush1.msra.mxu0 %v7000_v32  ;;  %4944 = vmatprep.subr.mxu1 %v7102_v17  ;;  %v7204_v32 = vld [vmem:[%s15201_s6 + $0x10d8] sm:$0xff]  ;;  %v7037_v17 = vld [vmem:[%s15201_s6 + $0xba8] sm:$0xff] }
 0x4f5   :  { %4565 = vmatprep.subr.mxu0 %v6999_v39  ;;  %4945 = vmatpush2.msra.mxu1 %v7101_v9  ;;  %v7203_v39 = vld [vmem:[%s15201_s6 + $0x10d0] sm:$0xff]  ;;  %v7036_v9 = vld [vmem:[%s15201_s6 + $0xba0] sm:$0xff] }
 0x4f6   :  { %4566 = vmatpush1.msra.mxu0 %v6998_v28  ;;  %4946 = vmatprep.subr.mxu1 %v7100_v37  ;;  %v7202_v28 = vld [vmem:[%s15201_s6 + $0x10c8] sm:$0xff]  ;;  %v7035_v37 = vld [vmem:[%s15201_s6 + $0xb98] sm:$0xff] }
 0x4f7   :  { %4567 = vmatprep.subr.mxu0 %v6997_v26  ;;  %4947 = vmatpush2.msra.mxu1 %v7099_v56  ;;  %v7201_v26 = vld [vmem:[%s15201_s6 + $0x10c0] sm:$0xff]  ;;  %v7034_v56 = vld [vmem:[%s15201_s6 + $0xb90] sm:$0xff] }
 0x4f8   :  { %4568 = vmatpush1.msra.mxu0 %v6996_v50  ;;  %4948 = vmatprep.subr.mxu1 %v7098_v8  ;;  %v7200_v50 = vld [vmem:[%s15201_s6 + $0x10b8] sm:$0xff]  ;;  %v7033_v8 = vld [vmem:[%s15201_s6 + $0xb88] sm:$0xff] }
 0x4f9   :  { %4569 = vmatprep.subr.mxu0 %v6995_v12  ;;  %4949 = vmatpush2.msra.mxu1 %v7097_v13  ;;  %v7199_v12 = vld [vmem:[%s15201_s6 + $0x10b0] sm:$0xff]  ;;  %v7032_v13 = vld [vmem:[%s15201_s6 + $0xb80] sm:$0xff] }
 0x4fa   :  { %4570 = vmatpush1.msra.mxu0 %v6994_v47  ;;  %4951 = vmatmul.mubr.f32.vlgmr.msra.gmra.mxu1 %v12380_v31  ;;  %v7198_v47 = vld [vmem:[%s15201_s6 + $0x10a8] sm:$0xff] }
 0x4fb   :  { %5028 = vmatprep.subr.mxu1 %v7224_v10  ;;  %4571 = vmatprep.subr.mxu0 %v6993_v30  ;;  %v7031_v10 = vld [vmem:[%s15201_s6 + $0xb78] sm:$0xff]  ;;  %v7197_v30 = vld [vmem:[%s15201_s6 + $0x10a0] sm:$0xff] }
 0x4fc   :  { %5029 = vmatpush1.msra.mxu1 %v7223_v51  ;;  %5092 = vmatprep.mubr.f32.mxu1 %v12618_v42  ;;  %v7030_v51 = vld [vmem:[%s15201_s6 + $0xb70] sm:$0xff] }
 0x4fd   :  { %4572 = vmatpush1.msra.mxu0 %v6992_v36  ;;  %5030 = vmatprep.subr.mxu1 %v7222_v43  ;;  %v7196_v36 = vld [vmem:[%s15201_s6 + $0x1098] sm:$0xff]  ;;  %v7029_v43 = vld [vmem:[%s15201_s6 + $0xb68] sm:$0xff] }
 0x4fe   :  { %4573 = vmatprep.subr.mxu0 %v7055_v27  ;;  %5031 = vmatpush1.msra.mxu1 %v7221_v61  ;;  %v7195_v27 = vld [vmem:[%s15201_s6 + $0x1090] sm:$0xff]  ;;  %v7028_v61 = vld [vmem:[%s15201_s6 + $0xb60] sm:$0xff] }
 0x4ff   :  { %4574 = vmatpush2.msra.mxu0 %v7054_v49  ;;  %5032 = vmatprep.subr.mxu1 %v7220_v59  ;;  %v7194_v49 = vld [vmem:[%s15201_s6 + $0x1088] sm:$0xff]  ;;  %v7027_v59 = vld [vmem:[%s15201_s6 + $0xb58] sm:$0xff] }
 0x500   :  { %4575 = vmatprep.subr.mxu0 %v7053_v38  ;;  %5033 = vmatpush1.msra.mxu1 %v7219_v40  ;;  %v7193_v38 = vld [vmem:[%s15201_s6 + $0x1080] sm:$0xff]  ;;  %v7026_v40 = vld [vmem:[%s15201_s6 + $0xb50] sm:$0xff] }
 0x501   :  { %4576 = vmatpush2.msra.mxu0 %v7052_v11  ;;  %5034 = vmatprep.subr.mxu1 %v7218_v46  ;;  %v7256_v11 = vld [vmem:[%s15201_s6 + $0x1278] sm:$0xff]  ;;  %v7025_v46 = vld [vmem:[%s15201_s6 + $0xb48] sm:$0xff] }
 0x502   :  { %4577 = vmatprep.subr.mxu0 %v7051_v25  ;;  %5035 = vmatpush1.msra.mxu1 %v7217_v41  ;;  %v7255_v25 = vld [vmem:[%s15201_s6 + $0x1270] sm:$0xff]  ;;  %v7024_v41 = vld [vmem:[%s15201_s6 + $0xb40] sm:$0xff] }
 0x503   :  { %4578 = vmatpush2.msra.mxu0 %v7050_v29  ;;  %5036 = vmatprep.subr.mxu1 %v7216_v20  ;;  %v7254_v29 = vld [vmem:[%s15201_s6 + $0x1268] sm:$0xff]  ;;  %v7063_v20 = vld [vmem:[%s15201_s6 + $0xc78] sm:$0xff] }
 0x504   :  { %4579 = vmatprep.subr.mxu0 %v7049_v1  ;;  %5037 = vmatpush1.msra.mxu1 %v7215_v2  ;;  %v7253_v1 = vld [vmem:[%s15201_s6 + $0x1260] sm:$0xff]  ;;  %v7062_v2 = vld [vmem:[%s15201_s6 + $0xc70] sm:$0xff] }
 0x505   :  { %4580 = vmatpush2.msra.mxu0 %v7048_v22  ;;  %5038 = vmatprep.subr.mxu1 %v7214_v52  ;;  %v7252_v22 = vld [vmem:[%s15201_s6 + $0x1258] sm:$0xff]  ;;  %v7061_v52 = vld [vmem:[%s15201_s6 + $0xc68] sm:$0xff] }
 0x506   :  { %4581 = vmatprep.subr.mxu0 %v7047_v55  ;;  %5039 = vmatpush1.msra.mxu1 %v7213_v24  ;;  %v7251_v55 = vld [vmem:[%s15201_s6 + $0x1250] sm:$0xff]  ;;  %v7060_v24 = vld [vmem:[%s15201_s6 + $0xc60] sm:$0xff] }
 0x507   :  { %4582 = vmatpush2.msra.mxu0 %v7046_v44  ;;  %5040 = vmatprep.subr.mxu1 %v7212_v45  ;;  %v7250_v44 = vld [vmem:[%s15201_s6 + $0x1248] sm:$0xff]  ;;  %v7059_v45 = vld [vmem:[%s15201_s6 + $0xc58] sm:$0xff] }
 0x508   :  { %4583 = vmatprep.subr.mxu0 %v7045_v18  ;;  %5041 = vmatpush1.msra.mxu1 %v7211_v0  ;;  %v7249_v18 = vld [vmem:[%s15201_s6 + $0x1240] sm:$0xff]  ;;  %v7058_v0 = vld [vmem:[%s15201_s6 + $0xc50] sm:$0xff] }
 0x509   :  { %4584 = vmatpush2.msra.mxu0 %v7044_v7  ;;  %5042 = vmatprep.subr.mxu1 %v7210_v21  ;;  %v7248_v7 = vld [vmem:[%s15201_s6 + $0x1238] sm:$0xff]  ;;  %v7057_v21 = vld [vmem:[%s15201_s6 + $0xc48] sm:$0xff] }
 0x50a   :  { %4585 = vmatprep.subr.mxu0 %v7043_v33  ;;  %5043 = vmatpush1.msra.mxu1 %v7209_v48  ;;  %v7247_v33 = vld [vmem:[%s15201_s6 + $0x1230] sm:$0xff]  ;;  %v7056_v48 = vld [vmem:[%s15201_s6 + $0xc40] sm:$0xff] }
 0x50b   :  { %4586 = vmatpush2.msra.mxu0 %v7042_v57  ;;  %5044 = vmatprep.subr.mxu1 %v7208_v4  ;;  %v7246_v57 = vld [vmem:[%s15201_s6 + $0x1228] sm:$0xff]  ;;  %v7160_v4 = vld [vmem:[%s15201_s6 + $0xf78] sm:$0xff] }
 0x50c   :  { %4587 = vmatprep.subr.mxu0 %v7041_v19  ;;  %5045 = vmatpush1.msra.mxu1 %v7207_v54  ;;  %v7245_v19 = vld [vmem:[%s15201_s6 + $0x1220] sm:$0xff]  ;;  %v7159_v54 = vld [vmem:[%s15201_s6 + $0xf70] sm:$0xff] }
 0x50d   :  { %4588 = vmatpush2.msra.mxu0 %v7040_v14  ;;  %5046 = vmatprep.subr.mxu1 %v7206_v35  ;;  %v7244_v14 = vld [vmem:[%s15201_s6 + $0x1218] sm:$0xff]  ;;  %v7158_v35 = vld [vmem:[%s15201_s6 + $0xf68] sm:$0xff] }
 0x50e   :  { %4589 = vmatprep.subr.mxu0 %v7039_v16  ;;  %5047 = vmatpush1.msra.mxu1 %v7205_v6  ;;  %v7243_v16 = vld [vmem:[%s15201_s6 + $0x1210] sm:$0xff]  ;;  %v7157_v6 = vld [vmem:[%s15201_s6 + $0xf60] sm:$0xff] }
 0x50f   :  { %4590 = vmatpush2.msra.mxu0 %v7038_v3  ;;  %5048 = vmatprep.subr.mxu1 %v7204_v32  ;;  %v7242_v3 = vld [vmem:[%s15201_s6 + $0x1208] sm:$0xff]  ;;  %v7156_v32 = vld [vmem:[%s15201_s6 + $0xf58] sm:$0xff] }
 0x510   :  { %4591 = vmatprep.subr.mxu0 %v7037_v17  ;;  %5049 = vmatpush1.msra.mxu1 %v7203_v39  ;;  %v7241_v17 = vld [vmem:[%s15201_s6 + $0x1200] sm:$0xff]  ;;  %v7155_v39 = vld [vmem:[%s15201_s6 + $0xf50] sm:$0xff] }
 0x511   :  { %4592 = vmatpush2.msra.mxu0 %v7036_v9  ;;  %5050 = vmatprep.subr.mxu1 %v7202_v28  ;;  %v7240_v9 = vld [vmem:[%s15201_s6 + $0x11f8] sm:$0xff]  ;;  %v7154_v28 = vld [vmem:[%s15201_s6 + $0xf48] sm:$0xff] }
 0x512   :  { %4593 = vmatprep.subr.mxu0 %v7035_v37  ;;  %5051 = vmatpush1.msra.mxu1 %v7201_v26  ;;  %v7239_v37 = vld [vmem:[%s15201_s6 + $0x11f0] sm:$0xff]  ;;  %v7153_v26 = vld [vmem:[%s15201_s6 + $0xf40] sm:$0xff] }
 0x513   :  { %4594 = vmatpush2.msra.mxu0 %v7034_v56  ;;  %5052 = vmatprep.subr.mxu1 %v7200_v50  ;;  %v7238_v56 = vld [vmem:[%s15201_s6 + $0x11e8] sm:$0xff]  ;;  %v7152_v50 = vld [vmem:[%s15201_s6 + $0xf38] sm:$0xff] }
 0x514   :  { %4595 = vmatprep.subr.mxu0 %v7033_v8  ;;  %5053 = vmatpush1.msra.mxu1 %v7199_v12  ;;  %v7237_v8 = vld [vmem:[%s15201_s6 + $0x11e0] sm:$0xff]  ;;  %v7151_v12 = vld [vmem:[%s15201_s6 + $0xf30] sm:$0xff] }
 0x515   :  { %4596 = vmatpush2.msra.mxu0 %v7032_v13  ;;  %5054 = vmatprep.subr.mxu1 %v7198_v47  ;;  %v7236_v13 = vld [vmem:[%s15201_s6 + $0x11d8] sm:$0xff]  ;;  %v7150_v47 = vld [vmem:[%s15201_s6 + $0xf28] sm:$0xff] }
 0x516   :  { %4597 = vmatprep.subr.mxu0 %v7031_v10  ;;  %5055 = vmatpush1.msra.mxu1 %v7197_v30  ;;  %v7235_v10 = vld [vmem:[%s15201_s6 + $0x11d0] sm:$0xff]  ;;  %v7149_v30 = vld [vmem:[%s15201_s6 + $0xf20] sm:$0xff] }
 0x517   :  { %4598 = vmatpush2.msra.mxu0 %v7030_v51  ;;  %5056 = vmatprep.subr.mxu1 %v7196_v36  ;;  %v7234_v51 = vld [vmem:[%s15201_s6 + $0x11c8] sm:$0xff]  ;;  %v7148_v36 = vld [vmem:[%s15201_s6 + $0xf18] sm:$0xff] }
 0x518   :  { %4599 = vmatprep.subr.mxu0 %v7029_v43  ;;  %5057 = vmatpush1.msra.mxu1 %v7195_v27  ;;  %v7233_v43 = vld [vmem:[%s15201_s6 + $0x11c0] sm:$0xff]  ;;  %v7147_v27 = vld [vmem:[%s15201_s6 + $0xf10] sm:$0xff] }
 0x519   :  { %4600 = vmatpush2.msra.mxu0 %v7028_v61  ;;  %5058 = vmatprep.subr.mxu1 %v7194_v49  ;;  %v7232_v61 = vld [vmem:[%s15201_s6 + $0x11b8] sm:$0xff]  ;;  %v7146_v49 = vld [vmem:[%s15201_s6 + $0xf08] sm:$0xff] }
 0x51a   :  { %4601 = vmatprep.subr.mxu0 %v7027_v59  ;;  %5059 = vmatpush1.msra.mxu1 %v7193_v38  ;;  %v7231_v59 = vld [vmem:[%s15201_s6 + $0x11b0] sm:$0xff]  ;;  %v7145_v38 = vld [vmem:[%s15201_s6 + $0xf00] sm:$0xff] }
 0x51b   :  { %4602 = vmatpush2.msra.mxu0 %v7026_v40  ;;  %5060 = vmatprep.subr.mxu1 %v7256_v11  ;;  %v7230_v40 = vld [vmem:[%s15201_s6 + $0x11a8] sm:$0xff]  ;;  %v7144_v11 = vld [vmem:[%s15201_s6 + $0xef8] sm:$0xff] }
 0x51c   :  { %4603 = vmatprep.subr.mxu0 %v7025_v46  ;;  %5061 = vmatpush2.msra.mxu1 %v7255_v25  ;;  %v7229_v46 = vld [vmem:[%s15201_s6 + $0x11a0] sm:$0xff]  ;;  %v7143_v25 = vld [vmem:[%s15201_s6 + $0xef0] sm:$0xff] }
 0x51d   :  { %4604 = vmatpush2.msra.mxu0 %v7024_v41  ;;  %5062 = vmatprep.subr.mxu1 %v7254_v29  ;;  %v7228_v41 = vld [vmem:[%s15201_s6 + $0x1198] sm:$0xff]  ;;  %v7142_v29 = vld [vmem:[%s15201_s6 + $0xee8] sm:$0xff] }
 0x51e   :  { %4606 = vmatmul.mubr.f32.vlgmr.msra.gmra.mxu0 %v12624_v34  ;;  %4636 = vmatprep.subr.mxu0 %v7063_v20  ;;  %v7227_v20 = vld [vmem:[%s15201_s6 + $0x1190] sm:$0xff] }
 0x51f   :  { %5063 = vmatpush2.msra.mxu1 %v7253_v1  ;;  %4637 = vmatpush1.msra.mxu0 %v7062_v2  ;;  %v7141_v1 = vld [vmem:[%s15201_s6 + $0xee0] sm:$0xff]  ;;  %v7226_v2 = vld [vmem:[%s15201_s6 + $0x1188] sm:$0xff] }
 0x520   :  { %5064 = vmatprep.subr.mxu1 %v7252_v22  ;;  %4638 = vmatprep.subr.mxu0 %v7061_v52  ;;  %v7140_v22 = vld [vmem:[%s15201_s6 + $0xed8] sm:$0xff]  ;;  %v7225_v52 = vld [vmem:[%s15201_s6 + $0x1180] sm:$0xff] }
 0x521   :  { %5065 = vmatpush2.msra.mxu1 %v7251_v55  ;;  %4639 = vmatpush1.msra.mxu0 %v7060_v24  ;;  %v7139_v55 = vld [vmem:[%s15201_s6 + $0xed0] sm:$0xff]  ;;  %v7361_v24 = vld [vmem:[%s15201_s6 + $0x15b8] sm:$0xff] }
 0x522   :  { %5066 = vmatprep.subr.mxu1 %v7250_v44  ;;  %4640 = vmatprep.subr.mxu0 %v7059_v45  ;;  %v7138_v44 = vld [vmem:[%s15201_s6 + $0xec8] sm:$0xff]  ;;  %v7360_v45 = vld [vmem:[%s15201_s6 + $0x15b0] sm:$0xff] }
 0x523   :  { %5067 = vmatpush2.msra.mxu1 %v7249_v18  ;;  %4641 = vmatpush1.msra.mxu0 %v7058_v0  ;;  %v7137_v18 = vld [vmem:[%s15201_s6 + $0xec0] sm:$0xff]  ;;  %v7359_v0 = vld [vmem:[%s15201_s6 + $0x15a8] sm:$0xff] }
 0x524   :  { %5068 = vmatprep.subr.mxu1 %v7248_v7  ;;  %4642 = vmatprep.subr.mxu0 %v7057_v21  ;;  %v7136_v7 = vld [vmem:[%s15201_s6 + $0xeb8] sm:$0xff]  ;;  %v7358_v21 = vld [vmem:[%s15201_s6 + $0x15a0] sm:$0xff] }
 0x525   :  { %5069 = vmatpush2.msra.mxu1 %v7247_v33  ;;  %4643 = vmatpush1.msra.mxu0 %v7056_v48  ;;  %v7135_v33 = vld [vmem:[%s15201_s6 + $0xeb0] sm:$0xff]  ;;  %v7357_v48 = vld [vmem:[%s15201_s6 + $0x1598] sm:$0xff] }
 0x526   :  { %4676 = vmatprep.mubr.f32.mxu0 %v8781_v63  ;;  %5070 = vmatprep.subr.mxu1 %v7246_v57  ;;  %v7134_v57 = vld [vmem:[%s15201_s6 + $0xea8] sm:$0xff] }
 0x527   :  { %7064 = vmatmul.mubr.msk.f32.vlgmr.msra.gmra.mxu0 %vm2269_vm6, %v12740_v5  ;;  %4957 = vmatprep.subr.mxu0 %v7160_v4  ;;  %v7356_v4 = vld [vmem:[%s15201_s6 + $0x1590] sm:$0xff] }
 0x528   :  { %5071 = vmatpush2.msra.mxu1 %v7245_v19  ;;  %4958 = vmatpush1.msra.mxu0 %v7159_v54  ;;  %v7355_v19 = vld [vmem:[%s15201_s6 + $0x1588] sm:$0xff]  ;;  %v7132_v54 = vld [vmem:[%s15201_s6 + $0xe98] sm:$0xff] }
 0x529   :  { %5021 = vmatprep.mubr.f32.mxu0 %v12504_v60  ;;  %5072 = vmatprep.subr.mxu1 %v7244_v14  ;;  %v7354_v14 = vld [vmem:[%s15201_s6 + $0x1580] sm:$0xff] }
 0x52a   :  { %4959 = vmatprep.subr.mxu0 %v7158_v35  ;;  %5073 = vmatpush2.msra.mxu1 %v7243_v16  ;;  %v7131_v35 = vld [vmem:[%s15201_s6 + $0xe90] sm:$0xff]  ;;  %v7353_v16 = vld [vmem:[%s15201_s6 + $0x1578] sm:$0xff] }
 0x52b   :  { %4960 = vmatpush1.msra.mxu0 %v7157_v6  ;;  %5074 = vmatprep.subr.mxu1 %v7242_v3  ;;  %v7130_v6 = vld [vmem:[%s15201_s6 + $0xe88] sm:$0xff]  ;;  %v7352_v3 = vld [vmem:[%s15201_s6 + $0x1570] sm:$0xff] }
 0x52c   :  { %4961 = vmatprep.subr.mxu0 %v7156_v32  ;;  %5075 = vmatpush2.msra.mxu1 %v7241_v17  ;;  %v7129_v32 = vld [vmem:[%s15201_s6 + $0xe80] sm:$0xff]  ;;  %v7351_v17 = vld [vmem:[%s15201_s6 + $0x1568] sm:$0xff] }
 0x52d   :  { %4962 = vmatpush1.msra.mxu0 %v7155_v39  ;;  %5076 = vmatprep.subr.mxu1 %v7240_v9  ;;  %v7192_v39 = vld [vmem:[%s15201_s6 + $0x1078] sm:$0xff]  ;;  %v7350_v9 = vld [vmem:[%s15201_s6 + $0x1560] sm:$0xff] }
 0x52e   :  { %4963 = vmatprep.subr.mxu0 %v7154_v28  ;;  %5077 = vmatpush2.msra.mxu1 %v7239_v37  ;;  %v7191_v28 = vld [vmem:[%s15201_s6 + $0x1070] sm:$0xff]  ;;  %v7349_v37 = vld [vmem:[%s15201_s6 + $0x1558] sm:$0xff] }
 0x52f   :  { %4964 = vmatpush1.msra.mxu0 %v7153_v26  ;;  %5078 = vmatprep.subr.mxu1 %v7238_v56  ;;  %v7190_v26 = vld [vmem:[%s15201_s6 + $0x1068] sm:$0xff]  ;;  %v7348_v56 = vld [vmem:[%s15201_s6 + $0x1550] sm:$0xff] }
 0x530   :  { %4965 = vmatprep.subr.mxu0 %v7152_v50  ;;  %5079 = vmatpush2.msra.mxu1 %v7237_v8  ;;  %v7189_v50 = vld [vmem:[%s15201_s6 + $0x1060] sm:$0xff]  ;;  %v7347_v8 = vld [vmem:[%s15201_s6 + $0x1548] sm:$0xff] }
 0x531   :  { %4966 = vmatpush1.msra.mxu0 %v7151_v12  ;;  %5080 = vmatprep.subr.mxu1 %v7236_v13  ;;  %v7188_v12 = vld [vmem:[%s15201_s6 + $0x1058] sm:$0xff]  ;;  %v7346_v13 = vld [vmem:[%s15201_s6 + $0x1540] sm:$0xff] }
 0x532   :  { %4967 = vmatprep.subr.mxu0 %v7150_v47  ;;  %5081 = vmatpush2.msra.mxu1 %v7235_v10  ;;  %v7187_v47 = vld [vmem:[%s15201_s6 + $0x1050] sm:$0xff]  ;;  %v7345_v10 = vld [vmem:[%s15201_s6 + $0x1538] sm:$0xff] }
 0x533   :  { %4968 = vmatpush1.msra.mxu0 %v7149_v30  ;;  %5082 = vmatprep.subr.mxu1 %v7234_v51  ;;  %v7186_v30 = vld [vmem:[%s15201_s6 + $0x1048] sm:$0xff]  ;;  %v7344_v51 = vld [vmem:[%s15201_s6 + $0x1530] sm:$0xff] }
 0x534   :  { %4969 = vmatprep.subr.mxu0 %v7148_v36  ;;  %5083 = vmatpush2.msra.mxu1 %v7233_v43  ;;  %v7185_v36 = vld [vmem:[%s15201_s6 + $0x1040] sm:$0xff]  ;;  %v7343_v43 = vld [vmem:[%s15201_s6 + $0x1528] sm:$0xff] }
 0x535   :  { %4970 = vmatpush1.msra.mxu0 %v7147_v27  ;;  %5084 = vmatprep.subr.mxu1 %v7232_v61  ;;  %v7184_v27 = vld [vmem:[%s15201_s6 + $0x1038] sm:$0xff]  ;;  %v7342_v61 = vld [vmem:[%s15201_s6 + $0x1520] sm:$0xff] }
 0x536   :  { %4971 = vmatprep.subr.mxu0 %v7146_v49  ;;  %5085 = vmatpush2.msra.mxu1 %v7231_v59  ;;  %v7183_v49 = vld [vmem:[%s15201_s6 + $0x1030] sm:$0xff]  ;;  %v7341_v59 = vld [vmem:[%s15201_s6 + $0x1518] sm:$0xff] }
 0x537   :  { %4972 = vmatpush1.msra.mxu0 %v7145_v38  ;;  %5086 = vmatprep.subr.mxu1 %v7230_v40  ;;  %v7182_v38 = vld [vmem:[%s15201_s6 + $0x1028] sm:$0xff]  ;;  %v7340_v40 = vld [vmem:[%s15201_s6 + $0x1510] sm:$0xff] }
 0x538   :  { %4973 = vmatprep.subr.mxu0 %v7144_v11  ;;  %5087 = vmatpush2.msra.mxu1 %v7229_v46  ;;  %v7181_v11 = vld [vmem:[%s15201_s6 + $0x1020] sm:$0xff]  ;;  %v7339_v46 = vld [vmem:[%s15201_s6 + $0x1508] sm:$0xff] }
 0x539   :  { %4974 = vmatpush1.msra.mxu0 %v7143_v25  ;;  %5088 = vmatprep.subr.mxu1 %v7228_v41  ;;  %v7180_v25 = vld [vmem:[%s15201_s6 + $0x1018] sm:$0xff]  ;;  %v7338_v41 = vld [vmem:[%s15201_s6 + $0x1500] sm:$0xff] }
 0x53a   :  { %4975 = vmatprep.subr.mxu0 %v7142_v29  ;;  %5089 = vmatpush2.msra.mxu1 %v7227_v20  ;;  %v7179_v29 = vld [vmem:[%s15201_s6 + $0x1010] sm:$0xff]  ;;  %v7337_v20 = vld [vmem:[%s15201_s6 + $0x14f8] sm:$0xff] }
 0x53b   :  { %4976 = vmatpush1.msra.mxu0 %v7141_v1  ;;  %5090 = vmatprep.subr.mxu1 %v7226_v2  ;;  %v7178_v1 = vld [vmem:[%s15201_s6 + $0x1008] sm:$0xff]  ;;  %v7336_v2 = vld [vmem:[%s15201_s6 + $0x14f0] sm:$0xff] }
 0x53c   :  { %4977 = vmatprep.subr.mxu0 %v7140_v22  ;;  %5091 = vmatpush2.msra.mxu1 %v7225_v52  ;;  %v7177_v22 = vld [vmem:[%s15201_s6 + $0x1000] sm:$0xff]  ;;  %v7335_v52 = vld [vmem:[%s15201_s6 + $0x14e8] sm:$0xff] }
 0x53d   :  { %4978 = vmatpush1.msra.mxu0 %v7139_v55  ;;  %5093 = vmatmul.mubr.f32.vlgmr.msra.gmra.mxu1 %v12624_v34  ;;  %v7176_v55 = vld [vmem:[%s15201_s6 + $0xff8] sm:$0xff] }
 0x53e   :  { %5442 = vmatprep.subr.mxu1 %v7361_v24  ;;  %4979 = vmatprep.subr.mxu0 %v7138_v44  ;;  %v7334_v24 = vld [vmem:[%s15201_s6 + $0x14e0] sm:$0xff]  ;;  %v7175_v44 = vld [vmem:[%s15201_s6 + $0xff0] sm:$0xff] }
 0x53f   :  { %5443 = vmatpush1.msra.mxu1 %v7360_v45  ;;  %5506 = vmatprep.mubr.f32.mxu1 %v12504_v60  ;;  %v7133_v60 = vld [vmem:[%s15201_s6 + $0xea0] sm:$0xff]  ;;  %v7333_v45 = vld [vmem:[%s15201_s6 + $0x14d8] sm:$0xff] }
 0x540   :  { %4980 = vmatpush1.msra.mxu0 %v7137_v18  ;;  %5444 = vmatprep.subr.mxu1 %v7359_v0  ;;  %v7174_v18 = vld [vmem:[%s15201_s6 + $0xfe8] sm:$0xff]  ;;  %v7332_v0 = vld [vmem:[%s15201_s6 + $0x14d0] sm:$0xff] }
 0x541   :  { %4981 = vmatprep.subr.mxu0 %v7136_v7  ;;  %5445 = vmatpush1.msra.mxu1 %v7358_v21  ;;  %v7173_v7 = vld [vmem:[%s15201_s6 + $0xfe0] sm:$0xff]  ;;  %v7331_v21 = vld [vmem:[%s15201_s6 + $0x14c8] sm:$0xff] }
 0x542   :  { %4982 = vmatpush1.msra.mxu0 %v7135_v33  ;;  %5446 = vmatprep.subr.mxu1 %v7357_v48  ;;  %v7172_v33 = vld [vmem:[%s15201_s6 + $0xfd8] sm:$0xff]  ;;  %v7330_v48 = vld [vmem:[%s15201_s6 + $0x14c0] sm:$0xff] }
 0x543   :  { %4983 = vmatprep.subr.mxu0 %v7134_v57  ;;  %5447 = vmatpush1.msra.mxu1 %v7356_v4  ;;  %v7171_v57 = vld [vmem:[%s15201_s6 + $0xfd0] sm:$0xff]  ;;  %v7393_v4 = vld [vmem:[%s15201_s6 + $0x16b8] sm:$0xff] }
 0x544   :  { %4984 = vmatpush1.msra.mxu0 %v7133_v60  ;;  %5448 = vmatprep.subr.mxu1 %v7355_v19  ;;  %v7170_v60 = vld [vmem:[%s15201_s6 + $0xfc8] sm:$0xff]  ;;  %v7392_v19 = vld [vmem:[%s15201_s6 + $0x16b0] sm:$0xff] }
 0x545   :  { %4985 = vmatprep.subr.mxu0 %v7132_v54  ;;  %5449 = vmatpush1.msra.mxu1 %v7354_v14  ;;  %v7169_v54 = vld [vmem:[%s15201_s6 + $0xfc0] sm:$0xff]  ;;  %v7391_v14 = vld [vmem:[%s15201_s6 + $0x16a8] sm:$0xff] }
 0x546   :  { %4986 = vmatpush1.msra.mxu0 %v7131_v35  ;;  %5450 = vmatprep.subr.mxu1 %v7353_v16  ;;  %v7168_v35 = vld [vmem:[%s15201_s6 + $0xfb8] sm:$0xff]  ;;  %v7390_v16 = vld [vmem:[%s15201_s6 + $0x16a0] sm:$0xff] }
 0x547   :  { %4987 = vmatprep.subr.mxu0 %v7130_v6  ;;  %5451 = vmatpush1.msra.mxu1 %v7352_v3  ;;  %v7167_v6 = vld [vmem:[%s15201_s6 + $0xfb0] sm:$0xff]  ;;  %v7389_v3 = vld [vmem:[%s15201_s6 + $0x1698] sm:$0xff] }
 0x548   :  { %4988 = vmatpush1.msra.mxu0 %v7129_v32  ;;  %5452 = vmatprep.subr.mxu1 %v7351_v17  ;;  %v7166_v32 = vld [vmem:[%s15201_s6 + $0xfa8] sm:$0xff]  ;;  %v7388_v17 = vld [vmem:[%s15201_s6 + $0x1690] sm:$0xff] }
 0x549   :  { %4989 = vmatprep.subr.mxu0 %v7192_v39  ;;  %5453 = vmatpush1.msra.mxu1 %v7350_v9  ;;  %v7165_v39 = vld [vmem:[%s15201_s6 + $0xfa0] sm:$0xff]  ;;  %v7387_v9 = vld [vmem:[%s15201_s6 + $0x1688] sm:$0xff] }
 0x54a   :  { %4990 = vmatpush2.msra.mxu0 %v7191_v28  ;;  %5454 = vmatprep.subr.mxu1 %v7349_v37  ;;  %v7164_v28 = vld [vmem:[%s15201_s6 + $0xf98] sm:$0xff]  ;;  %v7386_v37 = vld [vmem:[%s15201_s6 + $0x1680] sm:$0xff] }
 0x54b   :  { %4991 = vmatprep.subr.mxu0 %v7190_v26  ;;  %5455 = vmatpush1.msra.mxu1 %v7348_v56  ;;  %v7163_v26 = vld [vmem:[%s15201_s6 + $0xf90] sm:$0xff]  ;;  %v7385_v56 = vld [vmem:[%s15201_s6 + $0x1678] sm:$0xff] }
 0x54c   :  { %4992 = vmatpush2.msra.mxu0 %v7189_v50  ;;  %5456 = vmatprep.subr.mxu1 %v7347_v8  ;;  %v7162_v50 = vld [vmem:[%s15201_s6 + $0xf88] sm:$0xff]  ;;  %v7384_v8 = vld [vmem:[%s15201_s6 + $0x1670] sm:$0xff] }
 0x54d   :  { %4993 = vmatprep.subr.mxu0 %v7188_v12  ;;  %5457 = vmatpush1.msra.mxu1 %v7346_v13  ;;  %v7161_v12 = vld [vmem:[%s15201_s6 + $0xf80] sm:$0xff]  ;;  %v7383_v13 = vld [vmem:[%s15201_s6 + $0x1668] sm:$0xff] }
 0x54e   :  { %4994 = vmatpush2.msra.mxu0 %v7187_v47  ;;  %5458 = vmatprep.subr.mxu1 %v7345_v10  ;;  %v7264_v47 = vld [vmem:[%s15201_s6 + $0x12b8] sm:$0xff]  ;;  %v7382_v10 = vld [vmem:[%s15201_s6 + $0x1660] sm:$0xff] }
 0x54f   :  { %4995 = vmatprep.subr.mxu0 %v7186_v30  ;;  %5459 = vmatpush1.msra.mxu1 %v7344_v51  ;;  %v7263_v30 = vld [vmem:[%s15201_s6 + $0x12b0] sm:$0xff]  ;;  %v7381_v51 = vld [vmem:[%s15201_s6 + $0x1658] sm:$0xff] }
 0x550   :  { %4996 = vmatpush2.msra.mxu0 %v7185_v36  ;;  %5460 = vmatprep.subr.mxu1 %v7343_v43  ;;  %v7262_v36 = vld [vmem:[%s15201_s6 + $0x12a8] sm:$0xff]  ;;  %v7380_v43 = vld [vmem:[%s15201_s6 + $0x1650] sm:$0xff] }
 0x551   :  { %4997 = vmatprep.subr.mxu0 %v7184_v27  ;;  %5461 = vmatpush1.msra.mxu1 %v7342_v61  ;;  %v7261_v27 = vld [vmem:[%s15201_s6 + $0x12a0] sm:$0xff]  ;;  %v7379_v61 = vld [vmem:[%s15201_s6 + $0x1648] sm:$0xff] }
 0x552   :  { %4998 = vmatpush2.msra.mxu0 %v7183_v49  ;;  %5462 = vmatprep.subr.mxu1 %v7341_v59  ;;  %v7260_v49 = vld [vmem:[%s15201_s6 + $0x1298] sm:$0xff]  ;;  %v7378_v59 = vld [vmem:[%s15201_s6 + $0x1640] sm:$0xff] }
 0x553   :  { %4999 = vmatprep.subr.mxu0 %v7182_v38  ;;  %5463 = vmatpush1.msra.mxu1 %v7340_v40  ;;  %v7259_v38 = vld [vmem:[%s15201_s6 + $0x1290] sm:$0xff]  ;;  %v7377_v40 = vld [vmem:[%s15201_s6 + $0x1638] sm:$0xff] }
 0x554   :  { %5000 = vmatpush2.msra.mxu0 %v7181_v11  ;;  %5464 = vmatprep.subr.mxu1 %v7339_v46  ;;  %v7258_v11 = vld [vmem:[%s15201_s6 + $0x1288] sm:$0xff]  ;;  %v7376_v46 = vld [vmem:[%s15201_s6 + $0x1630] sm:$0xff] }
 0x555   :  { %5001 = vmatprep.subr.mxu0 %v7180_v25  ;;  %5465 = vmatpush1.msra.mxu1 %v7338_v41  ;;  %v7257_v25 = vld [vmem:[%s15201_s6 + $0x1280] sm:$0xff]  ;;  %v7375_v41 = vld [vmem:[%s15201_s6 + $0x1628] sm:$0xff] }
 0x556   :  { %5002 = vmatpush2.msra.mxu0 %v7179_v29  ;;  %5466 = vmatprep.subr.mxu1 %v7337_v20  ;;  %v7297_v29 = vld [vmem:[%s15201_s6 + $0x13b8] sm:$0xff]  ;;  %v7374_v20 = vld [vmem:[%s15201_s6 + $0x1620] sm:$0xff] }
 0x557   :  { %5003 = vmatprep.subr.mxu0 %v7178_v1  ;;  %5467 = vmatpush1.msra.mxu1 %v7336_v2  ;;  %v7296_v1 = vld [vmem:[%s15201_s6 + $0x13b0] sm:$0xff]  ;;  %v7373_v2 = vld [vmem:[%s15201_s6 + $0x1618] sm:$0xff] }
 0x558   :  { %5004 = vmatpush2.msra.mxu0 %v7177_v22  ;;  %5468 = vmatprep.subr.mxu1 %v7335_v52  ;;  %v7295_v22 = vld [vmem:[%s15201_s6 + $0x13a8] sm:$0xff]  ;;  %v7372_v52 = vld [vmem:[%s15201_s6 + $0x1610] sm:$0xff] }
 0x559   :  { %5005 = vmatprep.subr.mxu0 %v7176_v55  ;;  %5469 = vmatpush1.msra.mxu1 %v7334_v24  ;;  %v7294_v55 = vld [vmem:[%s15201_s6 + $0x13a0] sm:$0xff]  ;;  %v7371_v24 = vld [vmem:[%s15201_s6 + $0x1608] sm:$0xff] }
 0x55a   :  { %5006 = vmatpush2.msra.mxu0 %v7175_v44  ;;  %5470 = vmatprep.subr.mxu1 %v7333_v45  ;;  %v7293_v44 = vld [vmem:[%s15201_s6 + $0x1398] sm:$0xff]  ;;  %v7370_v45 = vld [vmem:[%s15201_s6 + $0x1600] sm:$0xff] }
 0x55b   :  { %5007 = vmatprep.subr.mxu0 %v7174_v18  ;;  %5471 = vmatpush1.msra.mxu1 %v7332_v0  ;;  %v7292_v18 = vld [vmem:[%s15201_s6 + $0x1390] sm:$0xff]  ;;  %v7369_v0 = vld [vmem:[%s15201_s6 + $0x15f8] sm:$0xff] }
 0x55c   :  { %5008 = vmatpush2.msra.mxu0 %v7173_v7  ;;  %5472 = vmatprep.subr.mxu1 %v7331_v21  ;;  %v7368_v7 = vld [vmem:[%s15201_s6 + $0x15f0] sm:$0xff]  ;;  %v7290_v21 = vld [vmem:[%s15201_s6 + $0x1380] sm:$0xff] }
 0x55d   :  { %5009 = vmatprep.subr.mxu0 %v7172_v33  ;;  %5473 = vmatpush1.msra.mxu1 %v7330_v48  ;;  %v7367_v33 = vld [vmem:[%s15201_s6 + $0x15e8] sm:$0xff]  ;;  %v7289_v48 = vld [vmem:[%s15201_s6 + $0x1378] sm:$0xff] }
 0x55e   :  { %5010 = vmatpush2.msra.mxu0 %v7171_v57  ;;  %5474 = vmatprep.subr.mxu1 %v7393_v4  ;;  %v7366_v57 = vld [vmem:[%s15201_s6 + $0x15e0] sm:$0xff]  ;;  %v7288_v4 = vld [vmem:[%s15201_s6 + $0x1370] sm:$0xff] }
 0x55f   :  { %5011 = vmatprep.subr.mxu0 %v7170_v60  ;;  %5475 = vmatpush2.msra.mxu1 %v7392_v19  ;;  %v7365_v60 = vld [vmem:[%s15201_s6 + $0x15d8] sm:$0xff]  ;;  %v7287_v19 = vld [vmem:[%s15201_s6 + $0x1368] sm:$0xff] }
 0x560   :  { %5012 = vmatpush2.msra.mxu0 %v7169_v54  ;;  %5476 = vmatprep.subr.mxu1 %v7391_v14  ;;  %v7364_v54 = vld [vmem:[%s15201_s6 + $0x15d0] sm:$0xff]  ;;  %v7286_v14 = vld [vmem:[%s15201_s6 + $0x1360] sm:$0xff] }
 0x561   :  { %5013 = vmatprep.subr.mxu0 %v7168_v35  ;;  %5477 = vmatpush2.msra.mxu1 %v7390_v16  ;;  %v7363_v35 = vld [vmem:[%s15201_s6 + $0x15c8] sm:$0xff]  ;;  %v7285_v16 = vld [vmem:[%s15201_s6 + $0x1358] sm:$0xff] }
 0x562   :  { %5014 = vmatpush2.msra.mxu0 %v7167_v6  ;;  %5478 = vmatprep.subr.mxu1 %v7389_v3  ;;  %v7362_v6 = vld [vmem:[%s15201_s6 + $0x15c0] sm:$0xff]  ;;  %v7284_v3 = vld [vmem:[%s15201_s6 + $0x1350] sm:$0xff] }
 0x563   :  { %5015 = vmatprep.subr.mxu0 %v7166_v32  ;;  %5479 = vmatpush2.msra.mxu1 %v7388_v17  ;;  %v7465_v32 = vld [vmem:[%s15201_s6 + $0x18f8] sm:$0xff]  ;;  %v7283_v17 = vld [vmem:[%s15201_s6 + $0x1348] sm:$0xff] }
 0x564   :  { %5016 = vmatpush2.msra.mxu0 %v7165_v39  ;;  %5480 = vmatprep.subr.mxu1 %v7387_v9  ;;  %v7464_v39 = vld [vmem:[%s15201_s6 + $0x18f0] sm:$0xff]  ;;  %v7282_v9 = vld [vmem:[%s15201_s6 + $0x1340] sm:$0xff] }
 0x565   :  { %5017 = vmatprep.subr.mxu0 %v7164_v28  ;;  %5481 = vmatpush2.msra.mxu1 %v7386_v37  ;;  %v7463_v28 = vld [vmem:[%s15201_s6 + $0x18e8] sm:$0xff]  ;;  %v7281_v37 = vld [vmem:[%s15201_s6 + $0x1338] sm:$0xff] }
 0x566   :  { %5018 = vmatpush2.msra.mxu0 %v7163_v26  ;;  %5482 = vmatprep.subr.mxu1 %v7385_v56  ;;  %v7462_v26 = vld [vmem:[%s15201_s6 + $0x18e0] sm:$0xff]  ;;  %v7280_v56 = vld [vmem:[%s15201_s6 + $0x1330] sm:$0xff] }
 0x567   :  { %5019 = vmatprep.subr.mxu0 %v7162_v50  ;;  %5483 = vmatpush2.msra.mxu1 %v7384_v8  ;;  %v7279_v50 = vld [vmem:[%s15201_s6 + $0x1328] sm:$0xff]  ;;  %v7460_v8 = vld [vmem:[%s15201_s6 + $0x18d0] sm:$0xff] }
 0x568   :  { %5020 = vmatpush2.msra.mxu0 %v7161_v12  ;;  %5484 = vmatprep.subr.mxu1 %v7383_v13  ;;  %v7278_v12 = vld [vmem:[%s15201_s6 + $0x1320] sm:$0xff]  ;;  %v7459_v13 = vld [vmem:[%s15201_s6 + $0x18c8] sm:$0xff] }
 0x569   :  { %5022 = vmatmul.mubr.f32.vlgmr.msra.gmra.mxu0 %v12514_v58  ;;  %5123 = vmatprep.subr.mxu0 %v7264_v47  ;;  %v7277_v47 = vld [vmem:[%s15201_s6 + $0x1318] sm:$0xff] }
 0x56a   :  { %5485 = vmatpush2.msra.mxu1 %v7382_v10  ;;  %5124 = vmatpush1.msra.mxu0 %v7263_v30  ;;  %v7458_v10 = vld [vmem:[%s15201_s6 + $0x18c0] sm:$0xff]  ;;  %v7276_v30 = vld [vmem:[%s15201_s6 + $0x1310] sm:$0xff] }
 0x56b   :  { %5486 = vmatprep.subr.mxu1 %v7381_v51  ;;  %5125 = vmatprep.subr.mxu0 %v7262_v36  ;;  %v7275_v51 = vld [vmem:[%s15201_s6 + $0x1308] sm:$0xff]  ;;  %v7274_v36 = vld [vmem:[%s15201_s6 + $0x1300] sm:$0xff] }
 0x56c   :  { %5487 = vmatpush2.msra.mxu1 %v7380_v43  ;;  %5126 = vmatpush1.msra.mxu0 %v7261_v27  ;;  %v7273_v43 = vld [vmem:[%s15201_s6 + $0x12f8] sm:$0xff]  ;;  %v7272_v27 = vld [vmem:[%s15201_s6 + $0x12f0] sm:$0xff] }
 0x56d   :  { %5488 = vmatprep.subr.mxu1 %v7379_v61  ;;  %5127 = vmatprep.subr.mxu0 %v7260_v49  ;;  %v7271_v61 = vld [vmem:[%s15201_s6 + $0x12e8] sm:$0xff]  ;;  %v7270_v49 = vld [vmem:[%s15201_s6 + $0x12e0] sm:$0xff] }
 0x56e   :  { %5489 = vmatpush2.msra.mxu1 %v7378_v59  ;;  %5128 = vmatpush1.msra.mxu0 %v7259_v38  ;;  %v7268_v59 = vld [vmem:[%s15201_s6 + $0x12d0] sm:$0xff]  ;;  %v7267_v38 = vld [vmem:[%s15201_s6 + $0x12c8] sm:$0xff] }
 0x56f   :  { %5490 = vmatprep.subr.mxu1 %v7377_v40  ;;  %5129 = vmatprep.subr.mxu0 %v7258_v11  ;;  %v7266_v40 = vld [vmem:[%s15201_s6 + $0x12c0] sm:$0xff]  ;;  %v7329_v11 = vld [vmem:[%s15201_s6 + $0x14b8] sm:$0xff] }
 0x570   :  { %5491 = vmatpush2.msra.mxu1 %v7376_v46  ;;  %5130 = vmatpush1.msra.mxu0 %v7257_v25  ;;  %v7328_v46 = vld [vmem:[%s15201_s6 + $0x14b0] sm:$0xff]  ;;  %v7327_v25 = vld [vmem:[%s15201_s6 + $0x14a8] sm:$0xff] }
 0x571   :  { %5163 = vmatprep.mubr.f32.mxu0 %v8781_v63  ;;  %5492 = vmatprep.subr.mxu1 %v7375_v41  ;;  %v7326_v41 = vld [vmem:[%s15201_s6 + $0x14a0] sm:$0xff] }
 0x572   :  { %7265 = vmatmul.mubr.msk.f32.vlgmr.msra.gmra.mxu0 %vm2269_vm6, %v12740_v5  ;;  %5371 = vmatprep.subr.mxu0 %v7297_v29  ;;  %v7325_v29 = vld [vmem:[%s15201_s6 + $0x1498] sm:$0xff] }
 0x573   :  { %5493 = vmatpush2.msra.mxu1 %v7374_v20  ;;  %5372 = vmatpush1.msra.mxu0 %v7296_v1  ;;  %v7324_v20 = vld [vmem:[%s15201_s6 + $0x1490] sm:$0xff]  ;;  %v7323_v1 = vld [vmem:[%s15201_s6 + $0x1488] sm:$0xff] }
 0x574   :  { %5435 = vmatprep.mubr.f32.mxu0 %v12148_v23  ;;  %5494 = vmatprep.subr.mxu1 %v7373_v2  ;;  %v7291_v23 = vld [vmem:[%s15201_s6 + $0x1388] sm:$0xff]  ;;  %v7322_v2 = vld [vmem:[%s15201_s6 + $0x1480] sm:$0xff] }
 0x575   :  { %5373 = vmatprep.subr.mxu0 %v7295_v22  ;;  %5495 = vmatpush2.msra.mxu1 %v7372_v52  ;;  %v7321_v22 = vld [vmem:[%s15201_s6 + $0x1478] sm:$0xff]  ;;  %v7320_v52 = vld [vmem:[%s15201_s6 + $0x1470] sm:$0xff] }
 0x576   :  { %5374 = vmatpush1.msra.mxu0 %v7294_v55  ;;  %5496 = vmatprep.subr.mxu1 %v7371_v24  ;;  %v7319_v55 = vld [vmem:[%s15201_s6 + $0x1468] sm:$0xff]  ;;  %v7318_v24 = vld [vmem:[%s15201_s6 + $0x1460] sm:$0xff] }
 0x577   :  { %5375 = vmatprep.subr.mxu0 %v7293_v44  ;;  %5497 = vmatpush2.msra.mxu1 %v7370_v45  ;;  %v7317_v44 = vld [vmem:[%s15201_s6 + $0x1458] sm:$0xff]  ;;  %v7316_v45 = vld [vmem:[%s15201_s6 + $0x1450] sm:$0xff] }
 0x578   :  { %5376 = vmatpush1.msra.mxu0 %v7292_v18  ;;  %5498 = vmatprep.subr.mxu1 %v7369_v0  ;;  %v7315_v18 = vld [vmem:[%s15201_s6 + $0x1448] sm:$0xff]  ;;  %v7314_v0 = vld [vmem:[%s15201_s6 + $0x1440] sm:$0xff] }
 0x579   :  { %5377 = vmatprep.subr.mxu0 %v7291_v23  ;;  %5499 = vmatpush2.msra.mxu1 %v7368_v7  ;;  %v7313_v23 = vld [vmem:[%s15201_s6 + $0x1438] sm:$0xff]  ;;  %v7312_v7 = vld [vmem:[%s15201_s6 + $0x1430] sm:$0xff] }
 0x57a   :  { %5378 = vmatpush1.msra.mxu0 %v7290_v21  ;;  %5500 = vmatprep.subr.mxu1 %v7367_v33  ;;  %v7311_v21 = vld [vmem:[%s15201_s6 + $0x1428] sm:$0xff]  ;;  %v7310_v33 = vld [vmem:[%s15201_s6 + $0x1420] sm:$0xff] }
 0x57b   :  { %5379 = vmatprep.subr.mxu0 %v7289_v48  ;;  %5501 = vmatpush2.msra.mxu1 %v7366_v57  ;;  %v7309_v48 = vld [vmem:[%s15201_s6 + $0x1418] sm:$0xff]  ;;  %v7308_v57 = vld [vmem:[%s15201_s6 + $0x1410] sm:$0xff] }
 0x57c   :  { %5380 = vmatpush1.msra.mxu0 %v7288_v4  ;;  %5502 = vmatprep.subr.mxu1 %v7365_v60  ;;  %v7307_v4 = vld [vmem:[%s15201_s6 + $0x1408] sm:$0xff]  ;;  %v7306_v60 = vld [vmem:[%s15201_s6 + $0x1400] sm:$0xff] }
 0x57d   :  { %5381 = vmatprep.subr.mxu0 %v7287_v19  ;;  %5503 = vmatpush2.msra.mxu1 %v7364_v54  ;;  %v7305_v19 = vld [vmem:[%s15201_s6 + $0x13f8] sm:$0xff]  ;;  %v7304_v54 = vld [vmem:[%s15201_s6 + $0x13f0] sm:$0xff] }
 0x57e   :  { %5382 = vmatpush1.msra.mxu0 %v7286_v14  ;;  %5504 = vmatprep.subr.mxu1 %v7363_v35  ;;  %v7303_v14 = vld [vmem:[%s15201_s6 + $0x13e8] sm:$0xff]  ;;  %v7302_v35 = vld [vmem:[%s15201_s6 + $0x13e0] sm:$0xff] }
 0x57f   :  { %5383 = vmatprep.subr.mxu0 %v7285_v16  ;;  %5505 = vmatpush2.msra.mxu1 %v7362_v6  ;;  %v7301_v16 = vld [vmem:[%s15201_s6 + $0x13d8] sm:$0xff]  ;;  %v7300_v6 = vld [vmem:[%s15201_s6 + $0x13d0] sm:$0xff] }
 0x580   :  { %5384 = vmatpush1.msra.mxu0 %v7284_v3  ;;  %5507 = vmatmul.mubr.f32.vlgmr.msra.gmra.mxu1 %v12514_v58  ;;  %v7461_v58 = vld [vmem:[%s15201_s6 + $0x18d8] sm:$0xff]  ;;  %v7299_v3 = vld [vmem:[%s15201_s6 + $0x13c8] sm:$0xff] }
 0x581   :  { %5608 = vmatprep.subr.mxu1 %v7465_v32  ;;  %5385 = vmatprep.subr.mxu0 %v7283_v17  ;;  %v7298_v32 = vld [vmem:[%s15201_s6 + $0x13c0] sm:$0xff]  ;;  %v7425_v17 = vld [vmem:[%s15201_s6 + $0x17b8] sm:$0xff] }
 0x582   :  { %5609 = vmatpush1.msra.mxu1 %v7464_v39  ;;  %5386 = vmatpush1.msra.mxu0 %v7282_v9  ;;  %v7424_v39 = vld [vmem:[%s15201_s6 + $0x17b0] sm:$0xff]  ;;  %v7423_v9 = vld [vmem:[%s15201_s6 + $0x17a8] sm:$0xff] }
 0x583   :  { %5610 = vmatprep.subr.mxu1 %v7463_v28  ;;  %5387 = vmatprep.subr.mxu0 %v7281_v37  ;;  %v7422_v28 = vld [vmem:[%s15201_s6 + $0x17a0] sm:$0xff]  ;;  %v7421_v37 = vld [vmem:[%s15201_s6 + $0x1798] sm:$0xff] }
 0x584   :  { %5611 = vmatpush1.msra.mxu1 %v7462_v26  ;;  %5388 = vmatpush1.msra.mxu0 %v7280_v56  ;;  %v7420_v26 = vld [vmem:[%s15201_s6 + $0x1790] sm:$0xff]  ;;  %v7418_v56 = vld [vmem:[%s15201_s6 + $0x1780] sm:$0xff] }
 0x585   :  { %5612 = vmatprep.subr.mxu1 %v7461_v58  ;;  %5389 = vmatprep.subr.mxu0 %v7279_v50  ;;  %v7416_v58 = vld [vmem:[%s15201_s6 + $0x1770] sm:$0xff]  ;;  %v7415_v50 = vld [vmem:[%s15201_s6 + $0x1768] sm:$0xff] }
 0x586   :  { %5613 = vmatpush1.msra.mxu1 %v7460_v8  ;;  %5390 = vmatpush1.msra.mxu0 %v7278_v12  ;;  %v7414_v8 = vld [vmem:[%s15201_s6 + $0x1760] sm:$0xff]  ;;  %v7413_v12 = vld [vmem:[%s15201_s6 + $0x1758] sm:$0xff] }
 0x587   :  { %5614 = vmatprep.subr.mxu1 %v7459_v13  ;;  %5391 = vmatprep.subr.mxu0 %v7277_v47  ;;  %v7412_v13 = vld [vmem:[%s15201_s6 + $0x1750] sm:$0xff]  ;;  %v7411_v47 = vld [vmem:[%s15201_s6 + $0x1748] sm:$0xff] }
 0x588   :  { %5615 = vmatpush1.msra.mxu1 %v7458_v10  ;;  %5648 = vmatprep.mubr.f32.mxu1 %v8781_v63  ;;  %v7410_v10 = vld [vmem:[%s15201_s6 + $0x1740] sm:$0xff] }
 0x589   :  { %5392 = vmatpush1.msra.mxu0 %v7276_v30  ;;  %7466 = vmatmul.mubr.msk.f32.vlgmr.msra.gmra.mxu1 %vm2269_vm6, %v12740_v5  ;;  %v7269_v5 = vld [vmem:[%s15201_s6 + $0x12d8] sm:$0xff] }
 0x58a   :  { %5393 = vmatprep.subr.mxu0 %v7275_v51  ;;  %v7409_v30 = vld [vmem:[%s15201_s6 + $0x1738] sm:$0xff]  ;;  %v7408_v51 = vld [vmem:[%s15201_s6 + $0x1730] sm:$0xff] }
 0x58b   :  { %5394 = vmatpush1.msra.mxu0 %v7274_v36  ;;  %v7407_v36 = vld [vmem:[%s15201_s6 + $0x1728] sm:$0xff] }
 0x58c   :  { %5395 = vmatprep.subr.mxu0 %v7273_v43  ;;  %v7406_v43 = vld [vmem:[%s15201_s6 + $0x1720] sm:$0xff] }
 0x58d   :  { %5396 = vmatpush1.msra.mxu0 %v7272_v27  ;;  %v7405_v27 = vld [vmem:[%s15201_s6 + $0x1718] sm:$0xff] }
 0x58e   :  { %5397 = vmatprep.subr.mxu0 %v7271_v61  ;;  %v7404_v61 = vld [vmem:[%s15201_s6 + $0x1710] sm:$0xff] }
 0x58f   :  { %5398 = vmatpush1.msra.mxu0 %v7270_v49  ;;  %v7403_v49 = vld [vmem:[%s15201_s6 + $0x1708] sm:$0xff] }
 0x590   :  { %5399 = vmatprep.subr.mxu0 %v7269_v5  ;;  %v7402_v5 = vld [vmem:[%s15201_s6 + $0x1700] sm:$0xff] }
 0x591   :  { %5400 = vmatpush1.msra.mxu0 %v7268_v59  ;;  %v7401_v59 = vld [vmem:[%s15201_s6 + $0x16f8] sm:$0xff] }
 0x592   :  { %5401 = vmatprep.subr.mxu0 %v7267_v38  ;;  %v7400_v38 = vld [vmem:[%s15201_s6 + $0x16f0] sm:$0xff] }
 0x593   :  { %5402 = vmatpush1.msra.mxu0 %v7266_v40  ;;  %v7399_v40 = vld [vmem:[%s15201_s6 + $0x16e8] sm:$0xff] }
 0x594   :  { %5403 = vmatprep.subr.mxu0 %v7329_v11  ;;  %v7398_v11 = vld [vmem:[%s15201_s6 + $0x16e0] sm:$0xff] }
 0x595   :  { %5404 = vmatpush2.msra.mxu0 %v7328_v46  ;;  %v7397_v46 = vld [vmem:[%s15201_s6 + $0x16d8] sm:$0xff] }
 0x596   :  { %5405 = vmatprep.subr.mxu0 %v7327_v25  ;;  %v7396_v25 = vld [vmem:[%s15201_s6 + $0x16d0] sm:$0xff] }
 0x597   :  { %5406 = vmatpush2.msra.mxu0 %v7326_v41  ;;  %v7395_v41 = vld [vmem:[%s15201_s6 + $0x16c8] sm:$0xff] }
 0x598   :  { %5407 = vmatprep.subr.mxu0 %v7325_v29  ;;  %v7394_v29 = vld [vmem:[%s15201_s6 + $0x16c0] sm:$0xff] }
 0x599   :  { %5408 = vmatpush2.msra.mxu0 %v7324_v20  ;;  %v7457_v20 = vld [vmem:[%s15201_s6 + $0x18b8] sm:$0xff] }
 0x59a   :  { %5409 = vmatprep.subr.mxu0 %v7323_v1  ;;  %v7456_v1 = vld [vmem:[%s15201_s6 + $0x18b0] sm:$0xff] }
 0x59b   :  { %5410 = vmatpush2.msra.mxu0 %v7322_v2  ;;  %v7455_v2 = vld [vmem:[%s15201_s6 + $0x18a8] sm:$0xff] }
 0x59c   :  { %5411 = vmatprep.subr.mxu0 %v7321_v22  ;;  %v7454_v22 = vld [vmem:[%s15201_s6 + $0x18a0] sm:$0xff] }
 0x59d   :  { %5412 = vmatpush2.msra.mxu0 %v7320_v52  ;;  %v7453_v52 = vld [vmem:[%s15201_s6 + $0x1898] sm:$0xff] }
 0x59e   :  { %5413 = vmatprep.subr.mxu0 %v7319_v55  ;;  %v7452_v55 = vld [vmem:[%s15201_s6 + $0x1890] sm:$0xff] }
 0x59f   :  { %5414 = vmatpush2.msra.mxu0 %v7318_v24  ;;  %v7451_v24 = vld [vmem:[%s15201_s6 + $0x1888] sm:$0xff] }
 0x5a0   :  { %5415 = vmatprep.subr.mxu0 %v7317_v44  ;;  %v7450_v44 = vld [vmem:[%s15201_s6 + $0x1880] sm:$0xff] }
 0x5a1   :  { %5416 = vmatpush2.msra.mxu0 %v7316_v45  ;;  %v7449_v45 = vld [vmem:[%s15201_s6 + $0x1878] sm:$0xff] }
 0x5a2   :  { %5417 = vmatprep.subr.mxu0 %v7315_v18  ;;  %v7448_v18 = vld [vmem:[%s15201_s6 + $0x1870] sm:$0xff] }
 0x5a3   :  { %5418 = vmatpush2.msra.mxu0 %v7314_v0  ;;  %v7447_v0 = vld [vmem:[%s15201_s6 + $0x1868] sm:$0xff] }
 0x5a4   :  { %5419 = vmatprep.subr.mxu0 %v7313_v23  ;;  %v7446_v23 = vld [vmem:[%s15201_s6 + $0x1860] sm:$0xff] }
 0x5a5   :  { %5420 = vmatpush2.msra.mxu0 %v7312_v7  ;;  %v7445_v7 = vld [vmem:[%s15201_s6 + $0x1858] sm:$0xff] }
 0x5a6   :  { %5421 = vmatprep.subr.mxu0 %v7311_v21  ;;  %v7444_v21 = vld [vmem:[%s15201_s6 + $0x1850] sm:$0xff] }
 0x5a7   :  { %5422 = vmatpush2.msra.mxu0 %v7310_v33  ;;  %v7443_v33 = vld [vmem:[%s15201_s6 + $0x1848] sm:$0xff] }
 0x5a8   :  { %5423 = vmatprep.subr.mxu0 %v7309_v48  ;;  %v7442_v48 = vld [vmem:[%s15201_s6 + $0x1840] sm:$0xff] }
 0x5a9   :  { %5424 = vmatpush2.msra.mxu0 %v7308_v57  ;;  %v7441_v57 = vld [vmem:[%s15201_s6 + $0x1838] sm:$0xff] }
 0x5aa   :  { %5425 = vmatprep.subr.mxu0 %v7307_v4  ;;  %v7440_v4 = vld [vmem:[%s15201_s6 + $0x1830] sm:$0xff] }
 0x5ab   :  { %5426 = vmatpush2.msra.mxu0 %v7306_v60  ;;  %v7439_v60 = vld [vmem:[%s15201_s6 + $0x1828] sm:$0xff] }
 0x5ac   :  { %5427 = vmatprep.subr.mxu0 %v7305_v19  ;;  %v7438_v19 = vld [vmem:[%s15201_s6 + $0x1820] sm:$0xff] }
 0x5ad   :  { %5428 = vmatpush2.msra.mxu0 %v7304_v54  ;;  %v7437_v54 = vld [vmem:[%s15201_s6 + $0x1818] sm:$0xff] }
 0x5ae   :  { %5429 = vmatprep.subr.mxu0 %v7303_v14  ;;  %v7436_v14 = vld [vmem:[%s15201_s6 + $0x1810] sm:$0xff] }
 0x5af   :  { %5430 = vmatpush2.msra.mxu0 %v7302_v35  ;;  %v7435_v35 = vld [vmem:[%s15201_s6 + $0x1808] sm:$0xff] }
 0x5b0   :  { %5431 = vmatprep.subr.mxu0 %v7301_v16  ;;  %v7434_v16 = vld [vmem:[%s15201_s6 + $0x1800] sm:$0xff] }
 0x5b1   :  { %5432 = vmatpush2.msra.mxu0 %v7300_v6  ;;  %v7433_v6 = vld [vmem:[%s15201_s6 + $0x17f8] sm:$0xff] }
 0x5b2   :  { %5433 = vmatprep.subr.mxu0 %v7299_v3  ;;  %v7432_v3 = vld [vmem:[%s15201_s6 + $0x17f0] sm:$0xff] }
 0x5b3   :  { %5434 = vmatpush2.msra.mxu0 %v7298_v32  ;;  %v7431_v32 = vld [vmem:[%s15201_s6 + $0x17e8] sm:$0xff] }
 0x5b4   :  { %5436 = vmatmul.mubr.f32.vlgmr.msra.gmra.mxu0 %v12380_v31  ;;  %5513 = vmatprep.subr.mxu0 %v7425_v17  ;;  %v7419_v31 = vld [vmem:[%s15201_s6 + $0x1788] sm:$0xff]  ;;  %v7430_v17 = vld [vmem:[%s15201_s6 + $0x17e0] sm:$0xff] }
 0x5b5   :  { %5514 = vmatpush1.msra.mxu0 %v7424_v39  ;;  %5577 = vmatprep.mubr.f32.mxu0 %v12618_v42  ;;  %v7417_v42 = vld [vmem:[%s15201_s6 + $0x1778] sm:$0xff] }
 0x5b6   :  { %5515 = vmatprep.subr.mxu0 %v7423_v9  ;;  %v7429_v39 = vld [vmem:[%s15201_s6 + $0x17d8] sm:$0xff]  ;;  %v7428_v9 = vld [vmem:[%s15201_s6 + $0x17d0] sm:$0xff] }
 0x5b7   :  { %5516 = vmatpush1.msra.mxu0 %v7422_v28  ;;  %v7427_v28 = vld [vmem:[%s15201_s6 + $0x17c8] sm:$0xff] }
 0x5b8   :  { %5517 = vmatprep.subr.mxu0 %v7421_v37  ;;  %v7426_v37 = vld [vmem:[%s15201_s6 + $0x17c0] sm:$0xff] }
 0x5b9   :  { %5518 = vmatpush1.msra.mxu0 %v7420_v26  ;;  %v5690_v26 = vld [vmem:[%s15203_s7 + $0xf8] sm:$0xff] }
 0x5ba   :  { %5519 = vmatprep.subr.mxu0 %v7419_v31  ;;  %v5689_v31 = vld [vmem:[%s15203_s7 + $0xf0] sm:$0xff]  ;;  %5725 = vmatprep.subr.mxu1 %v5690_v26 }
 0x5bb   :  { %5520 = vmatpush1.msra.mxu0 %v7418_v56  ;;  %v5688_v56 = vld [vmem:[%s15203_s7 + $0xe8] sm:$0xff]  ;;  %5726 = vmatpush1.msra.mxu1 %v5689_v31  ;;  %v3980_v31 = vpop.f32.mrf.mxu1 }
 0x5bc   :  { %5521 = vmatprep.subr.mxu0 %v7417_v42  ;;  %v5687_v42 = vld [vmem:[%s15203_s7 + $0xe0] sm:$0xff]  ;;  %5727 = vmatprep.subr.mxu1 %v5688_v56 }
 0x5bd   :  { %5522 = vmatpush1.msra.mxu0 %v7416_v58  ;;  %v5685_v58 = vld [vmem:[%s15203_s7 + $0xd0] sm:$0xff]  ;;  %5728 = vmatpush1.msra.mxu1 %v5687_v42  ;;  %v3982_v42 = vpop.f32.mrf.mxu1 }
 0x5be   :  { %5523 = vmatprep.subr.mxu0 %v7415_v50  ;;  %v5684_v50 = vld [vmem:[%s15203_s7 + $0xc8] sm:$0xff] }
 0x5bf   :  { %5524 = vmatpush1.msra.mxu0 %v7414_v8  ;;  %v5683_v8 = vld [vmem:[%s15203_s7 + $0xc0] sm:$0xff] }
 0x5c0   :  { %5525 = vmatprep.subr.mxu0 %v7413_v12  ;;  %v5682_v12 = vld [vmem:[%s15203_s7 + $0xb8] sm:$0xff] }
 0x5c1   :  { %5526 = vmatpush1.msra.mxu0 %v7412_v13  ;;  %v5681_v13 = vld [vmem:[%s15203_s7 + $0xb0] sm:$0xff] }
 0x5c2   :  { %5527 = vmatprep.subr.mxu0 %v7411_v47  ;;  %v5680_v47 = vld [vmem:[%s15203_s7 + $0xa8] sm:$0xff] }
 0x5c3   :  { %5528 = vmatpush1.msra.mxu0 %v7410_v10  ;;  %v5679_v10 = vld [vmem:[%s15203_s7 + $0xa0] sm:$0xff] }
 0x5c4   :  { %5529 = vmatprep.subr.mxu0 %v7409_v30  ;;  %v5678_v30 = vld [vmem:[%s15203_s7 + $0x98] sm:$0xff] }
 0x5c5   :  { %5530 = vmatpush1.msra.mxu0 %v7408_v51  ;;  %v5677_v51 = vld [vmem:[%s15203_s7 + $0x90] sm:$0xff] }
 0x5c6   :  { %5531 = vmatprep.subr.mxu0 %v7407_v36  ;;  %v5676_v36 = vld [vmem:[%s15203_s7 + $0x88] sm:$0xff] }
 0x5c7   :  { %5532 = vmatpush1.msra.mxu0 %v7406_v43  ;;  %v5675_v43 = vld [vmem:[%s15203_s7 + $0x80] sm:$0xff] }
 0x5c8   :  { %5533 = vmatprep.subr.mxu0 %v7405_v27  ;;  %v5674_v27 = vld [vmem:[%s15203_s7 + $0x78] sm:$0xff] }
 0x5c9   :  { %5534 = vmatpush1.msra.mxu0 %v7404_v61  ;;  %v5673_v61 = vld [vmem:[%s15203_s7 + $0x70] sm:$0xff] }
 0x5ca   :  { %5535 = vmatprep.subr.mxu0 %v7403_v49  ;;  %v5672_v49 = vld [vmem:[%s15203_s7 + $0x68] sm:$0xff] }
 0x5cb   :  { %5536 = vmatpush1.msra.mxu0 %v7402_v5  ;;  %v5671_v5 = vld [vmem:[%s15203_s7 + $0x60] sm:$0xff] }
 0x5cc   :  { %5537 = vmatprep.subr.mxu0 %v7401_v59  ;;  %v5670_v59 = vld [vmem:[%s15203_s7 + $0x58] sm:$0xff] }
 0x5cd   :  { %5538 = vmatpush1.msra.mxu0 %v7400_v38  ;;  %v5669_v38 = vld [vmem:[%s15203_s7 + $0x50] sm:$0xff] }
 0x5ce   :  { %5539 = vmatprep.subr.mxu0 %v7399_v40  ;;  %v5668_v40 = vld [vmem:[%s15203_s7 + $0x48] sm:$0xff] }
 0x5cf   :  { %5540 = vmatpush1.msra.mxu0 %v7398_v11  ;;  %v5667_v11 = vld [vmem:[%s15203_s7 + $0x40] sm:$0xff] }
 0x5d0   :  { %5541 = vmatprep.subr.mxu0 %v7397_v46  ;;  %v5666_v46 = vld [vmem:[%s15203_s7 + $0x38] sm:$0xff] }
 0x5d1   :  { %5542 = vmatpush1.msra.mxu0 %v7396_v25  ;;  %v5665_v25 = vld [vmem:[%s15203_s7 + $0x30] sm:$0xff] }
 0x5d2   :  { %5543 = vmatprep.subr.mxu0 %v7395_v41  ;;  %v5664_v41 = vld [vmem:[%s15203_s7 + $0x28] sm:$0xff] }
 0x5d3   :  { %5544 = vmatpush1.msra.mxu0 %v7394_v29  ;;  %v5663_v29 = vld [vmem:[%s15203_s7 + $0x20] sm:$0xff] }
 0x5d4   :  { %5545 = vmatprep.subr.mxu0 %v7457_v20  ;;  %v5662_v20 = vld [vmem:[%s15203_s7 + $0x18] sm:$0xff] }
 0x5d5   :  { %5546 = vmatpush2.msra.mxu0 %v7456_v1  ;;  %v5661_v1 = vld [vmem:[%s15203_s7 + $0x10] sm:$0xff] }
 0x5d6   :  { %5547 = vmatprep.subr.mxu0 %v7455_v2  ;;  %v5660_v2 = vld [vmem:[%s15203_s7 + $0x8] sm:$0xff] }
 0x5d7   :  { %5548 = vmatpush2.msra.mxu0 %v7454_v22  ;;  %v5659_v22 = vld [vmem:[%s15203_s7] sm:$0xff] }
 0x5d8   :  { %5549 = vmatprep.subr.mxu0 %v7453_v52  ;;  %v5708_v52 = vld [vmem:[%s15203_s7 + $0x188] sm:$0xff] }
 0x5d9   :  { %5550 = vmatpush2.msra.mxu0 %v7452_v55  ;;  %v5707_v55 = vld [vmem:[%s15203_s7 + $0x180] sm:$0xff] }
 0x5da   :  { %5551 = vmatprep.subr.mxu0 %v7451_v24  ;;  %v5706_v24 = vld [vmem:[%s15203_s7 + $0x178] sm:$0xff] }
 0x5db   :  { %5552 = vmatpush2.msra.mxu0 %v7450_v44  ;;  %v5705_v44 = vld [vmem:[%s15203_s7 + $0x170] sm:$0xff] }
 0x5dc   :  { %5553 = vmatprep.subr.mxu0 %v7449_v45  ;;  %v5704_v45 = vld [vmem:[%s15203_s7 + $0x168] sm:$0xff] }
 0x5dd   :  { %5554 = vmatpush2.msra.mxu0 %v7448_v18  ;;  %v5703_v18 = vld [vmem:[%s15203_s7 + $0x160] sm:$0xff] }
 0x5de   :  { %5555 = vmatprep.subr.mxu0 %v7447_v0  ;;  %v5702_v0 = vld [vmem:[%s15203_s7 + $0x158] sm:$0xff] }
 0x5df   :  { %5556 = vmatpush2.msra.mxu0 %v7446_v23  ;;  %v5701_v23 = vld [vmem:[%s15203_s7 + $0x150] sm:$0xff] }
 0x5e0   :  { %5557 = vmatprep.subr.mxu0 %v7445_v7  ;;  %v5700_v7 = vld [vmem:[%s15203_s7 + $0x148] sm:$0xff] }
 0x5e1   :  { %5558 = vmatpush2.msra.mxu0 %v7444_v21  ;;  %v5699_v21 = vld [vmem:[%s15203_s7 + $0x140] sm:$0xff] }
 0x5e2   :  { %5559 = vmatprep.subr.mxu0 %v7443_v33  ;;  %v5698_v33 = vld [vmem:[%s15203_s7 + $0x138] sm:$0xff] }
 0x5e3   :  { %5560 = vmatpush2.msra.mxu0 %v7442_v48  ;;  %v5697_v48 = vld [vmem:[%s15203_s7 + $0x130] sm:$0xff] }
 0x5e4   :  { %5561 = vmatprep.subr.mxu0 %v7441_v57  ;;  %v5696_v57 = vld [vmem:[%s15203_s7 + $0x128] sm:$0xff] }
 0x5e5   :  { %5562 = vmatpush2.msra.mxu0 %v7440_v4  ;;  %v5695_v4 = vld [vmem:[%s15203_s7 + $0x120] sm:$0xff] }
 0x5e6   :  { %5563 = vmatprep.subr.mxu0 %v7439_v60  ;;  %v5694_v60 = vld [vmem:[%s15203_s7 + $0x118] sm:$0xff] }
 0x5e7   :  { %5564 = vmatpush2.msra.mxu0 %v7438_v19  ;;  %v5839_v19 = vld [vmem:[%s15204_s9 + $0xf8] sm:$0xff] }
 0x5e8   :  { %5565 = vmatprep.subr.mxu0 %v7437_v54  ;;  %v5823_v54 = vld [vmem:[%s15204_s9 + $0x78] sm:$0xff] }
 0x5e9   :  { %5566 = vmatpush2.msra.mxu0 %v7436_v14  ;;  %v5693_v14 = vld [vmem:[%s15203_s7 + $0x110] sm:$0xff] }
 0x5ea   :  { %5567 = vmatprep.subr.mxu0 %v7435_v35  ;;  %v5838_v35 = vld [vmem:[%s15204_s9 + $0xf0] sm:$0xff] }
 0x5eb   :  { %5568 = vmatpush2.msra.mxu0 %v7434_v16  ;;  %v5822_v16 = vld [vmem:[%s15204_s9 + $0x70] sm:$0xff] }
 0x5ec   :  { %5569 = vmatprep.subr.mxu0 %v7433_v6  ;;  %v5692_v6 = vld [vmem:[%s15203_s7 + $0x108] sm:$0xff] }
 0x5ed   :  { %5570 = vmatpush2.msra.mxu0 %v7432_v3  ;;  %v5837_v3 = vld [vmem:[%s15204_s9 + $0xe8] sm:$0xff] }
 0x5ee   :  { %5571 = vmatprep.subr.mxu0 %v7431_v32  ;;  %v5691_v32 = vld [vmem:[%s15203_s7 + $0x100] sm:$0xff] }
 0x5ef   :  { %5572 = vmatpush2.msra.mxu0 %v7430_v17  ;;  %v5821_v17 = vld [vmem:[%s15204_s9 + $0x68] sm:$0xff] }
 0x5f0   :  { %5573 = vmatprep.subr.mxu0 %v7429_v39  ;;  %v7533_v39 = vld [vmem:[%s15204_s9 + $0x2f8] sm:$0xff] }
 0x5f1   :  { %5574 = vmatpush2.msra.mxu0 %v7428_v9  ;;  %v4051_v9 = vpop.f32.mrf.mxu0 }
 0x5f2   :  { %5575 = vmatprep.subr.mxu0 %v7427_v28 }
 0x5f3   :  { %5576 = vmatpush2.msra.mxu0 %v7426_v37  ;;  %v4053_v28 = vpop.f32.mrf.mxu0 }
 0x5f4   :  { %5578 = vmatmul.mubr.f32.vlgmr.msra.gmra.mxu0 %v12624_v34  ;;  %v5686_v34 = vld [vmem:[%s15203_s7 + $0xd8] sm:$0xff]  ;;  %7934 = vmatprep.subr.mxu0 %v5839_v19 }
 0x5f5   :  { %5729 = vmatprep.subr.mxu1 %v5686_v34  ;;  %7935 = vmatpush3.msra.mxu0 %v5823_v54  ;;  %v4193_v37 = vpop.f32.mrf.mxu0 }
 0x5f6   :  { %5730 = vmatpush1.msra.mxu1 %v5685_v58  ;;  %7936 = vmatprep.subr.mxu0 %v5838_v35  ;;  %v4122_v58 = vpop.f32.mrf.mxu1 }
 0x5f7   :  { %5731 = vmatprep.subr.mxu1 %v5684_v50  ;;  %7937 = vmatpush3.msra.mxu0 %v5822_v16  ;;  %v4195_v26 = vpop.f32.mrf.mxu0 }
 0x5f8   :  { %5732 = vmatpush1.msra.mxu1 %v5683_v8  ;;  %7938 = vmatprep.subr.mxu0 %v5837_v3  ;;  %v4124_v8 = vpop.f32.mrf.mxu1 }
 0x5f9   :  { %5733 = vmatprep.subr.mxu1 %v5682_v12  ;;  %7939 = vmatpush3.msra.mxu0 %v5821_v17  ;;  %v4465_v56 = vpop.f32.mrf.mxu0 }
 0x5fa   :  { %5734 = vmatpush1.msra.mxu1 %v5681_v13  ;;  %v4536_v13 = vpop.f32.mrf.mxu1 }
 0x5fb   :  { %5735 = vmatprep.subr.mxu1 %v5680_v47  ;;  %v4467_v34 = vpop.f32.mrf.mxu0 }
 0x5fc   :  { %5736 = vmatpush1.msra.mxu1 %v5679_v10  ;;  %v4538_v10 = vpop.f32.mrf.mxu1 }
 0x5fd   :  { %5737 = vmatprep.subr.mxu1 %v5678_v30  ;;  %v4607_v50 = vpop.f32.mrf.mxu0 }
 0x5fe   :  { %5738 = vmatpush1.msra.mxu1 %v5677_v51  ;;  %v4952_v51 = vpop.f32.mrf.mxu1 }
 0x5ff   :  { %5739 = vmatprep.subr.mxu1 %v5676_v36  ;;  %v4609_v12 = vpop.f32.mrf.mxu0 }
 0x600   :  { %5740 = vmatpush1.msra.mxu1 %v5675_v43  ;;  %v4954_v43 = vpop.f32.mrf.mxu1 }
 0x601   :  { %5741 = vmatprep.subr.mxu1 %v5674_v27  ;;  %v4678_v47 = vpop.f32.mrf.mxu0 }
 0x602   :  { %5742 = vmatpush1.msra.mxu1 %v5673_v61  ;;  %v5094_v61 = vpop.f32.mrf.mxu1 }
 0x603   :  { %5743 = vmatprep.subr.mxu1 %v5672_v49  ;;  %v4680_v30 = vpop.f32.mrf.mxu0 }
 0x604   :  { %5744 = vmatpush1.msra.mxu1 %v5671_v5  ;;  %v5096_v5 = vpop.f32.mrf.mxu1 }
 0x605   :  { %5745 = vmatprep.subr.mxu1 %v5670_v59 }
 0x606   :  { %5746 = vmatpush1.msra.mxu1 %v5669_v38 }
 0x607   :  { %5747 = vmatprep.subr.mxu1 %v5668_v40 }
 0x608   :  { %5748 = vmatpush1.msra.mxu1 %v5667_v11 }
 0x609   :  { %5749 = vmatprep.subr.mxu1 %v5666_v46 }
 0x60a   :  { %5750 = vmatpush1.msra.mxu1 %v5665_v25 }
 0x60b   :  { %5751 = vmatprep.subr.mxu1 %v5664_v41  ;;  %v4539_v41 = vadd.f32 %v4538_v10, %v4467_v34  ;;  %v7515_v34 = vld [vmem:[%s15204_s9 + $0x268] sm:$0xff]  ;;  %v5834_v10 = vld [vmem:[%s15204_s9 + $0xd0] sm:$0xff] }
 0x60c   :  { %5752 = vmatpush1.msra.mxu1 %v5663_v29 }
 0x60d   :  { %5753 = vmatprep.subr.mxu1 %v5662_v20 }
 0x60e   :  { %5754 = vmatpush1.msra.mxu1 %v5661_v1  ;;  %v4054_v1 = vadd.f32 %v4053_v28, %v3982_v42  ;;  %v5836_v42 = vld [vmem:[%s15204_s9 + $0xe0] sm:$0xff] }
 0x60f   :  { %5755 = vmatprep.subr.mxu1 %v5660_v2  ;;  %v4537_v2 = vadd.f32 %v4536_v13, %v4465_v56  ;;  %v7532_v56 = vld [vmem:[%s15204_s9 + $0x2f0] sm:$0xff]  ;;  %7940 = vmatprep.subr.mxu0 %v5836_v42  ;;  %v5819_v13 = vld [vmem:[%s15204_s9 + $0x58] sm:$0xff] }
 0x610   :  { %5756 = vmatpush1.msra.mxu1 %v5659_v22 }
 0x611   :  { %5771 = vmatprep.subr.mxu1 %v5708_v52 }
 0x612   :  { %5772 = vmatpush2.msra.mxu1 %v5707_v55  ;;  %v4610_v55 = vadd.f32 %v4609_v12, %v4539_v41  ;;  %v7514_v12 = vld [vmem:[%s15204_s9 + $0x260] sm:$0xff]  ;;  %v7525_v41 = vld [vmem:[%s15204_s9 + $0x2b8] sm:$0xff] }
 0x613   :  { %5773 = vmatprep.subr.mxu1 %v5706_v24 }
 0x614   :  { %5774 = vmatpush2.msra.mxu1 %v5705_v44 }
 0x615   :  { %5775 = vmatprep.subr.mxu1 %v5704_v45  ;;  %v4052_v45 = vadd.f32 %v4051_v9, %v3980_v31  ;;  %v7517_v31 = vld [vmem:[%s15204_s9 + $0x278] sm:$0xff] }
 0x616   :  { %5776 = vmatpush2.msra.mxu1 %v5703_v18  ;;  %v4125_v18 = vadd.f32 %v4124_v8, %v4054_v1  ;;  %v5835_v8 = vld [vmem:[%s15204_s9 + $0xd8] sm:$0xff]  ;;  %v5814_v1 = vld [vmem:[%s15204_s9 + $0x30] sm:$0xff] }
 0x617   :  { %5777 = vmatprep.subr.mxu1 %v5702_v0  ;;  %v4608_v0 = vadd.f32 %v4607_v50, %v4537_v2  ;;  %v7530_v50 = vld [vmem:[%s15204_s9 + $0x2e0] sm:$0xff]  ;;  %v7524_v2 = vld [vmem:[%s15204_s9 + $0x2b0] sm:$0xff] }
 0x618   :  { %5778 = vmatpush2.msra.mxu1 %v5701_v23 }
 0x619   :  { %5779 = vmatprep.subr.mxu1 %v5700_v7 }
 0x61a   :  { %5780 = vmatpush2.msra.mxu1 %v5699_v21  ;;  %v4681_v21 = vadd.f32 %v4680_v30, %v4610_v55  ;;  %v7513_v30 = vld [vmem:[%s15204_s9 + $0x258] sm:$0xff]  ;;  %v5813_v55 = vld [vmem:[%s15204_s9 + $0x28] sm:$0xff] }
 0x61b   :  { %5781 = vmatprep.subr.mxu1 %v5698_v33 }
 0x61c   :  { %5782 = vmatpush2.msra.mxu1 %v5697_v48 }
 0x61d   :  { %5783 = vmatprep.subr.mxu1 %v5696_v57 }
 0x61e   :  { %5784 = vmatpush2.msra.mxu1 %v5695_v4  ;;  %v4123_v4 = vadd.f32 %v4122_v58, %v4052_v45  ;;  %v5820_v58 = vld [vmem:[%s15204_s9 + $0x60] sm:$0xff]  ;;  %v7507_v45 = vld [vmem:[%s15204_s9 + $0x228] sm:$0xff] }
 0x61f   :  { %5785 = vmatprep.subr.mxu1 %v5694_v60  ;;  %v4679_v60 = vadd.f32 %v4678_v47, %v4608_v0  ;;  %7941 = vmatpush3.msra.mxu0 %v5820_v58  ;;  %v7529_v47 = vld [vmem:[%s15204_s9 + $0x2d8] sm:$0xff]  ;;  %v7522_v0 = vld [vmem:[%s15204_s9 + $0x2a0] sm:$0xff] }
 0x620   :  { %5786 = vmatpush2.msra.mxu1 %v5693_v14  ;;  %v4196_v14 = vadd.f32 %v4195_v26, %v4125_v18  ;;  %v7531_v26 = vld [vmem:[%s15204_s9 + $0x2e8] sm:$0xff]  ;;  %7942 = vmatprep.subr.mxu0 %v5835_v8  ;;  %v5812_v18 = vld [vmem:[%s15204_s9 + $0x20] sm:$0xff] }
 0x621   :  { %5787 = vmatprep.subr.mxu1 %v5692_v6  ;;  %v4194_v6 = vadd.f32 %v4193_v37, %v4123_v4  ;;  %v7516_v37 = vld [vmem:[%s15204_s9 + $0x270] sm:$0xff]  ;;  %7943 = vmatpush3.msra.mxu0 %v5819_v13 }
 0x622   :  { %5788 = vmatpush2.msra.mxu1 %v5691_v32  ;;  %v4684_v32 = vmax.f32 %v4196_v14, %v4681_v21  ;;  %7944 = vmatprep.subr.mxu0 %v5834_v10  ;;  %v5811_v21 = vld [vmem:[%s15204_s9 + $0x18] sm:$0xff]  ;;  %v5810_v4 = vld [vmem:[%s15204_s9 + $0x10] sm:$0xff]  ;;  %v5809_v14 = vld [vmem:[%s15204_s9 + $0x8] sm:$0xff] }
 0x623   :  { %8004 = vmatprep.subr.mxu1 %v7533_v39  ;;  %v4683_v39 = vmax.f32 %v4194_v6, %v4679_v60  ;;  %v7520_v60 = vld [vmem:[%s15204_s9 + $0x290] sm:$0xff]  ;;  %v7503_v6 = vld [vmem:[%s15204_s9 + $0x208] sm:$0xff] }
 0x629   :  { %v5023_v36 = vpop.f32.mrf.mxu0 }
 0x62a   :  { %v5024_v11 = vadd.f32 %v5023_v36, %v4952_v51  ;;  %v5818_v51 = vld [vmem:[%s15204_s9 + $0x50] sm:$0xff] }
 0x62b   :  { %v5025_v27 = vpop.f32.mrf.mxu0  ;;  %v7528_v36 = vld [vmem:[%s15204_s9 + $0x2d0] sm:$0xff]  ;;  %7945 = vmatpush3.msra.mxu0 %v5818_v51 }
 0x62c   :  { %v5026_v29 = vadd.f32 %v5025_v27, %v4954_v43  ;;  %v5095_v23 = vadd.f32 %v5094_v61, %v5024_v11  ;;  %v5833_v43 = vld [vmem:[%s15204_s9 + $0xc8] sm:$0xff]  ;;  %v7512_v27 = vld [vmem:[%s15204_s9 + $0x250] sm:$0xff]  ;;  %v5831_v11 = vld [vmem:[%s15204_s9 + $0xb8] sm:$0xff] }
 0x62d   :  { %v5817_v61 = vld [vmem:[%s15204_s9 + $0x48] sm:$0xff]  ;;  %7946 = vmatprep.subr.mxu0 %v5833_v43  ;;  %v7484_v51 = vld [vmem:[%s15204_s9 + $0x170] sm:$0xff] }
 0x62e   :  { %v5097_v33 = vadd.f32 %v5096_v5, %v5026_v29  ;;  %v5832_v5 = vld [vmem:[%s15204_s9 + $0xc0] sm:$0xff]  ;;  %7947 = vmatpush3.msra.mxu0 %v5817_v61  ;;  %v5830_v29 = vld [vmem:[%s15204_s9 + $0xb0] sm:$0xff]  ;;  %v7483_v43 = vld [vmem:[%s15204_s9 + $0x168] sm:$0xff] }
 0x62f   :  { %7948 = vmatprep.subr.mxu0 %v5832_v5  ;;  %v7482_v61 = vld [vmem:[%s15204_s9 + $0x160] sm:$0xff]  ;;  %v7481_v5 = vld [vmem:[%s15204_s9 + $0x158] sm:$0xff] }
 0x632   :  { %v5165_v49 = vpop.f32.mrf.mxu0 }
 0x633   :  { %v5166_v19 = vadd.f32 %v5165_v49, %v5095_v23  ;;  %v7527_v49 = vld [vmem:[%s15204_s9 + $0x2c8] sm:$0xff]  ;;  %v5827_v23 = vld [vmem:[%s15204_s9 + $0x98] sm:$0xff] }
 0x634   :  { %v5167_v59 = vpop.f32.mrf.mxu0 }
 0x635   :  { %v5168_v35 = vadd.f32 %v5167_v59, %v5097_v33  ;;  %v7511_v59 = vld [vmem:[%s15204_s9 + $0x248] sm:$0xff]  ;;  %v7521_v33 = vld [vmem:[%s15204_s9 + $0x298] sm:$0xff] }
 0x640   :  { %v5508_v38 = vpop.f32.mrf.mxu1 }
 0x642   :  { %v5510_v46 = vpop.f32.mrf.mxu1 }
 0x649   :  { %v5650_v22 = vpop.f32.mrf.mxu1 }
 0x64b   :  { %v5652_v54 = vpop.f32.mrf.mxu1 }
 0x674   :  { %v5437_v40 = vpop.f32.mrf.mxu0 }
 0x675   :  { %v5509_v20 = vadd.f32 %v5508_v38, %v5437_v40  ;;  %v5816_v38 = vld [vmem:[%s15204_s9 + $0x40] sm:$0xff] }
 0x676   :  { %v5439_v25 = vpop.f32.mrf.mxu0  ;;  %v7526_v40 = vld [vmem:[%s15204_s9 + $0x2c0] sm:$0xff]  ;;  %7949 = vmatpush3.msra.mxu0 %v5816_v38  ;;  %v7480_v38 = vld [vmem:[%s15204_s9 + $0x150] sm:$0xff] }
 0x677   :  { %v5511_v24 = vadd.f32 %v5510_v46, %v5439_v25  ;;  %v7510_v46 = vld [vmem:[%s15204_s9 + $0x240] sm:$0xff]  ;;  %v5815_v25 = vld [vmem:[%s15204_s9 + $0x38] sm:$0xff]  ;;  %7950 = vmatprep.subr.mxu0 %v5831_v11  ;;  %v7479_v11 = vld [vmem:[%s15204_s9 + $0x148] sm:$0xff] }
 0x678   :  { %7951 = vmatpush3.msra.mxu0 %v5815_v25  ;;  %v7478_v25 = vld [vmem:[%s15204_s9 + $0x140] sm:$0xff] }
 0x679   :  { %7952 = vmatprep.subr.mxu0 %v5830_v29  ;;  %v7477_v29 = vld [vmem:[%s15204_s9 + $0x138] sm:$0xff] }
 0x67a   :  { %7953 = vmatpush3.msra.mxu0 %v5814_v1  ;;  %v7476_v1 = vld [vmem:[%s15204_s9 + $0x130] sm:$0xff] }
 0x6b4   :  { %v5579_v52 = vpop.f32.mrf.mxu0 }
 0x6b5   :  { %v5580_v44 = vadd.f32 %v5579_v52, %v5509_v20  ;;  %v7509_v20 = vld [vmem:[%s15204_s9 + $0x238] sm:$0xff]  ;;  %v7508_v52 = vld [vmem:[%s15204_s9 + $0x230] sm:$0xff] }
 0x6b6   :  { %v5581_v7 = vpop.f32.mrf.mxu0 }
 0x6b7   :  { %v5651_v48 = vadd.f32 %v5650_v22, %v5580_v44  ;;  %v5582_v57 = vadd.f32 %v5581_v7, %v5511_v24  ;;  %v5829_v22 = vld [vmem:[%s15204_s9 + $0xa8] sm:$0xff]  ;;  %v5828_v44 = vld [vmem:[%s15204_s9 + $0xa0] sm:$0xff] }
 0x6b8   :  { %v7523_v24 = vld [vmem:[%s15204_s9 + $0x2a8] sm:$0xff]  ;;  %7954 = vmatprep.subr.mxu0 %v5829_v22  ;;  %v7506_v7 = vld [vmem:[%s15204_s9 + $0x220] sm:$0xff] }
 0x6b9   :  { %v5653_v16 = vadd.f32 %v5652_v54, %v5582_v57  ;;  %v5655_v3 = vmax.f32 %v5166_v19, %v5651_v48  ;;  %7955 = vmatpush3.msra.mxu0 %v5813_v55  ;;  %v5826_v48 = vld [vmem:[%s15204_s9 + $0x90] sm:$0xff]  ;;  %v7505_v57 = vld [vmem:[%s15204_s9 + $0x218] sm:$0xff]  ;;  %v5825_v19 = vld [vmem:[%s15204_s9 + $0x88] sm:$0xff] }
 0x6ba   :  { %7956 = vmatprep.subr.mxu0 %v5828_v44  ;;  %v7504_v54 = vld [vmem:[%s15204_s9 + $0x210] sm:$0xff]  ;;  %v7475_v22 = vld [vmem:[%s15204_s9 + $0x128] sm:$0xff]  ;;  %v7474_v55 = vld [vmem:[%s15204_s9 + $0x120] sm:$0xff] }
 0x6bb   :  { %v5656_v17 = vmax.f32 %v5168_v35, %v5653_v16  ;;  %v5657_v28 = vmax.f32 %v4683_v39, %v5655_v3  ;;  %7957 = vmatpush3.msra.mxu0 %v5812_v18  ;;  %v7519_v35 = vld [vmem:[%s15204_s9 + $0x288] sm:$0xff]  ;;  %v5824_v16 = vld [vmem:[%s15204_s9 + $0x80] sm:$0xff]  ;;  %v7473_v44 = vld [vmem:[%s15204_s9 + $0x118] sm:$0xff] }
 0x6bc   :  { %7958 = vmatprep.subr.mxu0 %v5827_v23  ;;  %v5808_v3 = vld [vmem:[%s15204_s9] sm:$0xff]  ;;  %v7472_v18 = vld [vmem:[%s15204_s9 + $0x110] sm:$0xff]  ;;  %v7471_v23 = vld [vmem:[%s15204_s9 + $0x108] sm:$0xff] }
 0x6bd   :  { %v5658_v9 = vmax.f32 %v4684_v32, %v5656_v17  ;;  %7959 = vmatpush3.msra.mxu0 %v5811_v21  ;;  %v7518_v32 = vld [vmem:[%s15204_s9 + $0x280] sm:$0xff]  ;;  %v7501_v17 = vld [vmem:[%s15204_s9 + $0x1f8] sm:$0xff] }
 0x6be   :  { %7960 = vmatprep.subr.mxu0 %v5826_v48  ;;  %v7502_v39 = vld [vmem:[%s15204_s9 + $0x200] sm:$0xff]  ;;  %v7549_v48 = vld [vmem:[%s15204_s9 + $0x378] sm:$0xff] }
 0x6bf   :  { %7467 = vmatprep.mubr.msk.f32.mxu1 %vm5721_vm15, %v5658_v9  ;;  %7961 = vmatpush3.msra.mxu0 %v5810_v4  ;;  %v5709_v9 = vld [vmem:[%s15205_s8] sm:$0x3]  ;;  %v7548_v4 = vld [vmem:[%s15204_s9 + $0x370] sm:$0xff] }
 0x6c0   :  { %5790 = vmatmul.mubr.f32.vlgmr.msra.gmra.mxu1 %v5657_v28  ;;  %7962 = vmatprep.subr.mxu0 %v5825_v19  ;;  %v5714_v28 = vrot.slane %v5709_v9, %v2784_v53  ;;  %v7470_v21 = vld [vmem:[%s15204_s9 + $0x100] sm:$0xff]  ;;  %v7547_v19 = vld [vmem:[%s15204_s9 + $0x368] sm:$0xff] }
 0x6c1   :  { %8005 = vmatpush3.msra.mxu1 %v7517_v31  ;;  %7963 = vmatpush3.msra.mxu0 %v5809_v14  ;;  %v5718_v31 = vrot.slane %v5709_v9, %v2788_v62  ;;  %v7546_v14 = vld [vmem:[%s15204_s9 + $0x360] sm:$0xff] }
 0x6c2   :  { %8006 = vmatprep.subr.mxu1 %v7532_v56  ;;  %7964 = vmatprep.subr.mxu0 %v5824_v16  ;;  %v7545_v16 = vld [vmem:[%s15204_s9 + $0x358] sm:$0xff]  ;;  %v7542_v9 = vld [vmem:[%s15204_s9 + $0x340] sm:$0xff] }
 0x6c3   :  { %8007 = vmatpush3.msra.mxu1 %v7516_v37  ;;  %7965 = vmatpush3.msra.mxu0 %v5808_v3  ;;  %v7544_v3 = vld [vmem:[%s15204_s9 + $0x350] sm:$0xff] }
 0x6c4   :  { %8008 = vmatprep.subr.mxu1 %v7531_v26  ;;  %7969 = vmatprep.subr.mxu0 %v7501_v17  ;;  %v7543_v17 = vld [vmem:[%s15204_s9 + $0x348] sm:$0xff] }
 0x6c5   :  { %8009 = vmatpush3.msra.mxu1 %v7515_v34 }
 0x6c6   :  { %8010 = vmatprep.subr.mxu1 %v7530_v50 }
 0x6c7   :  { %8011 = vmatpush3.msra.mxu1 %v7514_v12 }
 0x6c8   :  { %8012 = vmatprep.subr.mxu1 %v7529_v47 }
 0x6c9   :  { %8013 = vmatpush3.msra.mxu1 %v7513_v30  ;;  %v7500_v30 = vld [vmem:[%s15204_s9 + $0x1f0] sm:$0xff] }
 0x6ca   :  { %8014 = vmatprep.subr.mxu1 %v7528_v36  ;;  %v7499_v36 = vld [vmem:[%s15204_s9 + $0x1e8] sm:$0xff] }
 0x6cb   :  { %8015 = vmatpush3.msra.mxu1 %v7512_v27  ;;  %v7498_v27 = vld [vmem:[%s15204_s9 + $0x1e0] sm:$0xff] }
 0x6cc   :  { %8016 = vmatprep.subr.mxu1 %v7527_v49  ;;  %v7497_v49 = vld [vmem:[%s15204_s9 + $0x1d8] sm:$0xff] }
 0x6cd   :  { %8017 = vmatpush3.msra.mxu1 %v7511_v59  ;;  %v7496_v59 = vld [vmem:[%s15204_s9 + $0x1d0] sm:$0xff] }
 0x6ce   :  { %8018 = vmatprep.subr.mxu1 %v7526_v40  ;;  %v7495_v40 = vld [vmem:[%s15204_s9 + $0x1c8] sm:$0xff] }
 0x6cf   :  { %8019 = vmatpush3.msra.mxu1 %v7510_v46  ;;  %v7494_v46 = vld [vmem:[%s15204_s9 + $0x1c0] sm:$0xff] }
 0x6d0   :  { %8020 = vmatprep.subr.mxu1 %v7525_v41  ;;  %v7493_v41 = vld [vmem:[%s15204_s9 + $0x1b8] sm:$0xff] }
 0x6d1   :  { %8021 = vmatpush3.msra.mxu1 %v7509_v20  ;;  %v7492_v20 = vld [vmem:[%s15204_s9 + $0x1b0] sm:$0xff] }
 0x6d2   :  { %8022 = vmatprep.subr.mxu1 %v7524_v2  ;;  %v7491_v2 = vld [vmem:[%s15204_s9 + $0x1a8] sm:$0xff] }
 0x6d3   :  { %8023 = vmatpush3.msra.mxu1 %v7508_v52  ;;  %v7490_v52 = vld [vmem:[%s15204_s9 + $0x1a0] sm:$0xff] }
 0x6d4   :  { %8024 = vmatprep.subr.mxu1 %v7523_v24  ;;  %v7489_v24 = vld [vmem:[%s15204_s9 + $0x198] sm:$0xff] }
 0x6d5   :  { %8025 = vmatpush3.msra.mxu1 %v7507_v45  ;;  %v7488_v45 = vld [vmem:[%s15204_s9 + $0x190] sm:$0xff] }
 0x6d6   :  { %8026 = vmatprep.subr.mxu1 %v7522_v0  ;;  %v7487_v0 = vld [vmem:[%s15204_s9 + $0x188] sm:$0xff] }
 0x6d7   :  { %8027 = vmatpush3.msra.mxu1 %v7506_v7  ;;  %v7486_v7 = vld [vmem:[%s15204_s9 + $0x180] sm:$0xff] }
 0x6d8   :  { %8028 = vmatprep.subr.mxu1 %v7521_v33  ;;  %v7565_v33 = vld [vmem:[%s15204_s9 + $0x3f8] sm:$0xff] }
 0x6d9   :  { %8029 = vmatpush3.msra.mxu1 %v7505_v57  ;;  %v7564_v57 = vld [vmem:[%s15204_s9 + $0x3f0] sm:$0xff] }
 0x6da   :  { %8030 = vmatprep.subr.mxu1 %v7520_v60  ;;  %v7563_v60 = vld [vmem:[%s15204_s9 + $0x3e8] sm:$0xff] }
 0x6db   :  { %8031 = vmatpush3.msra.mxu1 %v7504_v54  ;;  %v7562_v54 = vld [vmem:[%s15204_s9 + $0x3e0] sm:$0xff] }
 0x6dc   :  { %8032 = vmatprep.subr.mxu1 %v7519_v35  ;;  %v7561_v35 = vld [vmem:[%s15204_s9 + $0x3d8] sm:$0xff] }
 0x6dd   :  { %8033 = vmatpush3.msra.mxu1 %v7503_v6  ;;  %v7560_v6 = vld [vmem:[%s15204_s9 + $0x3d0] sm:$0xff] }
 0x6de   :  { %8034 = vmatprep.subr.mxu1 %v7518_v32  ;;  %v7559_v32 = vld [vmem:[%s15204_s9 + $0x3c8] sm:$0xff] }
 0x6df   :  { %8035 = vmatpush3.msra.mxu1 %v7502_v39  ;;  %v7558_v39 = vld [vmem:[%s15204_s9 + $0x3c0] sm:$0xff] }
 0x6e0   :  { %8597 = vmatprep.subr.mxu1 %v8781_v63 }
 0x780   :  { %v5791_v56 = vpop.f32.mrf.mxu1 }
 0x781   :  { %v5792_v37 = vadd.f32 %v5791_v56, %v5714_v28  ;;  %v7557_v28 = vld [vmem:[%s15204_s9 + $0x3b8] sm:$0xff]  ;;  %v7556_v56 = vld [vmem:[%s15204_s9 + $0x3b0] sm:$0xff] }
 0x782   :  { %v5793_v26 = vpop.f32.mrf.mxu1 }
 0x783   :  { %v5798_v42 = vmin.f32 %v5792_v37, 0.0  ;;  %v5794_v34 = vadd.f32 %v5793_v26, %v5718_v31  ;;  %vm5796_vm2 = vcmp.gt.f32.partialorder %v5792_v37, 0.0  ;;  %v7541_v31 = vld [vmem:[%s15204_s9 + $0x338] sm:$0xff]  ;;  %v7555_v26 = vld [vmem:[%s15204_s9 + $0x3a8] sm:$0xff] }
 0x785   :  { %v5800_v58 = vmul.f32 1.442695, %v5798_v42  ;;  %v5799_v50 = vmin.f32 %v5794_v34, 0.0  ;;  %vm5797_vm1 = vcmp.gt.f32.partialorder %v5794_v34, 0.0  ;;  %v7539_v42 = vld [vmem:[%s15204_s9 + $0x328] sm:$0xff] }
 0x787   :  { %8761 = vpow2.f32 %v5800_v58  ;;  %v5802_v8 = vmul.f32 1.442695, %v5799_v50  ;;  %v7538_v58 = vld [vmem:[%s15204_s9 + $0x320] sm:$0xff]  ;;  %v7553_v50 = vld [vmem:[%s15204_s9 + $0x398] sm:$0xff] }
 0x789   :  { %8763 = vpow2.f32 %v5802_v8  ;;  %v7537_v8 = vld [vmem:[%s15204_s9 + $0x318] sm:$0xff] }
 0x794   :  { %v8762_v12 = vpop.eup %8761 }
 0x795   :  { %v7468_v47 = vadd.f32 -1.0, %v8762_v12  ;;  %v7552_v12 = vld [vmem:[%s15204_s9 + $0x390] sm:$0xff] }
 0x796   :  { %v8764_v13 = vpop.eup %8763 }
 0x797   :  { %v7469_v10 = vadd.f32 -1.0, %v8764_v13  ;;  %v14811_v62 = vsel %vm5796_vm2, %v5792_v37, %v7468_v47  ;;  %v7540_v37 = vld [vmem:[%s15204_s9 + $0x330] sm:$0xff]  ;;  %v7551_v47 = vld [vmem:[%s15204_s9 + $0x388] sm:$0xff] }
 0x798   :  { %v7536_v13 = vld [vmem:[%s15204_s9 + $0x310] sm:$0xff] }
 0x799   :  { %v14806_v53 = vsel %vm5797_vm1, %v5794_v34, %v7469_v10  ;;  %v7554_v34 = vld [vmem:[%s15204_s9 + $0x3a0] sm:$0xff]  ;;  %v7535_v10 = vld [vmem:[%s15204_s9 + $0x308] sm:$0xff] }
 0x79a   :  { %5904 = vmatprep.mubr.f32.mxu0 %v14806_v53  ;;  %6111 = vmatprep.mubr.f32.mxu1 %v14806_v53 }
 0x79b   :  { %5905 = vmatmul.mubr.f32.vlgmr.msra.gmra.mxu0 %v14811_v62  ;;  %6112 = vmatmul.mubr.f32.vlgmr.msra.gmra.mxu1 %v14811_v62 }
 0x79c   :  { %7970 = vmatpush3.msra.mxu0 %v7485_v15  ;;  %6007 = vmatprep.mubr.f32.mxu0 %v14806_v53  ;;  %v7534_v15 = vld [vmem:[%s15204_s9 + $0x300] sm:$0xff] }
 0x79d   :  { %7971 = vmatprep.subr.mxu0 %v7500_v30  ;;  %8613 = vmatprep.mubr.msk.f32.mxu1 %vm8782_vm0, %v8781_v63  ;;  %v6229_v30 = vld [vmem:[%s15206_s10 + $0x38] sm:$0xff] }
 0x79e   :  { %7972 = vmatpush3.msra.mxu0 %v7484_v51  ;;  %v6228_v51 = vld [vmem:[%s15206_s10 + $0x30] sm:$0xff]  ;;  %8598 = vmatpush3.msra.mxu1 %v6229_v30 }
 0x79f   :  { %7973 = vmatprep.subr.mxu0 %v7499_v36  ;;  %8599 = vmatprep.subr.mxu1 %v8781_v63  ;;  %v6226_v36 = vld [vmem:[%s15206_s10 + $0x20] sm:$0xff] }
 0x7a0   :  { %7974 = vmatpush3.msra.mxu0 %v7483_v43  ;;  %8600 = vmatpush3.msra.mxu1 %v6228_v51  ;;  %v6225_v43 = vld [vmem:[%s15206_s10 + $0x18] sm:$0xff] }
 0x7a1   :  { %7975 = vmatprep.subr.mxu0 %v7498_v27  ;;  %8601 = vmatprep.subr.mxu1 %v8781_v63  ;;  %v6224_v27 = vld [vmem:[%s15206_s10 + $0x10] sm:$0xff] }
 0x7a2   :  { %7976 = vmatpush3.msra.mxu0 %v7482_v61  ;;  %v6223_v61 = vld [vmem:[%s15206_s10 + $0x8] sm:$0xff] }
 0x7a3   :  { %7977 = vmatprep.subr.mxu0 %v7497_v49  ;;  %v6222_v49 = vld [vmem:[%s15206_s10] sm:$0xff] }
 0x7a4   :  { %7978 = vmatpush3.msra.mxu0 %v7481_v5 }
 0x7a5   :  { %7979 = vmatprep.subr.mxu0 %v7496_v59 }
 0x7a6   :  { %7980 = vmatpush3.msra.mxu0 %v7480_v38 }
 0x7a7   :  { %7981 = vmatprep.subr.mxu0 %v7495_v40 }
 0x7a8   :  { %7982 = vmatpush3.msra.mxu0 %v7479_v11 }
 0x7a9   :  { %7983 = vmatprep.subr.mxu0 %v7494_v46 }
 0x7aa   :  { %7984 = vmatpush3.msra.mxu0 %v7478_v25 }
 0x7ab   :  { %7985 = vmatprep.subr.mxu0 %v7493_v41 }
 0x7ac   :  { %7986 = vmatpush3.msra.mxu0 %v7477_v29 }
 0x7ad   :  { %7987 = vmatprep.subr.mxu0 %v7492_v20 }
 0x7ae   :  { %7988 = vmatpush3.msra.mxu0 %v7476_v1 }
 0x7af   :  { %7989 = vmatprep.subr.mxu0 %v7491_v2 }
 0x7b0   :  { %7990 = vmatpush3.msra.mxu0 %v7475_v22 }
 0x7b1   :  { %7991 = vmatprep.subr.mxu0 %v7490_v52 }
 0x7b2   :  { %7992 = vmatpush3.msra.mxu0 %v7474_v55 }
 0x7b3   :  { %7993 = vmatprep.subr.mxu0 %v7489_v24  ;;  %v6319_v24 = vld [vmem:[%s15207_s12 + $0x18] sm:$0xff] }
 0x7b4   :  { %7994 = vmatpush3.msra.mxu0 %v7473_v44  ;;  %v6318_v44 = vld [vmem:[%s15207_s12 + $0x10] sm:$0xff] }
 0x7b5   :  { %7995 = vmatprep.subr.mxu0 %v7488_v45  ;;  %v6317_v45 = vld [vmem:[%s15207_s12 + $0x8] sm:$0xff] }
 0x7b6   :  { %7996 = vmatpush3.msra.mxu0 %v7472_v18  ;;  %v6316_v18 = vld [vmem:[%s15207_s12] sm:$0xff] }
 0x7b7   :  { %7997 = vmatprep.subr.mxu0 %v7487_v0  ;;  %v7566_v0 = vld [vmem:[%s15208_s11] ss:$0 sm:$0xff] }
 0x7b8   :  { %7998 = vmatpush3.msra.mxu0 %v7471_v23 }
 0x7b9   :  { %7999 = vmatprep.subr.mxu0 %v7486_v7 }
 0x7ba   :  { %8000 = vmatpush3.msra.mxu0 %v7470_v21 }
 0x7bb   :  { %6008 = vmatmul.mubr.f32.vlgmr.msra.gmra.mxu0 %v14811_v62  ;;  %8039 = vmatprep.subr.mxu0 %v7565_v33 }
 0x7bc   :  { %8040 = vmatpush3.msra.mxu0 %v7549_v48  ;;  %6214 = vmatprep.mubr.f32.mxu0 %v14806_v53  ;;  %v7550_v53 = vld [vmem:[%s15204_s9 + $0x380] sm:$0xff] }
 0x7bd   :  { %8041 = vmatprep.subr.mxu0 %v7564_v57 }
 0x7be   :  { %8042 = vmatpush3.msra.mxu0 %v7548_v4 }
 0x7bf   :  { %8043 = vmatprep.subr.mxu0 %v7563_v60 }
 0x7c0   :  { %8044 = vmatpush3.msra.mxu0 %v7547_v19  ;;  %v6412_v19 = vld [vmem:[%s15209_s14 + $0x30] sm:$0x3] }
 0x7c1   :  { %8045 = vmatprep.subr.mxu0 %v7562_v54  ;;  %v6411_v54 = vld [vmem:[%s15209_s14 + $0x28] sm:$0xff] }
 0x7c2   :  { %8046 = vmatpush3.msra.mxu0 %v7546_v14  ;;  %v6410_v14 = vld [vmem:[%s15209_s14 + $0x20] sm:$0xff] }
 0x7c3   :  { %8047 = vmatprep.subr.mxu0 %v7561_v35  ;;  %v6409_v35 = vld [vmem:[%s15209_s14 + $0x18] sm:$0xff] }
 0x7c4   :  { %8048 = vmatpush3.msra.mxu0 %v7545_v16  ;;  %v6408_v16 = vld [vmem:[%s15209_s14 + $0x10] sm:$0xff] }
 0x7c5   :  { %8049 = vmatprep.subr.mxu0 %v7560_v6  ;;  %v6407_v6 = vld [vmem:[%s15209_s14 + $0x8] sm:$0xff] }
 0x7c6   :  { %8050 = vmatpush3.msra.mxu0 %v7544_v3  ;;  %v6406_v3 = vld [vmem:[%s15209_s14] sm:$0xff] }
 0x7c7   :  { %8051 = vmatprep.subr.mxu0 %v7559_v32  ;;  %v7569_v32 = vld [vmem:[%s15210_s13] ss:$0 sm:$0xff] }
 0x7c8   :  { %8052 = vmatpush3.msra.mxu0 %v7543_v17 }
 0x7c9   :  { %8053 = vmatprep.subr.mxu0 %v7558_v39 }
 0x7ca   :  { %8054 = vmatpush3.msra.mxu0 %v7542_v9 }
 0x7cb   :  { %8055 = vmatprep.subr.mxu0 %v7557_v28 }
 0x7cc   :  { %8056 = vmatpush3.msra.mxu0 %v7541_v31 }
 0x7cd   :  { %8057 = vmatprep.subr.mxu0 %v7556_v56 }
 0x7ce   :  { %8058 = vmatpush3.msra.mxu0 %v7540_v37 }
 0x7cf   :  { %8059 = vmatprep.subr.mxu0 %v7555_v26 }
 0x7d0   :  { %8060 = vmatpush3.msra.mxu0 %v7539_v42  ;;  %v6510_v42 = vld [vmem:[%s15211_s16 + $0x30] sm:$0x3] }
 0x7d1   :  { %8061 = vmatprep.subr.mxu0 %v7554_v34  ;;  %v6509_v34 = vld [vmem:[%s15211_s16 + $0x28] sm:$0xff] }
 0x7d2   :  { %8062 = vmatpush3.msra.mxu0 %v7538_v58  ;;  %v6508_v58 = vld [vmem:[%s15211_s16 + $0x20] sm:$0xff] }
 0x7d3   :  { %8063 = vmatprep.subr.mxu0 %v7553_v50  ;;  %v6612_v50 = vld [vmem:[%s15212_s18 + $0x60] sm:$0xf] }
 0x7d4   :  { %8064 = vmatpush3.msra.mxu0 %v7537_v8  ;;  %v6507_v8 = vld [vmem:[%s15211_s16 + $0x18] sm:$0xff] }
 0x7d5   :  { %8065 = vmatprep.subr.mxu0 %v7552_v12  ;;  %v6506_v12 = vld [vmem:[%s15211_s16 + $0x10] sm:$0xff] }
 0x7d6   :  { %8066 = vmatpush3.msra.mxu0 %v7536_v13  ;;  %v6505_v13 = vld [vmem:[%s15211_s16 + $0x8] sm:$0xff] }
 0x7d7   :  { %8067 = vmatprep.subr.mxu0 %v7551_v47  ;;  %v6504_v47 = vld [vmem:[%s15211_s16] sm:$0xff] }
 0x7d8   :  { %8068 = vmatpush3.msra.mxu0 %v7535_v10  ;;  %v7572_v10 = vld [vmem:[%s15213_s15] ss:$0 sm:$0xff] }
 0x7d9   :  { %8069 = vmatprep.subr.mxu0 %v7550_v53 }
 0x7da   :  { %8070 = vmatpush3.msra.mxu0 %v7534_v15 }
 0x7db   :  { %6215 = vmatmul.mubr.f32.vlgmr.msra.gmra.mxu0 %v14811_v62  ;;  %8644 = vmatprep.subr.mxu0 %v8781_v63  ;;  %v6227_v62 = vld [vmem:[%s15206_s10 + $0x28] sm:$0xff] }
 0x7dc   :  { %8658 = vmatprep.mubr.msk.f32.mxu0 %vm8782_vm0, %v8781_v63  ;;  %8602 = vmatpush3.msra.mxu1 %v6227_v62 }
 0x7dd   :  { %8603 = vmatprep.subr.mxu1 %v8781_v63  ;;  %8645 = vmatpush3.msk.msra.mxu0 %vm6424_vm4, %v6510_v42 }
 0x7de   :  { %8604 = vmatpush3.msra.mxu1 %v6226_v36  ;;  %8646 = vmatprep.subr.mxu0 %v8781_v63 }
 0x7df   :  { %8605 = vmatprep.subr.mxu1 %v8781_v63  ;;  %8647 = vmatpush3.msra.mxu0 %v6509_v34 }
 0x7e0   :  { %8606 = vmatpush3.msra.mxu1 %v6225_v43  ;;  %8648 = vmatprep.subr.mxu0 %v8781_v63 }
 0x7e1   :  { %8607 = vmatprep.subr.mxu1 %v8781_v63  ;;  %8649 = vmatpush3.msra.mxu0 %v6508_v58 }
 0x7e2   :  { %8608 = vmatpush3.msra.mxu1 %v6224_v27  ;;  %8650 = vmatprep.subr.mxu0 %v8781_v63 }
 0x7e3   :  { %8609 = vmatprep.subr.mxu1 %v8781_v63  ;;  %8651 = vmatpush3.msra.mxu0 %v6507_v8 }
 0x7e4   :  { %8610 = vmatpush3.msra.mxu1 %v6223_v61  ;;  %8652 = vmatprep.subr.mxu0 %v8781_v63  ;;  %v6611_v61 = vld [vmem:[%s15212_s18 + $0x58] sm:$0xff] }
 0x7e5   :  { %8611 = vmatprep.subr.mxu1 %v8781_v63  ;;  %8653 = vmatpush3.msra.mxu0 %v6506_v12 }
 0x7e6   :  { %8612 = vmatpush3.msra.mxu1 %v6222_v49  ;;  %8654 = vmatprep.subr.mxu0 %v8781_v63  ;;  %v6610_v49 = vld [vmem:[%s15212_s18 + $0x50] sm:$0xff] }
 0x7e7   :  { %8616 = vmatprep.subr.mxu1 %v8781_v63  ;;  %8655 = vmatpush3.msra.mxu0 %v6505_v13 }
 0x7e8   :  { %8656 = vmatprep.subr.mxu0 %v8781_v63 }
 0x7e9   :  { %8657 = vmatpush3.msra.mxu0 %v6504_v47 }
 0x85b   :  { %v7966_v5 = vpop.f32.mrf.mxu0  ;;  %v8036_v40 = vpop.f32.mrf.mxu1 }
 0x85d   :  { %v7967_v59 = vpop.f32.mrf.mxu0  ;;  %v8037_v46 = vpop.f32.mrf.mxu1 }
 0x85e   :  { %v7968_v20 = vadd.f32 %v7967_v59, %v7966_v5  ;;  %v8038_v1 = vadd.f32 %v8037_v46, %v8036_v40  ;;  %v6609_v5 = vld [vmem:[%s15212_s18 + $0x48] sm:$0xff]  ;;  %v6608_v59 = vld [vmem:[%s15212_s18 + $0x40] sm:$0xff]  ;;  %v6606_v40 = vld [vmem:[%s15212_s18 + $0x30] sm:$0xff] }
 0x85f   :  { %v6604_v46 = vld [vmem:[%s15212_s18 + $0x20] sm:$0xff] }
 0x87b   :  { %v8001_v38 = vpop.f32.mrf.mxu0 }
 0x87d   :  { %v8002_v11 = vpop.f32.mrf.mxu0 }
 0x87e   :  { %v8003_v41 = vadd.f32 %v8002_v11, %v8001_v38  ;;  %v6607_v38 = vld [vmem:[%s15212_s18 + $0x38] sm:$0xff]  ;;  %v6605_v11 = vld [vmem:[%s15212_s18 + $0x28] sm:$0xff] }
 0x880   :  { %v6013_v22 = vmax.f32 %v7968_v20, %v8003_v41  ;;  %v6602_v41 = vld [vmem:[%s15212_s18 + $0x10] sm:$0xff]  ;;  %v6600_v20 = vld [vmem:[%s15212_s18] sm:$0xff] }
 0x89b   :  { %v8071_v25 = vpop.f32.mrf.mxu0 }
 0x89d   :  { %v8072_v29 = vpop.f32.mrf.mxu0 }
 0x89e   :  { %v8073_v2 = vadd.f32 %v8072_v29, %v8071_v25  ;;  %v6603_v25 = vld [vmem:[%s15212_s18 + $0x18] sm:$0xff]  ;;  %v6601_v29 = vld [vmem:[%s15212_s18 + $0x8] sm:$0xff] }
 0x8a0   :  { %v6220_v52 = vmax.f32 %v8038_v1, %v8073_v2  ;;  %v7576_v1 = vld [vmem:[%s15214_s17] ss:$0 sm:$0xff] }
 0x8a2   :  { %v6221_v55 = vmax.f32 %v6013_v22, %v6220_v52 }
 0x8a4   :  { %8614 = vmatmul.mubr.msk.f32.vlgmr.msra.gmra.mxu1 %vm2265_vm3, %v6221_v55 }
 0x8a5   :  { %8624 = vmatprep.mubr.msk.f32.mxu1 %vm8782_vm0, %v8781_v63  ;;  %8617 = vmatpush3.msra.mxu1 %v6319_v24 }
 0x8a6   :  { %8618 = vmatprep.subr.mxu1 %v8781_v63 }
 0x8a7   :  { %8619 = vmatpush3.msra.mxu1 %v6318_v44 }
 0x8a8   :  { %8620 = vmatprep.subr.mxu1 %v8781_v63 }
 0x8a9   :  { %8621 = vmatpush3.msra.mxu1 %v6317_v45 }
 0x8aa   :  { %8622 = vmatprep.subr.mxu1 %v8781_v63 }
 0x8ab   :  { %8623 = vmatpush3.msra.mxu1 %v6316_v18 }
 0x8ac   :  { %8627 = vmatprep.subr.mxu1 %v8781_v63 }
 0x964   :  { %v6306_v23 = vpop.f32.mrf.mxu1 }
 0x965   :  { %v6307_v7 = vadd.f32 %v7566_v0, %v6306_v23 }
 0x966   :  { %v8615_v21 = vpop.f32.mrf.mxu1 }
 0x967   :  { %v6311_v33 = vmin.f32 %v6307_v7, 0.0  ;;  %vm6310_vm3 = vcmp.gt.f32.partialorder %v6307_v7, 0.0 }
 0x969   :  { %v6312_v48 = vmul.f32 1.442695, %v6311_v33 }
 0x96b   :  { %8765 = vpow2.f32 %v6312_v48 }
 0x978   :  { %v8766_v57 = vpop.eup %8765 }
 0x979   :  { %v7568_v4 = vadd.f32 -1.0, %v8766_v57 }
 0x97b   :  { %v6315_v60 = vsel %vm6310_vm3, %v6307_v7, %v7568_v4 }
 0x97c   :  { %8625 = vmatmul.mubr.msk.f32.vlgmr.msra.gmra.mxu1 %vm2269_vm6, %v6315_v60 }
 0x97d   :  { %8641 = vmatprep.mubr.msk.f32.mxu1 %vm8782_vm0, %v8781_v63  ;;  %8628 = vmatpush3.msk.msra.mxu1 %vm6424_vm4, %v6412_v19 }
 0x97e   :  { %8629 = vmatprep.subr.mxu1 %v8781_v63 }
 0x97f   :  { %8630 = vmatpush3.msra.mxu1 %v6411_v54 }
 0x980   :  { %8631 = vmatprep.subr.mxu1 %v8781_v63 }
 0x981   :  { %8632 = vmatpush3.msra.mxu1 %v6410_v14 }
 0x982   :  { %8633 = vmatprep.subr.mxu1 %v8781_v63 }
 0x983   :  { %8634 = vmatpush3.msra.mxu1 %v6409_v35 }
 0x984   :  { %8635 = vmatprep.subr.mxu1 %v8781_v63 }
 0x985   :  { %8636 = vmatpush3.msra.mxu1 %v6408_v16 }
 0x986   :  { %8637 = vmatprep.subr.mxu1 %v8781_v63 }
 0x987   :  { %8638 = vmatpush3.msra.mxu1 %v6407_v6 }
 0x988   :  { %8639 = vmatprep.subr.mxu1 %v8781_v63 }
 0x989   :  { %8640 = vmatpush3.msra.mxu1 %v6406_v3 }
 0x98a   :  { %8661 = vmatprep.subr.mxu1 %v8781_v63 }
 0xa3c   :  { %v6396_v17 = vpop.f32.mrf.mxu1 }
 0xa3d   :  { %v6397_v39 = vadd.f32 %v7569_v32, %v6396_v17 }
 0xa3e   :  { %v8626_v9 = vpop.f32.mrf.mxu1 }
 0xa3f   :  { %v6401_v28 = vmin.f32 %v6397_v39, 0.0  ;;  %vm6400_vm6 = vcmp.gt.f32.partialorder %v6397_v39, 0.0 }
 0xa41   :  { %v6402_v31 = vmul.f32 1.442695, %v6401_v28 }
 0xa43   :  { %8767 = vpow2.f32 %v6402_v31 }
 0xa50   :  { %v8768_v56 = vpop.eup %8767 }
 0xa51   :  { %v7571_v37 = vadd.f32 -1.0, %v8768_v56 }
 0xa53   :  { %v6405_v26 = vsel %vm6400_vm6, %v6397_v39, %v7571_v37 }
 0xa54   :  { %8642 = vmatmul.mubr.msk.f32.vlgmr.msra.gmra.mxu1 %vm6420_vm5, %v6405_v26 }
 0xa55   :  { %8687 = vmatprep.mubr.msk.f32.mxu1 %vm8782_vm0, %v8781_v63  ;;  %8662 = vmatpush3.msk.msra.mxu1 %vm6624_vm7, %v6612_v50 }
 0xa56   :  { %8663 = vmatprep.subr.mxu1 %v8781_v63 }
 0xa57   :  { %8664 = vmatpush3.msra.mxu1 %v6611_v61 }
 0xa58   :  { %8665 = vmatprep.subr.mxu1 %v8781_v63 }
 0xa59   :  { %8666 = vmatpush3.msra.mxu1 %v6610_v49 }
 0xa5a   :  { %8667 = vmatprep.subr.mxu1 %v8781_v63 }
 0xa5b   :  { %8668 = vmatpush3.msra.mxu1 %v6609_v5 }
 0xa5c   :  { %8669 = vmatprep.subr.mxu1 %v8781_v63 }
 0xa5d   :  { %8670 = vmatpush3.msra.mxu1 %v6608_v59 }
 0xa5e   :  { %8671 = vmatprep.subr.mxu1 %v8781_v63 }
 0xa5f   :  { %8672 = vmatpush3.msra.mxu1 %v6607_v38 }
 0xa60   :  { %8673 = vmatprep.subr.mxu1 %v8781_v63 }
 0xa61   :  { %8674 = vmatpush3.msra.mxu1 %v6606_v40 }
 0xa62   :  { %8675 = vmatprep.subr.mxu1 %v8781_v63 }
 0xa63   :  { %8676 = vmatpush3.msra.mxu1 %v6605_v11 }
 0xa64   :  { %8677 = vmatprep.subr.mxu1 %v8781_v63 }
 0xa65   :  { %8678 = vmatpush3.msra.mxu1 %v6604_v46 }
 0xa66   :  { %8679 = vmatprep.subr.mxu1 %v8781_v63 }
 0xa67   :  { %8680 = vmatpush3.msra.mxu1 %v6603_v25 }
 0xa68   :  { %8681 = vmatprep.subr.mxu1 %v8781_v63 }
 0xa69   :  { %8682 = vmatpush3.msra.mxu1 %v6602_v41 }
 0xa6a   :  { %8683 = vmatprep.subr.mxu1 %v8781_v63 }
 0xa6b   :  { %8684 = vmatpush3.msra.mxu1 %v6601_v29 }
 0xa6c   :  { %8685 = vmatprep.subr.mxu1 %v8781_v63  ;;  %v7580_v63 = vld [vmem:[%s15215_s19] ss:$0 sm:$0xff] }
 0xa6d   :  { %8686 = vmatpush3.msra.mxu1 %v6600_v20 }
 0xb14   :  { %v6494_v53 = vpop.f32.mrf.mxu1 }
 0xb15   :  { %v6495_v15 = vadd.f32 %v7572_v10, %v6494_v53 }
 0xb16   :  { %v8643_v30 = vpop.f32.mrf.mxu1 }
 0xb17   :  { %v6499_v51 = vmin.f32 %v6495_v15, 0.0  ;;  %vm6498_vm0 = vcmp.gt.f32.partialorder %v6495_v15, 0.0 }
 0xb19   :  { %v6500_v62 = vmul.f32 1.442695, %v6499_v51 }
 0xb1b   :  { %8769 = vpow2.f32 %v6500_v62 }
 0xb28   :  { %v8770_v36 = vpop.eup %8769 }
 0xb29   :  { %v7575_v43 = vadd.f32 -1.0, %v8770_v36 }
 0xb2b   :  { %v6503_v27 = vsel %vm6498_vm0, %v6495_v15, %v7575_v43 }
 0xb2c   :  { %8659 = vmatmul.mubr.msk.f32.vlgmr.msra.gmra.mxu0 %vm6420_vm5, %v6503_v27 }
 0xbec   :  { %v6590_v2 = vpop.f32.mrf.mxu0 }
 0xbed   :  { %v6591_v22 = vadd.f32 %v7576_v1, %v6590_v2 }
 0xbee   :  { %v8660_v52 = vpop.f32.mrf.mxu0 }
 0xbef   :  { %v6595_v55 = vmin.f32 %v6591_v22, 0.0  ;;  %vm6594_vm9 = vcmp.gt.f32.partialorder %v6591_v22, 0.0 }
 0xbf1   :  { %v6596_v24 = vmul.f32 1.442695, %v6595_v55 }
 0xbf3   :  { %8771 = vpow2.f32 %v6596_v24 }
 0xc00   :  { %v8772_v44 = vpop.eup %8771 }
 0xc01   :  { %v7579_v45 = vadd.f32 -1.0, %v8772_v44 }
 0xc03   :  { %v6599_v18 = vsel %vm6594_vm9, %v6591_v22, %v7579_v45 }
 0xc04   :  { %8688 = vmatmul.mubr.msk.f32.vlgmr.msra.gmra.mxu1 %vm6620_vm8, %v6599_v18 }
 0xcc4   :  { %v6694_v0 = vpop.f32.mrf.mxu1 }
 0xcc5   :  { %v6695_v23 = vadd.f32 %v7580_v63, %v6694_v0 }
 0xcc6   :  { %v8689_v7 = vpop.f32.mrf.mxu1 }
 0xcc7   :  { %6698 = vst [vmem:[%s15216_s20] sm:$0xff] %v6695_v23 }

</bundles_post_ra>
